<compile_context>
chip_gen: v7x
topology: tpu7x:2x2x1
jax: 0.10.0
libtpu: 0.0.40
codegen_flags: <defaults>
</compile_context>

<pallas_src>
import functools

import numpy as np
import jax
import jax.numpy as jnp
from jax.experimental import pallas as pl
from jax.experimental.pallas import tpu as pltpu


# ----------------------------------------------------------------------------
# Fused forward kernel: one grid step = Bt batch elements
# ----------------------------------------------------------------------------
def _layernorm(z, g, b, eps):
    mean = jnp.mean(z, axis=-1, keepdims=True)
    var = jnp.mean(jnp.square(z - mean), axis=-1, keepdims=True)   # biased var (PyTorch LayerNorm)
    return (z - mean) * jax.lax.rsqrt(var + eps) * g + b


def _fused_forward_kernel(
    x_ref, w_in_ref, pos_ref,
    w_qkv_ref, b_qkv_ref, w_o_ref, b_o_ref, ln1_g_ref, ln1_b_ref,
    w_ff1_ref, b_ff1_ref, w_ff2_ref, b_ff2_ref, ln2_g_ref, ln2_b_ref,
    w_out_ref, b_out_ref,
    o_ref,
    *, num_layers, nhead, bt, seq, scale, eps):
    f32 = jnp.float32
    din = x_ref.shape[-1]
    d = w_in_ref.shape[-1]
    dh = d // nhead
    n_tok = bt * seq

    def mdot(a, w_ref_slice):
        # matmul in the weight dtype (f32 or bf16), accumulate in f32 on the MXU
        w = w_ref_slice
        return jnp.dot(a.astype(w.dtype), w, preferred_element_type=f32)

    # ---- input projection + positional encoding (b_in pre-folded into pos) ----
    x = x_ref[...].reshape(n_tok, din).astype(f32)                      # (Bt*S, Din)
    h = mdot(x, w_in_ref[...])                                          # (Bt*S, D)
    pos = pos_ref[...].astype(f32)                                      # (S, D)
    h = (h.reshape(bt, seq, d) + pos).reshape(n_tok, d)

    # TODO(synk): static unroll over layers; switch to lax.fori_loop over the stacked
    # L axis once num_layers grows (bounds vreg live ranges / code size).
    for l in range(num_layers):
        # ---- fused QKV projection: one lane-dense (D, 3D) matmul ----
        qkv = mdot(h, w_qkv_ref[l]) + b_qkv_ref[l].astype(f32)          # (Bt*S, 3D)

        # ---- per-head attention, batched over the Bt sequences ----
        heads = []
        for hd in range(nhead):                                         # static unroll (small H)
            q = qkv[:, hd * dh:(hd + 1) * dh] * scale                   # scale hoisted onto q
            k = qkv[:, d + hd * dh:d + (hd + 1) * dh]
            v = qkv[:, 2 * d + hd * dh:2 * d + (hd + 1) * dh]
            q3 = q.reshape(bt, seq, dh)
            k3 = k.reshape(bt, seq, dh)
            v3 = v.reshape(bt, seq, dh)
            s = jnp.einsum('bqd,bkd->bqk', q3, k3,
                           preferred_element_type=f32)                  # (Bt, S, S)
            m = jnp.max(s, axis=-1, keepdims=True)
            p = jnp.exp(s - m)
            denom = jnp.sum(p, axis=-1, keepdims=True)
            p = p * pl.reciprocal(denom, approx=False)                  # EUP slot; exact
            oh = jnp.einsum('bqk,bkd->bqd', p, v3,
                            preferred_element_type=f32)                 # (Bt, S, Dh)
            heads.append(oh.reshape(n_tok, dh))
        o_cat = jnp.concatenate(heads, axis=-1)                         # (Bt*S, D)

        # ---- attention output projection: one (D, D) matmul ----
        attn = mdot(o_cat, w_o_ref[l]) + b_o_ref[l].astype(f32)
        # TODO(synk): dropout from TransformerEncoderLayer is identity in eval mode; omitted.
        h = _layernorm(h + attn, ln1_g_ref[l].astype(f32), ln1_b_ref[l].astype(f32), eps)

        # ---- feed-forward (ReLU) ----
        ff = mdot(h, w_ff1_ref[l]) + b_ff1_ref[l].astype(f32)
        ff = jnp.maximum(ff, 0.0)
        ff = mdot(ff, w_ff2_ref[l]) + b_ff2_ref[l].astype(f32)
        h = _layernorm(h + ff, ln2_g_ref[l].astype(f32), ln2_b_ref[l].astype(f32), eps)

    # ---- output projection (padded to a lane-dense column count) ----
    out = mdot(h, w_out_ref[...]) + b_out_ref[...].astype(f32)          # (Bt*S, Dout_pad)
    o_ref[...] = out.reshape(o_ref.shape).astype(o_ref.dtype)


# ----------------------------------------------------------------------------
# Wrapper: weight packing, batch tiling, single pallas_call
# ----------------------------------------------------------------------------
def transformer_forward(x, params, nhead, weight_dtype=jnp.float32):
    B, S, Din = x.shape
    D = params["w_in"].shape[1]
    layers = params["layers"]
    L = len(layers)
    H = nhead
    assert D % H == 0
    Dh = D // H
    FF = layers[0]["w_ff1"].shape[1]
    assert S == params["pos"].shape[0], "sequence_length must equal input_dim (positional encoding)"

    f32 = jnp.float32

    # --- batch tiling: Bt*S ~ 128 rows per grid step (full MXU M-tile, fewer steps) ---
    bt = max(1, min(B, max(1, 128 // S)))
    B_pad = ((B + bt - 1) // bt) * bt
    if B_pad != B:
        x = jnp.concatenate([x, jnp.zeros((B_pad - B, S, Din), x.dtype)], axis=0)

    def stack(fn):
        return jnp.stack([fn(p) for p in layers], axis=0)

    # fused QKV / dense per-layer weights (stacked along L)
    w_qkv = stack(lambda p: p["w_qkv"]).astype(weight_dtype)            # (L, D, 3D)
    b_qkv = stack(lambda p: p["b_qkv"].reshape(1, 3 * D)).astype(f32)   # (L, 1, 3D)
    w_o = stack(lambda p: p["w_o"]).astype(weight_dtype)                # (L, D, D)
    b_o = stack(lambda p: p["b_o"].reshape(1, D)).astype(f32)
    ln1_g = stack(lambda p: p["ln1_g"].reshape(1, D)).astype(f32)
    ln1_b = stack(lambda p: p["ln1_b"].reshape(1, D)).astype(f32)
    ln2_g = stack(lambda p: p["ln2_g"].reshape(1, D)).astype(f32)
    ln2_b = stack(lambda p: p["ln2_b"].reshape(1, D)).astype(f32)
    w_ff1 = stack(lambda p: p["w_ff1"]).astype(weight_dtype)            # (L, D, FF)
    b_ff1 = stack(lambda p: p["b_ff1"].reshape(1, FF)).astype(f32)
    w_ff2 = stack(lambda p: p["w_ff2"]).astype(weight_dtype)            # (L, FF, D)
    b_ff2 = stack(lambda p: p["b_ff2"].reshape(1, D)).astype(f32)

    w_in = params["w_in"].astype(weight_dtype)                          # (Din, D)
    # fold b_in into the (learnable) positional encoding: one fewer add per step
    pos_b = (params["pos"] + params["b_in"][None, :]).astype(f32)       # (S, D)

    # lane-dense output: pad output columns to a multiple of 128
    Dout_pad = ((Din + 127) // 128) * 128
    w_out_p = jnp.zeros((D, Dout_pad), f32).at[:, :Din].set(params["w_out"]).astype(weight_dtype)
    b_out_p = jnp.zeros((1, Dout_pad), f32).at[0, :Din].set(params["b_out"])

    weights = [w_in, pos_b,
               w_qkv, b_qkv, w_o, b_o, ln1_g, ln1_b,
               w_ff1, b_ff1, w_ff2, b_ff2, ln2_g, ln2_b,
               w_out_p, b_out_p]

    def const_spec(a):
        nd = a.ndim
        return pl.BlockSpec(a.shape, lambda i, _nd=nd: (0,) * _nd)      # fetched once, VMEM-resident

    kernel = functools.partial(
        _fused_forward_kernel,
        num_layers=L, nhead=H, bt=bt, seq=S,
        scale=1.0 / float(np.sqrt(Dh)), eps=1e-5)

    out = pl.pallas_call(
        kernel,
        grid=(B_pad // bt,),
        in_specs=[pl.BlockSpec((bt, S, Din), lambda i: (i, 0, 0))]
                 + [const_spec(a) for a in weights],
        out_specs=pl.BlockSpec((bt, S, Dout_pad), lambda i: (i, 0, 0)),
        out_shape=jax.ShapeDtypeStruct((B_pad, S, Dout_pad), x.dtype),
        compiler_params=pltpu.CompilerParams(
            dimension_semantics=("parallel",),          # batch-tile axis feeds both v7x TCs
            vmem_limit_bytes=48 * 1024 * 1024),
    )(x, *weights)

    return out[:B, :, :Din]


# ----------------------------------------------------------------------------
# Deterministic parameter init (synthetic; shapes follow the PyTorch __init__)
# ----------------------------------------------------------------------------
def init_params(key, input_dim, d_model, nhead, num_layers, dim_ff):
    def dense(k, din, dout):
        kw, kb = jax.random.split(k)
        w = jax.random.normal(kw, (din, dout), jnp.float32) * (1.0 / np.sqrt(din))
        b = jax.random.normal(kb, (dout,), jnp.float32) * 0.01
        return w, b

    keys = jax.random.split(key, num_layers + 3)
    params = {}
    params["w_in"], params["b_in"] = dense(keys[0], input_dim, d_model)
    # positional_encoding is a learnable Parameter (1, input_dim, d_model); init small nonzero here.
    params["pos"] = jax.random.normal(keys[1], (input_dim, d_model), jnp.float32) * 0.02
    layers = []
    for l in range(num_layers):
        lk = jax.random.split(keys[2 + l], 4)
        p = {}
        p["w_qkv"], p["b_qkv"] = dense(lk[0], d_model, 3 * d_model)
        p["w_o"], p["b_o"] = dense(lk[1], d_model, d_model)
        p["w_ff1"], p["b_ff1"] = dense(lk[2], d_model, dim_ff)
        p["w_ff2"], p["b_ff2"] = dense(lk[3], dim_ff, d_model)
        p["ln1_g"] = jnp.ones((d_model,), jnp.float32)
        p["ln1_b"] = jnp.zeros((d_model,), jnp.float32)
        p["ln2_g"] = jnp.ones((d_model,), jnp.float32)
        p["ln2_b"] = jnp.zeros((d_model,), jnp.float32)
        layers.append(p)
    params["layers"] = layers
    params["w_out"], params["b_out"] = dense(keys[2 + num_layers], d_model, input_dim)
    return params


# ----------------------------------------------------------------------------
# Pure-JAX reference (for correctness check)
# ----------------------------------------------------------------------------
def _ref_layernorm(z, g, b, eps=1e-5):
    mean = jnp.mean(z, axis=-1, keepdims=True)
    var = jnp.mean(jnp.square(z - mean), axis=-1, keepdims=True)
    return (z - mean) * jax.lax.rsqrt(var + eps) * g + b


def ref_forward(x, params, nhead):
    B, S, Din = x.shape
    h = x @ params["w_in"] + params["b_in"] + params["pos"][None]
    for p in params["layers"]:
        D = h.shape[-1]
        Dh = D // nhead
        qkv = (h @ p["w_qkv"] + p["b_qkv"]).reshape(B, S, 3, nhead, Dh)
        q = jnp.transpose(qkv[:, :, 0], (0, 2, 1, 3))
        k = jnp.transpose(qkv[:, :, 1], (0, 2, 1, 3))
        v = jnp.transpose(qkv[:, :, 2], (0, 2, 1, 3))
        s = jnp.einsum("bhqd,bhkd->bhqk", q, k) / np.sqrt(Dh)
        a = jax.nn.softmax(s, axis=-1)
        o = jnp.einsum("bhqk,bhkd->bhqd", a, v)
        o = jnp.transpose(o, (0, 2, 1, 3)).reshape(B, S, D)
        attn_out = o @ p["w_o"] + p["b_o"]
        h = _ref_layernorm(h + attn_out, p["ln1_g"], p["ln1_b"])
        ff = jnp.maximum(h @ p["w_ff1"] + p["b_ff1"], 0.0) @ p["w_ff2"] + p["b_ff2"]
        h = _ref_layernorm(h + ff, p["ln2_g"], p["ln2_b"])
    return h @ params["w_out"] + params["b_out"]


# ----------------------------------------------------------------------------
if __name__ == "__main__":
    # sequence_length must equal input_dim for the (1, input_dim, d_model)
    # positional-encoding broadcast to be valid (as in the PyTorch module).
    B = 12                      # not a multiple of Bt=8 -> exercises the pad/slice path
    input_dim = 16
    seq_len = input_dim
    d_model = 32
    nhead = 4
    num_layers = 2
    dim_ff = 64

    key = jax.random.PRNGKey(0)
    kx, kp = jax.random.split(key)
    x = jax.random.normal(kx, (B, seq_len, input_dim), jnp.float32)
    params = init_params(kp, input_dim, d_model, nhead, num_layers, dim_ff)

    fwd = jax.jit(transformer_forward, static_argnums=2)
    out = jax.block_until_ready(fwd(x, params, nhead))

    ref = ref_forward(x, params, nhead)
    np.testing.assert_allclose(np.asarray(out), np.asarray(ref), rtol=1e-4, atol=1e-4)
    assert out.shape == (B, seq_len, input_dim)
    print("KERNEL_OK")
</pallas_src>

<mosaic_0001>
module attributes {stable_mosaic.version = 11 : i64} {
  func.func @_fused_forward_kernel(%arg0: i32, %arg1: memref<8x16x16xf32, #tpu.memory_space<vmem>>, %arg2: memref<16x32xf32, #tpu.memory_space<vmem>>, %arg3: memref<16x32xf32, #tpu.memory_space<vmem>>, %arg4: memref<2x32x96xf32, #tpu.memory_space<vmem>>, %arg5: memref<2x1x96xf32, #tpu.memory_space<vmem>>, %arg6: memref<2x32x32xf32, #tpu.memory_space<vmem>>, %arg7: memref<2x1x32xf32, #tpu.memory_space<vmem>>, %arg8: memref<2x1x32xf32, #tpu.memory_space<vmem>>, %arg9: memref<2x1x32xf32, #tpu.memory_space<vmem>>, %arg10: memref<2x32x64xf32, #tpu.memory_space<vmem>>, %arg11: memref<2x1x64xf32, #tpu.memory_space<vmem>>, %arg12: memref<2x64x32xf32, #tpu.memory_space<vmem>>, %arg13: memref<2x1x32xf32, #tpu.memory_space<vmem>>, %arg14: memref<2x1x32xf32, #tpu.memory_space<vmem>>, %arg15: memref<2x1x32xf32, #tpu.memory_space<vmem>>, %arg16: memref<32x128xf32, #tpu.memory_space<vmem>>, %arg17: memref<1x128xf32, #tpu.memory_space<vmem>>, %arg18: memref<8x16x128xf32, #tpu.memory_space<vmem>>) attributes {dimension_semantics = [#tpu.dimension_semantics<parallel>], iteration_bounds = array<i64: 2>, scalar_prefetch = 0 : i64, scratch_operands = 0 : i64, tpu.core_type = #tpu.core_type<tc>, window_params = [{transform_indices = @transform_0, window_bounds = array<i64: 8, 16, 16>}, {pipeline_mode = #tpu.pipeline_mode<synchronous>, transform_indices = @transform_1, window_bounds = array<i64: 16, 32>}, {pipeline_mode = #tpu.pipeline_mode<synchronous>, transform_indices = @transform_2, window_bounds = array<i64: 16, 32>}, {pipeline_mode = #tpu.pipeline_mode<synchronous>, transform_indices = @transform_3, window_bounds = array<i64: 2, 32, 96>}, {pipeline_mode = #tpu.pipeline_mode<synchronous>, transform_indices = @transform_4, window_bounds = array<i64: 2, 1, 96>}, {pipeline_mode = #tpu.pipeline_mode<synchronous>, transform_indices = @transform_5, window_bounds = array<i64: 2, 32, 32>}, {pipeline_mode = #tpu.pipeline_mode<synchronous>, transform_indices = @transform_6, window_bounds = array<i64: 2, 1, 32>}, {pipeline_mode = #tpu.pipeline_mode<synchronous>, transform_indices = @transform_7, window_bounds = array<i64: 2, 1, 32>}, {pipeline_mode = #tpu.pipeline_mode<synchronous>, transform_indices = @transform_8, window_bounds = array<i64: 2, 1, 32>}, {pipeline_mode = #tpu.pipeline_mode<synchronous>, transform_indices = @transform_9, window_bounds = array<i64: 2, 32, 64>}, {pipeline_mode = #tpu.pipeline_mode<synchronous>, transform_indices = @transform_10, window_bounds = array<i64: 2, 1, 64>}, {pipeline_mode = #tpu.pipeline_mode<synchronous>, transform_indices = @transform_11, window_bounds = array<i64: 2, 64, 32>}, {pipeline_mode = #tpu.pipeline_mode<synchronous>, transform_indices = @transform_12, window_bounds = array<i64: 2, 1, 32>}, {pipeline_mode = #tpu.pipeline_mode<synchronous>, transform_indices = @transform_13, window_bounds = array<i64: 2, 1, 32>}, {pipeline_mode = #tpu.pipeline_mode<synchronous>, transform_indices = @transform_14, window_bounds = array<i64: 2, 1, 32>}, {pipeline_mode = #tpu.pipeline_mode<synchronous>, transform_indices = @transform_15, window_bounds = array<i64: 32, 128>}, {pipeline_mode = #tpu.pipeline_mode<synchronous>, transform_indices = @transform_16, window_bounds = array<i64: 1, 128>}, {transform_indices = @transform_17, window_bounds = array<i64: 8, 16, 128>}]} {
    %c0 = arith.constant 0 : index
    %c0_0 = arith.constant 0 : index
    %c0_1 = arith.constant 0 : index
    %0 = vector.load %arg1[%c0, %c0_0, %c0_1] : memref<8x16x16xf32, #tpu.memory_space<vmem>>, vector<8x16x16xf32>
    %1 = vector.shape_cast %0 : vector<8x16x16xf32> to vector<128x16xf32>
    %c0_2 = arith.constant 0 : index
    %c0_3 = arith.constant 0 : index
    %2 = vector.load %arg2[%c0_2, %c0_3] : memref<16x32xf32, #tpu.memory_space<vmem>>, vector<16x32xf32>
    %cst = arith.constant dense<0.000000e+00> : vector<128x32xf32>
    %3 = tpu.matmul %1, %2, %cst {dimension_numbers = #tpu.dot_dimension_numbers<[1], [0], [0], [1], [0, 0, 1, 1], [], []>} : vector<128x16xf32>, vector<16x32xf32>, vector<128x32xf32> -> vector<128x32xf32>
    %c0_4 = arith.constant 0 : index
    %c0_5 = arith.constant 0 : index
    %4 = vector.load %arg3[%c0_4, %c0_5] : memref<16x32xf32, #tpu.memory_space<vmem>>, vector<16x32xf32>
    %5 = vector.shape_cast %3 : vector<128x32xf32> to vector<8x16x32xf32>
    %6 = vector.shape_cast %4 : vector<16x32xf32> to vector<1x16x32xf32>
    %7 = vector.broadcast %6 : vector<1x16x32xf32> to vector<8x16x32xf32>
    %8 = arith.addf %5, %7 : vector<8x16x32xf32>
    %9 = vector.shape_cast %8 : vector<8x16x32xf32> to vector<128x32xf32>
    %c0_6 = arith.constant 0 : index
    %c0_7 = arith.constant 0 : index
    %c0_8 = arith.constant 0 : index
    %10 = vector.load %arg4[%c0_6, %c0_7, %c0_8] : memref<2x32x96xf32, #tpu.memory_space<vmem>>, vector<1x32x96xf32>
    %11 = vector.shape_cast %10 : vector<1x32x96xf32> to vector<32x96xf32>
    %cst_9 = arith.constant dense<0.000000e+00> : vector<128x96xf32>
    %12 = tpu.matmul %9, %11, %cst_9 {dimension_numbers = #tpu.dot_dimension_numbers<[1], [0], [0], [1], [0, 0, 1, 1], [], []>} : vector<128x32xf32>, vector<32x96xf32>, vector<128x96xf32> -> vector<128x96xf32>
    %c0_10 = arith.constant 0 : index
    %c0_11 = arith.constant 0 : index
    %c0_12 = arith.constant 0 : index
    %13 = vector.load %arg5[%c0_10, %c0_11, %c0_12] : memref<2x1x96xf32, #tpu.memory_space<vmem>>, vector<1x1x96xf32>
    %14 = vector.shape_cast %13 : vector<1x1x96xf32> to vector<1x96xf32>
    %15 = vector.broadcast %14 : vector<1x96xf32> to vector<128x96xf32>
    %16 = arith.addf %12, %15 : vector<128x96xf32>
    %17 = vector.extract_strided_slice %16 {offsets = [0, 0], sizes = [128, 8], strides = [1, 1]} : vector<128x96xf32> to vector<128x8xf32>
    %cst_13 = arith.constant 0.353553385 : f32
    %18 = vector.broadcast %cst_13 : f32 to vector<128x8xf32>
    %19 = arith.mulf %17, %18 : vector<128x8xf32>
    %20 = vector.extract_strided_slice %16 {offsets = [0, 32], sizes = [128, 8], strides = [1, 1]} : vector<128x96xf32> to vector<128x8xf32>
    %21 = vector.extract_strided_slice %16 {offsets = [0, 64], sizes = [128, 8], strides = [1, 1]} : vector<128x96xf32> to vector<128x8xf32>
    %22 = vector.shape_cast %19 : vector<128x8xf32> to vector<8x16x8xf32>
    %23 = vector.shape_cast %20 : vector<128x8xf32> to vector<8x16x8xf32>
    %24 = vector.shape_cast %21 : vector<128x8xf32> to vector<8x16x8xf32>
    "tpu.trace_start"() <{level = 10 : i32, message = "bqd,bkd->bqk"}> : () -> ()
    %cst_14 = arith.constant dense<0.000000e+00> : vector<8x16x16xf32>
    %25 = tpu.matmul %22, %23, %cst_14 {dimension_numbers = #tpu.dot_dimension_numbers<[2], [2], [1], [1], [0, 0, 0, 1, 1, 1], [0], [0]>} : vector<8x16x8xf32>, vector<8x16x8xf32>, vector<8x16x16xf32> -> vector<8x16x16xf32>
    "tpu.trace_stop"() : () -> ()
    %cst_15 = arith.constant dense<0xFF800000> : vector<8x16xf32>
    %26 = vector.multi_reduction <maximumf>, %25, %cst_15 [2] : vector<8x16x16xf32> to vector<8x16xf32>
    %27 = vector.shape_cast %26 : vector<8x16xf32> to vector<8x16x1xf32>
    %28 = vector.broadcast %27 : vector<8x16x1xf32> to vector<8x16x16xf32>
    %29 = arith.subf %25, %28 : vector<8x16x16xf32>
    %30 = math.exp %29 : vector<8x16x16xf32>
    %cst_16 = arith.constant dense<0.000000e+00> : vector<8x16xf32>
    %31 = vector.multi_reduction <add>, %30, %cst_16 [2] : vector<8x16x16xf32> to vector<8x16xf32>
    %32 = vector.shape_cast %31 : vector<8x16xf32> to vector<8x16x1xf32>
    %33 = tpu.reciprocal %32 : vector<8x16x1xf32> -> vector<8x16x1xf32>
    %34 = vector.broadcast %33 : vector<8x16x1xf32> to vector<8x16x16xf32>
    %35 = arith.mulf %30, %34 : vector<8x16x16xf32>
    "tpu.trace_start"() <{level = 10 : i32, message = "bqk,bkd->bqd"}> : () -> ()
    %cst_17 = arith.constant dense<0.000000e+00> : vector<8x16x8xf32>
    %36 = tpu.matmul %35, %24, %cst_17 {dimension_numbers = #tpu.dot_dimension_numbers<[2], [1], [1], [2], [0, 0, 0, 1, 1, 2], [0], [0]>} : vector<8x16x16xf32>, vector<8x16x8xf32>, vector<8x16x8xf32> -> vector<8x16x8xf32>
    "tpu.trace_stop"() : () -> ()
    %37 = vector.shape_cast %36 : vector<8x16x8xf32> to vector<128x8xf32>
    %38 = vector.extract_strided_slice %16 {offsets = [0, 8], sizes = [128, 8], strides = [1, 1]} : vector<128x96xf32> to vector<128x8xf32>
    %cst_18 = arith.constant 0.353553385 : f32
    %39 = vector.broadcast %cst_18 : f32 to vector<128x8xf32>
    %40 = arith.mulf %38, %39 : vector<128x8xf32>
    %41 = vector.extract_strided_slice %16 {offsets = [0, 40], sizes = [128, 8], strides = [1, 1]} : vector<128x96xf32> to vector<128x8xf32>
    %42 = vector.extract_strided_slice %16 {offsets = [0, 72], sizes = [128, 8], strides = [1, 1]} : vector<128x96xf32> to vector<128x8xf32>
    %43 = vector.shape_cast %40 : vector<128x8xf32> to vector<8x16x8xf32>
    %44 = vector.shape_cast %41 : vector<128x8xf32> to vector<8x16x8xf32>
    %45 = vector.shape_cast %42 : vector<128x8xf32> to vector<8x16x8xf32>
    "tpu.trace_start"() <{level = 10 : i32, message = "bqd,bkd->bqk"}> : () -> ()
    %cst_19 = arith.constant dense<0.000000e+00> : vector<8x16x16xf32>
    %46 = tpu.matmul %43, %44, %cst_19 {dimension_numbers = #tpu.dot_dimension_numbers<[2], [2], [1], [1], [0, 0, 0, 1, 1, 1], [0], [0]>} : vector<8x16x8xf32>, vector<8x16x8xf32>, vector<8x16x16xf32> -> vector<8x16x16xf32>
    "tpu.trace_stop"() : () -> ()
    %cst_20 = arith.constant dense<0xFF800000> : vector<8x16xf32>
    %47 = vector.multi_reduction <maximumf>, %46, %cst_20 [2] : vector<8x16x16xf32> to vector<8x16xf32>
    %48 = vector.shape_cast %47 : vector<8x16xf32> to vector<8x16x1xf32>
    %49 = vector.broadcast %48 : vector<8x16x1xf32> to vector<8x16x16xf32>
    %50 = arith.subf %46, %49 : vector<8x16x16xf32>
    %51 = math.exp %50 : vector<8x16x16xf32>
    %cst_21 = arith.constant dense<0.000000e+00> : vector<8x16xf32>
    %52 = vector.multi_reduction <add>, %51, %cst_21 [2] : vector<8x16x16xf32> to vector<8x16xf32>
    %53 = vector.shape_cast %52 : vector<8x16xf32> to vector<8x16x1xf32>
    %54 = tpu.reciprocal %53 : vector<8x16x1xf32> -> vector<8x16x1xf32>
    %55 = vector.broadcast %54 : vector<8x16x1xf32> to vector<8x16x16xf32>
    %56 = arith.mulf %51, %55 : vector<8x16x16xf32>
    "tpu.trace_start"() <{level = 10 : i32, message = "bqk,bkd->bqd"}> : () -> ()
    %cst_22 = arith.constant dense<0.000000e+00> : vector<8x16x8xf32>
    %57 = tpu.matmul %56, %45, %cst_22 {dimension_numbers = #tpu.dot_dimension_numbers<[2], [1], [1], [2], [0, 0, 0, 1, 1, 2], [0], [0]>} : vector<8x16x16xf32>, vector<8x16x8xf32>, vector<8x16x8xf32> -> vector<8x16x8xf32>
    "tpu.trace_stop"() : () -> ()
    %58 = vector.shape_cast %57 : vector<8x16x8xf32> to vector<128x8xf32>
    %59 = vector.extract_strided_slice %16 {offsets = [0, 16], sizes = [128, 8], strides = [1, 1]} : vector<128x96xf32> to vector<128x8xf32>
    %cst_23 = arith.constant 0.353553385 : f32
    %60 = vector.broadcast %cst_23 : f32 to vector<128x8xf32>
    %61 = arith.mulf %59, %60 : vector<128x8xf32>
    %62 = vector.extract_strided_slice %16 {offsets = [0, 48], sizes = [128, 8], strides = [1, 1]} : vector<128x96xf32> to vector<128x8xf32>
    %63 = vector.extract_strided_slice %16 {offsets = [0, 80], sizes = [128, 8], strides = [1, 1]} : vector<128x96xf32> to vector<128x8xf32>
    %64 = vector.shape_cast %61 : vector<128x8xf32> to vector<8x16x8xf32>
    %65 = vector.shape_cast %62 : vector<128x8xf32> to vector<8x16x8xf32>
    %66 = vector.shape_cast %63 : vector<128x8xf32> to vector<8x16x8xf32>
    "tpu.trace_start"() <{level = 10 : i32, message = "bqd,bkd->bqk"}> : () -> ()
    %cst_24 = arith.constant dense<0.000000e+00> : vector<8x16x16xf32>
    %67 = tpu.matmul %64, %65, %cst_24 {dimension_numbers = #tpu.dot_dimension_numbers<[2], [2], [1], [1], [0, 0, 0, 1, 1, 1], [0], [0]>} : vector<8x16x8xf32>, vector<8x16x8xf32>, vector<8x16x16xf32> -> vector<8x16x16xf32>
    "tpu.trace_stop"() : () -> ()
    %cst_25 = arith.constant dense<0xFF800000> : vector<8x16xf32>
    %68 = vector.multi_reduction <maximumf>, %67, %cst_25 [2] : vector<8x16x16xf32> to vector<8x16xf32>
    %69 = vector.shape_cast %68 : vector<8x16xf32> to vector<8x16x1xf32>
    %70 = vector.broadcast %69 : vector<8x16x1xf32> to vector<8x16x16xf32>
    %71 = arith.subf %67, %70 : vector<8x16x16xf32>
    %72 = math.exp %71 : vector<8x16x16xf32>
    %cst_26 = arith.constant dense<0.000000e+00> : vector<8x16xf32>
    %73 = vector.multi_reduction <add>, %72, %cst_26 [2] : vector<8x16x16xf32> to vector<8x16xf32>
    %74 = vector.shape_cast %73 : vector<8x16xf32> to vector<8x16x1xf32>
    %75 = tpu.reciprocal %74 : vector<8x16x1xf32> -> vector<8x16x1xf32>
    %76 = vector.broadcast %75 : vector<8x16x1xf32> to vector<8x16x16xf32>
    %77 = arith.mulf %72, %76 : vector<8x16x16xf32>
    "tpu.trace_start"() <{level = 10 : i32, message = "bqk,bkd->bqd"}> : () -> ()
    %cst_27 = arith.constant dense<0.000000e+00> : vector<8x16x8xf32>
    %78 = tpu.matmul %77, %66, %cst_27 {dimension_numbers = #tpu.dot_dimension_numbers<[2], [1], [1], [2], [0, 0, 0, 1, 1, 2], [0], [0]>} : vector<8x16x16xf32>, vector<8x16x8xf32>, vector<8x16x8xf32> -> vector<8x16x8xf32>
    "tpu.trace_stop"() : () -> ()
    %79 = vector.shape_cast %78 : vector<8x16x8xf32> to vector<128x8xf32>
    %80 = vector.extract_strided_slice %16 {offsets = [0, 24], sizes = [128, 8], strides = [1, 1]} : vector<128x96xf32> to vector<128x8xf32>
    %cst_28 = arith.constant 0.353553385 : f32
    %81 = vector.broadcast %cst_28 : f32 to vector<128x8xf32>
    %82 = arith.mulf %80, %81 : vector<128x8xf32>
    %83 = vector.extract_strided_slice %16 {offsets = [0, 56], sizes = [128, 8], strides = [1, 1]} : vector<128x96xf32> to vector<128x8xf32>
    %84 = vector.extract_strided_slice %16 {offsets = [0, 88], sizes = [128, 8], strides = [1, 1]} : vector<128x96xf32> to vector<128x8xf32>
    %85 = vector.shape_cast %82 : vector<128x8xf32> to vector<8x16x8xf32>
    %86 = vector.shape_cast %83 : vector<128x8xf32> to vector<8x16x8xf32>
    %87 = vector.shape_cast %84 : vector<128x8xf32> to vector<8x16x8xf32>
    "tpu.trace_start"() <{level = 10 : i32, message = "bqd,bkd->bqk"}> : () -> ()
    %cst_29 = arith.constant dense<0.000000e+00> : vector<8x16x16xf32>
    %88 = tpu.matmul %85, %86, %cst_29 {dimension_numbers = #tpu.dot_dimension_numbers<[2], [2], [1], [1], [0, 0, 0, 1, 1, 1], [0], [0]>} : vector<8x16x8xf32>, vector<8x16x8xf32>, vector<8x16x16xf32> -> vector<8x16x16xf32>
    "tpu.trace_stop"() : () -> ()
    %cst_30 = arith.constant dense<0xFF800000> : vector<8x16xf32>
    %89 = vector.multi_reduction <maximumf>, %88, %cst_30 [2] : vector<8x16x16xf32> to vector<8x16xf32>
    %90 = vector.shape_cast %89 : vector<8x16xf32> to vector<8x16x1xf32>
    %91 = vector.broadcast %90 : vector<8x16x1xf32> to vector<8x16x16xf32>
    %92 = arith.subf %88, %91 : vector<8x16x16xf32>
    %93 = math.exp %92 : vector<8x16x16xf32>
    %cst_31 = arith.constant dense<0.000000e+00> : vector<8x16xf32>
    %94 = vector.multi_reduction <add>, %93, %cst_31 [2] : vector<8x16x16xf32> to vector<8x16xf32>
    %95 = vector.shape_cast %94 : vector<8x16xf32> to vector<8x16x1xf32>
    %96 = tpu.reciprocal %95 : vector<8x16x1xf32> -> vector<8x16x1xf32>
    %97 = vector.broadcast %96 : vector<8x16x1xf32> to vector<8x16x16xf32>
    %98 = arith.mulf %93, %97 : vector<8x16x16xf32>
    "tpu.trace_start"() <{level = 10 : i32, message = "bqk,bkd->bqd"}> : () -> ()
    %cst_32 = arith.constant dense<0.000000e+00> : vector<8x16x8xf32>
    %99 = tpu.matmul %98, %87, %cst_32 {dimension_numbers = #tpu.dot_dimension_numbers<[2], [1], [1], [2], [0, 0, 0, 1, 1, 2], [0], [0]>} : vector<8x16x16xf32>, vector<8x16x8xf32>, vector<8x16x8xf32> -> vector<8x16x8xf32>
    "tpu.trace_stop"() : () -> ()
    %100 = vector.shape_cast %99 : vector<8x16x8xf32> to vector<128x8xf32>
    %101 = tpu.concatenate %37, %58, %79, %100 in 1 : vector<128x8xf32>, vector<128x8xf32>, vector<128x8xf32>, vector<128x8xf32> -> vector<128x32xf32>
    %c0_33 = arith.constant 0 : index
    %c0_34 = arith.constant 0 : index
    %c0_35 = arith.constant 0 : index
    %102 = vector.load %arg6[%c0_33, %c0_34, %c0_35] : memref<2x32x32xf32, #tpu.memory_space<vmem>>, vector<1x32x32xf32>
    %103 = vector.shape_cast %102 : vector<1x32x32xf32> to vector<32x32xf32>
    %cst_36 = arith.constant dense<0.000000e+00> : vector<128x32xf32>
    %104 = tpu.matmul %101, %103, %cst_36 {dimension_numbers = #tpu.dot_dimension_numbers<[1], [0], [0], [1], [0, 0, 1, 1], [], []>} : vector<128x32xf32>, vector<32x32xf32>, vector<128x32xf32> -> vector<128x32xf32>
    %c0_37 = arith.constant 0 : index
    %c0_38 = arith.constant 0 : index
    %c0_39 = arith.constant 0 : index
    %105 = vector.load %arg7[%c0_37, %c0_38, %c0_39] : memref<2x1x32xf32, #tpu.memory_space<vmem>>, vector<1x1x32xf32>
    %106 = vector.shape_cast %105 : vector<1x1x32xf32> to vector<1x32xf32>
    %107 = vector.broadcast %106 : vector<1x32xf32> to vector<128x32xf32>
    %108 = arith.addf %104, %107 : vector<128x32xf32>
    %109 = arith.addf %9, %108 : vector<128x32xf32>
    %c0_40 = arith.constant 0 : index
    %c0_41 = arith.constant 0 : index
    %c0_42 = arith.constant 0 : index
    %110 = vector.load %arg8[%c0_40, %c0_41, %c0_42] : memref<2x1x32xf32, #tpu.memory_space<vmem>>, vector<1x1x32xf32>
    %111 = vector.shape_cast %110 : vector<1x1x32xf32> to vector<1x32xf32>
    %c0_43 = arith.constant 0 : index
    %c0_44 = arith.constant 0 : index
    %c0_45 = arith.constant 0 : index
    %112 = vector.load %arg9[%c0_43, %c0_44, %c0_45] : memref<2x1x32xf32, #tpu.memory_space<vmem>>, vector<1x1x32xf32>
    %113 = vector.shape_cast %112 : vector<1x1x32xf32> to vector<1x32xf32>
    %cst_46 = arith.constant dense<0.000000e+00> : vector<128xf32>
    %114 = vector.multi_reduction <add>, %109, %cst_46 [1] : vector<128x32xf32> to vector<128xf32>
    %115 = vector.shape_cast %114 : vector<128xf32> to vector<128x1xf32>
    %cst_47 = arith.constant 3.200000e+01 : f32
    %116 = vector.broadcast %cst_47 : f32 to vector<128x1xf32>
    %117 = arith.divf %115, %116 : vector<128x1xf32>
    %118 = vector.broadcast %117 : vector<128x1xf32> to vector<128x32xf32>
    %119 = arith.subf %109, %118 : vector<128x32xf32>
    %120 = arith.mulf %119, %119 : vector<128x32xf32>
    %cst_48 = arith.constant dense<0.000000e+00> : vector<128xf32>
    %121 = vector.multi_reduction <add>, %120, %cst_48 [1] : vector<128x32xf32> to vector<128xf32>
    %122 = vector.shape_cast %121 : vector<128xf32> to vector<128x1xf32>
    %cst_49 = arith.constant 3.200000e+01 : f32
    %123 = vector.broadcast %cst_49 : f32 to vector<128x1xf32>
    %124 = arith.divf %122, %123 : vector<128x1xf32>
    %125 = vector.broadcast %117 : vector<128x1xf32> to vector<128x32xf32>
    %126 = arith.subf %109, %125 : vector<128x32xf32>
    %cst_50 = arith.constant 9.99999974E-6 : f32
    %127 = vector.broadcast %cst_50 : f32 to vector<128x1xf32>
    %128 = arith.addf %124, %127 : vector<128x1xf32>
    %129 = math.rsqrt %128 : vector<128x1xf32>
    %130 = vector.broadcast %129 : vector<128x1xf32> to vector<128x32xf32>
    %131 = arith.mulf %126, %130 : vector<128x32xf32>
    %132 = vector.broadcast %111 : vector<1x32xf32> to vector<128x32xf32>
    %133 = arith.mulf %131, %132 : vector<128x32xf32>
    %134 = vector.broadcast %113 : vector<1x32xf32> to vector<128x32xf32>
    %135 = arith.addf %133, %134 : vector<128x32xf32>
    %c0_51 = arith.constant 0 : index
    %c0_52 = arith.constant 0 : index
    %c0_53 = arith.constant 0 : index
    %136 = vector.load %arg10[%c0_51, %c0_52, %c0_53] : memref<2x32x64xf32, #tpu.memory_space<vmem>>, vector<1x32x64xf32>
    %137 = vector.shape_cast %136 : vector<1x32x64xf32> to vector<32x64xf32>
    %cst_54 = arith.constant dense<0.000000e+00> : vector<128x64xf32>
    %138 = tpu.matmul %135, %137, %cst_54 {dimension_numbers = #tpu.dot_dimension_numbers<[1], [0], [0], [1], [0, 0, 1, 1], [], []>} : vector<128x32xf32>, vector<32x64xf32>, vector<128x64xf32> -> vector<128x64xf32>
    %c0_55 = arith.constant 0 : index
    %c0_56 = arith.constant 0 : index
    %c0_57 = arith.constant 0 : index
    %139 = vector.load %arg11[%c0_55, %c0_56, %c0_57] : memref<2x1x64xf32, #tpu.memory_space<vmem>>, vector<1x1x64xf32>
    %140 = vector.shape_cast %139 : vector<1x1x64xf32> to vector<1x64xf32>
    %141 = vector.broadcast %140 : vector<1x64xf32> to vector<128x64xf32>
    %142 = arith.addf %138, %141 : vector<128x64xf32>
    %cst_58 = arith.constant 0.000000e+00 : f32
    %143 = vector.broadcast %cst_58 : f32 to vector<128x64xf32>
    %144 = arith.maximumf %142, %143 : vector<128x64xf32>
    %c0_59 = arith.constant 0 : index
    %c0_60 = arith.constant 0 : index
    %c0_61 = arith.constant 0 : index
    %145 = vector.load %arg12[%c0_59, %c0_60, %c0_61] : memref<2x64x32xf32, #tpu.memory_space<vmem>>, vector<1x64x32xf32>
    %146 = vector.shape_cast %145 : vector<1x64x32xf32> to vector<64x32xf32>
    %cst_62 = arith.constant dense<0.000000e+00> : vector<128x32xf32>
    %147 = tpu.matmul %144, %146, %cst_62 {dimension_numbers = #tpu.dot_dimension_numbers<[1], [0], [0], [1], [0, 0, 1, 1], [], []>} : vector<128x64xf32>, vector<64x32xf32>, vector<128x32xf32> -> vector<128x32xf32>
    %c0_63 = arith.constant 0 : index
    %c0_64 = arith.constant 0 : index
    %c0_65 = arith.constant 0 : index
    %148 = vector.load %arg13[%c0_63, %c0_64, %c0_65] : memref<2x1x32xf32, #tpu.memory_space<vmem>>, vector<1x1x32xf32>
    %149 = vector.shape_cast %148 : vector<1x1x32xf32> to vector<1x32xf32>
    %150 = vector.broadcast %149 : vector<1x32xf32> to vector<128x32xf32>
    %151 = arith.addf %147, %150 : vector<128x32xf32>
    %152 = arith.addf %135, %151 : vector<128x32xf32>
    %c0_66 = arith.constant 0 : index
    %c0_67 = arith.constant 0 : index
    %c0_68 = arith.constant 0 : index
    %153 = vector.load %arg14[%c0_66, %c0_67, %c0_68] : memref<2x1x32xf32, #tpu.memory_space<vmem>>, vector<1x1x32xf32>
    %154 = vector.shape_cast %153 : vector<1x1x32xf32> to vector<1x32xf32>
    %c0_69 = arith.constant 0 : index
    %c0_70 = arith.constant 0 : index
    %c0_71 = arith.constant 0 : index
    %155 = vector.load %arg15[%c0_69, %c0_70, %c0_71] : memref<2x1x32xf32, #tpu.memory_space<vmem>>, vector<1x1x32xf32>
    %156 = vector.shape_cast %155 : vector<1x1x32xf32> to vector<1x32xf32>
    %cst_72 = arith.constant dense<0.000000e+00> : vector<128xf32>
    %157 = vector.multi_reduction <add>, %152, %cst_72 [1] : vector<128x32xf32> to vector<128xf32>
    %158 = vector.shape_cast %157 : vector<128xf32> to vector<128x1xf32>
    %cst_73 = arith.constant 3.200000e+01 : f32
    %159 = vector.broadcast %cst_73 : f32 to vector<128x1xf32>
    %160 = arith.divf %158, %159 : vector<128x1xf32>
    %161 = vector.broadcast %160 : vector<128x1xf32> to vector<128x32xf32>
    %162 = arith.subf %152, %161 : vector<128x32xf32>
    %163 = arith.mulf %162, %162 : vector<128x32xf32>
    %cst_74 = arith.constant dense<0.000000e+00> : vector<128xf32>
    %164 = vector.multi_reduction <add>, %163, %cst_74 [1] : vector<128x32xf32> to vector<128xf32>
    %165 = vector.shape_cast %164 : vector<128xf32> to vector<128x1xf32>
    %cst_75 = arith.constant 3.200000e+01 : f32
    %166 = vector.broadcast %cst_75 : f32 to vector<128x1xf32>
    %167 = arith.divf %165, %166 : vector<128x1xf32>
    %168 = vector.broadcast %160 : vector<128x1xf32> to vector<128x32xf32>
    %169 = arith.subf %152, %168 : vector<128x32xf32>
    %cst_76 = arith.constant 9.99999974E-6 : f32
    %170 = vector.broadcast %cst_76 : f32 to vector<128x1xf32>
    %171 = arith.addf %167, %170 : vector<128x1xf32>
    %172 = math.rsqrt %171 : vector<128x1xf32>
    %173 = vector.broadcast %172 : vector<128x1xf32> to vector<128x32xf32>
    %174 = arith.mulf %169, %173 : vector<128x32xf32>
    %175 = vector.broadcast %154 : vector<1x32xf32> to vector<128x32xf32>
    %176 = arith.mulf %174, %175 : vector<128x32xf32>
    %177 = vector.broadcast %156 : vector<1x32xf32> to vector<128x32xf32>
    %178 = arith.addf %176, %177 : vector<128x32xf32>
    %c1 = arith.constant 1 : index
    %c0_77 = arith.constant 0 : index
    %c0_78 = arith.constant 0 : index
    %179 = vector.load %arg4[%c1, %c0_77, %c0_78] : memref<2x32x96xf32, #tpu.memory_space<vmem>>, vector<1x32x96xf32>
    %180 = vector.shape_cast %179 : vector<1x32x96xf32> to vector<32x96xf32>
    %cst_79 = arith.constant dense<0.000000e+00> : vector<128x96xf32>
    %181 = tpu.matmul %178, %180, %cst_79 {dimension_numbers = #tpu.dot_dimension_numbers<[1], [0], [0], [1], [0, 0, 1, 1], [], []>} : vector<128x32xf32>, vector<32x96xf32>, vector<128x96xf32> -> vector<128x96xf32>
    %c1_80 = arith.constant 1 : index
    %c0_81 = arith.constant 0 : index
    %c0_82 = arith.constant 0 : index
    %182 = vector.load %arg5[%c1_80, %c0_81, %c0_82] : memref<2x1x96xf32, #tpu.memory_space<vmem>>, vector<1x1x96xf32>
    %183 = vector.shape_cast %182 : vector<1x1x96xf32> to vector<1x96xf32>
    %184 = vector.broadcast %183 : vector<1x96xf32> to vector<128x96xf32>
    %185 = arith.addf %181, %184 : vector<128x96xf32>
    %186 = vector.extract_strided_slice %185 {offsets = [0, 0], sizes = [128, 8], strides = [1, 1]} : vector<128x96xf32> to vector<128x8xf32>
    %cst_83 = arith.constant 0.353553385 : f32
    %187 = vector.broadcast %cst_83 : f32 to vector<128x8xf32>
    %188 = arith.mulf %186, %187 : vector<128x8xf32>
    %189 = vector.extract_strided_slice %185 {offsets = [0, 32], sizes = [128, 8], strides = [1, 1]} : vector<128x96xf32> to vector<128x8xf32>
    %190 = vector.extract_strided_slice %185 {offsets = [0, 64], sizes = [128, 8], strides = [1, 1]} : vector<128x96xf32> to vector<128x8xf32>
    %191 = vector.shape_cast %188 : vector<128x8xf32> to vector<8x16x8xf32>
    %192 = vector.shape_cast %189 : vector<128x8xf32> to vector<8x16x8xf32>
    %193 = vector.shape_cast %190 : vector<128x8xf32> to vector<8x16x8xf32>
    "tpu.trace_start"() <{level = 10 : i32, message = "bqd,bkd->bqk"}> : () -> ()
    %cst_84 = arith.constant dense<0.000000e+00> : vector<8x16x16xf32>
    %194 = tpu.matmul %191, %192, %cst_84 {dimension_numbers = #tpu.dot_dimension_numbers<[2], [2], [1], [1], [0, 0, 0, 1, 1, 1], [0], [0]>} : vector<8x16x8xf32>, vector<8x16x8xf32>, vector<8x16x16xf32> -> vector<8x16x16xf32>
    "tpu.trace_stop"() : () -> ()
    %cst_85 = arith.constant dense<0xFF800000> : vector<8x16xf32>
    %195 = vector.multi_reduction <maximumf>, %194, %cst_85 [2] : vector<8x16x16xf32> to vector<8x16xf32>
    %196 = vector.shape_cast %195 : vector<8x16xf32> to vector<8x16x1xf32>
    %197 = vector.broadcast %196 : vector<8x16x1xf32> to vector<8x16x16xf32>
    %198 = arith.subf %194, %197 : vector<8x16x16xf32>
    %199 = math.exp %198 : vector<8x16x16xf32>
    %cst_86 = arith.constant dense<0.000000e+00> : vector<8x16xf32>
    %200 = vector.multi_reduction <add>, %199, %cst_86 [2] : vector<8x16x16xf32> to vector<8x16xf32>
    %201 = vector.shape_cast %200 : vector<8x16xf32> to vector<8x16x1xf32>
    %202 = tpu.reciprocal %201 : vector<8x16x1xf32> -> vector<8x16x1xf32>
    %203 = vector.broadcast %202 : vector<8x16x1xf32> to vector<8x16x16xf32>
    %204 = arith.mulf %199, %203 : vector<8x16x16xf32>
    "tpu.trace_start"() <{level = 10 : i32, message = "bqk,bkd->bqd"}> : () -> ()
    %cst_87 = arith.constant dense<0.000000e+00> : vector<8x16x8xf32>
    %205 = tpu.matmul %204, %193, %cst_87 {dimension_numbers = #tpu.dot_dimension_numbers<[2], [1], [1], [2], [0, 0, 0, 1, 1, 2], [0], [0]>} : vector<8x16x16xf32>, vector<8x16x8xf32>, vector<8x16x8xf32> -> vector<8x16x8xf32>
    "tpu.trace_stop"() : () -> ()
    %206 = vector.shape_cast %205 : vector<8x16x8xf32> to vector<128x8xf32>
    %207 = vector.extract_strided_slice %185 {offsets = [0, 8], sizes = [128, 8], strides = [1, 1]} : vector<128x96xf32> to vector<128x8xf32>
    %cst_88 = arith.constant 0.353553385 : f32
    %208 = vector.broadcast %cst_88 : f32 to vector<128x8xf32>
    %209 = arith.mulf %207, %208 : vector<128x8xf32>
    %210 = vector.extract_strided_slice %185 {offsets = [0, 40], sizes = [128, 8], strides = [1, 1]} : vector<128x96xf32> to vector<128x8xf32>
    %211 = vector.extract_strided_slice %185 {offsets = [0, 72], sizes = [128, 8], strides = [1, 1]} : vector<128x96xf32> to vector<128x8xf32>
    %212 = vector.shape_cast %209 : vector<128x8xf32> to vector<8x16x8xf32>
    %213 = vector.shape_cast %210 : vector<128x8xf32> to vector<8x16x8xf32>
    %214 = vector.shape_cast %211 : vector<128x8xf32> to vector<8x16x8xf32>
    "tpu.trace_start"() <{level = 10 : i32, message = "bqd,bkd->bqk"}> : () -> ()
    %cst_89 = arith.constant dense<0.000000e+00> : vector<8x16x16xf32>
    %215 = tpu.matmul %212, %213, %cst_89 {dimension_numbers = #tpu.dot_dimension_numbers<[2], [2], [1], [1], [0, 0, 0, 1, 1, 1], [0], [0]>} : vector<8x16x8xf32>, vector<8x16x8xf32>, vector<8x16x16xf32> -> vector<8x16x16xf32>
    "tpu.trace_stop"() : () -> ()
    %cst_90 = arith.constant dense<0xFF800000> : vector<8x16xf32>
    %216 = vector.multi_reduction <maximumf>, %215, %cst_90 [2] : vector<8x16x16xf32> to vector<8x16xf32>
    %217 = vector.shape_cast %216 : vector<8x16xf32> to vector<8x16x1xf32>
    %218 = vector.broadcast %217 : vector<8x16x1xf32> to vector<8x16x16xf32>
    %219 = arith.subf %215, %218 : vector<8x16x16xf32>
    %220 = math.exp %219 : vector<8x16x16xf32>
    %cst_91 = arith.constant dense<0.000000e+00> : vector<8x16xf32>
    %221 = vector.multi_reduction <add>, %220, %cst_91 [2] : vector<8x16x16xf32> to vector<8x16xf32>
    %222 = vector.shape_cast %221 : vector<8x16xf32> to vector<8x16x1xf32>
    %223 = tpu.reciprocal %222 : vector<8x16x1xf32> -> vector<8x16x1xf32>
    %224 = vector.broadcast %223 : vector<8x16x1xf32> to vector<8x16x16xf32>
    %225 = arith.mulf %220, %224 : vector<8x16x16xf32>
    "tpu.trace_start"() <{level = 10 : i32, message = "bqk,bkd->bqd"}> : () -> ()
    %cst_92 = arith.constant dense<0.000000e+00> : vector<8x16x8xf32>
    %226 = tpu.matmul %225, %214, %cst_92 {dimension_numbers = #tpu.dot_dimension_numbers<[2], [1], [1], [2], [0, 0, 0, 1, 1, 2], [0], [0]>} : vector<8x16x16xf32>, vector<8x16x8xf32>, vector<8x16x8xf32> -> vector<8x16x8xf32>
    "tpu.trace_stop"() : () -> ()
    %227 = vector.shape_cast %226 : vector<8x16x8xf32> to vector<128x8xf32>
    %228 = vector.extract_strided_slice %185 {offsets = [0, 16], sizes = [128, 8], strides = [1, 1]} : vector<128x96xf32> to vector<128x8xf32>
    %cst_93 = arith.constant 0.353553385 : f32
    %229 = vector.broadcast %cst_93 : f32 to vector<128x8xf32>
    %230 = arith.mulf %228, %229 : vector<128x8xf32>
    %231 = vector.extract_strided_slice %185 {offsets = [0, 48], sizes = [128, 8], strides = [1, 1]} : vector<128x96xf32> to vector<128x8xf32>
    %232 = vector.extract_strided_slice %185 {offsets = [0, 80], sizes = [128, 8], strides = [1, 1]} : vector<128x96xf32> to vector<128x8xf32>
    %233 = vector.shape_cast %230 : vector<128x8xf32> to vector<8x16x8xf32>
    %234 = vector.shape_cast %231 : vector<128x8xf32> to vector<8x16x8xf32>
    %235 = vector.shape_cast %232 : vector<128x8xf32> to vector<8x16x8xf32>
    "tpu.trace_start"() <{level = 10 : i32, message = "bqd,bkd->bqk"}> : () -> ()
    %cst_94 = arith.constant dense<0.000000e+00> : vector<8x16x16xf32>
    %236 = tpu.matmul %233, %234, %cst_94 {dimension_numbers = #tpu.dot_dimension_numbers<[2], [2], [1], [1], [0, 0, 0, 1, 1, 1], [0], [0]>} : vector<8x16x8xf32>, vector<8x16x8xf32>, vector<8x16x16xf32> -> vector<8x16x16xf32>
    "tpu.trace_stop"() : () -> ()
    %cst_95 = arith.constant dense<0xFF800000> : vector<8x16xf32>
    %237 = vector.multi_reduction <maximumf>, %236, %cst_95 [2] : vector<8x16x16xf32> to vector<8x16xf32>
    %238 = vector.shape_cast %237 : vector<8x16xf32> to vector<8x16x1xf32>
    %239 = vector.broadcast %238 : vector<8x16x1xf32> to vector<8x16x16xf32>
    %240 = arith.subf %236, %239 : vector<8x16x16xf32>
    %241 = math.exp %240 : vector<8x16x16xf32>
    %cst_96 = arith.constant dense<0.000000e+00> : vector<8x16xf32>
    %242 = vector.multi_reduction <add>, %241, %cst_96 [2] : vector<8x16x16xf32> to vector<8x16xf32>
    %243 = vector.shape_cast %242 : vector<8x16xf32> to vector<8x16x1xf32>
    %244 = tpu.reciprocal %243 : vector<8x16x1xf32> -> vector<8x16x1xf32>
    %245 = vector.broadcast %244 : vector<8x16x1xf32> to vector<8x16x16xf32>
    %246 = arith.mulf %241, %245 : vector<8x16x16xf32>
    "tpu.trace_start"() <{level = 10 : i32, message = "bqk,bkd->bqd"}> : () -> ()
    %cst_97 = arith.constant dense<0.000000e+00> : vector<8x16x8xf32>
    %247 = tpu.matmul %246, %235, %cst_97 {dimension_numbers = #tpu.dot_dimension_numbers<[2], [1], [1], [2], [0, 0, 0, 1, 1, 2], [0], [0]>} : vector<8x16x16xf32>, vector<8x16x8xf32>, vector<8x16x8xf32> -> vector<8x16x8xf32>
    "tpu.trace_stop"() : () -> ()
    %248 = vector.shape_cast %247 : vector<8x16x8xf32> to vector<128x8xf32>
    %249 = vector.extract_strided_slice %185 {offsets = [0, 24], sizes = [128, 8], strides = [1, 1]} : vector<128x96xf32> to vector<128x8xf32>
    %cst_98 = arith.constant 0.353553385 : f32
    %250 = vector.broadcast %cst_98 : f32 to vector<128x8xf32>
    %251 = arith.mulf %249, %250 : vector<128x8xf32>
    %252 = vector.extract_strided_slice %185 {offsets = [0, 56], sizes = [128, 8], strides = [1, 1]} : vector<128x96xf32> to vector<128x8xf32>
    %253 = vector.extract_strided_slice %185 {offsets = [0, 88], sizes = [128, 8], strides = [1, 1]} : vector<128x96xf32> to vector<128x8xf32>
    %254 = vector.shape_cast %251 : vector<128x8xf32> to vector<8x16x8xf32>
    %255 = vector.shape_cast %252 : vector<128x8xf32> to vector<8x16x8xf32>
    %256 = vector.shape_cast %253 : vector<128x8xf32> to vector<8x16x8xf32>
    "tpu.trace_start"() <{level = 10 : i32, message = "bqd,bkd->bqk"}> : () -> ()
    %cst_99 = arith.constant dense<0.000000e+00> : vector<8x16x16xf32>
    %257 = tpu.matmul %254, %255, %cst_99 {dimension_numbers = #tpu.dot_dimension_numbers<[2], [2], [1], [1], [0, 0, 0, 1, 1, 1], [0], [0]>} : vector<8x16x8xf32>, vector<8x16x8xf32>, vector<8x16x16xf32> -> vector<8x16x16xf32>
    "tpu.trace_stop"() : () -> ()
    %cst_100 = arith.constant dense<0xFF800000> : vector<8x16xf32>
    %258 = vector.multi_reduction <maximumf>, %257, %cst_100 [2] : vector<8x16x16xf32> to vector<8x16xf32>
    %259 = vector.shape_cast %258 : vector<8x16xf32> to vector<8x16x1xf32>
    %260 = vector.broadcast %259 : vector<8x16x1xf32> to vector<8x16x16xf32>
    %261 = arith.subf %257, %260 : vector<8x16x16xf32>
    %262 = math.exp %261 : vector<8x16x16xf32>
    %cst_101 = arith.constant dense<0.000000e+00> : vector<8x16xf32>
    %263 = vector.multi_reduction <add>, %262, %cst_101 [2] : vector<8x16x16xf32> to vector<8x16xf32>
    %264 = vector.shape_cast %263 : vector<8x16xf32> to vector<8x16x1xf32>
    %265 = tpu.reciprocal %264 : vector<8x16x1xf32> -> vector<8x16x1xf32>
    %266 = vector.broadcast %265 : vector<8x16x1xf32> to vector<8x16x16xf32>
    %267 = arith.mulf %262, %266 : vector<8x16x16xf32>
    "tpu.trace_start"() <{level = 10 : i32, message = "bqk,bkd->bqd"}> : () -> ()
    %cst_102 = arith.constant dense<0.000000e+00> : vector<8x16x8xf32>
    %268 = tpu.matmul %267, %256, %cst_102 {dimension_numbers = #tpu.dot_dimension_numbers<[2], [1], [1], [2], [0, 0, 0, 1, 1, 2], [0], [0]>} : vector<8x16x16xf32>, vector<8x16x8xf32>, vector<8x16x8xf32> -> vector<8x16x8xf32>
    "tpu.trace_stop"() : () -> ()
    %269 = vector.shape_cast %268 : vector<8x16x8xf32> to vector<128x8xf32>
    %270 = tpu.concatenate %206, %227, %248, %269 in 1 : vector<128x8xf32>, vector<128x8xf32>, vector<128x8xf32>, vector<128x8xf32> -> vector<128x32xf32>
    %c1_103 = arith.constant 1 : index
    %c0_104 = arith.constant 0 : index
    %c0_105 = arith.constant 0 : index
    %271 = vector.load %arg6[%c1_103, %c0_104, %c0_105] : memref<2x32x32xf32, #tpu.memory_space<vmem>>, vector<1x32x32xf32>
    %272 = vector.shape_cast %271 : vector<1x32x32xf32> to vector<32x32xf32>
    %cst_106 = arith.constant dense<0.000000e+00> : vector<128x32xf32>
    %273 = tpu.matmul %270, %272, %cst_106 {dimension_numbers = #tpu.dot_dimension_numbers<[1], [0], [0], [1], [0, 0, 1, 1], [], []>} : vector<128x32xf32>, vector<32x32xf32>, vector<128x32xf32> -> vector<128x32xf32>
    %c1_107 = arith.constant 1 : index
    %c0_108 = arith.constant 0 : index
    %c0_109 = arith.constant 0 : index
    %274 = vector.load %arg7[%c1_107, %c0_108, %c0_109] : memref<2x1x32xf32, #tpu.memory_space<vmem>>, vector<1x1x32xf32>
    %275 = vector.shape_cast %274 : vector<1x1x32xf32> to vector<1x32xf32>
    %276 = vector.broadcast %275 : vector<1x32xf32> to vector<128x32xf32>
    %277 = arith.addf %273, %276 : vector<128x32xf32>
    %278 = arith.addf %178, %277 : vector<128x32xf32>
    %c1_110 = arith.constant 1 : index
    %c0_111 = arith.constant 0 : index
    %c0_112 = arith.constant 0 : index
    %279 = vector.load %arg8[%c1_110, %c0_111, %c0_112] : memref<2x1x32xf32, #tpu.memory_space<vmem>>, vector<1x1x32xf32>
    %280 = vector.shape_cast %279 : vector<1x1x32xf32> to vector<1x32xf32>
    %c1_113 = arith.constant 1 : index
    %c0_114 = arith.constant 0 : index
    %c0_115 = arith.constant 0 : index
    %281 = vector.load %arg9[%c1_113, %c0_114, %c0_115] : memref<2x1x32xf32, #tpu.memory_space<vmem>>, vector<1x1x32xf32>
    %282 = vector.shape_cast %281 : vector<1x1x32xf32> to vector<1x32xf32>
    %cst_116 = arith.constant dense<0.000000e+00> : vector<128xf32>
    %283 = vector.multi_reduction <add>, %278, %cst_116 [1] : vector<128x32xf32> to vector<128xf32>
    %284 = vector.shape_cast %283 : vector<128xf32> to vector<128x1xf32>
    %cst_117 = arith.constant 3.200000e+01 : f32
    %285 = vector.broadcast %cst_117 : f32 to vector<128x1xf32>
    %286 = arith.divf %284, %285 : vector<128x1xf32>
    %287 = vector.broadcast %286 : vector<128x1xf32> to vector<128x32xf32>
    %288 = arith.subf %278, %287 : vector<128x32xf32>
    %289 = arith.mulf %288, %288 : vector<128x32xf32>
    %cst_118 = arith.constant dense<0.000000e+00> : vector<128xf32>
    %290 = vector.multi_reduction <add>, %289, %cst_118 [1] : vector<128x32xf32> to vector<128xf32>
    %291 = vector.shape_cast %290 : vector<128xf32> to vector<128x1xf32>
    %cst_119 = arith.constant 3.200000e+01 : f32
    %292 = vector.broadcast %cst_119 : f32 to vector<128x1xf32>
    %293 = arith.divf %291, %292 : vector<128x1xf32>
    %294 = vector.broadcast %286 : vector<128x1xf32> to vector<128x32xf32>
    %295 = arith.subf %278, %294 : vector<128x32xf32>
    %cst_120 = arith.constant 9.99999974E-6 : f32
    %296 = vector.broadcast %cst_120 : f32 to vector<128x1xf32>
    %297 = arith.addf %293, %296 : vector<128x1xf32>
    %298 = math.rsqrt %297 : vector<128x1xf32>
    %299 = vector.broadcast %298 : vector<128x1xf32> to vector<128x32xf32>
    %300 = arith.mulf %295, %299 : vector<128x32xf32>
    %301 = vector.broadcast %280 : vector<1x32xf32> to vector<128x32xf32>
    %302 = arith.mulf %300, %301 : vector<128x32xf32>
    %303 = vector.broadcast %282 : vector<1x32xf32> to vector<128x32xf32>
    %304 = arith.addf %302, %303 : vector<128x32xf32>
    %c1_121 = arith.constant 1 : index
    %c0_122 = arith.constant 0 : index
    %c0_123 = arith.constant 0 : index
    %305 = vector.load %arg10[%c1_121, %c0_122, %c0_123] : memref<2x32x64xf32, #tpu.memory_space<vmem>>, vector<1x32x64xf32>
    %306 = vector.shape_cast %305 : vector<1x32x64xf32> to vector<32x64xf32>
    %cst_124 = arith.constant dense<0.000000e+00> : vector<128x64xf32>
    %307 = tpu.matmul %304, %306, %cst_124 {dimension_numbers = #tpu.dot_dimension_numbers<[1], [0], [0], [1], [0, 0, 1, 1], [], []>} : vector<128x32xf32>, vector<32x64xf32>, vector<128x64xf32> -> vector<128x64xf32>
    %c1_125 = arith.constant 1 : index
    %c0_126 = arith.constant 0 : index
    %c0_127 = arith.constant 0 : index
    %308 = vector.load %arg11[%c1_125, %c0_126, %c0_127] : memref<2x1x64xf32, #tpu.memory_space<vmem>>, vector<1x1x64xf32>
    %309 = vector.shape_cast %308 : vector<1x1x64xf32> to vector<1x64xf32>
    %310 = vector.broadcast %309 : vector<1x64xf32> to vector<128x64xf32>
    %311 = arith.addf %307, %310 : vector<128x64xf32>
    %cst_128 = arith.constant 0.000000e+00 : f32
    %312 = vector.broadcast %cst_128 : f32 to vector<128x64xf32>
    %313 = arith.maximumf %311, %312 : vector<128x64xf32>
    %c1_129 = arith.constant 1 : index
    %c0_130 = arith.constant 0 : index
    %c0_131 = arith.constant 0 : index
    %314 = vector.load %arg12[%c1_129, %c0_130, %c0_131] : memref<2x64x32xf32, #tpu.memory_space<vmem>>, vector<1x64x32xf32>
    %315 = vector.shape_cast %314 : vector<1x64x32xf32> to vector<64x32xf32>
    %cst_132 = arith.constant dense<0.000000e+00> : vector<128x32xf32>
    %316 = tpu.matmul %313, %315, %cst_132 {dimension_numbers = #tpu.dot_dimension_numbers<[1], [0], [0], [1], [0, 0, 1, 1], [], []>} : vector<128x64xf32>, vector<64x32xf32>, vector<128x32xf32> -> vector<128x32xf32>
    %c1_133 = arith.constant 1 : index
    %c0_134 = arith.constant 0 : index
    %c0_135 = arith.constant 0 : index
    %317 = vector.load %arg13[%c1_133, %c0_134, %c0_135] : memref<2x1x32xf32, #tpu.memory_space<vmem>>, vector<1x1x32xf32>
    %318 = vector.shape_cast %317 : vector<1x1x32xf32> to vector<1x32xf32>
    %319 = vector.broadcast %318 : vector<1x32xf32> to vector<128x32xf32>
    %320 = arith.addf %316, %319 : vector<128x32xf32>
    %321 = arith.addf %304, %320 : vector<128x32xf32>
    %c1_136 = arith.constant 1 : index
    %c0_137 = arith.constant 0 : index
    %c0_138 = arith.constant 0 : index
    %322 = vector.load %arg14[%c1_136, %c0_137, %c0_138] : memref<2x1x32xf32, #tpu.memory_space<vmem>>, vector<1x1x32xf32>
    %323 = vector.shape_cast %322 : vector<1x1x32xf32> to vector<1x32xf32>
    %c1_139 = arith.constant 1 : index
    %c0_140 = arith.constant 0 : index
    %c0_141 = arith.constant 0 : index
    %324 = vector.load %arg15[%c1_139, %c0_140, %c0_141] : memref<2x1x32xf32, #tpu.memory_space<vmem>>, vector<1x1x32xf32>
    %325 = vector.shape_cast %324 : vector<1x1x32xf32> to vector<1x32xf32>
    %cst_142 = arith.constant dense<0.000000e+00> : vector<128xf32>
    %326 = vector.multi_reduction <add>, %321, %cst_142 [1] : vector<128x32xf32> to vector<128xf32>
    %327 = vector.shape_cast %326 : vector<128xf32> to vector<128x1xf32>
    %cst_143 = arith.constant 3.200000e+01 : f32
    %328 = vector.broadcast %cst_143 : f32 to vector<128x1xf32>
    %329 = arith.divf %327, %328 : vector<128x1xf32>
    %330 = vector.broadcast %329 : vector<128x1xf32> to vector<128x32xf32>
    %331 = arith.subf %321, %330 : vector<128x32xf32>
    %332 = arith.mulf %331, %331 : vector<128x32xf32>
    %cst_144 = arith.constant dense<0.000000e+00> : vector<128xf32>
    %333 = vector.multi_reduction <add>, %332, %cst_144 [1] : vector<128x32xf32> to vector<128xf32>
    %334 = vector.shape_cast %333 : vector<128xf32> to vector<128x1xf32>
    %cst_145 = arith.constant 3.200000e+01 : f32
    %335 = vector.broadcast %cst_145 : f32 to vector<128x1xf32>
    %336 = arith.divf %334, %335 : vector<128x1xf32>
    %337 = vector.broadcast %329 : vector<128x1xf32> to vector<128x32xf32>
    %338 = arith.subf %321, %337 : vector<128x32xf32>
    %cst_146 = arith.constant 9.99999974E-6 : f32
    %339 = vector.broadcast %cst_146 : f32 to vector<128x1xf32>
    %340 = arith.addf %336, %339 : vector<128x1xf32>
    %341 = math.rsqrt %340 : vector<128x1xf32>
    %342 = vector.broadcast %341 : vector<128x1xf32> to vector<128x32xf32>
    %343 = arith.mulf %338, %342 : vector<128x32xf32>
    %344 = vector.broadcast %323 : vector<1x32xf32> to vector<128x32xf32>
    %345 = arith.mulf %343, %344 : vector<128x32xf32>
    %346 = vector.broadcast %325 : vector<1x32xf32> to vector<128x32xf32>
    %347 = arith.addf %345, %346 : vector<128x32xf32>
    %c0_147 = arith.constant 0 : index
    %c0_148 = arith.constant 0 : index
    %348 = vector.load %arg16[%c0_147, %c0_148] : memref<32x128xf32, #tpu.memory_space<vmem>>, vector<32x128xf32>
    %cst_149 = arith.constant dense<0.000000e+00> : vector<128x128xf32>
    %349 = tpu.matmul %347, %348, %cst_149 {dimension_numbers = #tpu.dot_dimension_numbers<[1], [0], [0], [1], [0, 0, 1, 1], [], []>} : vector<128x32xf32>, vector<32x128xf32>, vector<128x128xf32> -> vector<128x128xf32>
    %c0_150 = arith.constant 0 : index
    %c0_151 = arith.constant 0 : index
    %350 = vector.load %arg17[%c0_150, %c0_151] : memref<1x128xf32, #tpu.memory_space<vmem>>, vector<1x128xf32>
    %351 = vector.broadcast %350 : vector<1x128xf32> to vector<128x128xf32>
    %352 = arith.addf %349, %351 : vector<128x128xf32>
    %353 = vector.shape_cast %352 : vector<128x128xf32> to vector<8x16x128xf32>
    %c0_152 = arith.constant 0 : index
    %c0_153 = arith.constant 0 : index
    %c0_154 = arith.constant 0 : index
    %354 = vector.load %arg18[%c0_152, %c0_153, %c0_154] : memref<8x16x128xf32, #tpu.memory_space<vmem>>, vector<8x16x128xf32>
    tpu.vector_store %arg18[%c0_152, %c0_153, %c0_154], %353 {strides = array<i32>} : memref<8x16x128xf32, #tpu.memory_space<vmem>>, vector<8x16x128xf32>,
    return
  }
  func.func @transform_0(%arg0: i32) -> (i32, i32, i32) {
    %c0_i32 = arith.constant 0 : i32
    %c0_i32_0 = arith.constant 0 : i32
    %c0_i32_1 = arith.constant 0 : i32
    return %arg0, %c0_i32, %c0_i32_0 : i32, i32, i32
  }
  func.func @transform_1(%arg0: i32) -> (i32, i32) {
    %c0_i32 = arith.constant 0 : i32
    %c0_i32_0 = arith.constant 0 : i32
    %c0_i32_1 = arith.constant 0 : i32
    return %c0_i32, %c0_i32_0 : i32, i32
  }
  func.func @transform_2(%arg0: i32) -> (i32, i32) {
    %c0_i32 = arith.constant 0 : i32
    %c0_i32_0 = arith.constant 0 : i32
    %c0_i32_1 = arith.constant 0 : i32
    return %c0_i32, %c0_i32_0 : i32, i32
  }
  func.func @transform_3(%arg0: i32) -> (i32, i32, i32) {
    %c0_i32 = arith.constant 0 : i32
    %c0_i32_0 = arith.constant 0 : i32
    %c0_i32_1 = arith.constant 0 : i32
    %c0_i32_2 = arith.constant 0 : i32
    return %c0_i32, %c0_i32_0, %c0_i32_1 : i32, i32, i32
  }
  func.func @transform_4(%arg0: i32) -> (i32, i32, i32) {
    %c0_i32 = arith.constant 0 : i32
    %c0_i32_0 = arith.constant 0 : i32
    %c0_i32_1 = arith.constant 0 : i32
    %c0_i32_2 = arith.constant 0 : i32
    return %c0_i32, %c0_i32_0, %c0_i32_1 : i32, i32, i32
  }
  func.func @transform_5(%arg0: i32) -> (i32, i32, i32) {
    %c0_i32 = arith.constant 0 : i32
    %c0_i32_0 = arith.constant 0 : i32
    %c0_i32_1 = arith.constant 0 : i32
    %c0_i32_2 = arith.constant 0 : i32
    return %c0_i32, %c0_i32_0, %c0_i32_1 : i32, i32, i32
  }
  func.func @transform_6(%arg0: i32) -> (i32, i32, i32) {
    %c0_i32 = arith.constant 0 : i32
    %c0_i32_0 = arith.constant 0 : i32
    %c0_i32_1 = arith.constant 0 : i32
    %c0_i32_2 = arith.constant 0 : i32
    return %c0_i32, %c0_i32_0, %c0_i32_1 : i32, i32, i32
  }
  func.func @transform_7(%arg0: i32) -> (i32, i32, i32) {
    %c0_i32 = arith.constant 0 : i32
    %c0_i32_0 = arith.constant 0 : i32
    %c0_i32_1 = arith.constant 0 : i32
    %c0_i32_2 = arith.constant 0 : i32
    return %c0_i32, %c0_i32_0, %c0_i32_1 : i32, i32, i32
  }
  func.func @transform_8(%arg0: i32) -> (i32, i32, i32) {
    %c0_i32 = arith.constant 0 : i32
    %c0_i32_0 = arith.constant 0 : i32
    %c0_i32_1 = arith.constant 0 : i32
    %c0_i32_2 = arith.constant 0 : i32
    return %c0_i32, %c0_i32_0, %c0_i32_1 : i32, i32, i32
  }
  func.func @transform_9(%arg0: i32) -> (i32, i32, i32) {
    %c0_i32 = arith.constant 0 : i32
    %c0_i32_0 = arith.constant 0 : i32
    %c0_i32_1 = arith.constant 0 : i32
    %c0_i32_2 = arith.constant 0 : i32
    return %c0_i32, %c0_i32_0, %c0_i32_1 : i32, i32, i32
  }
  func.func @transform_10(%arg0: i32) -> (i32, i32, i32) {
    %c0_i32 = arith.constant 0 : i32
    %c0_i32_0 = arith.constant 0 : i32
    %c0_i32_1 = arith.constant 0 : i32
    %c0_i32_2 = arith.constant 0 : i32
    return %c0_i32, %c0_i32_0, %c0_i32_1 : i32, i32, i32
  }
  func.func @transform_11(%arg0: i32) -> (i32, i32, i32) {
    %c0_i32 = arith.constant 0 : i32
    %c0_i32_0 = arith.constant 0 : i32
    %c0_i32_1 = arith.constant 0 : i32
    %c0_i32_2 = arith.constant 0 : i32
    return %c0_i32, %c0_i32_0, %c0_i32_1 : i32, i32, i32
  }
  func.func @transform_12(%arg0: i32) -> (i32, i32, i32) {
    %c0_i32 = arith.constant 0 : i32
    %c0_i32_0 = arith.constant 0 : i32
    %c0_i32_1 = arith.constant 0 : i32
    %c0_i32_2 = arith.constant 0 : i32
    return %c0_i32, %c0_i32_0, %c0_i32_1 : i32, i32, i32
  }
  func.func @transform_13(%arg0: i32) -> (i32, i32, i32) {
    %c0_i32 = arith.constant 0 : i32
    %c0_i32_0 = arith.constant 0 : i32
    %c0_i32_1 = arith.constant 0 : i32
    %c0_i32_2 = arith.constant 0 : i32
    return %c0_i32, %c0_i32_0, %c0_i32_1 : i32, i32, i32
  }
  func.func @transform_14(%arg0: i32) -> (i32, i32, i32) {
    %c0_i32 = arith.constant 0 : i32
    %c0_i32_0 = arith.constant 0 : i32
    %c0_i32_1 = arith.constant 0 : i32
    %c0_i32_2 = arith.constant 0 : i32
    return %c0_i32, %c0_i32_0, %c0_i32_1 : i32, i32, i32
  }
  func.func @transform_15(%arg0: i32) -> (i32, i32) {
    %c0_i32 = arith.constant 0 : i32
    %c0_i32_0 = arith.constant 0 : i32
    %c0_i32_1 = arith.constant 0 : i32
    return %c0_i32, %c0_i32_0 : i32, i32
  }
  func.func @transform_16(%arg0: i32) -> (i32, i32) {
    %c0_i32 = arith.constant 0 : i32
    %c0_i32_0 = arith.constant 0 : i32
    %c0_i32_1 = arith.constant 0 : i32
    return %c0_i32, %c0_i32_0 : i32, i32
  }
  func.func @transform_17(%arg0: i32) -> (i32, i32, i32) {
    %c0_i32 = arith.constant 0 : i32
    %c0_i32_0 = arith.constant 0 : i32
    %c0_i32_1 = arith.constant 0 : i32
    return %arg0, %c0_i32, %c0_i32_0 : i32, i32, i32
  }
}

</mosaic_0001>

<bundles_post_ra>
// kernel: transformer_forward.1
= control target key start
LH: loop header
LB: loop body
LE: loop exit
PB: predicated region body
PF: predicated region fallthrough
CT: control target
= control target key end

     0   :  { %s21842_s24 = smov 0   ;;  %s26742_s0 = inlined_call_operand.vmem [shape: f32[16,16,16], index: 0, kind: input, shape index: {}]   ;;  %s26743_s1 = inlined_call_operand.vmem [shape: f32[16,32], index: 1, kind: input, shape index: {}]   ;;  %s26744_s2 = inlined_call_operand.vmem [shape: f32[16,32], index: 2, kind: input, shape index: {}]   ;;  %s26745_s3 = inlined_call_operand.vmem [shape: f32[2,32,96], index: 3, kind: input, shape index: {}]   ;;  %s26746_s4 = inlined_call_operand.vmem [shape: f32[2,1,96], index: 4, kind: input, shape index: {}]   ;;  %s26747_s5 = inlined_call_operand.vmem [shape: f32[2,32,32], index: 5, kind: input, shape index: {}]   ;;  %s26748_s6 = inlined_call_operand.vmem [shape: f32[2,1,32], index: 6, kind: input, shape index: {}]   ;;  %s26749_s7 = inlined_call_operand.vmem [shape: f32[2,1,32], index: 7, kind: input, shape index: {}]   ;;  %s26750_s8 = inlined_call_operand.vmem [shape: f32[2,1,32], index: 8, kind: input, shape index: {}]   ;;  %s26751_s9 = inlined_call_operand.vmem [shape: f32[2,32,64], index: 9, kind: input, shape index: {}]   ;;  %s26752_s10 = inlined_call_operand.vmem [shape: f32[2,1,64], index: 10, kind: input, shape index: {}]   ;;  %s26753_s11 = inlined_call_operand.vmem [shape: f32[2,64,32], index: 11, kind: input, shape index: {}]   ;;  %s26754_s12 = inlined_call_operand.vmem [shape: f32[2,1,32], index: 12, kind: input, shape index: {}]   ;;  %s26755_s13 = inlined_call_operand.vmem [shape: f32[2,1,32], index: 13, kind: input, shape index: {}]   ;;  %s26756_s14 = inlined_call_operand.vmem [shape: f32[2,1,32], index: 14, kind: input, shape index: {}]   ;;  %s26757_s15 = inlined_call_operand.vmem [shape: f32[32,128], index: 15, kind: input, shape index: {}]   ;;  %s26758_s16 = inlined_call_operand.vmem [shape: f32[1,128], index: 16, kind: input, shape index: {}]   ;;  %s26759_s17 = inlined_call_operand.vmem [shape: f32[16,16,128], index: 17, kind: output, shape index: {}]  }
   0x1   :  { %26822 = sst [smem:[#allocation45_spill]] %s26742_s0 }
   0x2   :  { %26823 = sst [smem:[#allocation46_spill]] %s26743_s1 }
   0x3 LB: > { %s17146_s25 = sadd.s32 4294967295, %s21736_s24   ;;  %p17150_p0 = scmp.ge.s32.totalorder %s21736_s24, 1  ;;  %s21736_s24 = sphi %s21842_s24, %s27_s24  }
   0x4   : > { %p489_p1 = scmp.lt.s32.totalorder %s21736_s24, 3 }
   0x6   : > { %p490_p2 = pnand %p17150_p0, %p489_p1 }
   0x8   : > { %493 = sbr.rel (%p490_p2) target bundleno = 9241 (0x2419), region = 88 }
   0xf   : > { %s26824_s28 = sld [smem:[#allocation46_spill]]  ;;  %s17151_s30 = sshll.u32 %s17146_s25, 3  ;;  %v787_v2 = vld [vmem:[%s26745_s3] sm:$0xff]  ;;  %v788_v4 = vld [vmem:[%s26745_s3 + $0x8] sm:$0xff]  ;;  %vm575_vm0 = vcmask 130048   ;;  %v789_v22 = vld [vmem:[%s26745_s3 + $0x10] sm:$0xff] }
  0x10   : > { %p544_p3 = scmp.lt.s32.totalorder %s17151_s30, 15  ;;  %v19700_v5 = vpack.c.bf16 %v788_v4, %v787_v2  ;;  %s26825_s25 = sld [smem:[#allocation45_spill]]  ;;  %v790_v23 = vld [vmem:[%s26745_s3 + $0x18] sm:$0xff]  ;;  %v769_v25 = vld [vmem:[%s26744_s2] sm:$0xff]  ;;  %v770_v27 = vld [vmem:[%s26744_s2 + $0x8] sm:$0xff]  ;;  %vm798_vm1 = vcmask 261120  }
  0x11   : > { %v19704_v24 = vpack.c.bf16 %v790_v23, %v789_v22  ;;  %v17173_v59 = vld [vmem:[%s26746_s4] ss:$0 sm:$0xff]  ;;  %vm1014_vm2 = vcmask 64512   ;;  %s21739_s27 = smov 64   ;;  %s26804_s29 = smov 88   ;;  %vm7633_vm4 = vcmask 195584  }
  0x12   : > { %s27017_s30 = smov (!%p544_p3, %s17151_s30), 15  ;;  %19701 = vmatprep.subr.bf16.mxu1 %v19700_v5  ;;  %vm22080_vm3 = vmpackc.low %vm1014_vm2, %vm1014_vm2  ;;  %s26798_s0 = smov 120   ;;  %vm8360_vm5 = vcmask 523264  }
  0x13   : > { %s26781_s21 = sshll.u32 %s27017_s30, 4  ;;  %19703 = vmatpush3.bf16.msra.mxu1 %v19700_v5  ;;  %s26796_s18 = smov 56  }
  0x14   : > { %19705 = vmatprep.subr.bf16.mxu1 %v19704_v24  ;;  %s26794_s19 = smov 80   ;;  %s26792_s1 = smov 112  }
  0x15   : > { %v573_v0 = vld [vmem:[%s26824_s28] sm:$0xff]  ;;  %v574_v1 = vld [vmem:[%s26824_s28 + $0x8] sm:$0xff]  ;;  %s26790_s20 = smov 48   ;;  %s26788_s22 = smov 72  }
  0x16   : > { %v19696_v3 = vpack.c.bf16 %v574_v1, %v573_v0  ;;  %s21870_s26 = scalar_lea.vmem %s26825_s25, %s26781_s21  ;;  %s26782_s23 = smov 104  }
  0x17   : > { %v557_v6 = vld [vmem:[%s21870_s26] sm:$0xff]  ;;  %v558_v7 = vld [vmem:[%s21870_s26 + $0x8] sm:$0xff]  ;;  %v559_v8 = vld [vmem:[%s21870_s26 + $0x10] sm:$0xff]  ;;  %19707 = vmatpush3.bf16.msra.mxu1 %v19704_v24  ;;  %s26786_s25 = smov 40   ;;  %s26784_s21 = smov 8  }
  0x18   : > { %19697 = vmatprep.subr.bf16.mxu0 %v19696_v3  ;;  %18472 = vmatprep.mubr.msk.f32.mxu0 %vm575_vm0, %v557_v6  ;;  %v560_v9 = vld [vmem:[%s21870_s26 + $0x18] sm:$0xff]  ;;  %v561_v10 = vld [vmem:[%s21870_s26 + $0x20] sm:$0xff]  ;;  %v562_v11 = vld [vmem:[%s21870_s26 + $0x28] sm:$0xff] }
  0x19   : > { %19699 = vmatpush3.bf16.msra.mxu0 %v19696_v3  ;;  %v563_v12 = vld [vmem:[%s21870_s26 + $0x30] sm:$0xff]  ;;  %v564_v13 = vld [vmem:[%s21870_s26 + $0x38] sm:$0xff]  ;;  %v565_v14 = vld [vmem:[%s21870_s26 + $0x40] sm:$0xff] }
  0x1a   : > { %v566_v15 = vld [vmem:[%s21870_s26 + $0x48] sm:$0xff]  ;;  %v567_v16 = vld [vmem:[%s21870_s26 + $0x50] sm:$0xff]  ;;  %v568_v17 = vld [vmem:[%s21870_s26 + $0x58] sm:$0xff] }
  0x1b   : > { %v569_v18 = vld [vmem:[%s21870_s26 + $0x60] sm:$0xff]  ;;  %v570_v19 = vld [vmem:[%s21870_s26 + $0x68] sm:$0xff]  ;;  %v571_v20 = vld [vmem:[%s21870_s26 + $0x70] sm:$0xff] }
  0x1c   : > { %18473 = vmatmul.mubr.msk.f32.vlgmr.msra.gmra.mrb[0].mxu0 %vm575_vm0, %v558_v7  ;;  %v572_v21 = vld [vmem:[%s21870_s26 + $0x78] sm:$0xff]  ;;  %s21738_s26 = smov 96  }
  0x1d   : > { %18475 = vmatprep.mubr.msk.f32.mxu0 %vm575_vm0, %v559_v8 }
  0x20   : > { %18476 = vmatmul.mubr.msk.f32.gmra.mrb[2].mxu0 %vm575_vm0, %v560_v9 }
  0x21   : > { %18478 = vmatprep.mubr.msk.f32.mxu0 %vm575_vm0, %v561_v10 }
  0x24   : > { %18479 = vmatmul.mubr.msk.f32.gmra.mrb[4].mxu0 %vm575_vm0, %v562_v11 }
  0x25   : > { %18481 = vmatprep.mubr.msk.f32.mxu0 %vm575_vm0, %v563_v12 }
  0x28   : > { %18482 = vmatmul.mubr.msk.f32.gmra.mrb[6].mxu0 %vm575_vm0, %v564_v13 }
  0x29   : > { %18484 = vmatprep.mubr.msk.f32.mxu0 %vm575_vm0, %v565_v14 }
  0x2c   : > { %18485 = vmatmul.mubr.msk.f32.gmra.mrb[8].mxu0 %vm575_vm0, %v566_v15 }
  0x2d   : > { %18487 = vmatprep.mubr.msk.f32.mxu0 %vm575_vm0, %v567_v16 }
  0x30   : > { %18488 = vmatmul.mubr.msk.f32.gmra.mrb[10].mxu0 %vm575_vm0, %v568_v17 }
  0x31   : > { %18490 = vmatprep.mubr.msk.f32.mxu0 %vm575_vm0, %v569_v18 }
  0x34   : > { %18491 = vmatmul.mubr.msk.f32.gmra.mrb[12].mxu0 %vm575_vm0, %v570_v19 }
  0x35   : > { %18493 = vmatprep.mubr.msk.f32.mxu0 %vm575_vm0, %v571_v20 }
  0x38   : > { %18494 = vmatmul.mubr.msk.f32.gmra.mrb[14].mxu0 %vm575_vm0, %v572_v21 }
  0xef   : > { %v18474_v26 = vpop.f32.mrb[0].mxu0 }
  0xf0   : > { %v690_v28 = vpop.f32.mrb[1].mxu0  ;;  %v21918_v30 = vadd.f32 %v18474_v26, %v770_v27 }
  0xf1   : > { %v21916_v29 = vadd.f32 %v769_v25, %v690_v28 }
  0xf2   : > { %26827 = vst [vmem:[#allocation3_spill] sm:$0xff] %v21918_v30 }
  0xf3   : > { %26826 = vst [vmem:[#allocation2_spill] sm:$0xff] %v21916_v29  ;;  %v18477_v31 = vpop.f32.mrb[2].mxu0  ;;  %18504 = vmatprep.mubr.msk.f32.mxu1 %vm798_vm1, %v21916_v29 }
  0xf4   : > { %v700_v32 = vpop.f32.mrb[3].mxu0  ;;  %18505 = vmatmul.mubr.msk.f32.vlgmr.msra.gmra.mrb[0].mxu1 %vm798_vm1, %v21918_v30  ;;  %v21926_v34 = vadd.f32 %v18477_v31, %v770_v27 }
  0xf5   : > { %v21924_v33 = vadd.f32 %v769_v25, %v700_v32 }
  0xf6   : > { %26829 = vst [vmem:[#allocation5_spill] sm:$0xff] %v21926_v34 }
  0xf7   : > { %26828 = vst [vmem:[#allocation4_spill] sm:$0xff] %v21924_v33  ;;  %v18480_v35 = vpop.f32.mrb[4].mxu0  ;;  %18507 = vmatprep.mubr.msk.f32.mxu1 %vm798_vm1, %v21924_v33 }
  0xf8   : > { %v710_v36 = vpop.f32.mrb[5].mxu0  ;;  %18508 = vmatmul.mubr.msk.f32.gmra.mrb[2].mxu1 %vm798_vm1, %v21926_v34  ;;  %v21934_v38 = vadd.f32 %v18480_v35, %v770_v27 }
  0xf9   : > { %v21932_v37 = vadd.f32 %v769_v25, %v710_v36 }
  0xfa   : > { %26831 = vst [vmem:[#allocation7_spill] sm:$0xff] %v21934_v38 }
  0xfb   : > { %26830 = vst [vmem:[#allocation6_spill] sm:$0xff] %v21932_v37  ;;  %v18483_v39 = vpop.f32.mrb[6].mxu0  ;;  %18510 = vmatprep.mubr.msk.f32.mxu1 %vm798_vm1, %v21932_v37 }
  0xfc   : > { %v720_v40 = vpop.f32.mrb[7].mxu0  ;;  %18511 = vmatmul.mubr.msk.f32.gmra.mrb[4].mxu1 %vm798_vm1, %v21934_v38  ;;  %v21942_v42 = vadd.f32 %v18483_v39, %v770_v27 }
  0xfd   : > { %v21940_v41 = vadd.f32 %v769_v25, %v720_v40 }
  0xfe   : > { %26833 = vst [vmem:[#allocation9_spill] sm:$0xff] %v21942_v42 }
  0xff   : > { %26832 = vst [vmem:[#allocation8_spill] sm:$0xff] %v21940_v41  ;;  %v18486_v43 = vpop.f32.mrb[8].mxu0  ;;  %18513 = vmatprep.mubr.msk.f32.mxu1 %vm798_vm1, %v21940_v41 }
 0x100   : > { %v730_v44 = vpop.f32.mrb[9].mxu0  ;;  %18514 = vmatmul.mubr.msk.f32.gmra.mrb[6].mxu1 %vm798_vm1, %v21942_v42  ;;  %v21950_v46 = vadd.f32 %v18486_v43, %v770_v27 }
 0x101   : > { %v21948_v45 = vadd.f32 %v769_v25, %v730_v44 }
 0x102   : > { %26835 = vst [vmem:[#allocation11_spill] sm:$0xff] %v21950_v46 }
 0x103   : > { %26834 = vst [vmem:[#allocation10_spill] sm:$0xff] %v21948_v45  ;;  %v18489_v47 = vpop.f32.mrb[10].mxu0  ;;  %18516 = vmatprep.mubr.msk.f32.mxu1 %vm798_vm1, %v21948_v45 }
 0x104   : > { %v740_v48 = vpop.f32.mrb[11].mxu0  ;;  %18517 = vmatmul.mubr.msk.f32.gmra.mrb[8].mxu1 %vm798_vm1, %v21950_v46  ;;  %v21958_v50 = vadd.f32 %v18489_v47, %v770_v27 }
 0x105   : > { %v21956_v49 = vadd.f32 %v769_v25, %v740_v48 }
 0x106   : > { %26837 = vst [vmem:[#allocation13_spill] sm:$0xff] %v21958_v50 }
 0x107   : > { %26836 = vst [vmem:[#allocation12_spill] sm:$0xff] %v21956_v49  ;;  %v18492_v51 = vpop.f32.mrb[12].mxu0  ;;  %18519 = vmatprep.mubr.msk.f32.mxu1 %vm798_vm1, %v21956_v49 }
 0x108   : > { %v750_v52 = vpop.f32.mrb[13].mxu0  ;;  %18520 = vmatmul.mubr.msk.f32.gmra.mrb[10].mxu1 %vm798_vm1, %v21958_v50  ;;  %v21966_v54 = vadd.f32 %v18492_v51, %v770_v27 }
 0x109   : > { %v21964_v53 = vadd.f32 %v769_v25, %v750_v52 }
 0x10a   : > { %26839 = vst [vmem:[#allocation15_spill] sm:$0xff] %v21966_v54 }
 0x10b   : > { %26838 = vst [vmem:[#allocation14_spill] sm:$0xff] %v21964_v53  ;;  %v18495_v55 = vpop.f32.mrb[14].mxu0  ;;  %18522 = vmatprep.mubr.msk.f32.mxu1 %vm798_vm1, %v21964_v53 }
 0x10c   : > { %v21970_v56 = vadd.f32 %v18495_v55, %v770_v27  ;;  %v760_v57 = vpop.f32.mrb[15].mxu0  ;;  %18523 = vmatmul.mubr.msk.f32.gmra.mrb[12].mxu1 %vm798_vm1, %v21966_v54 }
 0x10d   : > { %v21974_v58 = vadd.f32 %v769_v25, %v760_v57 }
 0x10e   : > { %26840 = vst [vmem:[#allocation16_spill] sm:$0xff] %v21970_v56 }
 0x10f   : > { %26841 = vst [vmem:[#allocation17_spill] sm:$0xff] %v21974_v58  ;;  %18525 = vmatprep.mubr.msk.f32.mxu1 %vm798_vm1, %v21974_v58 }
 0x110   : > { %18526 = vmatmul.mubr.msk.f32.gmra.mrb[14].mxu1 %vm798_vm1, %v21970_v56 }
 0x1c7   : > { %v18506_v60 = vpop.f32.mrb[0].mxu1 }
 0x1c8   : > { %v21983_v61 = vadd.f32 %v18506_v60, %v17173_v59  ;;  %v913_v62 = vpop.f32.mrb[1].mxu1 }
 0x1c9   : > { %v914_v63 = vadd.f32 %v17173_v59, %v913_v62 }
 0x1cb   : > { %v18509_v0 = vpop.f32.mrb[2].mxu1  ;;  %v21986_v1 = vpack.i.bf16 %v21983_v61, %v914_v63  ;;  %v21988_v2 = vmul.f32 0.35355338, %v914_v63 }
 0x1cc   : > { %v21990_v3 = vadd.f32 %v18509_v0, %v17173_v59  ;;  %v923_v4 = vpop.f32.mrb[3].mxu1 }
 0x1cd   : > { %v924_v5 = vadd.f32 %v17173_v59, %v923_v4  ;;  %20451 = vrot.lane.b32.xlu0 %v21986_v1, %s21738_s26  ;;  %18532 = vmatprep.mubr.msk.f32.mxu0 %vm1014_vm2, %v21988_v2 }
 0x1cf   : > { %v18512_v6 = vpop.f32.mrb[4].mxu1  ;;  %v21997_v7 = vpack.i.bf16 %v21990_v3, %v924_v5  ;;  %v21999_v8 = vmul.f32 0.35355338, %v924_v5 }
 0x1d0   : > { %v22001_v9 = vadd.f32 %v18512_v6, %v17173_v59  ;;  %v933_v10 = vpop.f32.mrb[5].mxu1 }
 0x1d1   : > { %v934_v11 = vadd.f32 %v17173_v59, %v933_v10  ;;  %20456 = vrot.lane.b32.xlu0 %v21997_v7, %s21738_s26  ;;  %18539 = vmatprep.mubr.msk.f32.mxu1 %vm1014_vm2, %v21999_v8  ;;  %v22093_v10 = vmul.f32 0.35355338, %v21983_v61  ;;  %v22106_v61 = vmul.f32 0.35355338, %v21990_v3 }
 0x1d3   : > { %v18515_v12 = vpop.f32.mrb[6].mxu1  ;;  %v22008_v13 = vpack.i.bf16 %v22001_v9, %v934_v11 }
 0x1d4   : > { %v22010_v14 = vadd.f32 %v18515_v12, %v17173_v59  ;;  %v943_v15 = vpop.f32.mrb[7].mxu1 }
 0x1d5   : > { %v22012_v16 = vadd.f32 %v17173_v59, %v943_v15  ;;  %20461 = vrot.lane.b32.xlu1 %v22008_v13, %s21738_s26  ;;  %v22095_v15 = vmul.f32 0.35355338, %v934_v11 }
 0x1d7   : > { %v18518_v17 = vpop.f32.mrb[8].mxu1  ;;  %v22018_v18 = vpack.i.bf16 %v22010_v14, %v22012_v16 }
 0x1d8   : > { %v22020_v19 = vadd.f32 %v18518_v17, %v17173_v59  ;;  %v953_v20 = vpop.f32.mrb[9].mxu1 }
 0x1d9   : > { %v22022_v21 = vadd.f32 %v17173_v59, %v953_v20  ;;  %20466 = vrot.lane.b32.xlu1 %v22018_v18, %s21738_s26 }
 0x1db   : > { %v18521_v22 = vpop.f32.mrb[10].mxu1  ;;  %v22028_v23 = vpack.i.bf16 %v22020_v19, %v22022_v21 }
 0x1dc   : > { %v22030_v24 = vadd.f32 %v18521_v22, %v17173_v59  ;;  %v963_v25 = vpop.f32.mrb[11].mxu1 }
 0x1dd   : > { %v22032_v26 = vadd.f32 %v17173_v59, %v963_v25  ;;  %20471 = vrot.lane.b32.xlu0 %v22028_v23, %s21738_s26  ;;  %v22109_v25 = vmul.f32 0.35355338, %v22012_v16 }
 0x1df   : > { %v18524_v27 = vpop.f32.mrb[12].mxu1  ;;  %v22038_v28 = vpack.i.bf16 %v22030_v24, %v22032_v26 }
 0x1e0   : > { %v22040_v31 = vadd.f32 %v18524_v27, %v17173_v59  ;;  %v973_v32 = vpop.f32.mrb[13].mxu1 }
 0x1e1   : > { %v22042_v35 = vadd.f32 %v17173_v59, %v973_v32  ;;  %20476 = vrot.lane.b32.xlu1 %v22038_v28, %s21738_s26 }
 0x1e3   : > { %v18527_v36 = vpop.f32.mrb[14].mxu1  ;;  %v22048_v39 = vpack.i.bf16 %v22040_v31, %v22042_v35 }
 0x1e4   : > { %v22050_v40 = vadd.f32 %v18527_v36, %v17173_v59  ;;  %v983_v43 = vpop.f32.mrb[15].mxu1  ;;  %v22120_v36 = vmul.f32 0.35355338, %v22001_v9 }
 0x1e5   : > { %v22052_v44 = vadd.f32 %v17173_v59, %v983_v43  ;;  %20481 = vrot.lane.b32.xlu0 %v22048_v39, %s21738_s26  ;;  %v22123_v43 = vmul.f32 0.35355338, %v22022_v21 }
 0x1e7   : > { %v22058_v47 = vpack.i.bf16 %v22050_v40, %v22052_v44 }
 0x1e9   : > { %20491 = vrot.lane.b32.xlu0 %v21986_v1, %s21739_s27  ;;  %20486 = vrot.lane.b32.xlu1 %v22058_v47, %s21738_s26 }
 0x1ed   : > { %20501 = vrot.lane.b32.xlu0 %v22008_v13, %s21739_s27  ;;  %20496 = vrot.lane.b32.xlu1 %v21997_v7, %s21739_s27 }
 0x1f1   : > { %20511 = vrot.lane.b32.xlu0 %v22028_v23, %s21739_s27  ;;  %20506 = vrot.lane.b32.xlu1 %v22018_v18, %s21739_s27 }
 0x1f5   : > { %20516 = vrot.lane.b32.xlu1 %v22038_v28, %s21739_s27  ;;  %20521 = vrot.lane.b32.xlu0 %v22048_v39, %s21739_s27 }
 0x1f9   : > { %20526 = vrot.lane.b32.xlu1 %v22058_v47, %s21739_s27 }
 0x23f   : > { %v20452_v48 = vpop.permute.xlu0 %20451 }
 0x240   : > { %v20454_v51 = vunpack.i.h.bf16 %v20452_v48  ;;  %v20453_v52 = vunpack.i.l.bf16 %v20452_v48 }
 0x242   : > { %v19708_v57 = vpack.c.bf16 %v20454_v51, %v20453_v52  ;;  %v22134_v52 = vmul.f32 0.35355338, %v22010_v14 }
 0x243   : > { %v20457_v59 = vpop.permute.xlu0 %20456 }
 0x244   : > { %v20459_v60 = vunpack.i.h.bf16 %v20457_v59  ;;  %v20458_v62 = vunpack.i.l.bf16 %v20457_v59  ;;  %19710 = vmatprep.subr.msk.bf16.mxu0 %vm22080_vm3, %v19708_v57 }
 0x245   : > { %19713 = vmatpush3.bf16.xpose.msk.msra.mxu0 %vm22080_vm3, %v19708_v57  ;;  %v22137_v57 = vmul.f32 0.35355338, %v22032_v26 }
 0x246   : > { %v19714_v63 = vpack.c.bf16 %v20459_v60, %v20458_v62  ;;  %v22148_v62 = vmul.f32 0.35355338, %v22020_v19 }
 0x247   : > { %v20462_v0 = vpop.permute.xlu1 %20461 }
 0x248   : > { %v20464_v4 = vunpack.i.h.bf16 %v20462_v0  ;;  %v20463_v5 = vunpack.i.l.bf16 %v20462_v0  ;;  %19716 = vmatprep.subr.msk.bf16.mxu1 %vm22080_vm3, %v19714_v63  ;;  %v22151_v0 = vmul.f32 0.35355338, %v22042_v35  ;;  %v22162_v35 = vmul.f32 0.35355338, %v22030_v24 }
 0x249   : > { %19719 = vmatpush3.bf16.xpose.msk.msra.mxu1 %vm22080_vm3, %v19714_v63  ;;  %v22176_v24 = vmul.f32 0.35355338, %v22040_v31 }
 0x24a   : > { %v19720_v6 = vpack.c.bf16 %v20464_v4, %v20463_v5 }
 0x24b   : > { %v20467_v12 = vpop.permute.xlu1 %20466  ;;  %26844 = vst [vmem:[#allocation18_spill] sm:$0xff] %v22176_v24 }
 0x24c   : > { %v20469_v17 = vunpack.i.h.bf16 %v20467_v12  ;;  %v20468_v20 = vunpack.i.l.bf16 %v20467_v12  ;;  %18533 = vmatmul.mubr.msk.f32.vlgmr.msra.gmra.mrb[16].mxu0 %vm1014_vm2, %v22093_v10  ;;  %19722 = vmatprep.subr.msk.bf16.mxu0 %vm22080_vm3, %v19720_v6 }
 0x24d   : > { %19725 = vmatpush3.bf16.xpose.msk.msra.mxu0 %vm22080_vm3, %v19720_v6  ;;  %18546 = vmatprep.mubr.msk.f32.mxu0 %vm1014_vm2, %v22095_v15 }
 0x24e   : > { %v19726_v22 = vpack.c.bf16 %v20469_v17, %v20468_v20 }
 0x24f   : > { %v20472_v11 = vpop.permute.xlu0 %20471 }
 0x250   : > { %v20474_v27 = vunpack.i.h.bf16 %v20472_v11  ;;  %v20473_v32 = vunpack.i.l.bf16 %v20472_v11  ;;  %18540 = vmatmul.mubr.msk.f32.vlgmr.msra.gmra.mrb[16].mxu1 %vm1014_vm2, %v22106_v61  ;;  %19728 = vmatprep.subr.msk.bf16.mxu1 %vm22080_vm3, %v19726_v22  ;;  %v22165_v11 = vmul.f32 0.35355338, %v22052_v44 }
 0x251   : > { %19731 = vmatpush3.bf16.xpose.msk.msra.mxu1 %vm22080_vm3, %v19726_v22  ;;  %18553 = vmatprep.mubr.msk.f32.mxu1 %vm1014_vm2, %v22109_v25 }
 0x252   : > { %v19732_v3 = vpack.c.bf16 %v20474_v27, %v20473_v32 }
 0x253   : > { %v20477_v16 = vpop.permute.xlu1 %20476 }
 0x254   : > { %v20479_v48 = vunpack.i.h.bf16 %v20477_v16  ;;  %v20478_v51 = vunpack.i.l.bf16 %v20477_v16  ;;  %18547 = vmatmul.mubr.msk.f32.vlgmr.msra.gmra.mrb[18].mxu0 %vm1014_vm2, %v22120_v36  ;;  %19734 = vmatprep.subr.msk.bf16.mxu0 %vm22080_vm3, %v19732_v3 }
 0x255   : > { %19737 = vmatpush3.bf16.xpose.msk.msra.mxu0 %vm22080_vm3, %v19732_v3  ;;  %18560 = vmatprep.mubr.msk.f32.mxu0 %vm1014_vm2, %v22123_v43 }
 0x256   : > { %v19738_v9 = vpack.c.bf16 %v20479_v48, %v20478_v51 }
 0x257   : > { %v20482_v21 = vpop.permute.xlu0 %20481 }
 0x258   : > { %v20484_v59 = vunpack.i.h.bf16 %v20482_v21  ;;  %v20483_v60 = vunpack.i.l.bf16 %v20482_v21  ;;  %18554 = vmatmul.mubr.msk.f32.vlgmr.msra.gmra.mrb[18].mxu1 %vm1014_vm2, %v22134_v52  ;;  %19740 = vmatprep.subr.msk.bf16.mxu1 %vm22080_vm3, %v19738_v9 }
 0x259   : > { %19743 = vmatpush3.bf16.xpose.msk.msra.mxu1 %vm22080_vm3, %v19738_v9  ;;  %18567 = vmatprep.mubr.msk.f32.mxu1 %vm1014_vm2, %v22137_v57 }
 0x25a   : > { %v19744_v14 = vpack.c.bf16 %v20484_v59, %v20483_v60  ;;  %v22184_v59 = vmul.f32 0.35355338, %v22050_v40 }
 0x25b   : > { %v20492_v26 = vpop.permute.xlu0 %20491  ;;  %v20487_v63 = vpop.permute.xlu1 %20486 }
 0x25c   : > { %v20494_v4 = vunpack.i.h.bf16 %v20492_v26  ;;  %v20493_v5 = vunpack.i.l.bf16 %v20492_v26  ;;  %v20489_v6 = vunpack.i.h.bf16 %v20487_v63  ;;  %v20488_v12 = vunpack.i.l.bf16 %v20487_v63  ;;  %18561 = vmatmul.mubr.msk.f32.vlgmr.msra.gmra.mrb[20].mxu0 %vm1014_vm2, %v22148_v62  ;;  %19746 = vmatprep.subr.msk.bf16.mxu0 %vm22080_vm3, %v19744_v14  ;;  %26845 = vst [vmem:[#allocation19_spill] sm:$0xff] %v22184_v59 }
 0x25d   : > { %19749 = vmatpush3.bf16.xpose.msk.msra.mxu0 %vm22080_vm3, %v19744_v14  ;;  %18574 = vmatprep.mubr.msk.f32.mxu0 %vm1014_vm2, %v22151_v0 }
 0x25e   : > { %v19750_v19 = vpack.c.bf16 %v20489_v6, %v20488_v12  ;;  %v19756_v17 = vpack.c.bf16 %v20494_v4, %v20493_v5 }
 0x25f   : > { %v20502_v20 = vpop.permute.xlu0 %20501  ;;  %v20497_v22 = vpop.permute.xlu1 %20496 }
 0x260   : > { %v20504_v27 = vunpack.i.h.bf16 %v20502_v20  ;;  %v20503_v32 = vunpack.i.l.bf16 %v20502_v20  ;;  %v20499_v3 = vunpack.i.h.bf16 %v20497_v22  ;;  %v20498_v16 = vunpack.i.l.bf16 %v20497_v22  ;;  %18568 = vmatmul.mubr.msk.f32.vlgmr.msra.gmra.mrb[20].mxu1 %vm1014_vm2, %v22162_v35  ;;  %19752 = vmatprep.subr.msk.bf16.mxu1 %vm22080_vm3, %v19750_v19 }
 0x261   : > { %19757 = vmatprep.subr.bf16.mxu0 %v19756_v17  ;;  %19755 = vmatpush3.bf16.xpose.msk.msra.mxu1 %vm22080_vm3, %v19750_v19 }
 0x262   : > { %18581 = vmatprep.mubr.msk.f32.mxu1 %vm1014_vm2, %v22165_v11  ;;  %v19764_v44 = vpack.c.bf16 %v20504_v27, %v20503_v32  ;;  %v22180_v21 = vpack.c.bf16 %v20499_v3, %v20498_v16 }
 0x263   : > { %v20512_v48 = vpop.permute.xlu0 %20511 }
 0x264   : > { %v20514_v51 = vunpack.i.h.bf16 %v20512_v48  ;;  %v20513_v9 = vunpack.i.l.bf16 %v20512_v48  ;;  %18575 = vmatmul.mubr.msk.f32.vlgmr.msra.gmra.mrb[22].mxu0 %vm1014_vm2, %v22176_v24  ;;  %19765 = vmatprep.subr.bf16.mxu1 %v19764_v44 }
 0x265   : > { %19759 = vmatpush3.bf16.msra.mxu0 %v19756_v17 }
 0x266   : > { %19761 = vmatprep.subr.bf16.mxu0 %v22180_v21  ;;  %v22188_v31 = vpack.c.bf16 %v20514_v51, %v20513_v9 }
 0x268   : > { %18582 = vmatmul.mubr.msk.f32.vlgmr.msra.gmra.mrb[22].mxu1 %vm1014_vm2, %v22184_v59 }
 0x269   : > { %19767 = vmatpush3.bf16.msra.mxu1 %v19764_v44 }
 0x26a   : > { %19773 = vmatprep.subr.bf16.mxu1 %v22188_v31 }
 0x31f   : > { %v22191_v60 = vpop.f32.mrb[16].mxu0 }
 0x320   : > { %v22193_v14 = vpop.f32.mrb[17].mxu0  ;;  %v1740_v26 = vsel %vm575_vm0, %v22191_v60, -inf }
 0x321   : > { %1741 = vmax.xlane.f32.xlu1 %v1740_v26  ;;  %v1737_v40 = vsel %vm575_vm0, %v22193_v14, -inf }
 0x322   : > { %1738 = vmax.xlane.f32.xlu0 %v1737_v40 }
 0x323   : > { %v22199_v63 = vpop.f32.mrb[16].mxu1 }
 0x324   : > { %v22201_v4 = vpop.f32.mrb[17].mxu1  ;;  %v1746_v5 = vsel %vm575_vm0, %v22199_v63, -inf }
 0x325   : > { %1747 = vmax.xlane.f32.xlu1 %v1746_v5  ;;  %v1743_v6 = vsel %vm575_vm0, %v22201_v4, -inf }
 0x326   : > { %1744 = vmax.xlane.f32.xlu0 %v1743_v6 }
 0x327   : > { %v22207_v12 = vpop.f32.mrb[18].mxu0 }
 0x328   : > { %v22209_v19 = vpop.f32.mrb[19].mxu0  ;;  %v1752_v17 = vsel %vm575_vm0, %v22207_v12, -inf }
 0x329   : > { %v1749_v32 = vsel %vm575_vm0, %v22209_v19, -inf }
 0x32a   : > { %1753 = vmax.xlane.f32.xlu0 %v1752_v17 }
 0x32b   : > { %v22213_v20 = vpop.f32.mrb[18].mxu1 }
 0x32c   : > { %v22215_v22 = vpop.f32.mrb[19].mxu1  ;;  %v1758_v27 = vsel %vm575_vm0, %v22213_v20, -inf }
 0x32d   : > { %1759 = vmax.xlane.f32.xlu1 %v1758_v27  ;;  %v1755_v44 = vsel %vm575_vm0, %v22215_v22, -inf }
 0x32e   : > { %1750 = vmax.xlane.f32.xlu0 %v1749_v32 }
 0x32f   : > { %v22221_v3 = vpop.f32.mrb[20].mxu0 }
 0x330   : > { %v22223_v16 = vpop.f32.mrb[21].mxu0  ;;  %v1764_v48 = vsel %vm575_vm0, %v22221_v3, -inf }
 0x331   : > { %1756 = vmax.xlane.f32.xlu1 %v1755_v44  ;;  %v1761_v26 = vsel %vm575_vm0, %v22223_v16, -inf }
 0x332   : > { %1765 = vmax.xlane.f32.xlu0 %v1764_v48 }
 0x333   : > { %v22229_v51 = vpop.f32.mrb[20].mxu1 }
 0x334   : > { %v22231_v9 = vpop.f32.mrb[21].mxu1  ;;  %v1770_v17 = vsel %vm575_vm0, %v22229_v51, -inf }
 0x335   : > { %v1767_v40 = vsel %vm575_vm0, %v22231_v9, -inf }
 0x336   : > { %1762 = vmax.xlane.f32.xlu0 %v1761_v26  ;;  %1768 = vmax.xlane.f32.xlu1 %v1767_v40 }
 0x337   : > { %v22237_v5 = vpop.f32.mrb[22].mxu0 }
 0x338   : > { %v22239_v6 = vpop.f32.mrb[23].mxu0  ;;  %v1776_v48 = vsel %vm575_vm0, %v22237_v5, -inf }
 0x339   : > { %v1773_v27 = vsel %vm575_vm0, %v22239_v6, -inf }
 0x33a   : > { %1771 = vmax.xlane.f32.xlu0 %v1770_v17  ;;  %1774 = vmax.xlane.f32.xlu1 %v1773_v27  ;;  %v22267_v17 = vpop.permute.xlu1 %20506 }
 0x33b   : > { %v22245_v32 = vpop.f32.mrb[22].mxu1  ;;  %v20508_v33 = vunpack.i.l.bf16 %v22267_v17 }
 0x33c   : > { %v22247_v44 = vpop.f32.mrb[23].mxu1  ;;  %v1782_v26 = vsel %vm575_vm0, %v22245_v32, -inf }
 0x33d   : > { %v1779_v40 = vsel %vm575_vm0, %v22247_v44, -inf }
 0x33e   : > { %1777 = vmax.xlane.f32.xlu0 %v1776_v48  ;;  %v22269_v27 = vpop.permute.xlu1 %20516 }
 0x342   : > { %1783 = vmax.xlane.f32.xlu0 %v1782_v26  ;;  %v22271_v48 = vpop.permute.xlu1 %20526  ;;  %v22273_v26 = vpop.permute.xlu0 %20521 }
 0x34b   : > { %20536 = vrot.lane.b32.xlu1 %v21997_v7, %s26804_s29 }
 0x34f   : > { %2609 = vrot.lane.b32.xlu1 %v21988_v2, %s26798_s0 }
 0x353   : > { %20546 = vrot.lane.b32.xlu1 %v22018_v18, %s26804_s29 }
 0x358   : > { %20531 = vrot.lane.b32.xlu0 %v21986_v1, %s26804_s29 }
 0x35c   : > { %20541 = vrot.lane.b32.xlu0 %v22008_v13, %s26804_s29 }
 0x360   : > { %2611 = vrot.lane.b32.xlu0 %v22093_v10, %s26798_s0 }
 0x377   : > { %1780 = vmax.xlane.f32.xlu1 %v1779_v40 }
 0x3ae   : > { %v1742_v58 = vpop.xlane.xlu1 %1741 }
 0x3af   : > { %v1786_v56 = vsub.f32 %v22191_v60, %v1742_v58  ;;  %v1739_v53 = vpop.xlane.xlu0 %1738 }
 0x3b0   : > { %v1785_v54 = vsub.f32 %v22193_v14, %v1739_v53 }
 0x3b1   : > { %v1803_v49 = vmul.f32 1.442695, %v1786_v56 }
 0x3b2   : > { %v1801_v50 = vmul.f32 1.442695, %v1785_v54  ;;  %v1748_v45 = vpop.xlane.xlu1 %1747 }
 0x3b3   : > { %21090 = vpow2.f32 %v1803_v49  ;;  %v1788_v40 = vsub.f32 %v22199_v63, %v1748_v45  ;;  %v1745_v46 = vpop.xlane.xlu0 %1744 }
 0x3b4   : > { %21092 = vpow2.f32 %v1801_v50  ;;  %v1787_v41 = vsub.f32 %v22201_v4, %v1745_v46 }
 0x3b5   : > { %v1807_v42 = vmul.f32 1.442695, %v1788_v40 }
 0x3b6   : > { %v1805_v38 = vmul.f32 1.442695, %v1787_v41 }
 0x3b7   : > { %21094 = vpow2.f32 %v1807_v42  ;;  %v1754_v37 = vpop.xlane.xlu0 %1753 }
 0x3b8   : > { %v1790_v34 = vsub.f32 %v22207_v12, %v1754_v37  ;;  %21096 = vpow2.f32 %v1805_v38 }
 0x3ba   : > { %v1811_v58 = vmul.f32 1.442695, %v1790_v34  ;;  %v1760_v60 = vpop.xlane.xlu1 %1759 }
 0x3bb   : > { %v1792_v53 = vsub.f32 %v22213_v20, %v1760_v60  ;;  %v1751_v54 = vpop.xlane.xlu0 %1750 }
 0x3bc   : > { %21098 = vpow2.f32 %v1811_v58  ;;  %v1789_v49 = vsub.f32 %v22209_v19, %v1751_v54 }
 0x3bd   : > { %v22282_v45 = vpop.eup %21090  ;;  %v1815_v50 = vmul.f32 1.442695, %v1792_v53 }
 0x3be   : > { %v22284_v56 = vpop.eup %21092  ;;  %v1809_v46 = vmul.f32 1.442695, %v1789_v49  ;;  %v1757_v41 = vpop.xlane.xlu1 %1756  ;;  %v1836_v42 = vsel %vm575_vm0, %v22282_v45, 0.0 }
 0x3bf   : > { %21100 = vpow2.f32 %v1815_v50  ;;  %v1791_v34 = vsub.f32 %v22215_v22, %v1757_v41  ;;  %v1766_v37 = vpop.xlane.xlu0 %1765  ;;  %1837 = vadd.xlane.f32.xlu0 %v1836_v42  ;;  %v1833_v38 = vsel %vm575_vm0, %v22284_v56, 0.0 }
 0x3c0   : > { %21102 = vpow2.f32 %v1809_v46  ;;  %v1794_v14 = vsub.f32 %v22221_v3, %v1766_v37  ;;  %1834 = vadd.xlane.f32.xlu1 %v1833_v38 }
 0x3c1   : > { %v22292_v63 = vpop.eup %21094  ;;  %v1813_v4 = vmul.f32 1.442695, %v1791_v34 }
 0x3c2   : > { %v1819_v12 = vmul.f32 1.442695, %v1794_v14  ;;  %v1842_v19 = vsel %vm575_vm0, %v22292_v63, 0.0  ;;  %v22296_v22 = vpop.eup %21096 }
 0x3c3   : > { %21104 = vpow2.f32 %v1813_v4  ;;  %v1763_v20 = vpop.xlane.xlu0 %1762  ;;  %v1769_v40 = vpop.xlane.xlu1 %1768  ;;  %v1839_v46 = vsel %vm575_vm0, %v22296_v22, 0.0 }
 0x3c4   : > { %21106 = vpow2.f32 %v1819_v12  ;;  %v1793_v58 = vsub.f32 %v22223_v16, %v1763_v20  ;;  %v1795_v60 = vsub.f32 %v22231_v9, %v1769_v40  ;;  %1843 = vadd.xlane.f32.xlu1 %v1842_v19 }
 0x3c6   : > { %v22300_v3 = vpop.eup %21098  ;;  %v1817_v53 = vmul.f32 1.442695, %v1793_v58  ;;  %v1821_v54 = vmul.f32 1.442695, %v1795_v60 }
 0x3c7   : > { %v1772_v49 = vpop.xlane.xlu0 %1771  ;;  %v1848_v50 = vsel %vm575_vm0, %v22300_v3, 0.0 }
 0x3c8   : > { %21108 = vpow2.f32 %v1817_v53  ;;  %v1796_v41 = vsub.f32 %v22229_v51, %v1772_v49  ;;  %1849 = vadd.xlane.f32.xlu0 %v1848_v50  ;;  %1840 = vadd.xlane.f32.xlu1 %v1839_v46  ;;  %v1775_v46 = vpop.xlane.xlu1 %1774 }
 0x3c9   : > { %v22307_v16 = vpop.eup %21100  ;;  %21110 = vpow2.f32 %v1821_v54 }
 0x3ca   : > { %v22309_v9 = vpop.eup %21102  ;;  %v1823_v42 = vmul.f32 1.442695, %v1796_v41  ;;  %v1854_v34 = vsel %vm575_vm0, %v22307_v16, 0.0 }
 0x3cb   : > { %v1778_v37 = vpop.xlane.xlu0 %1777  ;;  %v1845_v38 = vsel %vm575_vm0, %v22309_v9, 0.0 }
 0x3cc   : > { %21112 = vpow2.f32 %v1823_v42  ;;  %v1798_v14 = vsub.f32 %v22237_v5, %v1778_v37  ;;  %1846 = vadd.xlane.f32.xlu0 %v1845_v38  ;;  %1855 = vadd.xlane.f32.xlu1 %v1854_v34  ;;  %v22346_v41 = vpop.permute.xlu1 %20536  ;;  %v1797_v42 = vsub.f32 %v22239_v6, %v1775_v46 }
 0x3cd   : > { %v22316_v51 = vpop.eup %21104 }
 0x3ce   : > { %v22318_v4 = vpop.eup %21106  ;;  %v1827_v12 = vmul.f32 1.442695, %v1798_v14  ;;  %v1851_v19 = vsel %vm575_vm0, %v22316_v51, 0.0  ;;  %v1825_v38 = vmul.f32 1.442695, %v1797_v42 }
 0x3cf   : > { %v1860_v20 = vsel %vm575_vm0, %v22318_v4, 0.0  ;;  %v1784_v37 = vpop.xlane.xlu0 %1783 }
 0x3d0   : > { %21114 = vpow2.f32 %v1827_v12  ;;  %1861 = vadd.xlane.f32.xlu0 %v1860_v20  ;;  %1852 = vadd.xlane.f32.xlu1 %v1851_v19  ;;  %v22351_v34 = vpop.permute.xlu1 %2609  ;;  %v1800_v14 = vsub.f32 %v22245_v32, %v1784_v37 }
 0x3d1   : > { %21116 = vpow2.f32 %v1825_v38 }
 0x3d2   : > { %v22324_v40 = vpop.eup %21108  ;;  %v1831_v19 = vmul.f32 1.442695, %v1800_v14 }
 0x3d3   : > { %v22326_v58 = vpop.eup %21110  ;;  %v1857_v5 = vsel %vm575_vm0, %v22324_v40, 0.0  ;;  %v22401_v42 = vpop.permute.xlu0 %20531 }
 0x3d4   : > { %1858 = vadd.xlane.f32.xlu0 %v1857_v5  ;;  %v1863_v60 = vsel %vm575_vm0, %v22326_v58, 0.0  ;;  %v22358_v12 = vpop.permute.xlu1 %20546  ;;  %21118 = vpow2.f32 %v1831_v19 }
 0x3d5   : > { %1864 = vadd.xlane.f32.xlu1 %v1863_v60 }
 0x3d6   : > { %v22332_v53 = vpop.eup %21112 }
 0x3d7   : > { %v1866_v54 = vsel %vm575_vm0, %v22332_v53, 0.0  ;;  %v22407_v37 = vpop.permute.xlu0 %20541 }
 0x3d8   : > { %1867 = vadd.xlane.f32.xlu0 %v1866_v54 }
 0x3da   : > { %v22336_v49 = vpop.eup %21114 }
 0x3db   : > { %v1872_v50 = vsel %vm575_vm0, %v22336_v49, 0.0  ;;  %v22367_v32 = vpop.eup %21116  ;;  %v22411_v38 = vpop.permute.xlu0 %2611 }
 0x3dc   : > { %1873 = vadd.xlane.f32.xlu0 %v1872_v50  ;;  %v1869_v60 = vsel %vm575_vm0, %v22367_v32, 0.0 }
 0x3de   : > { %v22373_v54 = vpop.eup %21118 }
 0x3e6   : > { %2702 = vrot.lane.b32.xlu1 %v22106_v61, %s26798_s0 }
 0x3ea   : > { %2791 = vrot.lane.b32.xlu1 %v22095_v15, %s26798_s0 }
 0x3f2   : > { %2700 = vrot.lane.b32.xlu0 %v21999_v8, %s26798_s0 }
 0x3f6   : > { %20551 = vrot.lane.b32.xlu0 %v22028_v23, %s26804_s29 }
 0x3fa   : > { %2793 = vrot.lane.b32.xlu0 %v22120_v36, %s26798_s0 }
 0x3fe   : > { %2882 = vrot.lane.b32.xlu0 %v22109_v25, %s26798_s0 }
 0x402   : > { %2973 = vrot.lane.b32.xlu0 %v22123_v43, %s26798_s0 }
 0x404   : > { %v1781_v6 = vpop.xlane.xlu1 %1780 }
 0x405   : > { %v1799_v20 = vsub.f32 %v22247_v44, %v1781_v6  ;;  %v1878_v44 = vsel %vm575_vm0, %v22373_v54, 0.0 }
 0x406   : > { %2975 = vrot.lane.b32.xlu0 %v22148_v62, %s26798_s0 }
 0x407   : > { %v1829_v5 = vmul.f32 1.442695, %v1799_v20 }
 0x409   : > { %21120 = vpow2.f32 %v1829_v5 }
 0x40a   : > { %20566 = vrot.lane.b32.xlu0 %v22058_v47, %s26804_s29 }
 0x40e   : > { %3155 = vrot.lane.b32.xlu0 %v22151_v0, %s26798_s0  ;;  %1870 = vadd.xlane.f32.xlu1 %v1869_v60 }
 0x412   : > { %3246 = vrot.lane.b32.xlu0 %v22165_v11, %s26798_s0  ;;  %1879 = vadd.xlane.f32.xlu1 %v1878_v44 }
 0x413   : > { %v22379_v50 = vpop.eup %21120 }
 0x414   : > { %v1875_v46 = vsel %vm575_vm0, %v22379_v50, 0.0 }
 0x416   : > { %20571 = vrot.lane.b32.xlu0 %v21986_v1, %s26796_s18  ;;  %1876 = vadd.xlane.f32.xlu1 %v1875_v46  ;;  %v20509_v46 = vunpack.i.h.bf16 %v22267_v17 }
 0x41a   : > { %20581 = vrot.lane.b32.xlu0 %v22008_v13, %s26796_s18 }
 0x41e   : > { %20591 = vrot.lane.b32.xlu0 %v22028_v23, %s26796_s18 }
 0x422   : > { %20601 = vrot.lane.b32.xlu0 %v22048_v39, %s26796_s18 }
 0x427   : > { %20556 = vrot.lane.b32.xlu1 %v22038_v28, %s26804_s29 }
 0x42b   : > { %2884 = vrot.lane.b32.xlu1 %v22134_v52, %s26798_s0 }
 0x42f   : > { %20561 = vrot.lane.b32.xlu1 %v22048_v39, %s26804_s29  ;;  %s26966_s29 = smov 72  }
 0x433   : > { %3064 = vrot.lane.b32.xlu1 %v22137_v57, %s26798_s0 }
 0x437   : > { %3066 = vrot.lane.b32.xlu1 %v22162_v35, %s26798_s0 }
 0x43b   : > { %3157 = vrot.lane.b32.xlu1 %v22176_v24, %s26798_s0  ;;  %v20519_v24 = vunpack.i.h.bf16 %v22269_v27 }
 0x43f   : > { %3248 = vrot.lane.b32.xlu1 %v22184_v59, %s26798_s0 }
 0x443   : > { %20576 = vrot.lane.b32.xlu1 %v21997_v7, %s26796_s18 }
 0x447   : > { %20586 = vrot.lane.b32.xlu1 %v22018_v18, %s26796_s18 }
 0x44b   : > { %20596 = vrot.lane.b32.xlu1 %v22038_v28, %s26796_s18 }
 0x44c   : > { %v1838_v14 = vpop.xlane.xlu0 %1837 }
 0x44d   : > { %21122 = vrcp.f32 %v1838_v14  ;;  %v1835_v19 = vpop.xlane.xlu1 %1834 }
 0x44e   : > { %21124 = vrcp.f32 %v1835_v19 }
 0x44f   : > { %20606 = vrot.lane.b32.xlu1 %v22058_v47, %s26796_s18  ;;  %s26935_s18 = smov 56  }
 0x451   : > { %v1844_v6 = vpop.xlane.xlu1 %1843 }
 0x452   : > { %21126 = vrcp.f32 %v1844_v6  ;;  %v19768_v6 = vpack.c.bf16 %v20509_v46, %v20508_v33 }
 0x455   : > { %v1850_v20 = vpop.xlane.xlu0 %1849  ;;  %v1841_v5 = vpop.xlane.xlu1 %1840 }
 0x456   : > { %21128 = vrcp.f32 %v1841_v5 }
 0x457   : > { %v21123_v60 = vpop.eup %21122  ;;  %21130 = vrcp.f32 %v1850_v20 }
 0x458   : > { %v21125_v44 = vpop.eup %21124  ;;  %v1898_v19 = vmul.f32 %v21123_v60, %v22282_v45 }
 0x459   : > { %v1847_v29 = vpop.xlane.xlu0 %1846  ;;  %v1856_v30 = vpop.xlane.xlu1 %1855  ;;  %v1897_v14 = vmul.f32 %v21125_v44, %v22284_v56 }
 0x45a   : > { %21132 = vrcp.f32 %v1847_v29  ;;  %v20518_v29 = vunpack.i.l.bf16 %v22269_v27 }
 0x45b   : > { %18588 = vmatprep.mubr.msk.f32.mxu0 %vm575_vm0, %v1897_v14  ;;  %21134 = vrcp.f32 %v1856_v30  ;;  %v20524_v30 = vunpack.i.h.bf16 %v22273_v26 }
 0x45c   : > { %18589 = vmatmul.mubr.msk.f32.vlgmr.msra.gmra.mrb[24].mxu0 %vm575_vm0, %v1898_v19  ;;  %v21127_v17 = vpop.eup %21126  ;;  %v19776_v46 = vpack.c.bf16 %v20519_v24, %v20518_v29  ;;  %v20533_v29 = vunpack.i.l.bf16 %v22401_v42 }
 0x45d   : > { %19763 = vmatpush3.bf16.msra.mxu0 %v22180_v21  ;;  %v1862_v5 = vpop.xlane.xlu0 %1861  ;;  %v1853_v59 = vpop.xlane.xlu1 %1852  ;;  %v1900_v21 = vmul.f32 %v21127_v17, %v22292_v63  ;;  %v20528_v17 = vunpack.i.l.bf16 %v22271_v48 }
 0x45e   : > { %19769 = vmatprep.subr.bf16.mxu0 %v19768_v6  ;;  %21136 = vrcp.f32 %v1853_v59  ;;  %v20523_v59 = vunpack.i.l.bf16 %v22273_v26 }
 0x45f   : > { %21138 = vrcp.f32 %v1862_v5  ;;  %v20529_v5 = vunpack.i.h.bf16 %v22271_v48 }
 0x460   : > { %v21129_v20 = vpop.eup %21128  ;;  %v19780_v26 = vpack.c.bf16 %v20524_v30, %v20523_v59 }
 0x461   : > { %v1859_v45 = vpop.xlane.xlu0 %1858  ;;  %v1899_v56 = vmul.f32 %v21129_v20, %v22296_v22  ;;  %v21131_v60 = vpop.eup %21130  ;;  %v20534_v20 = vunpack.i.h.bf16 %v22401_v42 }
 0x462   : > { %21140 = vrcp.f32 %v1859_v45  ;;  %v1865_v33 = vpop.xlane.xlu1 %1864  ;;  %v1902_v22 = vmul.f32 %v21131_v60, %v22300_v3  ;;  %v19784_v45 = vpack.c.bf16 %v20529_v5, %v20528_v17  ;;  %v20544_v5 = vunpack.i.h.bf16 %v22407_v37 }
 0x463   : > { %21142 = vrcp.f32 %v1865_v33  ;;  %18595 = vmatprep.mubr.msk.f32.mxu0 %vm575_vm0, %v1899_v56  ;;  %v19788_v33 = vpack.c.bf16 %v20534_v20, %v20533_v29  ;;  %v20543_v17 = vunpack.i.l.bf16 %v22407_v37 }
 0x464   : > { %v21133_v44 = vpop.eup %21132  ;;  %18596 = vmatmul.mubr.msk.f32.vlgmr.msra.gmra.mrb[26].mxu0 %vm575_vm0, %v1900_v21 }
 0x465   : > { %v1868_v27 = vpop.xlane.xlu0 %1867  ;;  %v1901_v14 = vmul.f32 %v21133_v44, %v22309_v9  ;;  %19771 = vmatpush3.bf16.msra.mxu0 %v19768_v6  ;;  %v21135_v63 = vpop.eup %21134 }
 0x466   : > { %21144 = vrcp.f32 %v1868_v27  ;;  %19777 = vmatprep.subr.bf16.mxu0 %v19776_v46  ;;  %v1904_v3 = vmul.f32 %v21135_v63, %v22307_v16  ;;  %v20538_v16 = vunpack.i.l.bf16 %v22346_v41  ;;  %v2703_v44 = vpop.permute.xlu1 %2702 }
 0x467   : > { %18602 = vmatprep.mubr.msk.f32.mxu1 %vm575_vm0, %v1901_v14 }
 0x468   : > { %18603 = vmatmul.mubr.msk.f32.vlgmr.msra.gmra.mrb[24].mxu1 %vm575_vm0, %v1902_v22  ;;  %v21137_v19 = vpop.eup %21136 }
 0x469   : > { %19775 = vmatpush3.bf16.msra.mxu1 %v22188_v31  ;;  %v1903_v24 = vmul.f32 %v21137_v19, %v22316_v51  ;;  %v21139_v9 = vpop.eup %21138  ;;  %v20539_v51 = vunpack.i.h.bf16 %v22346_v41 }
 0x46a   : > { %19781 = vmatprep.subr.bf16.mxu1 %v19780_v26  ;;  %v1906_v31 = vmul.f32 %v21139_v9, %v22318_v4  ;;  %v2792_v59 = vpop.permute.xlu1 %2791 }
 0x46b   : > { %18609 = vmatprep.mubr.msk.f32.mxu0 %vm575_vm0, %v1903_v24  ;;  %v19794_v4 = vpack.c.bf16 %v20539_v51, %v20538_v16 }
 0x46c   : > { %v21141_v6 = vpop.eup %21140  ;;  %18610 = vmatmul.mubr.msk.f32.vlgmr.msra.gmra.mrb[28].mxu0 %vm575_vm0, %v1904_v3 }
 0x46d   : > { %v1905_v48 = vmul.f32 %v21141_v6, %v22324_v40  ;;  %v21143_v56 = vpop.eup %21142  ;;  %19779 = vmatpush3.bf16.msra.mxu0 %v19776_v46  ;;  %v19800_v6 = vpack.c.bf16 %v20544_v5, %v20543_v17 }
 0x46e   : > { %19785 = vmatprep.subr.bf16.mxu0 %v19784_v45  ;;  %v1907_v42 = vmul.f32 %v21143_v56, %v22326_v58  ;;  %v1874_v58 = vpop.xlane.xlu0 %1873 }
 0x46f   : > { %18616 = vmatprep.mubr.msk.f32.mxu1 %vm575_vm0, %v1905_v48  ;;  %21146 = vrcp.f32 %v1874_v58 }
 0x470   : > { %v21145_v60 = vpop.eup %21144  ;;  %18617 = vmatmul.mubr.msk.f32.vlgmr.msra.gmra.mrb[26].mxu1 %vm575_vm0, %v1906_v31  ;;  %18623 = vmatprep.mubr.msk.f32.mxu0 %vm575_vm0, %v1907_v42 }
 0x471   : > { %19783 = vmatpush3.bf16.msra.mxu1 %v19780_v26  ;;  %v1908_v40 = vmul.f32 %v21145_v60, %v22332_v53 }
 0x472   : > { %19790 = vmatprep.subr.msk.bf16.mxu1 %vm22080_vm3, %v19788_v33  ;;  %v2701_v41 = vpop.permute.xlu0 %2700 }
 0x473   : > { %18624 = vmatmul.mubr.msk.f32.vlgmr.msra.gmra.mrb[30].mxu0 %vm575_vm0, %v1908_v40 }
 0x474   : > { %19787 = vmatpush3.bf16.msra.mxu0 %v19784_v45  ;;  %v20548_v45 = vunpack.i.l.bf16 %v22358_v12 }
 0x475   : > { %19796 = vmatprep.subr.msk.bf16.mxu0 %vm22080_vm3, %v19794_v4 }
 0x476   : > { %v20552_v21 = vpop.permute.xlu0 %20551 }
 0x477   : > { %v20554_v48 = vunpack.i.h.bf16 %v20552_v21  ;;  %v20553_v56 = vunpack.i.l.bf16 %v20552_v21 }
 0x479   : > { %v21147_v63 = vpop.eup %21146  ;;  %v19812_v60 = vpack.c.bf16 %v20554_v48, %v20553_v56 }
 0x47a   : > { %v2794_v30 = vpop.permute.xlu0 %2793  ;;  %v1910_v3 = vmul.f32 %v21147_v63, %v22336_v49  ;;  %v20549_v49 = vunpack.i.h.bf16 %v22358_v12 }
 0x47e   : > { %v2883_v27 = vpop.permute.xlu0 %2882 }
 0x482   : > { %v2974_v53 = vpop.permute.xlu0 %2973 }
 0x486   : > { %v2976_v26 = vpop.permute.xlu0 %2975 }
 0x48a   : > { %v20567_v20 = vpop.permute.xlu0 %20566 }
 0x48e   : > { %v3156_v42 = vpop.permute.xlu0 %3155 }
 0x49b   : > { %v1871_v46 = vpop.xlane.xlu1 %1870 }
 0x49c   : > { %21148 = vrcp.f32 %v1871_v46 }
 0x49f   : > { %v1880_v14 = vpop.xlane.xlu1 %1879 }
 0x4a0   : > { %21150 = vrcp.f32 %v1880_v14 }
 0x4a3   : > { %v1877_v22 = vpop.xlane.xlu1 %1876 }
 0x4a4   : > { %21152 = vrcp.f32 %v1877_v22 }
 0x4a6   : > { %v21149_v19 = vpop.eup %21148 }
 0x4a7   : > { %v20557_v24 = vpop.permute.xlu1 %20556  ;;  %v1909_v9 = vmul.f32 %v21149_v19, %v22367_v32 }
 0x4a9   : > { %18630 = vmatprep.mubr.msk.f32.mxu1 %vm575_vm0, %v1909_v9 }
 0x4aa   : > { %18631 = vmatmul.mubr.msk.f32.vlgmr.msra.gmra.mrb[28].mxu1 %vm575_vm0, %v1910_v3  ;;  %v21151_v37 = vpop.eup %21150 }
 0x4ab   : > { %19793 = vmatpush3.bf16.xpose.msk.msra.mxu1 %vm22080_vm3, %v19788_v33  ;;  %18644 = vmatprep.mubr.msk.f32.mxu1 %vm1014_vm2, %v22351_v34  ;;  %v2885_v29 = vpop.permute.xlu1 %2884  ;;  %v1912_v16 = vmul.f32 %v21151_v37, %v22373_v54  ;;  %v19806_v34 = vpack.c.bf16 %v20549_v49, %v20548_v45  ;;  %v3247_v54 = vpop.permute.xlu0 %3246 }
 0x4ac   : > { %19802 = vmatprep.subr.msk.bf16.mxu1 %vm22080_vm3, %v19800_v6 }
 0x4ae   : > { %v21153_v32 = vpop.eup %21152 }
 0x4af   : > { %v20562_v31 = vpop.permute.xlu1 %20561  ;;  %v1911_v51 = vmul.f32 %v21153_v32, %v22379_v50  ;;  %v20559_v50 = vunpack.i.h.bf16 %v20557_v24 }
 0x4b0   : > { %v20564_v33 = vunpack.i.h.bf16 %v20562_v31  ;;  %v20563_v40 = vunpack.i.l.bf16 %v20562_v31 }
 0x4b1   : > { %18637 = vmatprep.mubr.msk.f32.mxu0 %vm575_vm0, %v1911_v51 }
 0x4b2   : > { %18645 = vmatmul.mubr.msk.f32.vlgmr.msra.gmra.mrb[30].mxu1 %vm1014_vm2, %v22411_v38  ;;  %18638 = vmatmul.mubr.msk.f32.vlgmr.msra.gmra.mrb[32].mxu0 %vm575_vm0, %v1912_v16  ;;  %v20558_v38 = vunpack.i.l.bf16 %v20557_v24  ;;  %v19824_v21 = vpack.c.bf16 %v20564_v33, %v20563_v40 }
 0x4b3   : > { %19799 = vmatpush3.bf16.xpose.msk.msra.mxu0 %vm22080_vm3, %v19794_v4  ;;  %19805 = vmatpush3.bf16.xpose.msk.msra.mxu1 %vm22080_vm3, %v19800_v6  ;;  %v3065_v12 = vpop.permute.xlu1 %3064 }
 0x4b4   : > { %18658 = vmatprep.mubr.msk.f32.mxu1 %vm1014_vm2, %v2792_v59  ;;  %18651 = vmatprep.mubr.msk.f32.mxu0 %vm1014_vm2, %v2701_v41  ;;  %v19818_v58 = vpack.c.bf16 %v20559_v50, %v20558_v38  ;;  %v20572_v59 = vpop.permute.xlu0 %20571 }
 0x4b5   : > { %19808 = vmatprep.subr.msk.bf16.mxu0 %vm22080_vm3, %v19806_v34  ;;  %19814 = vmatprep.subr.msk.bf16.mxu1 %vm22080_vm3, %v19812_v60  ;;  %v20574_v14 = vunpack.i.h.bf16 %v20572_v59  ;;  %v20573_v22 = vunpack.i.l.bf16 %v20572_v59 }
 0x4b7   : > { %v3067_v4 = vpop.permute.xlu1 %3066  ;;  %v19836_v19 = vpack.c.bf16 %v20574_v14, %v20573_v22 }
 0x4ba   : > { %18652 = vmatmul.mubr.msk.f32.vlgmr.msra.gmra.mrb[34].mxu0 %vm1014_vm2, %v2703_v44  ;;  %18659 = vmatmul.mubr.msk.f32.vlgmr.msra.gmra.mrb[32].mxu1 %vm1014_vm2, %v2794_v30  ;;  %v20569_v44 = vunpack.i.h.bf16 %v20567_v20  ;;  %v20568_v30 = vunpack.i.l.bf16 %v20567_v20 }
 0x4bb   : > { %19811 = vmatpush3.bf16.xpose.msk.msra.mxu0 %vm22080_vm3, %v19806_v34  ;;  %18665 = vmatprep.mubr.msk.f32.mxu0 %vm1014_vm2, %v2883_v27  ;;  %v3158_v41 = vpop.permute.xlu1 %3157 }
 0x4bc   : > { %19817 = vmatpush3.bf16.xpose.msk.msra.mxu1 %vm22080_vm3, %v19812_v60  ;;  %18672 = vmatprep.mubr.msk.f32.mxu1 %vm1014_vm2, %v2974_v53  ;;  %v19830_v27 = vpack.c.bf16 %v20569_v44, %v20568_v30  ;;  %v20582_v53 = vpop.permute.xlu0 %20581 }
 0x4bd   : > { %19820 = vmatprep.subr.msk.bf16.mxu0 %vm22080_vm3, %v19818_v58  ;;  %19826 = vmatprep.subr.msk.bf16.mxu1 %vm22080_vm3, %v19824_v21  ;;  %v20584_v5 = vunpack.i.h.bf16 %v20582_v53  ;;  %v20583_v17 = vunpack.i.l.bf16 %v20582_v53 }
 0x4bf   : > { %v3249_v46 = vpop.permute.xlu1 %3248  ;;  %v22517_v6 = vpack.c.bf16 %v20584_v5, %v20583_v17 }
 0x4c2   : > { %18666 = vmatmul.mubr.msk.f32.vlgmr.msra.gmra.mrb[36].mxu0 %vm1014_vm2, %v2885_v29 }
 0x4c3   : > { %18673 = vmatmul.mubr.msk.f32.vlgmr.msra.gmra.mrb[34].mxu1 %vm1014_vm2, %v2976_v26  ;;  %19823 = vmatpush3.bf16.xpose.msk.msra.mxu0 %vm22080_vm3, %v19818_v58  ;;  %v20577_v63 = vpop.permute.xlu1 %20576 }
 0x4c4   : > { %18679 = vmatprep.mubr.msk.f32.mxu0 %vm1014_vm2, %v3065_v12  ;;  %19829 = vmatpush3.bf16.xpose.msk.msra.mxu1 %vm22080_vm3, %v19824_v21  ;;  %v20579_v26 = vunpack.i.h.bf16 %v20577_v63  ;;  %v20578_v24 = vunpack.i.l.bf16 %v20577_v63 }
 0x4c5   : > { %18686 = vmatprep.mubr.msk.f32.mxu1 %vm1014_vm2, %v3156_v42  ;;  %19832 = vmatprep.subr.msk.bf16.mxu0 %vm22080_vm3, %v19830_v27 }
 0x4c6   : > { %19837 = vmatprep.subr.bf16.mxu1 %v19836_v19  ;;  %v19840_v3 = vpack.c.bf16 %v20579_v26, %v20578_v24 }
 0x4c7   : > { %v20587_v9 = vpop.permute.xlu1 %20586 }
 0x4c8   : > { %v20589_v20 = vunpack.i.h.bf16 %v20587_v9  ;;  %v20588_v29 = vunpack.i.l.bf16 %v20587_v9 }
 0x4ca   : > { %18680 = vmatmul.mubr.msk.f32.vlgmr.msra.gmra.mrb[38].mxu0 %vm1014_vm2, %v3067_v4  ;;  %v22522_v37 = vpack.c.bf16 %v20589_v20, %v20588_v29 }
 0x4cb   : > { %18687 = vmatmul.mubr.msk.f32.vlgmr.msra.gmra.mrb[36].mxu1 %vm1014_vm2, %v3158_v41  ;;  %19835 = vmatpush3.bf16.xpose.msk.msra.mxu0 %vm22080_vm3, %v19830_v27 }
 0x4cc   : > { %18693 = vmatprep.mubr.msk.f32.mxu0 %vm1014_vm2, %v3247_v54  ;;  %19839 = vmatpush3.bf16.msra.mxu1 %v19836_v19 }
 0x4cd   : > { %19841 = vmatprep.subr.bf16.mxu0 %v19840_v3  ;;  %19845 = vmatprep.subr.bf16.mxu1 %v22517_v6 }
 0x4d2   : > { %18694 = vmatmul.mubr.msk.f32.vlgmr.msra.gmra.mrb[40].mxu0 %vm1014_vm2, %v3249_v46 }
 0x4d3   : > { %19843 = vmatpush3.bf16.msra.mxu0 %v19840_v3 }
 0x4d4   : > { %19849 = vmatprep.subr.bf16.mxu0 %v22522_v37 }
 0x52f   : > { %v22525_v32 = vpop.f32.mrb[24].mxu0 }
 0x530   : > { %26846 = vst [vmem:[#allocation20_spill] sm:$0xff] %v22525_v32  ;;  %v22527_v49 = vpop.f32.mrb[25].mxu0 }
 0x531   : > { %26847 = vst [vmem:[#allocation21_spill] sm:$0xff] %v22527_v49 }
 0x537   : > { %v22529_v45 = vpop.f32.mrb[26].mxu0 }
 0x538   : > { %26848 = vst [vmem:[#allocation22_spill] sm:$0xff] %v22529_v45  ;;  %v22531_v48 = vpop.f32.mrb[27].mxu0 }
 0x539   : > { %26849 = vst [vmem:[#allocation23_spill] sm:$0xff] %v22531_v48 }
 0x53b   : > { %v22533_v56 = vpop.f32.mrb[24].mxu1 }
 0x53c   : > { %26850 = vst [vmem:[#allocation24_spill] sm:$0xff] %v22533_v56  ;;  %v22535_v31 = vpop.f32.mrb[25].mxu1 }
 0x53d   : > { %26851 = vst [vmem:[#allocation25_spill] sm:$0xff] %v22535_v31 }
 0x53f   : > { %v22537_v51 = vpop.f32.mrb[28].mxu0 }
 0x540   : > { %26852 = vst [vmem:[#allocation26_spill] sm:$0xff] %v22537_v51  ;;  %v22539_v16 = vpop.f32.mrb[29].mxu0 }
 0x541   : > { %26853 = vst [vmem:[#allocation27_spill] sm:$0xff] %v22539_v16 }
 0x543   : > { %v22541_v42 = vpop.f32.mrb[26].mxu1 }
 0x544   : > { %26854 = vst [vmem:[#allocation28_spill] sm:$0xff] %v22541_v42  ;;  %v22543_v34 = vpop.f32.mrb[27].mxu1 }
 0x545   : > { %26855 = vst [vmem:[#allocation29_spill] sm:$0xff] %v22543_v34 }
 0x546   : > { %v22545_v60 = vpop.f32.mrb[30].mxu0 }
 0x547   : > { %26856 = vst [vmem:[#allocation30_spill] sm:$0xff] %v22545_v60  ;;  %v22547_v12 = vpop.f32.mrb[31].mxu0 }
 0x548   : > { %26857 = vst [vmem:[#allocation31_spill] sm:$0xff] %v22547_v12 }
 0x57d   : > { %v22549_v54 = vpop.f32.mrb[28].mxu1 }
 0x57e   : > { %26858 = vst [vmem:[#allocation32_spill] sm:$0xff] %v22549_v54  ;;  %v22551_v50 = vpop.f32.mrb[29].mxu1 }
 0x57f   : > { %26859 = vst [vmem:[#allocation33_spill] sm:$0xff] %v22551_v50 }
 0x585   : > { %v22553_v38 = vpop.f32.mrb[30].mxu1  ;;  %v22555_v33 = vpop.f32.mrb[32].mxu0 }
 0x586   : > { %26860 = vst [vmem:[#allocation34_spill] sm:$0xff] %v22555_v33  ;;  %v22557_v40 = vpop.f32.mrb[31].mxu1  ;;  %v3340_v4 = vsel %vm575_vm0, %v22553_v38, -inf  ;;  %v22561_v58 = vpop.f32.mrb[33].mxu0 }
 0x587   : > { %26861 = vst [vmem:[#allocation35_spill] sm:$0xff] %v22561_v58  ;;  %3341 = vmax.xlane.f32.xlu1 %v3340_v4  ;;  %v3337_v21 = vsel %vm575_vm0, %v22557_v40, -inf }
 0x588   : > { %3338 = vmax.xlane.f32.xlu0 %v3337_v21 }
 0x58d   : > { %v22565_v41 = vpop.f32.mrb[34].mxu0  ;;  %v22567_v59 = vpop.f32.mrb[32].mxu1 }
 0x58e   : > { %v22569_v44 = vpop.f32.mrb[35].mxu0  ;;  %v22571_v30 = vpop.f32.mrb[33].mxu1  ;;  %v3346_v46 = vsel %vm575_vm0, %v22565_v41, -inf  ;;  %v3352_v22 = vsel %vm575_vm0, %v22567_v59, -inf }
 0x58f   : > { %3347 = vmax.xlane.f32.xlu1 %v3346_v46  ;;  %v3343_v14 = vsel %vm575_vm0, %v22569_v44, -inf  ;;  %v3349_v17 = vsel %vm575_vm0, %v22571_v30, -inf }
 0x590   : > { %3344 = vmax.xlane.f32.xlu0 %v3343_v14 }
 0x594   : > { %3353 = vmax.xlane.f32.xlu0 %v3352_v22 }
 0x595   : > { %v22579_v27 = vpop.f32.mrb[36].mxu0 }
 0x596   : > { %v22581_v53 = vpop.f32.mrb[34].mxu1  ;;  %v22583_v63 = vpop.f32.mrb[37].mxu0  ;;  %v3358_v19 = vsel %vm575_vm0, %v22579_v27, -inf }
 0x597   : > { %v22587_v5 = vpop.f32.mrb[35].mxu1  ;;  %3359 = vmax.xlane.f32.xlu1 %v3358_v19  ;;  %v3355_v26 = vsel %vm575_vm0, %v22583_v63, -inf  ;;  %v3364_v24 = vsel %vm575_vm0, %v22581_v53, -inf }
 0x598   : > { %3350 = vmax.xlane.f32.xlu0 %v3349_v17  ;;  %v3361_v4 = vsel %vm575_vm0, %v22587_v5, -inf }
 0x59b   : > { %3356 = vmax.xlane.f32.xlu1 %v3355_v26 }
 0x59c   : > { %3365 = vmax.xlane.f32.xlu0 %v3364_v24 }
 0x59d   : > { %v22595_v9 = vpop.f32.mrb[38].mxu0 }
 0x59e   : > { %v22597_v3 = vpop.f32.mrb[36].mxu1  ;;  %v22599_v20 = vpop.f32.mrb[39].mxu0  ;;  %v3370_v46 = vsel %vm575_vm0, %v22595_v9, -inf }
 0x59f   : > { %v22601_v29 = vpop.f32.mrb[37].mxu1  ;;  %v3367_v21 = vsel %vm575_vm0, %v22599_v20, -inf  ;;  %v3376_v17 = vsel %vm575_vm0, %v22597_v3, -inf }
 0x5a0   : > { %3362 = vmax.xlane.f32.xlu0 %v3361_v4  ;;  %3368 = vmax.xlane.f32.xlu1 %v3367_v21  ;;  %v3373_v14 = vsel %vm575_vm0, %v22601_v29, -inf  ;;  %v22633_v4 = vpop.permute.xlu1 %20596  ;;  %v22635_v21 = vpop.permute.xlu0 %20591 }
 0x5a1   : > { %v20593_v31 = vunpack.i.l.bf16 %v22635_v21 }
 0x5a4   : > { %3371 = vmax.xlane.f32.xlu0 %v3370_v46  ;;  %3374 = vmax.xlane.f32.xlu1 %v3373_v14  ;;  %v22637_v46 = vpop.permute.xlu1 %20606  ;;  %v22639_v14 = vpop.permute.xlu0 %20601 }
 0x5a5   : > { %v22611_v22 = vpop.f32.mrb[40].mxu0 }
 0x5a6   : > { %v22613_v19 = vpop.f32.mrb[41].mxu0  ;;  %v3382_v26 = vsel %vm575_vm0, %v22611_v22, -inf }
 0x5a7   : > { %v3379_v24 = vsel %vm575_vm0, %v22613_v19, -inf }
 0x5a8   : > { %3377 = vmax.xlane.f32.xlu0 %v3376_v17 }
 0x5ac   : > { %3383 = vmax.xlane.f32.xlu0 %v3382_v26 }
 0x5b5   : > { %20616 = vrot.lane.b32.xlu1 %v21997_v7, %s26794_s19 }
 0x5b9   : > { %4209 = vrot.lane.b32.xlu1 %v21988_v2, %s26792_s1 }
 0x5bd   : > { %20626 = vrot.lane.b32.xlu1 %v22018_v18, %s26794_s19 }
 0x5c2   : > { %20611 = vrot.lane.b32.xlu0 %v21986_v1, %s26794_s19 }
 0x5c6   : > { %20621 = vrot.lane.b32.xlu0 %v22008_v13, %s26794_s19 }
 0x5ca   : > { %4211 = vrot.lane.b32.xlu0 %v22093_v10, %s26792_s1 }
 0x5e1   : > { %3380 = vmax.xlane.f32.xlu1 %v3379_v24 }
 0x614   : > { %v3342_v17 = vpop.xlane.xlu1 %3341 }
 0x615   : > { %v3386_v26 = vsub.f32 %v22553_v38, %v3342_v17  ;;  %v3339_v33 = vpop.xlane.xlu0 %3338 }
 0x616   : > { %v3385_v58 = vsub.f32 %v22557_v40, %v3339_v33 }
 0x617   : > { %v3403_v54 = vmul.f32 1.442695, %v3386_v26 }
 0x618   : > { %v3401_v50 = vmul.f32 1.442695, %v3385_v58 }
 0x619   : > { %21154 = vpow2.f32 %v3403_v54 }
 0x61a   : > { %21156 = vpow2.f32 %v3401_v50 }
 0x61c   : > { %v3348_v60 = vpop.xlane.xlu1 %3347 }
 0x61d   : > { %v3388_v24 = vsub.f32 %v22565_v41, %v3348_v60  ;;  %v3345_v12 = vpop.xlane.xlu0 %3344 }
 0x61e   : > { %v3387_v42 = vsub.f32 %v22569_v44, %v3345_v12 }
 0x61f   : > { %v3407_v34 = vmul.f32 1.442695, %v3388_v24 }
 0x620   : > { %v3405_v51 = vmul.f32 1.442695, %v3387_v42 }
 0x621   : > { %21158 = vpow2.f32 %v3407_v34  ;;  %v3354_v16 = vpop.xlane.xlu0 %3353 }
 0x622   : > { %v3390_v56 = vsub.f32 %v22567_v59, %v3354_v16  ;;  %21160 = vpow2.f32 %v3405_v51 }
 0x623   : > { %v22646_v38 = vpop.eup %21154 }
 0x624   : > { %v22648_v33 = vpop.eup %21156  ;;  %v3411_v40 = vmul.f32 1.442695, %v3390_v56  ;;  %v3360_v54 = vpop.xlane.xlu1 %3359  ;;  %v3436_v50 = vsel %vm575_vm0, %v22646_v38, 0.0 }
 0x625   : > { %v3392_v60 = vsub.f32 %v22579_v27, %v3360_v54  ;;  %v3351_v58 = vpop.xlane.xlu0 %3350  ;;  %3437 = vadd.xlane.f32.xlu0 %v3436_v50  ;;  %v3433_v42 = vsel %vm575_vm0, %v22648_v33, 0.0 }
 0x626   : > { %21162 = vpow2.f32 %v3411_v40  ;;  %v3389_v16 = vsub.f32 %v22571_v30, %v3351_v58  ;;  %3434 = vadd.xlane.f32.xlu1 %v3433_v42 }
 0x627   : > { %v3415_v34 = vmul.f32 1.442695, %v3392_v60 }
 0x628   : > { %v3409_v51 = vmul.f32 1.442695, %v3389_v16  ;;  %v3357_v12 = vpop.xlane.xlu1 %3356 }
 0x629   : > { %21164 = vpow2.f32 %v3415_v34  ;;  %v3391_v56 = vsub.f32 %v22583_v63, %v3357_v12  ;;  %v3366_v41 = vpop.xlane.xlu0 %3365 }
 0x62a   : > { %21166 = vpow2.f32 %v3409_v51  ;;  %v3394_v59 = vsub.f32 %v22581_v53, %v3366_v41 }
 0x62b   : > { %v22658_v44 = vpop.eup %21158  ;;  %v3413_v27 = vmul.f32 1.442695, %v3391_v56 }
 0x62c   : > { %v3419_v17 = vmul.f32 1.442695, %v3394_v59  ;;  %v3442_v26 = vsel %vm575_vm0, %v22658_v44, 0.0  ;;  %v22662_v24 = vpop.eup %21160 }
 0x62d   : > { %21168 = vpow2.f32 %v3413_v27  ;;  %v3363_v30 = vpop.xlane.xlu0 %3362  ;;  %v3369_v40 = vpop.xlane.xlu1 %3368  ;;  %3443 = vadd.xlane.f32.xlu1 %v3442_v26  ;;  %v3439_v58 = vsel %vm575_vm0, %v22662_v24, 0.0 }
 0x62e   : > { %21170 = vpow2.f32 %v3419_v17  ;;  %v3393_v63 = vsub.f32 %v22587_v5, %v3363_v30  ;;  %v3395_v54 = vsub.f32 %v22599_v20, %v3369_v40 }
 0x630   : > { %v22666_v50 = vpop.eup %21162  ;;  %v3417_v53 = vmul.f32 1.442695, %v3393_v63  ;;  %v3421_v60 = vmul.f32 1.442695, %v3395_v54 }
 0x631   : > { %v3372_v42 = vpop.xlane.xlu0 %3371  ;;  %3440 = vadd.xlane.f32.xlu1 %v3439_v58  ;;  %v3448_v16 = vsel %vm575_vm0, %v22666_v50, 0.0 }
 0x632   : > { %21172 = vpow2.f32 %v3417_v53  ;;  %v3396_v34 = vsub.f32 %v22595_v9, %v3372_v42  ;;  %3449 = vadd.xlane.f32.xlu0 %v3448_v16  ;;  %v3375_v16 = vpop.xlane.xlu1 %3374 }
 0x633   : > { %v22673_v51 = vpop.eup %21164  ;;  %21174 = vpow2.f32 %v3421_v60 }
 0x634   : > { %v22675_v5 = vpop.eup %21166  ;;  %v3423_v20 = vmul.f32 1.442695, %v3396_v34  ;;  %v3454_v12 = vsel %vm575_vm0, %v22673_v51, 0.0 }
 0x635   : > { %v3378_v56 = vpop.xlane.xlu0 %3377  ;;  %3455 = vadd.xlane.f32.xlu1 %v3454_v12  ;;  %v3445_v41 = vsel %vm575_vm0, %v22675_v5, 0.0 }
 0x636   : > { %21176 = vpow2.f32 %v3423_v20  ;;  %v3398_v59 = vsub.f32 %v22597_v3, %v3378_v56  ;;  %3446 = vadd.xlane.f32.xlu0 %v3445_v41  ;;  %v22712_v34 = vpop.permute.xlu1 %20616  ;;  %v3397_v20 = vsub.f32 %v22601_v29, %v3375_v16 }
 0x637   : > { %v22682_v9 = vpop.eup %21168 }
 0x638   : > { %v22684_v27 = vpop.eup %21170  ;;  %v3427_v17 = vmul.f32 1.442695, %v3398_v59  ;;  %v3451_v26 = vsel %vm575_vm0, %v22682_v9, 0.0  ;;  %v3425_v41 = vmul.f32 1.442695, %v3397_v20 }
 0x639   : > { %3452 = vadd.xlane.f32.xlu1 %v3451_v26  ;;  %v3460_v30 = vsel %vm575_vm0, %v22684_v27, 0.0  ;;  %v3384_v56 = vpop.xlane.xlu0 %3383 }
 0x63a   : > { %21178 = vpow2.f32 %v3427_v17  ;;  %3461 = vadd.xlane.f32.xlu0 %v3460_v30  ;;  %v22717_v12 = vpop.permute.xlu1 %4209  ;;  %v3400_v59 = vsub.f32 %v22611_v22, %v3384_v56  ;;  %v26862_v56 = vld [vmem:[#allocation18_spill] sm:$0xff] }
 0x63b   : > { %21180 = vpow2.f32 %v3425_v41 }
 0x63c   : > { %v22690_v40 = vpop.eup %21172  ;;  %v3431_v26 = vmul.f32 1.442695, %v3400_v59  ;;  %v26863_v59 = vld [vmem:[#allocation19_spill] sm:$0xff] }
 0x63d   : > { %v22692_v63 = vpop.eup %21174  ;;  %v3457_v3 = vsel %vm575_vm0, %v22690_v40, 0.0  ;;  %v22765_v20 = vpop.permute.xlu0 %20611 }
 0x63e   : > { %3458 = vadd.xlane.f32.xlu0 %v3457_v3  ;;  %v3463_v54 = vsel %vm575_vm0, %v22692_v63, 0.0  ;;  %v22724_v17 = vpop.permute.xlu1 %20626  ;;  %21182 = vpow2.f32 %v3431_v26 }
 0x63f   : > { %3464 = vadd.xlane.f32.xlu1 %v3463_v54 }
 0x640   : > { %v22698_v53 = vpop.eup %21176 }
 0x641   : > { %v3466_v60 = vsel %vm575_vm0, %v22698_v53, 0.0  ;;  %v22771_v41 = vpop.permute.xlu0 %20621 }
 0x642   : > { %3467 = vadd.xlane.f32.xlu0 %v3466_v60 }
 0x644   : > { %v22702_v58 = vpop.eup %21178 }
 0x645   : > { %v3472_v42 = vsel %vm575_vm0, %v22702_v58, 0.0  ;;  %v22733_v22 = vpop.eup %21180  ;;  %v22775_v26 = vpop.permute.xlu0 %4211 }
 0x646   : > { %3473 = vadd.xlane.f32.xlu0 %v3472_v42  ;;  %v3469_v54 = vsel %vm575_vm0, %v22733_v22, 0.0 }
 0x648   : > { %v22739_v60 = vpop.eup %21182 }
 0x650   : > { %4302 = vrot.lane.b32.xlu1 %v22106_v61, %s26792_s1 }
 0x654   : > { %4391 = vrot.lane.b32.xlu1 %v22095_v15, %s26792_s1 }
 0x65c   : > { %4300 = vrot.lane.b32.xlu0 %v21999_v8, %s26792_s1 }
 0x660   : > { %20631 = vrot.lane.b32.xlu0 %v22028_v23, %s26794_s19 }
 0x664   : > { %4393 = vrot.lane.b32.xlu0 %v22120_v36, %s26792_s1 }
 0x668   : > { %4482 = vrot.lane.b32.xlu0 %v22109_v25, %s26792_s1 }
 0x66c   : > { %4573 = vrot.lane.b32.xlu0 %v22123_v43, %s26792_s1 }
 0x66e   : > { %v3381_v29 = vpop.xlane.xlu1 %3380 }
 0x66f   : > { %v3399_v30 = vsub.f32 %v22613_v19, %v3381_v29  ;;  %v3478_v19 = vsel %vm575_vm0, %v22739_v60, 0.0 }
 0x670   : > { %4575 = vrot.lane.b32.xlu0 %v22148_v62, %s26792_s1 }
 0x671   : > { %v3429_v3 = vmul.f32 1.442695, %v3399_v30 }
 0x673   : > { %21184 = vpow2.f32 %v3429_v3 }
 0x674   : > { %20646 = vrot.lane.b32.xlu0 %v22058_v47, %s26794_s19 }
 0x678   : > { %4755 = vrot.lane.b32.xlu0 %v22151_v0, %s26792_s1  ;;  %3470 = vadd.xlane.f32.xlu1 %v3469_v54 }
 0x67c   : > { %4846 = vrot.lane.b32.xlu0 %v22165_v11, %s26792_s1  ;;  %3479 = vadd.xlane.f32.xlu1 %v3478_v19 }
 0x67d   : > { %v22745_v42 = vpop.eup %21184 }
 0x67e   : > { %v3475_v16 = vsel %vm575_vm0, %v22745_v42, 0.0 }
 0x680   : > { %20651 = vrot.lane.b32.xlu0 %v21986_v1, %s26790_s20  ;;  %3476 = vadd.xlane.f32.xlu1 %v3475_v16  ;;  %v20594_v16 = vunpack.i.h.bf16 %v22635_v21 }
 0x682   : > { %v19852_v49 = vpack.c.bf16 %v20594_v16, %v20593_v31 }
 0x684   : > { %20661 = vrot.lane.b32.xlu0 %v22008_v13, %s26790_s20 }
 0x688   : > { %20671 = vrot.lane.b32.xlu0 %v22028_v23, %s26790_s20 }
 0x68c   : > { %20681 = vrot.lane.b32.xlu0 %v22048_v39, %s26790_s20 }
 0x691   : > { %20636 = vrot.lane.b32.xlu1 %v22038_v28, %s26794_s19 }
 0x695   : > { %4484 = vrot.lane.b32.xlu1 %v22134_v52, %s26792_s1 }
 0x699   : > { %20641 = vrot.lane.b32.xlu1 %v22048_v39, %s26794_s19  ;;  %s26952_s19 = smov 80  }
 0x69d   : > { %4664 = vrot.lane.b32.xlu1 %v22137_v57, %s26792_s1 }
 0x6a1   : > { %4666 = vrot.lane.b32.xlu1 %v22162_v35, %s26792_s1 }
 0x6a5   : > { %4757 = vrot.lane.b32.xlu1 %v26862_v56, %s26792_s1 }
 0x6a9   : > { %4848 = vrot.lane.b32.xlu1 %v26863_v59, %s26792_s1  ;;  %s26953_s1 = smov 112  }
 0x6ad   : > { %20656 = vrot.lane.b32.xlu1 %v21997_v7, %s26790_s20 }
 0x6b1   : > { %20666 = vrot.lane.b32.xlu1 %v22018_v18, %s26790_s20 }
 0x6b2   : > { %v3438_v29 = vpop.xlane.xlu0 %3437 }
 0x6b3   : > { %21186 = vrcp.f32 %v3438_v29  ;;  %v3435_v30 = vpop.xlane.xlu1 %3434 }
 0x6b4   : > { %21188 = vrcp.f32 %v3435_v30 }
 0x6b5   : > { %20676 = vrot.lane.b32.xlu1 %v22038_v28, %s26790_s20 }
 0x6b9   : > { %20686 = vrot.lane.b32.xlu1 %v22058_v47, %s26790_s20  ;;  %s26954_s20 = smov 48  }
 0x6ba   : > { %v3444_v3 = vpop.xlane.xlu1 %3443 }
 0x6bb   : > { %21190 = vrcp.f32 %v3444_v3 }
 0x6bd   : > { %v21187_v54 = vpop.eup %21186 }
 0x6be   : > { %v21189_v19 = vpop.eup %21188  ;;  %v3441_v45 = vpop.xlane.xlu1 %3440  ;;  %v3498_v30 = vmul.f32 %v21187_v54, %v22646_v38  ;;  %v20599_v38 = vunpack.i.h.bf16 %v22633_v4  ;;  %v20598_v54 = vunpack.i.l.bf16 %v22633_v4 }
 0x6bf   : > { %21192 = vrcp.f32 %v3441_v45  ;;  %v3450_v48 = vpop.xlane.xlu0 %3449  ;;  %v3497_v29 = vmul.f32 %v21189_v19, %v22648_v33 }
 0x6c0   : > { %21194 = vrcp.f32 %v3450_v48 }
 0x6c1   : > { %18700 = vmatprep.mubr.msk.f32.mxu1 %vm575_vm0, %v3497_v29  ;;  %v20604_v29 = vunpack.i.h.bf16 %v22639_v14 }
 0x6c2   : > { %18701 = vmatmul.mubr.msk.f32.vlgmr.msra.gmra.mrb[38].mxu1 %vm575_vm0, %v3498_v30  ;;  %v3456_v32 = vpop.xlane.xlu1 %3455  ;;  %v20603_v30 = vunpack.i.l.bf16 %v22639_v14 }
 0x6c3   : > { %19847 = vmatpush3.bf16.msra.mxu1 %v22517_v6  ;;  %v3447_v59 = vpop.xlane.xlu0 %3446 }
 0x6c4   : > { %21196 = vrcp.f32 %v3447_v59  ;;  %19853 = vmatprep.subr.bf16.mxu1 %v19852_v49  ;;  %v19856_v59 = vpack.c.bf16 %v20599_v38, %v20598_v54  ;;  %v19860_v14 = vpack.c.bf16 %v20604_v29, %v20603_v30 }
 0x6c5   : > { %21198 = vrcp.f32 %v3456_v32  ;;  %v21191_v3 = vpop.eup %21190 }
 0x6c6   : > { %v3453_v21 = vpop.xlane.xlu1 %3452  ;;  %v3500_v48 = vmul.f32 %v21191_v3, %v22658_v44  ;;  %v20609_v3 = vunpack.i.h.bf16 %v22637_v46 }
 0x6c7   : > { %21200 = vrcp.f32 %v3453_v21  ;;  %v3462_v45 = vpop.xlane.xlu0 %3461 }
 0x6c8   : > { %21202 = vrcp.f32 %v3462_v45 }
 0x6c9   : > { %v21193_v33 = vpop.eup %21192 }
 0x6ca   : > { %v3499_v19 = vmul.f32 %v21193_v33, %v22662_v24  ;;  %v21195_v6 = vpop.eup %21194  ;;  %v20608_v33 = vunpack.i.l.bf16 %v22637_v46  ;;  %v20614_v46 = vunpack.i.h.bf16 %v22765_v20 }
 0x6cb   : > { %v3459_v31 = vpop.xlane.xlu0 %3458  ;;  %v3502_v21 = vmul.f32 %v21195_v6, %v22666_v50 }
 0x6cc   : > { %21204 = vrcp.f32 %v3459_v31  ;;  %18707 = vmatprep.mubr.msk.f32.mxu0 %vm575_vm0, %v3499_v19  ;;  %v3465_v32 = vpop.xlane.xlu1 %3464  ;;  %v19864_v50 = vpack.c.bf16 %v20609_v3, %v20608_v33  ;;  %v20613_v19 = vunpack.i.l.bf16 %v22765_v20 }
 0x6cd   : > { %18708 = vmatmul.mubr.msk.f32.vlgmr.msra.gmra.mrb[42].mxu0 %vm575_vm0, %v3500_v48  ;;  %21206 = vrcp.f32 %v3465_v32  ;;  %v20618_v48 = vunpack.i.l.bf16 %v22712_v34 }
 0x6ce   : > { %v21197_v16 = vpop.eup %21196  ;;  %19851 = vmatpush3.bf16.msra.mxu0 %v22522_v37 }
 0x6cf   : > { %19857 = vmatprep.subr.bf16.mxu0 %v19856_v59  ;;  %v3468_v4 = vpop.xlane.xlu0 %3467  ;;  %v3501_v44 = vmul.f32 %v21197_v16, %v22675_v5  ;;  %v21199_v24 = vpop.eup %21198  ;;  %v19868_v16 = vpack.c.bf16 %v20614_v46, %v20613_v19 }
 0x6d0   : > { %21208 = vrcp.f32 %v3468_v4  ;;  %v3504_v38 = vmul.f32 %v21199_v24, %v22673_v51  ;;  %v20619_v51 = vunpack.i.h.bf16 %v22712_v34 }
 0x6d1   : > { %v21201_v45 = vpop.eup %21200  ;;  %18714 = vmatprep.mubr.msk.f32.mxu1 %vm575_vm0, %v3501_v44 }
 0x6d2   : > { %18715 = vmatmul.mubr.msk.f32.vlgmr.msra.gmra.mrb[40].mxu1 %vm575_vm0, %v3502_v21  ;;  %v3503_v37 = vmul.f32 %v21201_v45, %v22682_v9  ;;  %v21203_v5 = vpop.eup %21202 }
 0x6d3   : > { %19855 = vmatpush3.bf16.msra.mxu1 %v19852_v49  ;;  %v3506_v49 = vmul.f32 %v21203_v5, %v22684_v27  ;;  %v19874_v27 = vpack.c.bf16 %v20619_v51, %v20618_v48 }
 0x6d4   : > { %19861 = vmatprep.subr.bf16.mxu1 %v19860_v14  ;;  %18721 = vmatprep.mubr.msk.f32.mxu0 %vm575_vm0, %v3503_v37  ;;  %v20623_v37 = vunpack.i.l.bf16 %v22771_v41 }
 0x6d5   : > { %18722 = vmatmul.mubr.msk.f32.vlgmr.msra.gmra.mrb[44].mxu0 %vm575_vm0, %v3504_v38 }
 0x6d6   : > { %v21205_v54 = vpop.eup %21204  ;;  %19859 = vmatpush3.bf16.msra.mxu0 %v19856_v59  ;;  %v4303_v59 = vpop.permute.xlu1 %4302 }
 0x6d7   : > { %19865 = vmatprep.subr.bf16.mxu0 %v19864_v50  ;;  %v3505_v31 = vmul.f32 %v21205_v54, %v22690_v40  ;;  %v21207_v9 = vpop.eup %21206 }
 0x6d8   : > { %v3507_v6 = vmul.f32 %v21207_v9, %v22692_v63  ;;  %v3474_v63 = vpop.xlane.xlu0 %3473 }
 0x6d9   : > { %18728 = vmatprep.mubr.msk.f32.mxu1 %vm575_vm0, %v3505_v31  ;;  %21210 = vrcp.f32 %v3474_v63  ;;  %v20628_v31 = vunpack.i.l.bf16 %v22724_v17 }
 0x6da   : > { %v21209_v32 = vpop.eup %21208  ;;  %18729 = vmatmul.mubr.msk.f32.vlgmr.msra.gmra.mrb[42].mxu1 %vm575_vm0, %v3506_v49  ;;  %18735 = vmatprep.mubr.msk.f32.mxu0 %vm575_vm0, %v3507_v6  ;;  %v4392_v30 = vpop.permute.xlu1 %4391 }
 0x6db   : > { %19863 = vmatpush3.bf16.msra.mxu1 %v19860_v14  ;;  %v3508_v40 = vmul.f32 %v21209_v32, %v22698_v53  ;;  %v20624_v14 = vunpack.i.h.bf16 %v22771_v41 }
 0x6dc   : > { %19870 = vmatprep.subr.msk.bf16.mxu1 %vm22080_vm3, %v19868_v16  ;;  %v4301_v34 = vpop.permute.xlu0 %4300 }
 0x6dd   : > { %18736 = vmatmul.mubr.msk.f32.vlgmr.msra.gmra.mrb[46].mxu0 %vm575_vm0, %v3508_v40  ;;  %v19880_v54 = vpack.c.bf16 %v20624_v14, %v20623_v37 }
 0x6de   : > { %19867 = vmatpush3.bf16.msra.mxu0 %v19864_v50 }
 0x6df   : > { %19876 = vmatprep.subr.msk.bf16.mxu0 %vm22080_vm3, %v19874_v27 }
 0x6e0   : > { %v20632_v20 = vpop.permute.xlu0 %20631 }
 0x6e1   : > { %v20634_v9 = vunpack.i.h.bf16 %v20632_v20  ;;  %v20633_v49 = vunpack.i.l.bf16 %v20632_v20 }
 0x6e3   : > { %v21211_v45 = vpop.eup %21210 }
 0x6e4   : > { %v4394_v29 = vpop.permute.xlu0 %4393  ;;  %v3510_v50 = vmul.f32 %v21211_v45, %v22702_v58  ;;  %v20629_v58 = vunpack.i.h.bf16 %v22724_v17 }
 0x6e8   : > { %v4483_v4 = vpop.permute.xlu0 %4482 }
 0x6ec   : > { %v4574_v53 = vpop.permute.xlu0 %4573 }
 0x6f0   : > { %v4576_v3 = vpop.permute.xlu0 %4575 }
 0x6f4   : > { %v20647_v46 = vpop.permute.xlu0 %20646 }
 0x6f8   : > { %v4756_v32 = vpop.permute.xlu0 %4755 }
 0x705   : > { %v3471_v44 = vpop.xlane.xlu1 %3470 }
 0x706   : > { %21212 = vrcp.f32 %v3471_v44 }
 0x709   : > { %v3480_v24 = vpop.xlane.xlu1 %3479 }
 0x70a   : > { %21214 = vrcp.f32 %v3480_v24 }
 0x70d   : > { %v3477_v21 = vpop.xlane.xlu1 %3476 }
 0x70e   : > { %21216 = vrcp.f32 %v3477_v21 }
 0x710   : > { %v21213_v33 = vpop.eup %21212 }
 0x711   : > { %v20637_v38 = vpop.permute.xlu1 %20636  ;;  %v3509_v5 = vmul.f32 %v21213_v33, %v22733_v22 }
 0x713   : > { %18742 = vmatprep.mubr.msk.f32.mxu1 %vm575_vm0, %v3509_v5 }
 0x714   : > { %18743 = vmatmul.mubr.msk.f32.vlgmr.msra.gmra.mrb[44].mxu1 %vm575_vm0, %v3510_v50  ;;  %v21215_v41 = vpop.eup %21214 }
 0x715   : > { %19873 = vmatpush3.bf16.xpose.msk.msra.mxu1 %vm22080_vm3, %v19868_v16  ;;  %18756 = vmatprep.mubr.msk.f32.mxu1 %vm1014_vm2, %v22717_v12  ;;  %v4485_v19 = vpop.permute.xlu1 %4484  ;;  %v3512_v6 = vmul.f32 %v21215_v41, %v22739_v60  ;;  %v19886_v12 = vpack.c.bf16 %v20629_v58, %v20628_v31  ;;  %v19892_v16 = vpack.c.bf16 %v20634_v9, %v20633_v49  ;;  %v4847_v60 = vpop.permute.xlu0 %4846 }
 0x716   : > { %19882 = vmatprep.subr.msk.bf16.mxu1 %vm22080_vm3, %v19880_v54 }
 0x718   : > { %v21217_v22 = vpop.eup %21216 }
 0x719   : > { %v20642_v51 = vpop.permute.xlu1 %20641  ;;  %v3511_v48 = vmul.f32 %v21217_v22, %v22745_v42  ;;  %v20639_v42 = vunpack.i.h.bf16 %v20637_v38  ;;  %v20652_v44 = vpop.permute.xlu0 %20651 }
 0x71a   : > { %v20644_v40 = vunpack.i.h.bf16 %v20642_v51  ;;  %v20643_v63 = vunpack.i.l.bf16 %v20642_v51  ;;  %v20654_v21 = vunpack.i.h.bf16 %v20652_v44  ;;  %v20653_v45 = vunpack.i.l.bf16 %v20652_v44 }
 0x71b   : > { %18749 = vmatprep.mubr.msk.f32.mxu0 %vm575_vm0, %v3511_v48 }
 0x71c   : > { %18757 = vmatmul.mubr.msk.f32.vlgmr.msra.gmra.mrb[46].mxu1 %vm1014_vm2, %v22775_v26  ;;  %18750 = vmatmul.mubr.msk.f32.vlgmr.msra.gmra.mrb[48].mxu0 %vm575_vm0, %v3512_v6  ;;  %v20638_v26 = vunpack.i.l.bf16 %v20637_v38  ;;  %v19916_v14 = vpack.c.bf16 %v20654_v21, %v20653_v45 }
 0x71d   : > { %19879 = vmatpush3.bf16.xpose.msk.msra.mxu0 %vm22080_vm3, %v19874_v27  ;;  %19885 = vmatpush3.bf16.xpose.msk.msra.mxu1 %vm22080_vm3, %v19880_v54  ;;  %v4665_v17 = vpop.permute.xlu1 %4664 }
 0x71e   : > { %18770 = vmatprep.mubr.msk.f32.mxu1 %vm1014_vm2, %v4392_v30  ;;  %18763 = vmatprep.mubr.msk.f32.mxu0 %vm1014_vm2, %v4301_v34  ;;  %v19898_v20 = vpack.c.bf16 %v20639_v42, %v20638_v26  ;;  %v19904_v30 = vpack.c.bf16 %v20644_v40, %v20643_v63 }
 0x71f   : > { %19888 = vmatprep.subr.msk.bf16.mxu0 %vm22080_vm3, %v19886_v12  ;;  %19894 = vmatprep.subr.msk.bf16.mxu1 %vm22080_vm3, %v19892_v16 }
 0x721   : > { %v4667_v27 = vpop.permute.xlu1 %4666 }
 0x724   : > { %18764 = vmatmul.mubr.msk.f32.vlgmr.msra.gmra.mrb[50].mxu0 %vm1014_vm2, %v4303_v59  ;;  %18771 = vmatmul.mubr.msk.f32.vlgmr.msra.gmra.mrb[48].mxu1 %vm1014_vm2, %v4394_v29  ;;  %v20649_v59 = vunpack.i.h.bf16 %v20647_v46  ;;  %v20648_v29 = vunpack.i.l.bf16 %v20647_v46 }
 0x725   : > { %19891 = vmatpush3.bf16.xpose.msk.msra.mxu0 %vm22080_vm3, %v19886_v12  ;;  %18777 = vmatprep.mubr.msk.f32.mxu0 %vm1014_vm2, %v4483_v4  ;;  %v4758_v34 = vpop.permute.xlu1 %4757 }
 0x726   : > { %19897 = vmatpush3.bf16.xpose.msk.msra.mxu1 %vm22080_vm3, %v19892_v16  ;;  %18784 = vmatprep.mubr.msk.f32.mxu1 %vm1014_vm2, %v4574_v53  ;;  %v19910_v4 = vpack.c.bf16 %v20649_v59, %v20648_v29  ;;  %v20662_v53 = vpop.permute.xlu0 %20661 }
 0x727   : > { %19900 = vmatprep.subr.msk.bf16.mxu0 %vm22080_vm3, %v19898_v20  ;;  %19906 = vmatprep.subr.msk.bf16.mxu1 %vm22080_vm3, %v19904_v30  ;;  %v20664_v37 = vunpack.i.h.bf16 %v20662_v53  ;;  %v20663_v38 = vunpack.i.l.bf16 %v20662_v53 }
 0x729   : > { %v4849_v24 = vpop.permute.xlu1 %4848  ;;  %v22883_v46 = vpack.c.bf16 %v20664_v37, %v20663_v38 }
 0x72c   : > { %18778 = vmatmul.mubr.msk.f32.vlgmr.msra.gmra.mrb[52].mxu0 %vm1014_vm2, %v4485_v19 }
 0x72d   : > { %18785 = vmatmul.mubr.msk.f32.vlgmr.msra.gmra.mrb[50].mxu1 %vm1014_vm2, %v4576_v3  ;;  %19903 = vmatpush3.bf16.xpose.msk.msra.mxu0 %vm22080_vm3, %v19898_v20  ;;  %v20657_v33 = vpop.permute.xlu1 %20656 }
 0x72e   : > { %18791 = vmatprep.mubr.msk.f32.mxu0 %vm1014_vm2, %v4665_v17  ;;  %19909 = vmatpush3.bf16.xpose.msk.msra.mxu1 %vm22080_vm3, %v19904_v30  ;;  %v20659_v3 = vunpack.i.h.bf16 %v20657_v33  ;;  %v20658_v5 = vunpack.i.l.bf16 %v20657_v33 }
 0x72f   : > { %18798 = vmatprep.mubr.msk.f32.mxu1 %vm1014_vm2, %v4756_v32  ;;  %19912 = vmatprep.subr.msk.bf16.mxu0 %vm22080_vm3, %v19910_v4 }
 0x730   : > { %19917 = vmatprep.subr.bf16.mxu1 %v19916_v14  ;;  %v19920_v54 = vpack.c.bf16 %v20659_v3, %v20658_v5 }
 0x731   : > { %v20667_v50 = vpop.permute.xlu1 %20666 }
 0x732   : > { %v20669_v19 = vunpack.i.h.bf16 %v20667_v50  ;;  %v20668_v41 = vunpack.i.l.bf16 %v20667_v50 }
 0x734   : > { %18792 = vmatmul.mubr.msk.f32.vlgmr.msra.gmra.mrb[54].mxu0 %vm1014_vm2, %v4667_v27  ;;  %v22888_v22 = vpack.c.bf16 %v20669_v19, %v20668_v41 }
 0x735   : > { %18799 = vmatmul.mubr.msk.f32.vlgmr.msra.gmra.mrb[52].mxu1 %vm1014_vm2, %v4758_v34  ;;  %19915 = vmatpush3.bf16.xpose.msk.msra.mxu0 %vm22080_vm3, %v19910_v4 }
 0x736   : > { %18805 = vmatprep.mubr.msk.f32.mxu0 %vm1014_vm2, %v4847_v60  ;;  %19919 = vmatpush3.bf16.msra.mxu1 %v19916_v14 }
 0x737   : > { %19921 = vmatprep.subr.bf16.mxu0 %v19920_v54  ;;  %19925 = vmatprep.subr.bf16.mxu1 %v22883_v46 }
 0x73c   : > { %18806 = vmatmul.mubr.msk.f32.vlgmr.msra.gmra.mrb[56].mxu0 %vm1014_vm2, %v4849_v24 }
 0x73d   : > { %19923 = vmatpush3.bf16.msra.mxu0 %v19920_v54 }
 0x73e   : > { %19929 = vmatprep.subr.bf16.mxu0 %v22888_v22 }
 0x795   : > { %v22891_v58 = vpop.f32.mrb[38].mxu1 }
 0x796   : > { %26864 = vst [vmem:[#allocation18_spill] sm:$0xff] %v22891_v58  ;;  %v22893_v31 = vpop.f32.mrb[39].mxu1 }
 0x7a0   : > { %v22895_v9 = vpop.f32.mrb[42].mxu0 }
 0x7a1   : > { %26865 = vst [vmem:[#allocation36_spill] sm:$0xff] %v22895_v9  ;;  %v22897_v49 = vpop.f32.mrb[43].mxu0 }
 0x7a5   : > { %v22899_v51 = vpop.f32.mrb[40].mxu1 }
 0x7a6   : > { %26866 = vst [vmem:[#allocation37_spill] sm:$0xff] %v22899_v51  ;;  %v22901_v48 = vpop.f32.mrb[41].mxu1 }
 0x7a8   : > { %v22903_v6 = vpop.f32.mrb[44].mxu0 }
 0x7a9   : > { %26867 = vst [vmem:[#allocation38_spill] sm:$0xff] %v22903_v6  ;;  %v22905_v32 = vpop.f32.mrb[45].mxu0 }
 0x7ad   : > { %v22907_v12 = vpop.f32.mrb[42].mxu1 }
 0x7ae   : > { %26868 = vst [vmem:[#allocation39_spill] sm:$0xff] %v22907_v12  ;;  %v22909_v16 = vpop.f32.mrb[43].mxu1 }
 0x7b0   : > { %v22911_v17 = vpop.f32.mrb[46].mxu0 }
 0x7b1   : > { %26869 = vst [vmem:[#allocation40_spill] sm:$0xff] %v22911_v17  ;;  %v22913_v60 = vpop.f32.mrb[47].mxu0 }
 0x7e7   : > { %v22915_v42 = vpop.f32.mrb[44].mxu1 }
 0x7e8   : > { %26870 = vst [vmem:[#allocation41_spill] sm:$0xff] %v22915_v42  ;;  %v22917_v26 = vpop.f32.mrb[45].mxu1 }
 0x7e9   : > { %26871 = vst [vmem:[#allocation42_spill] sm:$0xff] %v22917_v26 }
 0x7ef   : > { %v22919_v40 = vpop.f32.mrb[46].mxu1  ;;  %v22921_v63 = vpop.f32.mrb[48].mxu0 }
 0x7f0   : > { %26872 = vst [vmem:[#allocation43_spill] sm:$0xff] %v22921_v63  ;;  %v22923_v27 = vpop.f32.mrb[47].mxu1  ;;  %v4940_v20 = vsel %vm575_vm0, %v22919_v40, -inf  ;;  %v22927_v30 = vpop.f32.mrb[49].mxu0 }
 0x7f1   : > { %26873 = vst [vmem:[#allocation44_spill] sm:$0xff] %v22927_v30  ;;  %4941 = vmax.xlane.f32.xlu1 %v4940_v20  ;;  %v4937_v34 = vsel %vm575_vm0, %v22923_v27, -inf }
 0x7f2   : > { %4938 = vmax.xlane.f32.xlu0 %v4937_v34 }
 0x7f7   : > { %v22931_v44 = vpop.f32.mrb[50].mxu0  ;;  %v22933_v59 = vpop.f32.mrb[48].mxu1 }
 0x7f8   : > { %v22935_v29 = vpop.f32.mrb[51].mxu0  ;;  %v22937_v24 = vpop.f32.mrb[49].mxu1  ;;  %v4946_v21 = vsel %vm575_vm0, %v22931_v44, -inf  ;;  %v4952_v4 = vsel %vm575_vm0, %v22933_v59, -inf }
 0x7f9   : > { %4947 = vmax.xlane.f32.xlu1 %v4946_v21  ;;  %v4943_v45 = vsel %vm575_vm0, %v22935_v29, -inf  ;;  %v4949_v3 = vsel %vm575_vm0, %v22937_v24, -inf }
 0x7fa   : > { %4944 = vmax.xlane.f32.xlu0 %v4943_v45 }
 0x7fe   : > { %4953 = vmax.xlane.f32.xlu0 %v4952_v4 }
 0x7ff   : > { %v22945_v53 = vpop.f32.mrb[52].mxu0 }
 0x800   : > { %v22947_v33 = vpop.f32.mrb[50].mxu1  ;;  %v22949_v14 = vpop.f32.mrb[53].mxu0  ;;  %v4958_v37 = vsel %vm575_vm0, %v22945_v53, -inf }
 0x801   : > { %v22953_v38 = vpop.f32.mrb[51].mxu1  ;;  %4959 = vmax.xlane.f32.xlu1 %v4958_v37  ;;  %v4955_v5 = vsel %vm575_vm0, %v22949_v14, -inf  ;;  %v4964_v50 = vsel %vm575_vm0, %v22947_v33, -inf }
 0x802   : > { %4950 = vmax.xlane.f32.xlu0 %v4949_v3  ;;  %v4961_v34 = vsel %vm575_vm0, %v22953_v38, -inf }
 0x805   : > { %4956 = vmax.xlane.f32.xlu1 %v4955_v5 }
 0x806   : > { %4965 = vmax.xlane.f32.xlu0 %v4964_v50 }
 0x807   : > { %v22961_v54 = vpop.f32.mrb[54].mxu0 }
 0x808   : > { %v22963_v19 = vpop.f32.mrb[52].mxu1  ;;  %v22965_v41 = vpop.f32.mrb[55].mxu0  ;;  %v4970_v45 = vsel %vm575_vm0, %v22961_v54, -inf }
 0x809   : > { %v22967_v20 = vpop.f32.mrb[53].mxu1  ;;  %v4967_v21 = vsel %vm575_vm0, %v22965_v41, -inf  ;;  %v4976_v5 = vsel %vm575_vm0, %v22963_v19, -inf }
 0x80a   : > { %4962 = vmax.xlane.f32.xlu0 %v4961_v34  ;;  %4968 = vmax.xlane.f32.xlu1 %v4967_v21  ;;  %v4973_v4 = vsel %vm575_vm0, %v22967_v20, -inf  ;;  %v22999_v21 = vpop.permute.xlu1 %20676 }
 0x80e   : > { %4971 = vmax.xlane.f32.xlu0 %v4970_v45  ;;  %4974 = vmax.xlane.f32.xlu1 %v4973_v4  ;;  %v23001_v45 = vpop.permute.xlu0 %20671 }
 0x80f   : > { %v22977_v37 = vpop.f32.mrb[56].mxu0 }
 0x810   : > { %v22979_v3 = vpop.f32.mrb[57].mxu0  ;;  %v4982_v50 = vsel %vm575_vm0, %v22977_v37, -inf }
 0x811   : > { %v4979_v34 = vsel %vm575_vm0, %v22979_v3, -inf }
 0x812   : > { %4977 = vmax.xlane.f32.xlu0 %v4976_v5  ;;  %v23005_v4 = vpop.permute.xlu0 %20681 }
 0x816   : > { %4983 = vmax.xlane.f32.xlu0 %v4982_v50 }
 0x81f   : > { %20696 = vrot.lane.b32.xlu1 %v21997_v7, %s26788_s22 }
 0x823   : > { %5809 = vrot.lane.b32.xlu1 %v21988_v2, %s26782_s23  ;;  %v23003_v2 = vpop.permute.xlu1 %20686 }
 0x827   : > { %20706 = vrot.lane.b32.xlu1 %v22018_v18, %s26788_s22 }
 0x82c   : > { %20691 = vrot.lane.b32.xlu0 %v21986_v1, %s26788_s22 }
 0x830   : > { %20701 = vrot.lane.b32.xlu0 %v22008_v13, %s26788_s22 }
 0x834   : > { %5811 = vrot.lane.b32.xlu0 %v22093_v10, %s26782_s23 }
 0x84b   : > { %4980 = vmax.xlane.f32.xlu1 %v4979_v34 }
 0x87e   : > { %v4942_v5 = vpop.xlane.xlu1 %4941 }
 0x87f   : > { %v4986_v50 = vsub.f32 %v22919_v40, %v4942_v5  ;;  %v4939_v63 = vpop.xlane.xlu0 %4938 }
 0x880   : > { %v4985_v42 = vsub.f32 %v22923_v27, %v4939_v63 }
 0x881   : > { %v5003_v17 = vmul.f32 1.442695, %v4986_v50 }
 0x882   : > { %v5001_v10 = vmul.f32 1.442695, %v4985_v42 }
 0x883   : > { %21218 = vpow2.f32 %v5003_v17 }
 0x884   : > { %21220 = vpow2.f32 %v5001_v10 }
 0x886   : > { %v4948_v12 = vpop.xlane.xlu1 %4947 }
 0x887   : > { %v4988_v34 = vsub.f32 %v22931_v44, %v4948_v12  ;;  %v4945_v6 = vpop.xlane.xlu0 %4944 }
 0x888   : > { %v4987_v51 = vsub.f32 %v22935_v29, %v4945_v6 }
 0x889   : > { %v5007_v30 = vmul.f32 1.442695, %v4988_v34 }
 0x88a   : > { %v5005_v9 = vmul.f32 1.442695, %v4987_v51 }
 0x88b   : > { %21222 = vpow2.f32 %v5007_v30  ;;  %v4954_v26 = vpop.xlane.xlu0 %4953 }
 0x88c   : > { %v4990_v58 = vsub.f32 %v22933_v59, %v4954_v26  ;;  %21224 = vpow2.f32 %v5005_v9 }
 0x88d   : > { %v23012_v40 = vpop.eup %21218 }
 0x88e   : > { %v23014_v63 = vpop.eup %21220  ;;  %v5011_v42 = vmul.f32 1.442695, %v4990_v58  ;;  %v4960_v17 = vpop.xlane.xlu1 %4959  ;;  %v5036_v27 = vsel %vm575_vm0, %v23012_v40, 0.0 }
 0x88f   : > { %v4992_v12 = vsub.f32 %v22945_v53, %v4960_v17  ;;  %v4951_v44 = vpop.xlane.xlu0 %4950  ;;  %5037 = vadd.xlane.f32.xlu0 %v5036_v27  ;;  %v5033_v51 = vsel %vm575_vm0, %v23014_v63, 0.0 }
 0x890   : > { %21226 = vpow2.f32 %v5011_v42  ;;  %v4989_v6 = vsub.f32 %v22937_v24, %v4951_v44  ;;  %5034 = vadd.xlane.f32.xlu1 %v5033_v51 }
 0x891   : > { %v5015_v26 = vmul.f32 1.442695, %v4992_v12 }
 0x892   : > { %v5009_v9 = vmul.f32 1.442695, %v4989_v6  ;;  %v4957_v30 = vpop.xlane.xlu1 %4956 }
 0x893   : > { %21228 = vpow2.f32 %v5015_v26  ;;  %v4991_v58 = vsub.f32 %v22949_v14, %v4957_v30  ;;  %v4966_v59 = vpop.xlane.xlu0 %4965 }
 0x894   : > { %21230 = vpow2.f32 %v5009_v9  ;;  %v4994_v29 = vsub.f32 %v22947_v33, %v4966_v59 }
 0x895   : > { %v23024_v53 = vpop.eup %21222  ;;  %v5013_v5 = vmul.f32 1.442695, %v4991_v58 }
 0x896   : > { %v5019_v50 = vmul.f32 1.442695, %v4994_v29  ;;  %v5042_v10 = vsel %vm575_vm0, %v23024_v53, 0.0  ;;  %v23028_v34 = vpop.eup %21224 }
 0x897   : > { %21232 = vpow2.f32 %v5013_v5  ;;  %v4963_v24 = vpop.xlane.xlu0 %4962  ;;  %v4969_v42 = vpop.xlane.xlu1 %4968  ;;  %5043 = vadd.xlane.f32.xlu1 %v5042_v10  ;;  %v5039_v44 = vsel %vm575_vm0, %v23028_v34, 0.0 }
 0x898   : > { %21234 = vpow2.f32 %v5019_v50  ;;  %v4993_v14 = vsub.f32 %v22953_v38, %v4963_v24  ;;  %v4995_v17 = vsub.f32 %v22965_v41, %v4969_v42 }
 0x89a   : > { %v23032_v27 = vpop.eup %21226  ;;  %v5017_v33 = vmul.f32 1.442695, %v4993_v14  ;;  %v5021_v12 = vmul.f32 1.442695, %v4995_v17 }
 0x89b   : > { %v4972_v51 = vpop.xlane.xlu0 %4971  ;;  %5040 = vadd.xlane.f32.xlu1 %v5039_v44  ;;  %v5048_v6 = vsel %vm575_vm0, %v23032_v27, 0.0 }
 0x89c   : > { %21236 = vpow2.f32 %v5017_v33  ;;  %v4996_v26 = vsub.f32 %v22961_v54, %v4972_v51  ;;  %5049 = vadd.xlane.f32.xlu0 %v5048_v6  ;;  %v4975_v6 = vpop.xlane.xlu1 %4974 }
 0x89d   : > { %v23039_v9 = vpop.eup %21228  ;;  %21238 = vpow2.f32 %v5021_v12 }
 0x89e   : > { %v23041_v38 = vpop.eup %21230  ;;  %v5023_v41 = vmul.f32 1.442695, %v4996_v26  ;;  %v5054_v30 = vsel %vm575_vm0, %v23039_v9, 0.0 }
 0x89f   : > { %v4978_v58 = vpop.xlane.xlu0 %4977  ;;  %5055 = vadd.xlane.f32.xlu1 %v5054_v30  ;;  %v5045_v59 = vsel %vm575_vm0, %v23041_v38, 0.0 }
 0x8a0   : > { %21240 = vpow2.f32 %v5023_v41  ;;  %v4998_v29 = vsub.f32 %v22963_v19, %v4978_v58  ;;  %5046 = vadd.xlane.f32.xlu0 %v5045_v59  ;;  %v23078_v26 = vpop.permute.xlu1 %20696  ;;  %v4997_v41 = vsub.f32 %v22967_v20, %v4975_v6 }
 0x8a1   : > { %v23048_v54 = vpop.eup %21232 }
 0x8a2   : > { %v23050_v5 = vpop.eup %21234  ;;  %v5027_v50 = vmul.f32 1.442695, %v4998_v29  ;;  %v5051_v10 = vsel %vm575_vm0, %v23048_v54, 0.0 }
 0x8a3   : > { %5052 = vadd.xlane.f32.xlu1 %v5051_v10  ;;  %v5060_v24 = vsel %vm575_vm0, %v23050_v5, 0.0  ;;  %v4984_v58 = vpop.xlane.xlu0 %4983  ;;  %v26874_v10 = vld [vmem:[#allocation19_spill] sm:$0xff] }
 0x8a4   : > { %21242 = vpow2.f32 %v5027_v50  ;;  %5061 = vadd.xlane.f32.xlu0 %v5060_v24  ;;  %v23083_v30 = vpop.permute.xlu1 %5809 }
 0x8a6   : > { %v23056_v42 = vpop.eup %21236 }
 0x8a7   : > { %v23058_v14 = vpop.eup %21238  ;;  %v5057_v19 = vsel %vm575_vm0, %v23056_v42, 0.0 }
 0x8a8   : > { %5058 = vadd.xlane.f32.xlu0 %v5057_v19  ;;  %v5063_v17 = vsel %vm575_vm0, %v23058_v14, 0.0 }
 0x8a9   : > { %5064 = vadd.xlane.f32.xlu1 %v5063_v17 }
 0x8aa   : > { %v23064_v33 = vpop.eup %21240 }
 0x8ab   : > { %v5066_v12 = vsel %vm575_vm0, %v23064_v33, 0.0 }
 0x8ac   : > { %5067 = vadd.xlane.f32.xlu0 %v5066_v12  ;;  %v20673_v12 = vunpack.i.l.bf16 %v23001_v45 }
 0x8ae   : > { %v23068_v44 = vpop.eup %21242 }
 0x8af   : > { %v5072_v51 = vsel %vm575_vm0, %v23068_v44, 0.0 }
 0x8b0   : > { %5073 = vadd.xlane.f32.xlu0 %v5072_v51 }
 0x8ba   : > { %5902 = vrot.lane.b32.xlu1 %v22106_v61, %s26782_s23  ;;  %v5025_v61 = vmul.f32 1.442695, %v4997_v41 }
 0x8bc   : > { %21244 = vpow2.f32 %v5025_v61 }
 0x8be   : > { %5991 = vrot.lane.b32.xlu1 %v22095_v15, %s26782_s23  ;;  %v5000_v15 = vsub.f32 %v22977_v37, %v4984_v58 }
 0x8c0   : > { %v5031_v59 = vmul.f32 1.442695, %v5000_v15 }
 0x8c2   : > { %21246 = vpow2.f32 %v5031_v59 }
 0x8c6   : > { %5900 = vrot.lane.b32.xlu0 %v21999_v8, %s26782_s23  ;;  %v23090_v8 = vpop.permute.xlu1 %20706 }
 0x8ca   : > { %20711 = vrot.lane.b32.xlu0 %v22028_v23, %s26788_s22 }
 0x8ce   : > { %5993 = vrot.lane.b32.xlu0 %v22120_v36, %s26782_s23 }
 0x8d2   : > { %6082 = vrot.lane.b32.xlu0 %v22109_v25, %s26782_s23  ;;  %v23099_v25 = vpop.eup %21244 }
 0x8d3   : > { %v5069_v37 = vsel %vm575_vm0, %v23099_v25, 0.0 }
 0x8d6   : > { %6173 = vrot.lane.b32.xlu0 %v22123_v43, %s26782_s23  ;;  %v23105_v43 = vpop.eup %21246 }
 0x8d8   : > { %v4981_v20 = vpop.xlane.xlu1 %4980 }
 0x8d9   : > { %v4999_v29 = vsub.f32 %v22979_v3, %v4981_v20  ;;  %v5078_v3 = vsel %vm575_vm0, %v23105_v43, 0.0 }
 0x8da   : > { %6175 = vrot.lane.b32.xlu0 %v22148_v62, %s26782_s23 }
 0x8db   : > { %v5029_v36 = vmul.f32 1.442695, %v4999_v29  ;;  %v20678_v29 = vunpack.i.l.bf16 %v22999_v21 }
 0x8dd   : > { %21248 = vpow2.f32 %v5029_v36 }
 0x8de   : > { %20726 = vrot.lane.b32.xlu0 %v22058_v47, %s26788_s22 }
 0x8e2   : > { %6355 = vrot.lane.b32.xlu0 %v22151_v0, %s26782_s23  ;;  %5070 = vadd.xlane.f32.xlu1 %v5069_v37  ;;  %v23123_v0 = vpop.permute.xlu0 %20691 }
 0x8e6   : > { %6446 = vrot.lane.b32.xlu0 %v22165_v11, %s26782_s23  ;;  %5079 = vadd.xlane.f32.xlu1 %v5078_v3  ;;  %v23129_v11 = vpop.permute.xlu0 %20701 }
 0x8e7   : > { %v23111_v62 = vpop.eup %21248 }
 0x8e8   : > { %v5075_v50 = vsel %vm575_vm0, %v23111_v62, 0.0 }
 0x8ea   : > { %5076 = vadd.xlane.f32.xlu1 %v5075_v50 }
 0x8fb   : > { %20716 = vrot.lane.b32.xlu1 %v22038_v28, %s26788_s22 }
 0x8ff   : > { %6084 = vrot.lane.b32.xlu1 %v22134_v52, %s26782_s23  ;;  %v23133_v52 = vpop.permute.xlu0 %5811 }
 0x903   : > { %20721 = vrot.lane.b32.xlu1 %v22048_v39, %s26788_s22  ;;  %s26969_s22 = smov 8  }
 0x907   : > { %6264 = vrot.lane.b32.xlu1 %v22137_v57, %s26782_s23 }
 0x90b   : > { %6266 = vrot.lane.b32.xlu1 %v22162_v35, %s26782_s23 }
 0x90f   : > { %6357 = vrot.lane.b32.xlu1 %v26862_v56, %s26782_s23  ;;  %v20674_v56 = vunpack.i.h.bf16 %v23001_v45 }
 0x911   : > { %v19932_v61 = vpack.c.bf16 %v20674_v56, %v20673_v12  ;;  %v20689_v56 = vunpack.i.h.bf16 %v23003_v2  ;;  %v20688_v12 = vunpack.i.l.bf16 %v23003_v2  ;;  %v20694_v2 = vunpack.i.h.bf16 %v23123_v0 }
 0x913   : > { %6448 = vrot.lane.b32.xlu1 %v26874_v10, %s26782_s23  ;;  %s26802_s23 = smov 16  }
 0x917   : > { %20731 = vrot.lane.b32.xlu1 %v21986_v1, %s26786_s25 }
 0x91c   : > { %v5038_v57 = vpop.xlane.xlu0 %5037 }
 0x91d   : > { %21250 = vrcp.f32 %v5038_v57  ;;  %v5035_v24 = vpop.xlane.xlu1 %5034 }
 0x91e   : > { %21252 = vrcp.f32 %v5035_v24  ;;  %v20684_v24 = vunpack.i.h.bf16 %v23005_v4 }
 0x924   : > { %v5044_v19 = vpop.xlane.xlu1 %5043 }
 0x925   : > { %21254 = vrcp.f32 %v5044_v19  ;;  %v20683_v19 = vunpack.i.l.bf16 %v23005_v4 }
 0x927   : > { %v21251_v35 = vpop.eup %21250  ;;  %v19940_v4 = vpack.c.bf16 %v20684_v24, %v20683_v19 }
 0x928   : > { %v21253_v17 = vpop.eup %21252  ;;  %v5041_v51 = vpop.xlane.xlu1 %5040  ;;  %v5098_v58 = vmul.f32 %v21251_v35, %v23012_v40  ;;  %v20679_v40 = vunpack.i.h.bf16 %v22999_v21 }
 0x929   : > { %21256 = vrcp.f32 %v5041_v51  ;;  %v5050_v6 = vpop.xlane.xlu0 %5049  ;;  %v5097_v41 = vmul.f32 %v21253_v17, %v23014_v63 }
 0x92a   : > { %21258 = vrcp.f32 %v5050_v6  ;;  %v19936_v10 = vpack.c.bf16 %v20679_v40, %v20678_v29 }
 0x92b   : > { %18812 = vmatprep.mubr.msk.f32.mxu1 %vm575_vm0, %v5097_v41  ;;  %v20693_v41 = vunpack.i.l.bf16 %v23123_v0 }
 0x92c   : > { %18813 = vmatmul.mubr.msk.f32.vlgmr.msra.gmra.mrb[54].mxu1 %vm575_vm0, %v5098_v58  ;;  %v5056_v1 = vpop.xlane.xlu1 %5055 }
 0x92d   : > { %19927 = vmatpush3.bf16.msra.mxu1 %v22883_v46  ;;  %v5047_v15 = vpop.xlane.xlu0 %5046 }
 0x92e   : > { %21260 = vrcp.f32 %v5047_v15  ;;  %19933 = vmatprep.subr.bf16.mxu1 %v19932_v61 }
 0x92f   : > { %21262 = vrcp.f32 %v5056_v1  ;;  %v21255_v20 = vpop.eup %21254 }
 0x930   : > { %v5053_v45 = vpop.xlane.xlu1 %5052  ;;  %v5100_v3 = vmul.f32 %v21255_v20, %v23024_v53 }
 0x931   : > { %21264 = vrcp.f32 %v5053_v45  ;;  %v5062_v59 = vpop.xlane.xlu0 %5061 }
 0x932   : > { %21266 = vrcp.f32 %v5062_v59  ;;  %v19948_v59 = vpack.c.bf16 %v20694_v2, %v20693_v41 }
 0x933   : > { %v21257_v63 = vpop.eup %21256 }
 0x934   : > { %v5099_v36 = vmul.f32 %v21257_v63, %v23028_v34  ;;  %v21259_v46 = vpop.eup %21258 }
 0x935   : > { %v5059_v37 = vpop.xlane.xlu0 %5058  ;;  %v5102_v35 = vmul.f32 %v21259_v46, %v23032_v27  ;;  %v19944_v27 = vpack.c.bf16 %v20689_v56, %v20688_v12  ;;  %v20704_v46 = vunpack.i.h.bf16 %v23129_v11 }
 0x936   : > { %21268 = vrcp.f32 %v5059_v37  ;;  %18819 = vmatprep.mubr.msk.f32.mxu0 %vm575_vm0, %v5099_v36  ;;  %v5065_v50 = vpop.xlane.xlu1 %5064 }
 0x937   : > { %18820 = vmatmul.mubr.msk.f32.vlgmr.msra.gmra.mrb[58].mxu0 %vm575_vm0, %v5100_v3  ;;  %21270 = vrcp.f32 %v5065_v50  ;;  %v20703_v50 = vunpack.i.l.bf16 %v23129_v11 }
 0x938   : > { %v21261_v57 = vpop.eup %21260  ;;  %19931 = vmatpush3.bf16.msra.mxu0 %v22888_v22 }
 0x939   : > { %19937 = vmatprep.subr.bf16.mxu0 %v19936_v10  ;;  %v5068_v21 = vpop.xlane.xlu0 %5067  ;;  %v5101_v53 = vmul.f32 %v21261_v57, %v23041_v38  ;;  %v21263_v34 = vpop.eup %21262  ;;  %v19960_v19 = vpack.c.bf16 %v20704_v46, %v20703_v50 }
 0x93a   : > { %21272 = vrcp.f32 %v5068_v21  ;;  %v5104_v51 = vmul.f32 %v21263_v34, %v23039_v9  ;;  %v20699_v9 = vunpack.i.h.bf16 %v23078_v26  ;;  %v20708_v34 = vunpack.i.l.bf16 %v23090_v8 }
 0x93b   : > { %v21265_v17 = vpop.eup %21264  ;;  %18826 = vmatprep.mubr.msk.f32.mxu1 %vm575_vm0, %v5101_v53 }
 0x93c   : > { %18827 = vmatmul.mubr.msk.f32.vlgmr.msra.gmra.mrb[56].mxu1 %vm575_vm0, %v5102_v35  ;;  %v5103_v22 = vmul.f32 %v21265_v17, %v23048_v54  ;;  %v21267_v38 = vpop.eup %21266 }
 0x93d   : > { %19935 = vmatpush3.bf16.msra.mxu1 %v19932_v61  ;;  %v5106_v1 = vmul.f32 %v21267_v38, %v23050_v5  ;;  %v20698_v61 = vunpack.i.l.bf16 %v23078_v26  ;;  %v5074_v26 = vpop.xlane.xlu0 %5073 }
 0x93e   : > { %19941 = vmatprep.subr.bf16.mxu1 %v19940_v4  ;;  %18833 = vmatprep.mubr.msk.f32.mxu0 %vm575_vm0, %v5103_v22  ;;  %21274 = vrcp.f32 %v5074_v26 }
 0x93f   : > { %18834 = vmatmul.mubr.msk.f32.vlgmr.msra.gmra.mrb[60].mxu0 %vm575_vm0, %v5104_v51  ;;  %v19954_v5 = vpack.c.bf16 %v20699_v9, %v20698_v61 }
 0x940   : > { %v21269_v6 = vpop.eup %21268  ;;  %19939 = vmatpush3.bf16.msra.mxu0 %v19936_v10 }
 0x941   : > { %19945 = vmatprep.subr.bf16.mxu0 %v19944_v27  ;;  %v5105_v58 = vmul.f32 %v21269_v6, %v23056_v42  ;;  %v21271_v54 = vpop.eup %21270  ;;  %v5901_v20 = vpop.permute.xlu0 %5900 }
 0x942   : > { %v5107_v15 = vmul.f32 %v21271_v54, %v23058_v14  ;;  %v5903_v14 = vpop.permute.xlu1 %5902 }
 0x943   : > { %18840 = vmatprep.mubr.msk.f32.mxu1 %vm575_vm0, %v5105_v58 }
 0x944   : > { %v21273_v45 = vpop.eup %21272  ;;  %18841 = vmatmul.mubr.msk.f32.vlgmr.msra.gmra.mrb[58].mxu1 %vm575_vm0, %v5106_v1  ;;  %18847 = vmatprep.mubr.msk.f32.mxu0 %vm575_vm0, %v5107_v15 }
 0x945   : > { %19943 = vmatpush3.bf16.msra.mxu1 %v19940_v4  ;;  %v5108_v42 = vmul.f32 %v21273_v45, %v23064_v33  ;;  %v20712_v40 = vpop.permute.xlu0 %20711 }
 0x946   : > { %19950 = vmatprep.subr.msk.bf16.mxu1 %vm22080_vm3, %v19948_v59  ;;  %v5992_v0 = vpop.permute.xlu1 %5991  ;;  %v20714_v35 = vunpack.i.h.bf16 %v20712_v40  ;;  %v20713_v17 = vunpack.i.l.bf16 %v20712_v40 }
 0x947   : > { %18848 = vmatmul.mubr.msk.f32.vlgmr.msra.gmra.mrb[62].mxu0 %vm575_vm0, %v5108_v42 }
 0x948   : > { %19947 = vmatpush3.bf16.msra.mxu0 %v19944_v27  ;;  %v21275_v37 = vpop.eup %21274  ;;  %v19972_v51 = vpack.c.bf16 %v20714_v35, %v20713_v17 }
 0x949   : > { %19956 = vmatprep.subr.msk.bf16.mxu0 %vm22080_vm3, %v19954_v5  ;;  %v5994_v36 = vpop.permute.xlu0 %5993  ;;  %v5110_v24 = vmul.f32 %v21275_v37, %v23068_v44  ;;  %v20709_v44 = vunpack.i.h.bf16 %v23090_v8 }
 0x94d   : > { %v6083_v21 = vpop.permute.xlu0 %6082 }
 0x951   : > { %v6174_v4 = vpop.permute.xlu0 %6173 }
 0x96f   : > { %v5071_v63 = vpop.xlane.xlu1 %5070 }
 0x970   : > { %21276 = vrcp.f32 %v5071_v63 }
 0x973   : > { %v5080_v29 = vpop.xlane.xlu1 %5079 }
 0x974   : > { %21278 = vrcp.f32 %v5080_v29 }
 0x977   : > { %v5077_v33 = vpop.xlane.xlu1 %5076 }
 0x978   : > { %21280 = vrcp.f32 %v5077_v33 }
 0x97a   : > { %v21277_v3 = vpop.eup %21276 }
 0x97b   : > { %v20717_v10 = vpop.permute.xlu1 %20716  ;;  %v5109_v57 = vmul.f32 %v21277_v3, %v23099_v25 }
 0x97d   : > { %18854 = vmatprep.mubr.msk.f32.mxu1 %vm575_vm0, %v5109_v57 }
 0x97e   : > { %18855 = vmatmul.mubr.msk.f32.vlgmr.msra.gmra.mrb[60].mxu1 %vm575_vm0, %v5110_v24  ;;  %v21279_v11 = vpop.eup %21278 }
 0x97f   : > { %19953 = vmatpush3.bf16.xpose.msk.msra.mxu1 %vm22080_vm3, %v19948_v59  ;;  %18868 = vmatprep.mubr.msk.f32.mxu1 %vm1014_vm2, %v23083_v30  ;;  %v6085_v53 = vpop.permute.xlu1 %6084  ;;  %v5112_v22 = vmul.f32 %v21279_v11, %v23105_v43  ;;  %v19966_v30 = vpack.c.bf16 %v20709_v44, %v20708_v34  ;;  %v6176_v43 = vpop.permute.xlu0 %6175 }
 0x980   : > { %19962 = vmatprep.subr.msk.bf16.mxu1 %vm22080_vm3, %v19960_v19 }
 0x982   : > { %v21281_v25 = vpop.eup %21280 }
 0x983   : > { %v20722_v56 = vpop.permute.xlu1 %20721  ;;  %v5111_v12 = vmul.f32 %v21281_v25, %v23111_v62  ;;  %v20719_v62 = vunpack.i.h.bf16 %v20717_v10  ;;  %v20727_v54 = vpop.permute.xlu0 %20726 }
 0x984   : > { %v20724_v38 = vunpack.i.h.bf16 %v20722_v56  ;;  %v20723_v27 = vunpack.i.l.bf16 %v20722_v56  ;;  %v20729_v1 = vunpack.i.h.bf16 %v20727_v54  ;;  %v20728_v9 = vunpack.i.l.bf16 %v20727_v54 }
 0x985   : > { %18861 = vmatprep.mubr.msk.f32.mxu0 %vm575_vm0, %v5111_v12 }
 0x986   : > { %18869 = vmatmul.mubr.msk.f32.vlgmr.msra.gmra.mrb[62].mxu1 %vm1014_vm2, %v23133_v52  ;;  %18862 = vmatmul.mubr.msk.f32.vlgmr.msra.gmra.mrb[64].mxu0 %vm575_vm0, %v5112_v22  ;;  %v20718_v52 = vunpack.i.l.bf16 %v20717_v10  ;;  %v19984_v41 = vpack.c.bf16 %v20724_v38, %v20723_v27  ;;  %v19990_v15 = vpack.c.bf16 %v20729_v1, %v20728_v9 }
 0x987   : > { %19959 = vmatpush3.bf16.xpose.msk.msra.mxu0 %vm22080_vm3, %v19954_v5  ;;  %19965 = vmatpush3.bf16.xpose.msk.msra.mxu1 %vm22080_vm3, %v19960_v19  ;;  %v6265_v8 = vpop.permute.xlu1 %6264  ;;  %v6356_v59 = vpop.permute.xlu0 %6355 }
 0x988   : > { %18882 = vmatprep.mubr.msk.f32.mxu1 %vm1014_vm2, %v5992_v0  ;;  %18875 = vmatprep.mubr.msk.f32.mxu0 %vm1014_vm2, %v5901_v20  ;;  %v19978_v2 = vpack.c.bf16 %v20719_v62, %v20718_v52 }
 0x989   : > { %19968 = vmatprep.subr.msk.bf16.mxu0 %vm22080_vm3, %v19966_v30  ;;  %19974 = vmatprep.subr.msk.bf16.mxu1 %vm22080_vm3, %v19972_v51 }
 0x98b   : > { %v6267_v6 = vpop.permute.xlu1 %6266  ;;  %v6447_v26 = vpop.permute.xlu0 %6446 }
 0x98e   : > { %18876 = vmatmul.mubr.msk.f32.vlgmr.msra.gmra.mrb[66].mxu0 %vm1014_vm2, %v5903_v14  ;;  %18883 = vmatmul.mubr.msk.f32.vlgmr.msra.gmra.mrb[64].mxu1 %vm1014_vm2, %v5994_v36 }
 0x98f   : > { %19971 = vmatpush3.bf16.xpose.msk.msra.mxu0 %vm22080_vm3, %v19966_v30  ;;  %18889 = vmatprep.mubr.msk.f32.mxu0 %vm1014_vm2, %v6083_v21  ;;  %v6358_v58 = vpop.permute.xlu1 %6357 }
 0x990   : > { %19977 = vmatpush3.bf16.xpose.msk.msra.mxu1 %vm22080_vm3, %v19972_v51  ;;  %18896 = vmatprep.mubr.msk.f32.mxu1 %vm1014_vm2, %v6174_v4 }
 0x991   : > { %19980 = vmatprep.subr.msk.bf16.mxu0 %vm22080_vm3, %v19978_v2  ;;  %19986 = vmatprep.subr.msk.bf16.mxu1 %vm22080_vm3, %v19984_v41 }
 0x993   : > { %v6449_v61 = vpop.permute.xlu1 %6448 }
 0x996   : > { %18890 = vmatmul.mubr.msk.f32.vlgmr.msra.gmra.mrb[68].mxu0 %vm1014_vm2, %v6085_v53 }
 0x997   : > { %18897 = vmatmul.mubr.msk.f32.vlgmr.msra.gmra.mrb[66].mxu1 %vm1014_vm2, %v6176_v43  ;;  %19983 = vmatpush3.bf16.xpose.msk.msra.mxu0 %vm22080_vm3, %v19978_v2  ;;  %v20732_v45 = vpop.permute.xlu1 %20731 }
 0x998   : > { %18903 = vmatprep.mubr.msk.f32.mxu0 %vm1014_vm2, %v6265_v8  ;;  %19989 = vmatpush3.bf16.xpose.msk.msra.mxu1 %vm22080_vm3, %v19984_v41  ;;  %v20734_v42 = vunpack.i.h.bf16 %v20732_v45  ;;  %v20733_v5 = vunpack.i.l.bf16 %v20732_v45 }
 0x999   : > { %18910 = vmatprep.mubr.msk.f32.mxu1 %vm1014_vm2, %v6356_v59  ;;  %19992 = vmatprep.subr.msk.bf16.mxu0 %vm22080_vm3, %v19990_v15 }
 0x99a   : > { %v19996_v14 = vpack.c.bf16 %v20734_v42, %v20733_v5 }
 0x99c   : > { %19997 = vmatprep.subr.bf16.mxu1 %v19996_v14 }
 0x99e   : > { %18904 = vmatmul.mubr.msk.f32.vlgmr.msra.gmra.mrb[70].mxu0 %vm1014_vm2, %v6267_v6 }
 0x99f   : > { %18911 = vmatmul.mubr.msk.f32.vlgmr.msra.gmra.mrb[68].mxu1 %vm1014_vm2, %v6358_v58  ;;  %19995 = vmatpush3.bf16.xpose.msk.msra.mxu0 %vm22080_vm3, %v19990_v15 }
 0x9a0   : > { %18917 = vmatprep.mubr.msk.f32.mxu0 %vm1014_vm2, %v6447_v26  ;;  %19999 = vmatpush3.bf16.msra.mxu1 %v19996_v14 }
 0x9a6   : > { %18918 = vmatmul.mubr.msk.f32.vlgmr.msra.gmra.mrb[72].mxu0 %vm1014_vm2, %v6449_v61 }
 0x9ff   : > { %v23237_v0 = vpop.f32.mrb[54].mxu1 }
 0xa00   : > { %v23239_v20 = vpop.f32.mrb[55].mxu1 }
 0xa0a   : > { %v23241_v63 = vpop.f32.mrb[58].mxu0 }
 0xa0b   : > { %v23243_v40 = vpop.f32.mrb[59].mxu0 }
 0xa0f   : > { %v23245_v29 = vpop.f32.mrb[56].mxu1 }
 0xa10   : > { %v23247_v33 = vpop.f32.mrb[57].mxu1 }
 0xa12   : > { %v23249_v36 = vpop.f32.mrb[60].mxu0 }
 0xa13   : > { %v23251_v37 = vpop.f32.mrb[61].mxu0 }
 0xa17   : > { %v23253_v3 = vpop.f32.mrb[58].mxu1 }
 0xa18   : > { %v23255_v46 = vpop.f32.mrb[59].mxu1 }
 0xa1a   : > { %v23257_v50 = vpop.f32.mrb[62].mxu0 }
 0xa1b   : > { %v23259_v10 = vpop.f32.mrb[63].mxu0 }
 0xa51   : > { %v23261_v57 = vpop.f32.mrb[60].mxu1 }
 0xa52   : > { %v23263_v24 = vpop.f32.mrb[61].mxu1 }
 0xa59   : > { %v18870_v19 = vpop.f32.mrb[62].mxu1  ;;  %v23265_v21 = vpop.f32.mrb[64].mxu0 }
 0xa5a   : > { %v5891_v53 = vpop.f32.mrb[63].mxu1  ;;  %v6540_v11 = vsel %vm575_vm0, %v18870_v19, -inf  ;;  %v23268_v25 = vpop.f32.mrb[65].mxu0 }
 0xa5b   : > { %6541 = vmax.xlane.f32.xlu1 %v6540_v11  ;;  %v6537_v44 = vsel %vm575_vm0, %v5891_v53, -inf }
 0xa5c   : > { %6538 = vmax.xlane.f32.xlu0 %v6537_v44 }
 0xa61   : > { %v18877_v34 = vpop.f32.mrb[66].mxu0  ;;  %v23271_v35 = vpop.f32.mrb[64].mxu1 }
 0xa62   : > { %v5982_v17 = vpop.f32.mrb[67].mxu0  ;;  %v6073_v56 = vpop.f32.mrb[65].mxu1  ;;  %v6546_v12 = vsel %vm575_vm0, %v18877_v34, -inf  ;;  %v6552_v43 = vsel %vm575_vm0, %v23271_v35, -inf }
 0xa63   : > { %6547 = vmax.xlane.f32.xlu0 %v6546_v12  ;;  %v6549_v4 = vsel %vm575_vm0, %v6073_v56, -inf  ;;  %v6543_v22 = vsel %vm575_vm0, %v5982_v17, -inf }
 0xa64   : > { %6550 = vmax.xlane.f32.xlu1 %v6549_v4 }
 0xa67   : > { %6544 = vmax.xlane.f32.xlu0 %v6543_v22 }
 0xa69   : > { %v23276_v30 = vpop.f32.mrb[68].mxu0 }
 0xa6a   : > { %v23278_v51 = vpop.f32.mrb[66].mxu1  ;;  %v23280_v8 = vpop.f32.mrb[69].mxu0  ;;  %v6558_v38 = vsel %vm575_vm0, %v23276_v30, -inf }
 0xa6b   : > { %v23284_v62 = vpop.f32.mrb[67].mxu1  ;;  %6553 = vmax.xlane.f32.xlu0 %v6552_v43  ;;  %v6555_v52 = vsel %vm575_vm0, %v23280_v8, -inf  ;;  %v6564_v58 = vsel %vm575_vm0, %v23278_v51, -inf }
 0xa6c   : > { %6556 = vmax.xlane.f32.xlu1 %v6555_v52  ;;  %v6561_v27 = vsel %vm575_vm0, %v23284_v62, -inf }
 0xa6f   : > { %6559 = vmax.xlane.f32.xlu0 %v6558_v38 }
 0xa70   : > { %6562 = vmax.xlane.f32.xlu1 %v6561_v27 }
 0xa71   : > { %v23292_v6 = vpop.f32.mrb[70].mxu0 }
 0xa72   : > { %v23294_v2 = vpop.f32.mrb[68].mxu1  ;;  %v23296_v41 = vpop.f32.mrb[71].mxu0  ;;  %v6570_v9 = vsel %vm575_vm0, %v23292_v6, -inf }
 0xa73   : > { %v23300_v54 = vpop.f32.mrb[69].mxu1  ;;  %6565 = vmax.xlane.f32.xlu0 %v6564_v58  ;;  %v6567_v1 = vsel %vm575_vm0, %v23296_v41, -inf  ;;  %v6576_v59 = vsel %vm575_vm0, %v23294_v2, -inf }
 0xa74   : > { %6568 = vmax.xlane.f32.xlu1 %v6567_v1  ;;  %v6573_v61 = vsel %vm575_vm0, %v23300_v54, -inf }
 0xa77   : > { %6571 = vmax.xlane.f32.xlu0 %v6570_v9 }
 0xa78   : > { %6574 = vmax.xlane.f32.xlu1 %v6573_v61 }
 0xa79   : > { %v23308_v15 = vpop.f32.mrb[72].mxu0 }
 0xa7a   : > { %v23310_v45 = vpop.f32.mrb[73].mxu0  ;;  %v6582_v42 = vsel %vm575_vm0, %v23308_v15, -inf }
 0xa7b   : > { %6577 = vmax.xlane.f32.xlu0 %v6576_v59  ;;  %v6579_v5 = vsel %vm575_vm0, %v23310_v45, -inf }
 0xa7f   : > { %6583 = vmax.xlane.f32.xlu0 %v6582_v42 }
 0xa89   : > { %20741 = vrot.lane.b32.xlu1 %v22008_v13, %s26786_s25 }
 0xa95   : > { %20736 = vrot.lane.b32.xlu0 %v21997_v7, %s26786_s25 }
 0xaad   : > { %6580 = vmax.xlane.f32.xlu1 %v6579_v5 }
 0xae8   : > { %v6542_v14 = vpop.xlane.xlu1 %6541 }
 0xae9   : > { %v6586_v26 = vsub.f32 %v18870_v19, %v6542_v14  ;;  %v6539_v11 = vpop.xlane.xlu0 %6538 }
 0xaea   : > { %v6585_v44 = vsub.f32 %v5891_v53, %v6539_v11 }
 0xaeb   : > { %v6603_v12 = vmul.f32 1.442695, %v6586_v26 }
 0xaec   : > { %v6601_v4 = vmul.f32 1.442695, %v6585_v44 }
 0xaed   : > { %21282 = vpow2.f32 %v6603_v12 }
 0xaee   : > { %21284 = vpow2.f32 %v6601_v4 }
 0xaf0   : > { %v6548_v22 = vpop.xlane.xlu0 %6547 }
 0xaf1   : > { %v6588_v43 = vsub.f32 %v18877_v34, %v6548_v22  ;;  %v6551_v52 = vpop.xlane.xlu1 %6550 }
 0xaf2   : > { %v6589_v13 = vsub.f32 %v6073_v56, %v6551_v52 }
 0xaf3   : > { %v6607_v38 = vmul.f32 1.442695, %v6588_v43 }
 0xaf4   : > { %v6545_v27 = vpop.xlane.xlu0 %6544  ;;  %v6609_v1 = vmul.f32 1.442695, %v6589_v13 }
 0xaf5   : > { %21286 = vpow2.f32 %v6607_v38  ;;  %v6587_v7 = vsub.f32 %v5982_v17, %v6545_v27 }
 0xaf7   : > { %v23322_v58 = vpop.eup %21282  ;;  %v6605_v9 = vmul.f32 1.442695, %v6587_v7 }
 0xaf8   : > { %v23324_v61 = vpop.eup %21284  ;;  %v6554_v19 = vpop.xlane.xlu0 %6553  ;;  %v6636_v53 = vsel %vm575_vm0, %v23322_v58, 0.0 }
 0xaf9   : > { %21288 = vpow2.f32 %v6605_v9  ;;  %v6590_v59 = vsub.f32 %v23271_v35, %v6554_v19  ;;  %v6557_v34 = vpop.xlane.xlu1 %6556  ;;  %6637 = vadd.xlane.f32.xlu0 %v6636_v53  ;;  %v6633_v56 = vsel %vm575_vm0, %v23324_v61, 0.0 }
 0xafa   : > { %v6591_v17 = vsub.f32 %v23280_v8, %v6557_v34  ;;  %6634 = vadd.xlane.f32.xlu1 %v6633_v56  ;;  %21290 = vpow2.f32 %v6609_v1 }
 0xafb   : > { %v6611_v42 = vmul.f32 1.442695, %v6590_v59 }
 0xafc   : > { %v6613_v5 = vmul.f32 1.442695, %v6591_v17  ;;  %v6560_v14 = vpop.xlane.xlu0 %6559 }
 0xafd   : > { %21292 = vpow2.f32 %v6611_v42  ;;  %v6592_v26 = vsub.f32 %v23276_v30, %v6560_v14  ;;  %v6563_v11 = vpop.xlane.xlu1 %6562 }
 0xafe   : > { %v6593_v44 = vsub.f32 %v23284_v62, %v6563_v11  ;;  %21294 = vpow2.f32 %v6613_v5 }
 0xaff   : > { %v23334_v12 = vpop.eup %21286  ;;  %v6615_v35 = vmul.f32 1.442695, %v6592_v26 }
 0xb00   : > { %v6617_v4 = vmul.f32 1.442695, %v6593_v44  ;;  %v6566_v22 = vpop.xlane.xlu0 %6565  ;;  %v6642_v8 = vsel %vm575_vm0, %v23334_v12, 0.0 }
 0xb01   : > { %21296 = vpow2.f32 %v6615_v35  ;;  %v6594_v43 = vsub.f32 %v23278_v51, %v6566_v22  ;;  %v6569_v52 = vpop.xlane.xlu1 %6568  ;;  %6643 = vadd.xlane.f32.xlu0 %v6642_v8 }
 0xb02   : > { %v6595_v38 = vsub.f32 %v23296_v41, %v6569_v52  ;;  %21298 = vpow2.f32 %v6617_v4 }
 0xb03   : > { %v23340_v30 = vpop.eup %21288  ;;  %v6619_v62 = vmul.f32 1.442695, %v6594_v43 }
 0xb04   : > { %v6621_v13 = vmul.f32 1.442695, %v6595_v38  ;;  %v6572_v27 = vpop.xlane.xlu0 %6571  ;;  %v6639_v7 = vsel %vm575_vm0, %v23340_v30, 0.0  ;;  %v23344_v1 = vpop.eup %21290 }
 0xb05   : > { %21300 = vpow2.f32 %v6619_v62  ;;  %v6596_v9 = vsub.f32 %v23292_v6, %v6572_v27  ;;  %v6575_v19 = vpop.xlane.xlu1 %6574  ;;  %6640 = vadd.xlane.f32.xlu1 %v6639_v7  ;;  %v6645_v56 = vsel %vm575_vm0, %v23344_v1, 0.0 }
 0xb06   : > { %v6597_v41 = vsub.f32 %v23300_v54, %v6575_v19  ;;  %21302 = vpow2.f32 %v6621_v13 }
 0xb07   : > { %v23347_v51 = vpop.eup %21292  ;;  %v6623_v53 = vmul.f32 1.442695, %v6596_v9 }
 0xb08   : > { %v6578_v59 = vpop.xlane.xlu0 %6577  ;;  %v6648_v34 = vsel %vm575_vm0, %v23347_v51, 0.0  ;;  %v23354_v17 = vpop.eup %21294  ;;  %v6625_v54 = vmul.f32 1.442695, %v6597_v41 }
 0xb09   : > { %21304 = vpow2.f32 %v6623_v53  ;;  %v6598_v6 = vsub.f32 %v23294_v2, %v6578_v59  ;;  %v20742_v42 = vpop.permute.xlu1 %20741  ;;  %6649 = vadd.xlane.f32.xlu0 %v6648_v34  ;;  %6646 = vadd.xlane.f32.xlu1 %v6645_v56  ;;  %v6651_v4 = vsel %vm575_vm0, %v23354_v17, 0.0 }
 0xb0a   : > { %v20744_v5 = vunpack.i.h.bf16 %v20742_v42  ;;  %v20743_v14 = vunpack.i.l.bf16 %v20742_v42 }
 0xb0b   : > { %v23357_v26 = vpop.eup %21296  ;;  %v6627_v11 = vmul.f32 1.442695, %v6598_v6 }
 0xb0c   : > { %v6584_v44 = vpop.xlane.xlu0 %6583  ;;  %v6654_v35 = vsel %vm575_vm0, %v23357_v26, 0.0  ;;  %v23363_v22 = vpack.c.bf16 %v20744_v5, %v20743_v14  ;;  %v23365_v8 = vpop.eup %21298 }
 0xb0d   : > { %21306 = vpow2.f32 %v6627_v11  ;;  %v6600_v2 = vsub.f32 %v23308_v15, %v6584_v44  ;;  %6655 = vadd.xlane.f32.xlu0 %v6654_v35  ;;  %6652 = vadd.xlane.f32.xlu1 %v6651_v4  ;;  %v6657_v13 = vsel %vm575_vm0, %v23365_v8, 0.0  ;;  %v26884_v4 = vld [vmem:[#allocation43_spill] sm:$0xff] }
 0xb0e   : > { %20005 = vmatprep.subr.bf16.mxu1 %v23363_v22  ;;  %21308 = vpow2.f32 %v6625_v54 }
 0xb0f   : > { %v23369_v43 = vpop.eup %21300  ;;  %v6631_v52 = vmul.f32 1.442695, %v6600_v2 }
 0xb10   : > { %v20737_v38 = vpop.permute.xlu0 %20736  ;;  %v6660_v62 = vsel %vm575_vm0, %v23369_v43, 0.0  ;;  %v23375_v15 = vpop.eup %21302 }
 0xb11   : > { %v20739_v27 = vunpack.i.h.bf16 %v20737_v38  ;;  %v20738_v7 = vunpack.i.l.bf16 %v20737_v38  ;;  %6661 = vadd.xlane.f32.xlu0 %v6660_v62  ;;  %6658 = vadd.xlane.f32.xlu1 %v6657_v13  ;;  %21310 = vpow2.f32 %v6631_v52  ;;  %v6663_v41 = vsel %vm575_vm0, %v23375_v15, 0.0 }
 0xb13   : > { %v23377_v9 = vpop.eup %21304  ;;  %v20000_v19 = vpack.c.bf16 %v20739_v27, %v20738_v7 }
 0xb14   : > { %v6666_v53 = vsel %vm575_vm0, %v23377_v9, 0.0 }
 0xb15   : > { %6667 = vadd.xlane.f32.xlu0 %v6666_v53  ;;  %20001 = vmatprep.subr.bf16.mxu0 %v20000_v19 }
 0xb16   : > { %6664 = vadd.xlane.f32.xlu1 %v6663_v41  ;;  %20003 = vmatpush3.bf16.msra.mxu0 %v20000_v19 }
 0xb17   : > { %v23383_v59 = vpop.eup %21306 }
 0xb18   : > { %v6672_v34 = vsel %vm575_vm0, %v23383_v59, 0.0  ;;  %v23387_v56 = vpop.eup %21308 }
 0xb19   : > { %6673 = vadd.xlane.f32.xlu0 %v6672_v34  ;;  %v6669_v6 = vsel %vm575_vm0, %v23387_v56, 0.0 }
 0xb1b   : > { %v23391_v42 = vpop.eup %21310 }
 0xb1c   : > { %v6678_v5 = vsel %vm575_vm0, %v23391_v42, 0.0 }
 0xb1d   : > { %6670 = vadd.xlane.f32.xlu0 %v6669_v6 }
 0xb21   : > { %6679 = vadd.xlane.f32.xlu0 %v6678_v5 }
 0xb27   : > { %20751 = vrot.lane.b32.xlu1 %v22028_v23, %s26786_s25 }
 0xb2b   : > { %20756 = vrot.lane.b32.xlu1 %v22038_v28, %s26786_s25 }
 0xb2f   : > { %20761 = vrot.lane.b32.xlu1 %v22048_v39, %s26786_s25  ;;  %v26875_v39 = vld [vmem:[#allocation18_spill] sm:$0xff] }
 0xb37   : > { %20746 = vrot.lane.b32.xlu0 %v22018_v18, %s26786_s25 }
 0xb3a   : > { %v6581_v14 = vpop.xlane.xlu1 %6580 }
 0xb3b   : > { %7425 = vrot.lane.b32.xlu0 %v22893_v31, %s26784_s21  ;;  %v6599_v54 = vsub.f32 %v23310_v45, %v6581_v14  ;;  %v26876_v31 = vld [vmem:[#allocation42_spill] sm:$0xff] }
 0xb3d   : > { %v6629_v23 = vmul.f32 1.442695, %v6599_v54 }
 0xb3f   : > { %7489 = vrot.lane.b32.xlu0 %v23239_v20, %s26802_s23  ;;  %21312 = vpow2.f32 %v6629_v23 }
 0xb43   : > { %7429 = vrot.lane.b32.xlu0 %v22897_v49, %s26784_s21  ;;  %v26877_v49 = vld [vmem:[#allocation36_spill] sm:$0xff] }
 0xb47   : > { %7493 = vrot.lane.b32.xlu0 %v23243_v40, %s26802_s23 }
 0xb49   : > { %v23414_v18 = vpop.eup %21312 }
 0xb4a   : > { %v6675_v28 = vsel %vm575_vm0, %v23414_v18, 0.0 }
 0xb4b   : > { %7433 = vrot.lane.b32.xlu0 %v22901_v48, %s26784_s21  ;;  %v26879_v48 = vld [vmem:[#allocation37_spill] sm:$0xff] }
 0xb4f   : > { %7497 = vrot.lane.b32.xlu0 %v23247_v33, %s26802_s23 }
 0xb53   : > { %6676 = vadd.xlane.f32.xlu1 %v6675_v28  ;;  %7437 = vrot.lane.b32.xlu0 %v22905_v32, %s26784_s21  ;;  %v26880_v32 = vld [vmem:[#allocation38_spill] sm:$0xff] }
 0xb57   : > { %7501 = vrot.lane.b32.xlu0 %v23251_v37, %s26802_s23 }
 0xb5b   : > { %7441 = vrot.lane.b32.xlu0 %v22909_v16, %s26784_s21 }
 0xb5f   : > { %7505 = vrot.lane.b32.xlu0 %v23255_v46, %s26802_s23 }
 0xb63   : > { %7445 = vrot.lane.b32.xlu0 %v22913_v60, %s26784_s21 }
 0xb64   : > { %20766 = vrot.lane.b32.xlu1 %v22058_v47, %s26786_s25  ;;  %v26878_v47 = vld [vmem:[#allocation44_spill] sm:$0xff]  ;;  %s26970_s25 = smov 16  }
 0xb67   : > { %7509 = vrot.lane.b32.xlu0 %v23259_v10, %s26802_s23  ;;  %v26883_v10 = vld [vmem:[#allocation41_spill] sm:$0xff] }
 0xb68   : > { %7427 = vrot.lane.b32.xlu1 %v26875_v39, %s26784_s21 }
 0xb6b   : > { %7449 = vrot.lane.b32.xlu0 %v26876_v31, %s26784_s21 }
 0xb6c   : > { %7491 = vrot.lane.b32.xlu1 %v23237_v0, %s26802_s23  ;;  %v26881_v0 = vld [vmem:[#allocation39_spill] sm:$0xff] }
 0xb6f   : > { %7513 = vrot.lane.b32.xlu0 %v23263_v24, %s26802_s23 }
 0xb70   : > { %7431 = vrot.lane.b32.xlu1 %v26877_v49, %s26784_s21 }
 0xb73   : > { %7453 = vrot.lane.b32.xlu0 %v26878_v47, %s26784_s21 }
 0xb74   : > { %7495 = vrot.lane.b32.xlu1 %v23241_v63, %s26802_s23  ;;  %v26882_v63 = vld [vmem:[#allocation40_spill] sm:$0xff] }
 0xb78   : > { %7435 = vrot.lane.b32.xlu1 %v26879_v48, %s26784_s21 }
 0xb7c   : > { %7499 = vrot.lane.b32.xlu1 %v23245_v29, %s26802_s23 }
 0xb80   : > { %7439 = vrot.lane.b32.xlu1 %v26880_v32, %s26784_s21 }
 0xb84   : > { %7503 = vrot.lane.b32.xlu1 %v23249_v36, %s26802_s23 }
 0xb86   : > { %v6638_v16 = vpop.xlane.xlu0 %6637 }
 0xb87   : > { %21314 = vrcp.f32 %v6638_v16  ;;  %v6635_v60 = vpop.xlane.xlu1 %6634 }
 0xb88   : > { %7443 = vrot.lane.b32.xlu1 %v26881_v0, %s26784_s21  ;;  %21316 = vrcp.f32 %v6635_v60 }
 0xb8c   : > { %7507 = vrot.lane.b32.xlu1 %v23253_v3, %s26802_s23 }
 0xb8e   : > { %v6644_v20 = vpop.xlane.xlu0 %6643 }
 0xb8f   : > { %21318 = vrcp.f32 %v6644_v20 }
 0xb90   : > { %7447 = vrot.lane.b32.xlu1 %v26882_v63, %s26784_s21 }
 0xb91   : > { %v21315_v40 = vpop.eup %21314 }
 0xb92   : > { %v21317_v29 = vpop.eup %21316  ;;  %v6641_v33 = vpop.xlane.xlu1 %6640  ;;  %v6698_v37 = vmul.f32 %v21315_v40, %v23322_v58 }
 0xb93   : > { %21320 = vrcp.f32 %v6641_v33  ;;  %v6697_v36 = vmul.f32 %v21317_v29, %v23324_v61 }
 0xb94   : > { %7511 = vrot.lane.b32.xlu1 %v23257_v50, %s26802_s23 }
 0xb95   : > { %18924 = vmatprep.mubr.msk.f32.mxu1 %vm575_vm0, %v6697_v36 }
 0xb96   : > { %v6650_v46 = vpop.xlane.xlu0 %6649  ;;  %18925 = vmatmul.mubr.msk.f32.vlgmr.msra.gmra.mrb[70].mxu1 %vm575_vm0, %v6698_v37  ;;  %v6647_v3 = vpop.xlane.xlu1 %6646 }
 0xb97   : > { %21322 = vrcp.f32 %v6650_v46  ;;  %20007 = vmatpush3.bf16.msra.mxu1 %v23363_v22 }
 0xb98   : > { %21324 = vrcp.f32 %v6647_v3  ;;  %7451 = vrot.lane.b32.xlu1 %v26883_v10, %s26784_s21 }
 0xb99   : > { %v21319_v61 = vpop.eup %21318 }
 0xb9a   : > { %v6656_v24 = vpop.xlane.xlu0 %6655  ;;  %v6653_v45 = vpop.xlane.xlu1 %6652  ;;  %v6700_v35 = vmul.f32 %v21319_v61, %v23334_v12 }
 0xb9b   : > { %21326 = vrcp.f32 %v6653_v45  ;;  %v7651_v45 = vld [vmem:[%s26747_s5 + $0x8] sm:$0xff] }
 0xb9c   : > { %7515 = vrot.lane.b32.xlu1 %v23261_v57, %s26802_s23 }
 0xb9d   : > { %v21321_v50 = vpop.eup %21320 }
 0xb9e   : > { %v6662_v58 = vpop.xlane.xlu0 %6661  ;;  %v6659_v11 = vpop.xlane.xlu1 %6658  ;;  %v6699_v44 = vmul.f32 %v21321_v50, %v23340_v30 }
 0xb9f   : > { %21328 = vrcp.f32 %v6659_v11 }
 0xba0   : > { %7455 = vrot.lane.b32.xlu1 %v26884_v4, %s26784_s21  ;;  %18931 = vmatprep.mubr.msk.f32.mxu0 %vm575_vm0, %v6699_v44  ;;  %21330 = vrcp.f32 %v6662_v58  ;;  %s26800_s21 = smov 24  }
 0xba1   : > { %v21323_v22 = vpop.eup %21322  ;;  %18932 = vmatmul.mubr.msk.f32.vlgmr.msra.gmra.mrb[74].mxu0 %vm575_vm0, %v6700_v35 }
 0xba2   : > { %v21325_v2 = vpop.eup %21324  ;;  %v6668_v52 = vpop.xlane.xlu0 %6667  ;;  %v6702_v57 = vmul.f32 %v21323_v22, %v23347_v51 }
 0xba3   : > { %v6665_v38 = vpop.xlane.xlu1 %6664  ;;  %v6701_v62 = vmul.f32 %v21325_v2, %v23344_v1 }
 0xba5   : > { %18938 = vmatprep.mubr.msk.f32.mxu1 %vm575_vm0, %v6701_v62  ;;  %v21327_v12 = vpop.eup %21326 }
 0xba6   : > { %18939 = vmatmul.mubr.msk.f32.vlgmr.msra.gmra.mrb[72].mxu1 %vm575_vm0, %v6702_v57  ;;  %v6674_v30 = vpop.xlane.xlu0 %6673  ;;  %v6703_v27 = vmul.f32 %v21327_v12, %v23354_v17 }
 0xba7   : > { %v20752_v13 = vpop.permute.xlu1 %20751  ;;  %21332 = vrcp.f32 %v6674_v30 }
 0xba8   : > { %v20754_v7 = vunpack.i.h.bf16 %v20752_v13  ;;  %v20753_v19 = vunpack.i.l.bf16 %v20752_v13  ;;  %18945 = vmatprep.mubr.msk.f32.mxu0 %vm575_vm0, %v6703_v27 }
 0xba9   : > { %v21329_v53 = vpop.eup %21328 }
 0xbaa   : > { %v6671_v41 = vpop.xlane.xlu0 %6670  ;;  %v20012_v51 = vpack.c.bf16 %v20754_v7, %v20753_v19  ;;  %v21331_v34 = vpop.eup %21330  ;;  %v6705_v6 = vmul.f32 %v21329_v53, %v23365_v8 }
 0xbab   : > { %21334 = vrcp.f32 %v6671_v41  ;;  %v20757_v1 = vpop.permute.xlu1 %20756  ;;  %v6706_v5 = vmul.f32 %v21331_v34, %v23369_v43 }
 0xbac   : > { %21336 = vrcp.f32 %v6656_v24  ;;  %20013 = vmatprep.subr.bf16.mxu1 %v20012_v51  ;;  %18952 = vmatprep.mubr.msk.f32.mxu1 %vm575_vm0, %v6705_v6  ;;  %v20759_v31 = vunpack.i.h.bf16 %v20757_v1  ;;  %v20758_v49 = vunpack.i.l.bf16 %v20757_v1 }
 0xbad   : > { %21338 = vrcp.f32 %v6665_v38  ;;  %20015 = vmatpush3.bf16.msra.mxu1 %v20012_v51 }
 0xbae   : > { %v6680_v17 = vpop.xlane.xlu0 %6679  ;;  %21340 = vrcp.f32 %v6668_v52  ;;  %v20016_v20 = vpack.c.bf16 %v20759_v31, %v20758_v49 }
 0xbaf   : > { %v20762_v14 = vpop.permute.xlu1 %20761  ;;  %21342 = vrcp.f32 %v6680_v17 }
 0xbb0   : > { %v20764_v54 = vunpack.i.h.bf16 %v20762_v14  ;;  %v20763_v23 = vunpack.i.l.bf16 %v20762_v14  ;;  %18953 = vmatmul.mubr.msk.f32.vlgmr.msra.gmra.mrb[74].mxu1 %vm575_vm0, %v6706_v5 }
 0xbb1   : > { %v21333_v48 = vpop.eup %21332 }
 0xbb2   : > { %v20747_v28 = vpop.permute.xlu0 %20746  ;;  %v20020_v39 = vpack.c.bf16 %v20764_v54, %v20763_v23  ;;  %v6710_v63 = vmul.f32 %v21333_v48, %v23383_v59 }
 0xbb3   : > { %v20749_v8 = vunpack.i.h.bf16 %v20747_v28  ;;  %v20748_v47 = vunpack.i.l.bf16 %v20747_v28 }
 0xbb4   : > { %20021 = vmatprep.subr.bf16.mxu1 %v20020_v39 }
 0xbb5   : > { %v21335_v32 = vpop.eup %21334  ;;  %20023 = vmatpush3.bf16.msra.mxu1 %v20020_v39  ;;  %v20008_v16 = vpack.c.bf16 %v20749_v8, %v20748_v47 }
 0xbb6   : > { %v21337_v60 = vpop.eup %21336  ;;  %v6709_v43 = vmul.f32 %v21335_v32, %v23387_v56  ;;  %v7426_v38 = vpop.permute.xlu0 %7425 }
 0xbb7   : > { %v21339_v0 = vpop.eup %21338  ;;  %20009 = vmatprep.subr.bf16.mxu0 %v20008_v16  ;;  %v6704_v40 = vmul.f32 %v21337_v60, %v23357_v26 }
 0xbb8   : > { %20011 = vmatpush3.bf16.msra.mxu0 %v20008_v16  ;;  %18966 = vmatprep.mubr.msk.f32.mxu1 %vm575_vm0, %v6709_v43  ;;  %v21341_v29 = vpop.eup %21340  ;;  %v6707_v33 = vmul.f32 %v21339_v0, %v23375_v15 }
 0xbb9   : > { %20017 = vmatprep.subr.bf16.mxu0 %v20016_v20  ;;  %18967 = vmatmul.mubr.msk.f32.vlgmr.msra.gmra.mrb[76].mxu1 %vm575_vm0, %v6710_v63  ;;  %v6708_v56 = vmul.f32 %v21341_v29, %v23377_v9  ;;  %v21343_v26 = vpop.eup %21342  ;;  %v7650_v9 = vld [vmem:[%s26747_s5] sm:$0xff] }
 0xbba   : > { %v6712_v24 = vmul.f32 %v21343_v26, %v23391_v42  ;;  %v20028_v61 = vpack.c.bf16 %v7651_v45, %v7650_v9  ;;  %v7653_v42 = vld [vmem:[%s26747_s5 + $0x18] sm:$0xff]  ;;  %v7490_v12 = vpop.permute.xlu0 %7489 }
 0xbbb   : > { %18946 = vmatmul.mubr.msk.f32.vlgmr.msra.gmra.mrb[76].mxu0 %vm575_vm0, %v6704_v40 }
 0xbbc   : > { %20019 = vmatpush3.bf16.msra.mxu0 %v20016_v20  ;;  %18959 = vmatprep.mubr.msk.f32.mxu0 %vm575_vm0, %v6707_v33  ;;  %v26885_v33 = vld [vmem:[#allocation21_spill] sm:$0xff] }
 0xbbd   : > { %20029 = vmatprep.subr.bf16.mxu1 %v20028_v61 }
 0xbbe   : > { %20031 = vmatpush3.bf16.msra.mxu1 %v20028_v61  ;;  %v7430_v53 = vpop.permute.xlu0 %7429 }
 0xbbf   : > { %18960 = vmatmul.mubr.msk.f32.vlgmr.msra.gmra.mrb[78].mxu0 %vm575_vm0, %v6708_v56  ;;  %v7601_v56 = vsel %vm1014_vm2, %v26885_v33, %v7426_v38 }
 0xbc2   : > { %v7494_v1 = vpop.permute.xlu0 %7493 }
 0xbc6   : > { %v7434_v17 = vpop.permute.xlu0 %7433 }
 0xbca   : > { %v7498_v14 = vpop.permute.xlu0 %7497 }
 0xbce   : > { %v7438_v23 = vpop.permute.xlu0 %7437 }
 0xbd2   : > { %v7502_v39 = vpop.permute.xlu0 %7501 }
 0xbd6   : > { %v7442_v49 = vpop.permute.xlu0 %7441 }
 0xbe0   : > { %v6677_v59 = vpop.xlane.xlu1 %6676 }
 0xbe1   : > { %21344 = vrcp.f32 %v6677_v59 }
 0xbe4   : > { %v20767_v36 = vpop.permute.xlu1 %20766 }
 0xbe5   : > { %v20769_v37 = vunpack.i.h.bf16 %v20767_v36  ;;  %v20768_v46 = vunpack.i.l.bf16 %v20767_v36  ;;  %v7617_v36 = vsel %vm575_vm0, %v7601_v56, %v7490_v12 }
 0xbe7   : > { %v20024_v3 = vpack.c.bf16 %v20769_v37, %v20768_v46  ;;  %v26886_v37 = vld [vmem:[#allocation20_spill] sm:$0xff] }
 0xbe8   : > { %v7428_v52 = vpop.permute.xlu1 %7427 }
 0xbe9   : > { %20025 = vmatprep.subr.bf16.mxu0 %v20024_v3  ;;  %v7602_v46 = vsel %vm1014_vm2, %v26886_v37, %v7428_v52  ;;  %v26890_v52 = vld [vmem:[#allocation24_spill] sm:$0xff] }
 0xbea   : > { %20027 = vmatpush3.bf16.msra.mxu0 %v20024_v3 }
 0xbeb   : > { %v21345_v15 = vpop.eup %21344 }
 0xbec   : > { %v6711_v10 = vmul.f32 %v21345_v15, %v23414_v18  ;;  %v7652_v18 = vld [vmem:[%s26747_s5 + $0x10] sm:$0xff]  ;;  %v7492_v62 = vpop.permute.xlu1 %7491 }
 0xbed   : > { %v20032_v50 = vpack.c.bf16 %v7653_v42, %v7652_v18  ;;  %v7618_v26 = vsel %vm575_vm0, %v7602_v46, %v7492_v62  ;;  %v26888_v18 = vld [vmem:[#allocation22_spill] sm:$0xff] }
 0xbee   : > { %18973 = vmatprep.mubr.msk.f32.mxu0 %vm575_vm0, %v6711_v10 }
 0xbef   : > { %18974 = vmatmul.mubr.msk.f32.vlgmr.msra.gmra.mrb[80].mxu0 %vm575_vm0, %v6712_v24  ;;  %20033 = vmatprep.subr.bf16.mxu1 %v20032_v50  ;;  %v26887_v24 = vld [vmem:[#allocation23_spill] sm:$0xff] }
 0xbf0   : > { %20035 = vmatpush3.bf16.msra.mxu1 %v20032_v50  ;;  %v7432_v19 = vpop.permute.xlu1 %7431  ;;  %v7603_v9 = vsel %vm1014_vm2, %v26887_v24, %v7430_v53  ;;  %v26892_v53 = vld [vmem:[#allocation26_spill] sm:$0xff] }
 0xbf1   : > { %v7619_v61 = vsel %vm575_vm0, %v7603_v9, %v7494_v1  ;;  %v7604_v42 = vsel %vm1014_vm2, %v26888_v18, %v7432_v19 }
 0xbf4   : > { %v7496_v34 = vpop.permute.xlu1 %7495 }
 0xbf8   : > { %v7436_v6 = vpop.permute.xlu1 %7435 }
 0xbfc   : > { %v7500_v5 = vpop.permute.xlu1 %7499 }
 0xc00   : > { %v7440_v54 = vpop.permute.xlu1 %7439 }
 0xc04   : > { %v7504_v28 = vpop.permute.xlu1 %7503 }
 0xc08   : > { %v23533_v31 = vpop.permute.xlu1 %7443 }
 0xc0c   : > { %v23535_v8 = vpop.permute.xlu1 %7507 }
 0xc10   : > { %v23537_v47 = vpop.permute.xlu1 %7447 }
 0xc14   : > { %v23543_v16 = vpop.permute.xlu1 %7511 }
 0xc18   : > { %v23545_v43 = vpop.permute.xlu1 %7451 }
 0xc1c   : > { %v23549_v20 = vpop.permute.xlu1 %7515 }
 0xc20   : > { %v23553_v40 = vpop.permute.xlu1 %7455 }
 0xc69   : > { %v18926_v58 = vpop.f32.mrb[70].mxu1 }
 0xc6a   : > { %7555 = vrot.lane.b32.xlu1 %v18926_v58, %s26800_s21  ;;  %v6791_v11 = vpop.f32.mrb[71].mxu1  ;;  %v7620_v58 = vsel %vm575_vm0, %v7604_v42, %v7496_v34 }
 0xc6b   : > { %7553 = vrot.lane.b32.xlu0 %v6791_v11, %s26800_s21 }
 0xc74   : > { %v18933_v44 = vpop.f32.mrb[74].mxu0 }
 0xc75   : > { %7559 = vrot.lane.b32.xlu1 %v18933_v44, %s26800_s21  ;;  %v6878_v35 = vpop.f32.mrb[75].mxu0 }
 0xc76   : > { %7557 = vrot.lane.b32.xlu0 %v6878_v35, %s26800_s21  ;;  %v26889_v35 = vld [vmem:[#allocation25_spill] sm:$0xff] }
 0xc79   : > { %v18940_v4 = vpop.f32.mrb[72].mxu1 }
 0xc7a   : > { %7563 = vrot.lane.b32.xlu1 %v18940_v4, %s26800_s21  ;;  %v6965_v22 = vpop.f32.mrb[73].mxu1  ;;  %v7605_v4 = vsel %vm1014_vm2, %v26889_v35, %v7434_v17  ;;  %v26893_v17 = vld [vmem:[#allocation29_spill] sm:$0xff] }
 0xc7b   : > { %7561 = vrot.lane.b32.xlu0 %v6965_v22, %s26800_s21 }
 0xc83   : > { %v18954_v2 = vpop.f32.mrb[74].mxu1 }
 0xc84   : > { %v7139_v57 = vpop.f32.mrb[75].mxu1 }
 0xc8c   : > { %v18968_v30 = vpop.f32.mrb[76].mxu1 }
 0xc8d   : > { %v7313_v13 = vpop.f32.mrb[77].mxu1 }
 0xc8e   : > { %v18947_v27 = vpop.f32.mrb[76].mxu0 }
 0xc8f   : > { %7567 = vrot.lane.b32.xlu1 %v18947_v27, %s26800_s21  ;;  %v7052_v7 = vpop.f32.mrb[77].mxu0 }
 0xc90   : > { %7565 = vrot.lane.b32.xlu0 %v7052_v7, %s26800_s21 }
 0xc92   : > { %v18961_v41 = vpop.f32.mrb[78].mxu0 }
 0xc93   : > { %v7226_v51 = vpop.f32.mrb[79].mxu0  ;;  %7571 = vrot.lane.b32.xlu1 %v18954_v2, %s26800_s21  ;;  %v7621_v2 = vsel %vm575_vm0, %v7605_v4, %v7498_v14 }
 0xc94   : > { %7569 = vrot.lane.b32.xlu0 %v7139_v57, %s26800_s21  ;;  %v7606_v57 = vsel %vm1014_vm2, %v26890_v52, %v7436_v6  ;;  %v26901_v52 = vld [vmem:[#allocation3_spill] sm:$0xff] }
 0xc95   : > { %v7622_v62 = vsel %vm575_vm0, %v7606_v57, %v7500_v5  ;;  %v7609_v5 = vsel %vm1014_vm2, %v26893_v17, %v7442_v49  ;;  %v26895_v49 = vld [vmem:[#allocation31_spill] sm:$0xff] }
 0xc97   : > { %7575 = vrot.lane.b32.xlu1 %v18961_v41, %s26800_s21  ;;  %v7608_v41 = vsel %vm1014_vm2, %v26892_v53, %v7440_v54  ;;  %v26903_v53 = vld [vmem:[#allocation4_spill] sm:$0xff] }
 0xc98   : > { %7573 = vrot.lane.b32.xlu0 %v7226_v51, %s26800_s21  ;;  %v7624_v34 = vsel %vm575_vm0, %v7608_v41, %v7504_v28 }
 0xc9b   : > { %7519 = vrot.lane.b32.xlu1 %v23265_v21, %s26802_s23  ;;  %v7506_v21 = vpop.permute.xlu0 %7505 }
 0xc9c   : > { %7517 = vrot.lane.b32.xlu0 %v23268_v25, %s26802_s23  ;;  %s26967_s23 = smov 104  }
 0xc9f   : > { %7579 = vrot.lane.b32.xlu1 %v18968_v30, %s26800_s21  ;;  %v23539_v25 = vpop.permute.xlu0 %7445 }
 0xca0   : > { %7577 = vrot.lane.b32.xlu0 %v7313_v13, %s26800_s21  ;;  %v26891_v13 = vld [vmem:[#allocation27_spill] sm:$0xff]  ;;  %v7611_v56 = vsel %vm1014_vm2, %v26895_v49, %v23539_v25 }
 0xca1   : > { %v7607_v27 = vsel %vm1014_vm2, %v26891_v13, %v7438_v23  ;;  %v7625_v23 = vsel %vm575_vm0, %v7609_v5, %v7506_v21 }
 0xca2   : > { %v7623_v19 = vsel %vm575_vm0, %v7607_v27, %v7502_v39  ;;  %v26894_v39 = vld [vmem:[#allocation28_spill] sm:$0xff] }
 0xca3   : > { %v7510_v60 = vpop.permute.xlu0 %7509  ;;  %v7610_v54 = vsel %vm1014_vm2, %v26894_v39, %v23533_v31  ;;  %v26896_v31 = vld [vmem:[#allocation30_spill] sm:$0xff] }
 0xca4   : > { %v7626_v28 = vsel %vm575_vm0, %v7610_v54, %v23535_v8  ;;  %v7627_v21 = vsel %vm575_vm0, %v7611_v56, %v7510_v60  ;;  %v26897_v60 = vld [vmem:[#allocation33_spill] sm:$0xff]  ;;  %v26906_v54 = vld [vmem:[#allocation7_spill] sm:$0xff] }
 0xca7   : > { %v23547_v0 = vpop.permute.xlu0 %7449 }
 0xcab   : > { %v23551_v63 = vpop.permute.xlu0 %7513 }
 0xcaf   : > { %v23555_v29 = vpop.permute.xlu0 %7453 }
 0xcc2   : > { %v18975_v48 = vpop.f32.mrb[80].mxu0 }
 0xcc3   : > { %v7400_v32 = vpop.f32.mrb[81].mxu0  ;;  %7583 = vrot.lane.b32.xlu1 %v18975_v48, %s26800_s21 }
 0xcc4   : > { %7581 = vrot.lane.b32.xlu0 %v7400_v32, %s26800_s21  ;;  %s26968_s21 = smov 40  }
 0xcdc   : > { %v7556_v59 = vpop.permute.xlu1 %7555 }
 0xcdd   : > { %v7554_v3 = vpop.permute.xlu0 %7553  ;;  %v7635_v10 = vsel %vm7633_vm4, %v7618_v26, %v7556_v59 }
 0xcde   : > { %v7634_v15 = vsel %vm7633_vm4, %v7617_v36, %v7554_v3  ;;  %v7612_v36 = vsel %vm1014_vm2, %v26896_v31, %v23537_v47  ;;  %v26907_v31 = vld [vmem:[#allocation9_spill] sm:$0xff] }
 0xcdf   : > { %18984 = vmatprep.mubr.msk.f32.mxu1 %vm798_vm1, %v7634_v15  ;;  %v7628_v37 = vsel %vm575_vm0, %v7612_v36, %v23543_v16  ;;  %v7613_v15 = vsel %vm1014_vm2, %v26897_v60, %v23547_v0  ;;  %v26898_v16 = vld [vmem:[#allocation32_spill] sm:$0xff]  ;;  %v26899_v0 = vld [vmem:[#allocation35_spill] sm:$0xff] }
 0xce0   : > { %18985 = vmatmul.mubr.msk.f32.vlgmr.msra.gmra.mrb[78].mxu1 %vm798_vm1, %v7635_v10  ;;  %v7629_v47 = vsel %vm575_vm0, %v7613_v15, %v23551_v63  ;;  %v7614_v24 = vsel %vm1014_vm2, %v26898_v16, %v23545_v43  ;;  %v7615_v63 = vsel %vm1014_vm2, %v26899_v0, %v23555_v29  ;;  %v23651_v29 = vld [vmem:[%s26748_s6] ss:$0 sm:$0xff] }
 0xce1   : > { %v26910_v16 = vld [vmem:[#allocation10_spill] sm:$0xff] }
 0xce7   : > { %v7560_v45 = vpop.permute.xlu1 %7559 }
 0xce8   : > { %v7558_v50 = vpop.permute.xlu0 %7557  ;;  %v7637_v44 = vsel %vm7633_vm4, %v7620_v58, %v7560_v45  ;;  %v7630_v45 = vsel %vm575_vm0, %v7614_v24, %v23549_v20 }
 0xce9   : > { %v7636_v11 = vsel %vm7633_vm4, %v7619_v61, %v7558_v50  ;;  %v26900_v50 = vld [vmem:[#allocation34_spill] sm:$0xff] }
 0xcea   : > { %18987 = vmatprep.mubr.msk.f32.mxu1 %vm798_vm1, %v7636_v11  ;;  %v7616_v43 = vsel %vm1014_vm2, %v26900_v50, %v23553_v40 }
 0xceb   : > { %18988 = vmatmul.mubr.msk.f32.gmra.mrb[80].mxu1 %vm798_vm1, %v7637_v44 }
 0xcec   : > { %v7564_v22 = vpop.permute.xlu1 %7563 }
 0xced   : > { %v7562_v38 = vpop.permute.xlu0 %7561  ;;  %v7639_v30 = vsel %vm7633_vm4, %v7622_v62, %v7564_v22 }
 0xcee   : > { %v7638_v12 = vsel %vm7633_vm4, %v7621_v2, %v7562_v38  ;;  %v26902_v38 = vld [vmem:[#allocation2_spill] sm:$0xff] }
 0xcef   : > { %18990 = vmatprep.mubr.msk.f32.mxu1 %vm798_vm1, %v7638_v12 }
 0xcf0   : > { %18991 = vmatmul.mubr.msk.f32.gmra.mrb[82].mxu1 %vm798_vm1, %v7639_v30 }
 0xd01   : > { %v7568_v7 = vpop.permute.xlu1 %7567 }
 0xd02   : > { %v7566_v51 = vpop.permute.xlu0 %7565  ;;  %v7641_v6 = vsel %vm7633_vm4, %v7624_v34, %v7568_v7  ;;  %v26904_v34 = vld [vmem:[#allocation5_spill] sm:$0xff] }
 0xd03   : > { %v7640_v1 = vsel %vm7633_vm4, %v7623_v19, %v7566_v51 }
 0xd04   : > { %18993 = vmatprep.mubr.msk.f32.mxu1 %vm798_vm1, %v7640_v1 }
 0xd05   : > { %18994 = vmatmul.mubr.msk.f32.gmra.mrb[84].mxu1 %vm798_vm1, %v7641_v6  ;;  %v7572_v14 = vpop.permute.xlu1 %7571 }
 0xd06   : > { %v7570_v48 = vpop.permute.xlu0 %7569  ;;  %v7643_v33 = vsel %vm7633_vm4, %v7626_v28, %v7572_v14 }
 0xd07   : > { %v7642_v32 = vsel %vm7633_vm4, %v7625_v23, %v7570_v48  ;;  %v26905_v23 = vld [vmem:[#allocation6_spill] sm:$0xff] }
 0xd08   : > { %18996 = vmatprep.mubr.msk.f32.mxu1 %vm798_vm1, %v7642_v32 }
 0xd09   : > { %v7576_v59 = vpop.permute.xlu1 %7575  ;;  %18997 = vmatmul.mubr.msk.f32.gmra.mrb[86].mxu1 %vm798_vm1, %v7643_v33 }
 0xd0a   : > { %v7574_v8 = vpop.permute.xlu0 %7573  ;;  %v7645_v3 = vsel %vm7633_vm4, %v7628_v37, %v7576_v59 }
 0xd0b   : > { %v7644_v46 = vsel %vm7633_vm4, %v7627_v21, %v7574_v8  ;;  %v26908_v8 = vld [vmem:[#allocation8_spill] sm:$0xff] }
 0xd0c   : > { %18999 = vmatprep.mubr.msk.f32.mxu1 %vm798_vm1, %v7644_v46 }
 0xd0d   : > { %v7520_v25 = vpop.permute.xlu1 %7519  ;;  %19000 = vmatmul.mubr.msk.f32.gmra.mrb[88].mxu1 %vm798_vm1, %v7645_v3 }
 0xd0e   : > { %v7518_v26 = vpop.permute.xlu0 %7517  ;;  %v7632_v11 = vsel %vm575_vm0, %v7616_v43, %v7520_v25  ;;  %v26912_v43 = vld [vmem:[#allocation12_spill] sm:$0xff] }
 0xd0f   : > { %v7631_v58 = vsel %vm575_vm0, %v7615_v63, %v7518_v26 }
 0xd11   : > { %v7580_v10 = vpop.permute.xlu1 %7579 }
 0xd12   : > { %v7578_v9 = vpop.permute.xlu0 %7577  ;;  %v7647_v18 = vsel %vm7633_vm4, %v7630_v45, %v7580_v10  ;;  %v26909_v10 = vld [vmem:[#allocation11_spill] sm:$0xff] }
 0xd13   : > { %v7646_v61 = vsel %vm7633_vm4, %v7629_v47, %v7578_v9 }
 0xd14   : > { %19002 = vmatprep.mubr.msk.f32.mxu1 %vm798_vm1, %v7646_v61 }
 0xd15   : > { %19003 = vmatmul.mubr.msk.f32.gmra.mrb[90].mxu1 %vm798_vm1, %v7647_v18 }
 0xd35   : > { %v7584_v42 = vpop.permute.xlu1 %7583 }
 0xd36   : > { %v7582_v20 = vpop.permute.xlu0 %7581  ;;  %v7649_v35 = vsel %vm7633_vm4, %v7632_v11, %v7584_v42  ;;  %v26911_v42 = vld [vmem:[#allocation13_spill] sm:$0xff] }
 0xd37   : > { %v7648_v44 = vsel %vm7633_vm4, %v7631_v58, %v7582_v20 }
 0xd38   : > { %19005 = vmatprep.mubr.msk.f32.mxu1 %vm798_vm1, %v7648_v44 }
 0xd39   : > { %19006 = vmatmul.mubr.msk.f32.gmra.mrb[92].mxu1 %vm798_vm1, %v7649_v35 }
 0xdb3   : > { %v18986_v4 = vpop.f32.mrb[78].mxu1 }
 0xdb4   : > { %v7781_v40 = vadd.f32 %v18986_v4, %v23651_v29  ;;  %v7775_v22 = vpop.f32.mrb[79].mxu1 }
 0xdb5   : > { %v7776_v2 = vadd.f32 %v23651_v29, %v7775_v22  ;;  %v26913_v22 = vld [vmem:[#allocation15_spill] sm:$0xff] }
 0xdb6   : > { %v23656_v57 = vadd.f32 %v7781_v40, %v26901_v52  ;;  %v26914_v52 = vld [vmem:[#allocation14_spill] sm:$0xff] }
 0xdb7   : > { %v23659_v62 = vadd.f32 %v7776_v2, %v26902_v38 }
 0xdb8   : > { %v7875_v12 = vsel %vm798_vm1, %v23656_v57, 0.0 }
 0xdb9   : > { %7876 = vadd.xlane.f32.xlu1 %v7875_v12  ;;  %v7872_v30 = vsel %vm798_vm1, %v23659_v62, 0.0 }
 0xdba   : > { %7873 = vadd.xlane.f32.xlu0 %v7872_v30 }
 0xdbe   : > { %v18989_v13 = vpop.f32.mrb[80].mxu1 }
 0xdbf   : > { %v7785_v27 = vpop.f32.mrb[81].mxu1  ;;  %v7791_v7 = vadd.f32 %v18989_v13, %v23651_v29 }
 0xdc0   : > { %v7786_v19 = vadd.f32 %v23651_v29, %v7785_v27 }
 0xdc1   : > { %v23671_v1 = vadd.f32 %v7791_v7, %v26904_v34  ;;  %v26916_v34 = vld [vmem:[#allocation17_spill] sm:$0xff] }
 0xdc2   : > { %v23668_v41 = vadd.f32 %v7786_v19, %v26903_v53  ;;  %v26915_v53 = vld [vmem:[#allocation16_spill] sm:$0xff] }
 0xdc3   : > { %v18992_v51 = vpop.f32.mrb[82].mxu1  ;;  %v7881_v28 = vsel %vm798_vm1, %v23671_v1, 0.0 }
 0xdc4   : > { %v7801_v6 = vadd.f32 %v18992_v51, %v23651_v29  ;;  %v7795_v17 = vpop.f32.mrb[83].mxu1  ;;  %v7878_v5 = vsel %vm798_vm1, %v23668_v41, 0.0 }
 0xdc5   : > { %v7796_v14 = vadd.f32 %v23651_v29, %v7795_v17  ;;  %7879 = vadd.xlane.f32.xlu0 %v7878_v5 }
 0xdc6   : > { %v23681_v48 = vadd.f32 %v7801_v6, %v26906_v54 }
 0xdc7   : > { %v23678_v39 = vadd.f32 %v7796_v14, %v26905_v23 }
 0xdc8   : > { %v7887_v33 = vsel %vm798_vm1, %v23681_v48, 0.0 }
 0xdc9   : > { %v7884_v32 = vsel %vm798_vm1, %v23678_v39, 0.0  ;;  %7882 = vadd.xlane.f32.xlu0 %v7881_v28 }
 0xdca   : > { %7885 = vadd.xlane.f32.xlu1 %v7884_v32 }
 0xdcd   : > { %7888 = vadd.xlane.f32.xlu0 %v7887_v33 }
 0xdd8   : > { %v18995_v49 = vpop.f32.mrb[84].mxu1 }
 0xdd9   : > { %v7811_v56 = vadd.f32 %v18995_v49, %v23651_v29  ;;  %v7805_v59 = vpop.f32.mrb[85].mxu1 }
 0xdda   : > { %v7806_v21 = vadd.f32 %v23651_v29, %v7805_v59 }
 0xddb   : > { %v23692_v36 = vadd.f32 %v7811_v56, %v26907_v31 }
 0xddc   : > { %v23695_v37 = vadd.f32 %v7806_v21, %v26908_v8  ;;  %v18998_v46 = vpop.f32.mrb[86].mxu1 }
 0xddd   : > { %v7821_v3 = vadd.f32 %v18998_v46, %v23651_v29  ;;  %v7815_v25 = vpop.f32.mrb[87].mxu1  ;;  %v7893_v26 = vsel %vm798_vm1, %v23692_v36, 0.0 }
 0xdde   : > { %v7816_v60 = vadd.f32 %v23651_v29, %v7815_v25  ;;  %7894 = vadd.xlane.f32.xlu0 %v7893_v26  ;;  %v7890_v15 = vsel %vm798_vm1, %v23695_v37, 0.0 }
 0xddf   : > { %v23704_v47 = vadd.f32 %v7821_v3, %v26909_v10  ;;  %7891 = vadd.xlane.f32.xlu1 %v7890_v15 }
 0xde0   : > { %v23707_v24 = vadd.f32 %v7816_v60, %v26910_v16  ;;  %v19001_v9 = vpop.f32.mrb[88].mxu1 }
 0xde1   : > { %v7831_v45 = vadd.f32 %v19001_v9, %v23651_v29  ;;  %v7825_v61 = vpop.f32.mrb[89].mxu1  ;;  %v7899_v18 = vsel %vm798_vm1, %v23704_v47, 0.0 }
 0xde2   : > { %v7826_v0 = vadd.f32 %v23651_v29, %v7825_v61  ;;  %7900 = vadd.xlane.f32.xlu0 %v7899_v18  ;;  %v7896_v63 = vsel %vm798_vm1, %v23707_v24, 0.0 }
 0xde3   : > { %v23716_v50 = vadd.f32 %v7831_v45, %v26911_v42  ;;  %7897 = vadd.xlane.f32.xlu1 %v7896_v63 }
 0xde4   : > { %v23719_v58 = vadd.f32 %v7826_v0, %v26912_v43  ;;  %v8125_v0 = vld [vmem:[%s26751_s9] sm:$0xff] }
 0xde5   : > { %v7905_v20 = vsel %vm798_vm1, %v23716_v50, 0.0 }
 0xde6   : > { %7906 = vadd.xlane.f32.xlu0 %v7905_v20  ;;  %v7902_v11 = vsel %vm798_vm1, %v23719_v58, 0.0 }
 0xde7   : > { %7903 = vadd.xlane.f32.xlu1 %v7902_v11 }
 0xde8   : > { %v19004_v44 = vpop.f32.mrb[90].mxu1 }
 0xde9   : > { %v7841_v35 = vadd.f32 %v19004_v44, %v23651_v29  ;;  %v7835_v4 = vpop.f32.mrb[91].mxu1 }
 0xdea   : > { %v7836_v40 = vadd.f32 %v23651_v29, %v7835_v4  ;;  %v8128_v4 = vld [vmem:[%s26751_s9 + $0x18] sm:$0xff] }
 0xdeb   : > { %v23728_v2 = vadd.f32 %v7841_v35, %v26913_v22  ;;  %v8127_v35 = vld [vmem:[%s26751_s9 + $0x10] sm:$0xff] }
 0xdec   : > { %v23731_v38 = vadd.f32 %v7836_v40, %v26914_v52  ;;  %v20040_v52 = vpack.c.bf16 %v8128_v4, %v8127_v35 }
 0xded   : > { %v7911_v12 = vsel %vm798_vm1, %v23728_v2, 0.0 }
 0xdee   : > { %7912 = vadd.xlane.f32.xlu0 %v7911_v12  ;;  %v7908_v30 = vsel %vm798_vm1, %v23731_v38, 0.0 }
 0xdef   : > { %7909 = vadd.xlane.f32.xlu1 %v7908_v30 }
 0xe0c   : > { %v19007_v13 = vpop.f32.mrb[92].mxu1 }
 0xe0d   : > { %v7851_v27 = vadd.f32 %v19007_v13, %v23651_v29  ;;  %v7845_v7 = vpop.f32.mrb[93].mxu1 }
 0xe0e   : > { %v7846_v19 = vadd.f32 %v23651_v29, %v7845_v7 }
 0xe0f   : > { %v23740_v51 = vadd.f32 %v7851_v27, %v26915_v53 }
 0xe10   : > { %v23743_v6 = vadd.f32 %v7846_v19, %v26916_v34 }
 0xe11   : > { %v7917_v17 = vsel %vm798_vm1, %v23740_v51, 0.0 }
 0xe12   : > { %7918 = vadd.xlane.f32.xlu0 %v7917_v17  ;;  %v7914_v5 = vsel %vm798_vm1, %v23743_v6, 0.0 }
 0xe13   : > { %7915 = vadd.xlane.f32.xlu1 %v7914_v5 }
 0xe46   : > { %v7877_v14 = vpop.xlane.xlu1 %7876 }
 0xe47   : > { %v7922_v23 = vmul.f32 0.03125, %v7877_v14  ;;  %v7874_v54 = vpop.xlane.xlu0 %7873 }
 0xe48   : > { %v7921_v28 = vmul.f32 0.03125, %v7874_v54 }
 0xe49   : > { %v23750_v29 = vsub.f32 %v23656_v57, %v7922_v23 }
 0xe4a   : > { %v23753_v32 = vsub.f32 %v23659_v62, %v7921_v28 }
 0xe4b   : > { %v7954_v33 = vmul.f32 %v23750_v29, %v23750_v29 }
 0xe4c   : > { %v7953_v49 = vmul.f32 %v23753_v32, %v23753_v32 }
 0xe4d   : > { %v7972_v56 = vsel %vm798_vm1, %v7954_v33, 0.0 }
 0xe4e   : > { %7973 = vadd.xlane.f32.xlu0 %v7972_v56  ;;  %v7969_v59 = vsel %vm798_vm1, %v7953_v49, 0.0 }
 0xe4f   : > { %7970 = vadd.xlane.f32.xlu1 %v7969_v59 }
 0xe52   : > { %v7880_v21 = vpop.xlane.xlu0 %7879 }
 0xe53   : > { %v7923_v31 = vmul.f32 0.03125, %v7880_v21 }
 0xe55   : > { %v23762_v57 = vsub.f32 %v23668_v41, %v7923_v31 }
 0xe56   : > { %v7883_v8 = vpop.xlane.xlu0 %7882 }
 0xe57   : > { %v7886_v62 = vpop.xlane.xlu1 %7885  ;;  %v7924_v46 = vmul.f32 0.03125, %v7883_v8  ;;  %v7955_v3 = vmul.f32 %v23762_v57, %v23762_v57 }
 0xe58   : > { %v7925_v25 = vmul.f32 0.03125, %v7886_v62 }
 0xe59   : > { %v23767_v26 = vsub.f32 %v23671_v1, %v7924_v46  ;;  %v7975_v60 = vsel %vm798_vm1, %v7955_v3, 0.0 }
 0xe5a   : > { %v23771_v15 = vsub.f32 %v23678_v39, %v7925_v25  ;;  %7976 = vadd.xlane.f32.xlu1 %v7975_v60  ;;  %v7889_v10 = vpop.xlane.xlu0 %7888 }
 0xe5b   : > { %v7926_v16 = vmul.f32 0.03125, %v7889_v10  ;;  %v7956_v41 = vmul.f32 %v23767_v26, %v23767_v26 }
 0xe5c   : > { %v7957_v9 = vmul.f32 %v23771_v15, %v23771_v15 }
 0xe5d   : > { %v23778_v45 = vsub.f32 %v23681_v48, %v7926_v16  ;;  %v7978_v1 = vsel %vm798_vm1, %v7956_v41, 0.0  ;;  %v8126_v48 = vld [vmem:[%s26751_s9 + $0x8] sm:$0xff] }
 0xe5e   : > { %v7981_v61 = vsel %vm798_vm1, %v7957_v9, 0.0  ;;  %7979 = vadd.xlane.f32.xlu0 %v7978_v1  ;;  %v20036_v42 = vpack.c.bf16 %v8126_v48, %v8125_v0  ;;  %v8347_v48 = vld [vmem:[%s26753_s11 + $0x10] sm:$0xff] }
 0xe5f   : > { %7982 = vadd.xlane.f32.xlu1 %v7981_v61  ;;  %v7958_v39 = vmul.f32 %v23778_v45, %v23778_v45 }
 0xe60   : > { %20037 = vmatprep.subr.bf16.mxu0 %v20036_v42 }
 0xe61   : > { %v7984_v18 = vsel %vm798_vm1, %v7958_v39, 0.0  ;;  %20039 = vmatpush3.bf16.msra.mxu0 %v20036_v42  ;;  %v8348_v42 = vld [vmem:[%s26753_s11 + $0x18] sm:$0xff] }
 0xe62   : > { %7985 = vadd.xlane.f32.xlu0 %v7984_v18  ;;  %20041 = vmatprep.subr.bf16.mxu0 %v20040_v52 }
 0xe65   : > { %20043 = vmatpush3.bf16.msra.mxu0 %v20040_v52 }
 0xe6b   : > { %v7895_v63 = vpop.xlane.xlu0 %7894 }
 0xe6c   : > { %v7928_v43 = vmul.f32 0.03125, %v7895_v63  ;;  %v7892_v20 = vpop.xlane.xlu1 %7891 }
 0xe6d   : > { %v7927_v11 = vmul.f32 0.03125, %v7892_v20  ;;  %v8349_v20 = vld [vmem:[%s26753_s11 + $0x20] sm:$0xff] }
 0xe6e   : > { %v23792_v44 = vsub.f32 %v23692_v36, %v7928_v43  ;;  %v20048_v43 = vpack.c.bf16 %v8348_v42, %v8347_v48 }
 0xe6f   : > { %v23801_v40 = vsub.f32 %v23695_v37, %v7927_v11  ;;  %v7901_v22 = vpop.xlane.xlu0 %7900  ;;  %v8350_v11 = vld [vmem:[%s26753_s11 + $0x28] sm:$0xff] }
 0xe70   : > { %v7930_v12 = vmul.f32 0.03125, %v7901_v22  ;;  %v7898_v30 = vpop.xlane.xlu1 %7897  ;;  %v7960_v36 = vmul.f32 %v23792_v44, %v23792_v44  ;;  %v20052_v35 = vpack.c.bf16 %v8350_v11, %v8349_v20 }
 0xe71   : > { %v7929_v13 = vmul.f32 0.03125, %v7898_v30  ;;  %v7959_v27 = vmul.f32 %v23801_v40, %v23801_v40 }
 0xe72   : > { %v23808_v7 = vsub.f32 %v23704_v47, %v7930_v12  ;;  %v7990_v19 = vsel %vm798_vm1, %v7960_v36, 0.0 }
 0xe73   : > { %v23812_v37 = vsub.f32 %v23707_v24, %v7929_v13  ;;  %7991 = vadd.xlane.f32.xlu0 %v7990_v19  ;;  %v7907_v53 = vpop.xlane.xlu0 %7906  ;;  %v7987_v34 = vsel %vm798_vm1, %v7959_v27, 0.0 }
 0xe74   : > { %v7932_v17 = vmul.f32 0.03125, %v7907_v53  ;;  %v7904_v5 = vpop.xlane.xlu1 %7903  ;;  %7988 = vadd.xlane.f32.xlu1 %v7987_v34  ;;  %v7962_v14 = vmul.f32 %v23808_v7, %v23808_v7  ;;  %v23878_v34 = vld [vmem:[%s26749_s7] ss:$0 sm:$0xff] }
 0xe75   : > { %v7931_v23 = vmul.f32 0.03125, %v7904_v5  ;;  %v7961_v47 = vmul.f32 %v23812_v37, %v23812_v37 }
 0xe76   : > { %v23820_v54 = vsub.f32 %v23716_v50, %v7932_v17  ;;  %v7996_v24 = vsel %vm798_vm1, %v7962_v14, 0.0 }
 0xe77   : > { %v23824_v28 = vsub.f32 %v23719_v58, %v7931_v23  ;;  %7997 = vadd.xlane.f32.xlu0 %v7996_v24  ;;  %v7993_v33 = vsel %vm798_vm1, %v7961_v47, 0.0 }
 0xe78   : > { %7994 = vadd.xlane.f32.xlu1 %v7993_v33  ;;  %v7964_v49 = vmul.f32 %v23820_v54, %v23820_v54 }
 0xe79   : > { %v7963_v56 = vmul.f32 %v23824_v28, %v23824_v28 }
 0xe7a   : > { %v8002_v59 = vsel %vm798_vm1, %v7964_v49, 0.0  ;;  %v23885_v49 = vld [vmem:[%s26750_s8] ss:$0 sm:$0xff] }
 0xe7b   : > { %8003 = vadd.xlane.f32.xlu0 %v8002_v59  ;;  %v7913_v50 = vpop.xlane.xlu0 %7912  ;;  %v7999_v21 = vsel %vm798_vm1, %v7963_v56, 0.0 }
 0xe7c   : > { %v7934_v31 = vmul.f32 0.03125, %v7913_v50  ;;  %v7910_v8 = vpop.xlane.xlu1 %7909  ;;  %8000 = vadd.xlane.f32.xlu1 %v7999_v21 }
 0xe7d   : > { %v7933_v58 = vmul.f32 0.03125, %v7910_v8 }
 0xe7e   : > { %v23834_v62 = vsub.f32 %v23728_v2, %v7934_v31 }
 0xe7f   : > { %v23837_v46 = vsub.f32 %v23731_v38, %v7933_v58 }
 0xe80   : > { %v7966_v3 = vmul.f32 %v23834_v62, %v23834_v62 }
 0xe81   : > { %v7965_v25 = vmul.f32 %v23837_v46, %v23837_v46 }
 0xe82   : > { %v8008_v60 = vsel %vm798_vm1, %v7966_v3, 0.0 }
 0xe83   : > { %8009 = vadd.xlane.f32.xlu0 %v8008_v60  ;;  %v8005_v10 = vsel %vm798_vm1, %v7965_v25, 0.0 }
 0xe84   : > { %8006 = vadd.xlane.f32.xlu1 %v8005_v10 }
 0xe9f   : > { %v7919_v16 = vpop.xlane.xlu0 %7918 }
 0xea0   : > { %v7936_v41 = vmul.f32 0.03125, %v7919_v16  ;;  %v7916_v9 = vpop.xlane.xlu1 %7915 }
 0xea1   : > { %v7935_v2 = vmul.f32 0.03125, %v7916_v9 }
 0xea2   : > { %v23846_v1 = vsub.f32 %v23740_v51, %v7936_v41  ;;  %v8345_v51 = vld [vmem:[%s26753_s11] sm:$0xff] }
 0xea3   : > { %v23849_v38 = vsub.f32 %v23743_v6, %v7935_v2  ;;  %v8346_v6 = vld [vmem:[%s26753_s11 + $0x8] sm:$0xff] }
 0xea4   : > { %v7968_v61 = vmul.f32 %v23846_v1, %v23846_v1  ;;  %v20044_v63 = vpack.c.bf16 %v8346_v6, %v8345_v51 }
 0xea5   : > { %v7967_v39 = vmul.f32 %v23849_v38, %v23849_v38 }
 0xea6   : > { %v8014_v18 = vsel %vm798_vm1, %v7968_v61, 0.0  ;;  %20045 = vmatprep.subr.bf16.mxu1 %v20044_v63 }
 0xea7   : > { %8015 = vadd.xlane.f32.xlu0 %v8014_v18  ;;  %v8011_v0 = vsel %vm798_vm1, %v7967_v39, 0.0  ;;  %20047 = vmatpush3.bf16.msra.mxu1 %v20044_v63 }
 0xea8   : > { %8012 = vadd.xlane.f32.xlu1 %v8011_v0  ;;  %20049 = vmatprep.subr.bf16.mxu1 %v20048_v43 }
 0xeab   : > { %20051 = vmatpush3.bf16.msra.mxu1 %v20048_v43 }
 0xeac   : > { %20053 = vmatprep.subr.bf16.mxu1 %v20052_v35 }
 0xeaf   : > { %20055 = vmatpush3.bf16.msra.mxu1 %v20052_v35 }
 0xedb   : > { %v7974_v4 = vpop.xlane.xlu0 %7973 }
 0xedc   : > { %v8018_v22 = vmul.f32 0.03125, %v7974_v4  ;;  %v7971_v52 = vpop.xlane.xlu1 %7970 }
 0xedd   : > { %v8017_v12 = vmul.f32 0.03125, %v7971_v52 }
 0xede   : > { %v8034_v30 = vadd.f32 1e-05, %v8018_v22 }
 0xedf   : > { %v8033_v36 = vadd.f32 1e-05, %v8017_v12 }
 0xee0   : > { %21346 = vrsqrt.f32 %v8034_v30 }
 0xee1   : > { %21348 = vrsqrt.f32 %v8033_v36 }
 0xee7   : > { %v7977_v13 = vpop.xlane.xlu1 %7976 }
 0xee8   : > { %v8019_v27 = vmul.f32 0.03125, %v7977_v13 }
 0xeea   : > { %v21347_v19 = vpop.eup %21346  ;;  %v8035_v53 = vadd.f32 1e-05, %v8019_v27 }
 0xeeb   : > { %v21349_v17 = vpop.eup %21348  ;;  %v8066_v5 = vmul.f32 %v21347_v19, %v23750_v29  ;;  %v7980_v14 = vpop.xlane.xlu0 %7979 }
 0xeec   : > { %21350 = vrsqrt.f32 %v8035_v53  ;;  %v7983_v23 = vpop.xlane.xlu1 %7982  ;;  %v8020_v47 = vmul.f32 0.03125, %v7980_v14  ;;  %v8065_v24 = vmul.f32 %v21349_v17, %v23753_v32 }
 0xeed   : > { %v8021_v33 = vmul.f32 0.03125, %v7983_v23  ;;  %v8088_v56 = vmul.f32 %v23878_v34, %v8066_v5 }
 0xeee   : > { %v8036_v59 = vadd.f32 1e-05, %v8020_v47  ;;  %v8087_v50 = vmul.f32 %v23878_v34, %v8065_v24 }
 0xeef   : > { %v8037_v21 = vadd.f32 1e-05, %v8021_v33  ;;  %v7986_v31 = vpop.xlane.xlu0 %7985  ;;  %v23893_v32 = vadd.f32 %v23885_v49, %v8088_v56 }
 0xef0   : > { %21352 = vrsqrt.f32 %v8036_v59  ;;  %v8022_v29 = vmul.f32 0.03125, %v7986_v31  ;;  %v23890_v8 = vadd.f32 %v23885_v49, %v8087_v50 }
 0xef1   : > { %21354 = vrsqrt.f32 %v8037_v21 }
 0xef2   : > { %v8038_v58 = vadd.f32 1e-05, %v8022_v29  ;;  %19016 = vmatprep.mubr.msk.f32.mxu0 %vm798_vm1, %v23890_v8 }
 0xef3   : > { %19017 = vmatmul.mubr.msk.f32.vlgmr.msra.gmra.mrb[82].mxu0 %vm798_vm1, %v23893_v32 }
 0xef4   : > { %21356 = vrsqrt.f32 %v8038_v58 }
 0xef6   : > { %v21351_v3 = vpop.eup %21350 }
 0xef7   : > { %v8067_v25 = vmul.f32 %v21351_v3, %v23762_v57 }
 0xef9   : > { %v8089_v60 = vmul.f32 %v23878_v34, %v8067_v25 }
 0xefa   : > { %v21353_v10 = vpop.eup %21352 }
 0xefb   : > { %v21355_v16 = vpop.eup %21354  ;;  %v23902_v41 = vadd.f32 %v23885_v49, %v8089_v60  ;;  %v8068_v9 = vmul.f32 %v21353_v10, %v23767_v26 }
 0xefc   : > { %v8069_v2 = vmul.f32 %v21355_v16, %v23771_v15 }
 0xefd   : > { %19019 = vmatprep.mubr.msk.f32.mxu0 %vm798_vm1, %v23902_v41  ;;  %v8090_v61 = vmul.f32 %v23878_v34, %v8068_v9 }
 0xefe   : > { %v21357_v39 = vpop.eup %21356  ;;  %v8091_v18 = vmul.f32 %v23878_v34, %v8069_v2 }
 0xeff   : > { %v23911_v57 = vadd.f32 %v23885_v49, %v8090_v61  ;;  %v8070_v0 = vmul.f32 %v21357_v39, %v23778_v45 }
 0xf00   : > { %v7992_v51 = vpop.xlane.xlu0 %7991  ;;  %v23915_v6 = vadd.f32 %v23885_v49, %v8091_v18 }
 0xf01   : > { %v8024_v26 = vmul.f32 0.03125, %v7992_v51  ;;  %v7989_v48 = vpop.xlane.xlu1 %7988  ;;  %19020 = vmatmul.mubr.msk.f32.gmra.mrb[84].mxu0 %vm798_vm1, %v23911_v57  ;;  %v8092_v15 = vmul.f32 %v23878_v34, %v8070_v0 }
 0xf02   : > { %v8023_v63 = vmul.f32 0.03125, %v7989_v48  ;;  %19022 = vmatprep.mubr.msk.f32.mxu0 %vm798_vm1, %v23915_v6 }
 0xf03   : > { %v8040_v42 = vadd.f32 1e-05, %v8024_v26  ;;  %v23923_v43 = vadd.f32 %v23885_v49, %v8092_v15 }
 0xf04   : > { %v8039_v45 = vadd.f32 1e-05, %v8023_v63  ;;  %v7998_v20 = vpop.xlane.xlu0 %7997 }
 0xf05   : > { %21358 = vrsqrt.f32 %v8040_v42  ;;  %v8026_v11 = vmul.f32 0.03125, %v7998_v20  ;;  %v7995_v35 = vpop.xlane.xlu1 %7994  ;;  %19023 = vmatmul.mubr.msk.f32.gmra.mrb[86].mxu0 %vm798_vm1, %v23923_v43 }
 0xf06   : > { %21360 = vrsqrt.f32 %v8039_v45  ;;  %v8025_v4 = vmul.f32 0.03125, %v7995_v35 }
 0xf07   : > { %v8042_v22 = vadd.f32 1e-05, %v8026_v11 }
 0xf08   : > { %v8041_v52 = vadd.f32 1e-05, %v8025_v4  ;;  %v8004_v12 = vpop.xlane.xlu0 %8003 }
 0xf09   : > { %21362 = vrsqrt.f32 %v8042_v22  ;;  %v8028_v30 = vmul.f32 0.03125, %v8004_v12  ;;  %v8001_v36 = vpop.xlane.xlu1 %8000 }
 0xf0a   : > { %21364 = vrsqrt.f32 %v8041_v52  ;;  %v8027_v13 = vmul.f32 0.03125, %v8001_v36 }
 0xf0b   : > { %v8044_v27 = vadd.f32 1e-05, %v8028_v30 }
 0xf0c   : > { %v8043_v19 = vadd.f32 1e-05, %v8027_v13  ;;  %v8351_v13 = vld [vmem:[%s26753_s11 + $0x30] sm:$0xff] }
 0xf0d   : > { %21366 = vrsqrt.f32 %v8044_v27  ;;  %v8352_v27 = vld [vmem:[%s26753_s11 + $0x38] sm:$0xff] }
 0xf0e   : > { %21368 = vrsqrt.f32 %v8043_v19 }
 0xf0f   : > { %v21359_v53 = vpop.eup %21358 }
 0xf10   : > { %v21361_v17 = vpop.eup %21360  ;;  %v8010_v5 = vpop.xlane.xlu0 %8009  ;;  %v8072_v14 = vmul.f32 %v21359_v53, %v23792_v44  ;;  %v20056_v53 = vpack.c.bf16 %v8352_v27, %v8351_v13 }
 0xf11   : > { %v8030_v23 = vmul.f32 0.03125, %v8010_v5  ;;  %v8007_v47 = vpop.xlane.xlu1 %8006  ;;  %v8071_v24 = vmul.f32 %v21361_v17, %v23801_v40 }
 0xf12   : > { %v8029_v33 = vmul.f32 0.03125, %v8007_v47  ;;  %v8094_v56 = vmul.f32 %v23878_v34, %v8072_v14  ;;  %20057 = vmatprep.subr.bf16.mxu1 %v20056_v53 }
 0xf13   : > { %v21363_v59 = vpop.eup %21362  ;;  %v8046_v50 = vadd.f32 1e-05, %v8030_v23  ;;  %v8093_v21 = vmul.f32 %v23878_v34, %v8071_v24  ;;  %20059 = vmatpush3.bf16.msra.mxu1 %v20056_v53 }
 0xf14   : > { %v21365_v31 = vpop.eup %21364  ;;  %v8045_v29 = vadd.f32 1e-05, %v8029_v33  ;;  %v8074_v58 = vmul.f32 %v21363_v59, %v23808_v7  ;;  %v23937_v40 = vadd.f32 %v23885_v49, %v8094_v56 }
 0xf15   : > { %21370 = vrsqrt.f32 %v8046_v50  ;;  %v23933_v3 = vadd.f32 %v23885_v49, %v8093_v21  ;;  %v8073_v44 = vmul.f32 %v21365_v31, %v23812_v37 }
 0xf16   : > { %21372 = vrsqrt.f32 %v8045_v29  ;;  %v8096_v25 = vmul.f32 %v23878_v34, %v8074_v58 }
 0xf17   : > { %v21367_v60 = vpop.eup %21366  ;;  %19025 = vmatprep.mubr.msk.f32.mxu0 %vm798_vm1, %v23933_v3  ;;  %v8095_v10 = vmul.f32 %v23878_v34, %v8073_v44 }
 0xf18   : > { %v21369_v16 = vpop.eup %21368  ;;  %19026 = vmatmul.mubr.msk.f32.gmra.mrb[88].mxu0 %vm798_vm1, %v23937_v40  ;;  %v8076_v7 = vmul.f32 %v21367_v60, %v23820_v54  ;;  %v23951_v2 = vadd.f32 %v23885_v49, %v8096_v25 }
 0xf19   : > { %v23947_v37 = vadd.f32 %v23885_v49, %v8095_v10  ;;  %v8075_v9 = vmul.f32 %v21369_v16, %v23824_v28 }
 0xf1a   : > { %v8098_v61 = vmul.f32 %v23878_v34, %v8076_v7 }
 0xf1b   : > { %19028 = vmatprep.mubr.msk.f32.mxu0 %vm798_vm1, %v23947_v37  ;;  %v8097_v39 = vmul.f32 %v23878_v34, %v8075_v9 }
 0xf1c   : > { %19029 = vmatmul.mubr.msk.f32.gmra.mrb[90].mxu0 %vm798_vm1, %v23951_v2  ;;  %v23963_v18 = vadd.f32 %v23885_v49, %v8098_v61 }
 0xf1d   : > { %v23960_v54 = vadd.f32 %v23885_v49, %v8097_v39 }
 0xf1f   : > { %v21371_v28 = vpop.eup %21370  ;;  %19031 = vmatprep.mubr.msk.f32.mxu0 %vm798_vm1, %v23960_v54 }
 0xf20   : > { %v21373_v0 = vpop.eup %21372  ;;  %19032 = vmatmul.mubr.msk.f32.gmra.mrb[92].mxu0 %vm798_vm1, %v23963_v18  ;;  %v8078_v51 = vmul.f32 %v21371_v28, %v23834_v62 }
 0xf21   : > { %v8077_v26 = vmul.f32 %v21373_v0, %v23837_v46 }
 0xf22   : > { %v8100_v48 = vmul.f32 %v23878_v34, %v8078_v51 }
 0xf23   : > { %v8099_v15 = vmul.f32 %v23878_v34, %v8077_v26 }
 0xf24   : > { %v23977_v42 = vadd.f32 %v23885_v49, %v8100_v48 }
 0xf25   : > { %v23974_v63 = vadd.f32 %v23885_v49, %v8099_v15 }
 0xf27   : > { %19034 = vmatprep.mubr.msk.f32.mxu0 %vm798_vm1, %v23974_v63 }
 0xf28   : > { %19035 = vmatmul.mubr.msk.f32.gmra.mrb[94].mxu0 %vm798_vm1, %v23977_v42 }
 0xf34   : > { %v8016_v45 = vpop.xlane.xlu0 %8015 }
 0xf35   : > { %v8032_v62 = vmul.f32 0.03125, %v8016_v45  ;;  %v8013_v20 = vpop.xlane.xlu1 %8012 }
 0xf36   : > { %v8031_v46 = vmul.f32 0.03125, %v8013_v20 }
 0xf37   : > { %v8048_v11 = vadd.f32 1e-05, %v8032_v62 }
 0xf38   : > { %v8047_v35 = vadd.f32 1e-05, %v8031_v46 }
 0xf39   : > { %21374 = vrsqrt.f32 %v8048_v11 }
 0xf3a   : > { %21376 = vrsqrt.f32 %v8047_v35 }
 0xf43   : > { %v21375_v4 = vpop.eup %21374 }
 0xf44   : > { %v21377_v22 = vpop.eup %21376  ;;  %v8080_v52 = vmul.f32 %v21375_v4, %v23846_v1 }
 0xf45   : > { %v8079_v12 = vmul.f32 %v21377_v22, %v23849_v38  ;;  %v17401_v38 = vld [vmem:[%s26752_s10] ss:$0 sm:$0xff] }
 0xf46   : > { %v8102_v30 = vmul.f32 %v23878_v34, %v8080_v52 }
 0xf47   : > { %v8101_v36 = vmul.f32 %v23878_v34, %v8079_v12 }
 0xf48   : > { %v23997_v1 = vadd.f32 %v23885_v49, %v8102_v30 }
 0xf49   : > { %v23994_v19 = vadd.f32 %v23885_v49, %v8101_v36 }
 0xf4b   : > { %19037 = vmatprep.mubr.msk.f32.mxu0 %vm798_vm1, %v23994_v19 }
 0xf4c   : > { %19038 = vmatmul.mubr.msk.f32.gmra.mrb[96].mxu0 %vm798_vm1, %v23997_v1 }
 0xfc6   : > { %v19018_v34 = vpop.f32.mrb[82].mxu0 }
 0xfc7   : > { %v8256_v17 = vadd.f32 %v19018_v34, %v17401_v38  ;;  %v8250_v5 = vpop.f32.mrb[83].mxu0 }
 0xfc8   : > { %v8251_v14 = vadd.f32 %v17401_v38, %v8250_v5  ;;  %v24025_v5 = vld [vmem:[%s26754_s12] ss:$0 sm:$0xff] }
 0xfc9   : > { %v8330_v49 = vmax.f32 %v8256_v17, 0.0 }
 0xfca   : > { %v8329_v23 = vmax.f32 %v8251_v14, 0.0 }
 0xfcc   : > { %19056 = vmatprep.mubr.msk.f32.mxu1 %vm8360_vm5, %v8329_v23 }
 0xfcd   : > { %19057 = vmatmul.mubr.msk.f32.vlgmr.msra.gmra.mrb[94].mxu1 %vm8360_vm5, %v8330_v49 }
 0xfd4   : > { %v19021_v47 = vpop.f32.mrb[84].mxu0 }
 0xfd5   : > { %v8266_v24 = vadd.f32 %v19021_v47, %v17401_v38  ;;  %v8260_v33 = vpop.f32.mrb[85].mxu0 }
 0xfd6   : > { %v8261_v56 = vadd.f32 %v17401_v38, %v8260_v33 }
 0xfd7   : > { %v8332_v21 = vmax.f32 %v8266_v24, 0.0 }
 0xfd8   : > { %v8331_v59 = vmax.f32 %v8261_v56, 0.0  ;;  %v19024_v50 = vpop.f32.mrb[86].mxu0 }
 0xfd9   : > { %v8276_v31 = vadd.f32 %v19024_v50, %v17401_v38  ;;  %v8270_v29 = vpop.f32.mrb[87].mxu0 }
 0xfda   : > { %v8271_v58 = vadd.f32 %v17401_v38, %v8270_v29  ;;  %19059 = vmatprep.mubr.msk.f32.mxu1 %vm8360_vm5, %v8331_v59 }
 0xfdb   : > { %19060 = vmatmul.mubr.msk.f32.gmra.mrb[96].mxu1 %vm8360_vm5, %v8332_v21  ;;  %v8334_v25 = vmax.f32 %v8276_v31, 0.0 }
 0xfdc   : > { %v8333_v44 = vmax.f32 %v8271_v58, 0.0 }
 0xfde   : > { %19062 = vmatprep.mubr.msk.f32.mxu1 %vm8360_vm5, %v8333_v44 }
 0xfdf   : > { %19063 = vmatmul.mubr.msk.f32.gmra.mrb[98].mxu1 %vm8360_vm5, %v8334_v25 }
 0xfeb   : > { %v19027_v60 = vpop.f32.mrb[88].mxu0 }
 0xfec   : > { %v8286_v10 = vadd.f32 %v19027_v60, %v17401_v38  ;;  %v8280_v16 = vpop.f32.mrb[89].mxu0 }
 0xfed   : > { %v8281_v7 = vadd.f32 %v17401_v38, %v8280_v16 }
 0xfee   : > { %v8336_v39 = vmax.f32 %v8286_v10, 0.0 }
 0xfef   : > { %v8335_v9 = vmax.f32 %v8281_v7, 0.0  ;;  %v19030_v61 = vpop.f32.mrb[90].mxu0 }
 0xff0   : > { %v8296_v28 = vadd.f32 %v19030_v61, %v17401_v38  ;;  %v8290_v0 = vpop.f32.mrb[91].mxu0 }
 0xff1   : > { %v8291_v51 = vadd.f32 %v17401_v38, %v8290_v0  ;;  %19065 = vmatprep.mubr.msk.f32.mxu1 %vm8360_vm5, %v8335_v9 }
 0xff2   : > { %19066 = vmatmul.mubr.msk.f32.gmra.mrb[100].mxu1 %vm8360_vm5, %v8336_v39  ;;  %v8338_v15 = vmax.f32 %v8296_v28, 0.0 }
 0xff3   : > { %v8337_v26 = vmax.f32 %v8291_v51, 0.0  ;;  %v19033_v48 = vpop.f32.mrb[92].mxu0 }
 0xff4   : > { %v8306_v45 = vadd.f32 %v19033_v48, %v17401_v38  ;;  %v8300_v62 = vpop.f32.mrb[93].mxu0 }
 0xff5   : > { %v8301_v20 = vadd.f32 %v17401_v38, %v8300_v62  ;;  %19068 = vmatprep.mubr.msk.f32.mxu1 %vm8360_vm5, %v8337_v26 }
 0xff6   : > { %19069 = vmatmul.mubr.msk.f32.gmra.mrb[102].mxu1 %vm8360_vm5, %v8338_v15  ;;  %v8340_v11 = vmax.f32 %v8306_v45, 0.0 }
 0xff7   : > { %v8339_v46 = vmax.f32 %v8301_v20, 0.0 }
 0xff9   : > { %19071 = vmatprep.mubr.msk.f32.mxu1 %vm8360_vm5, %v8339_v46 }
 0xffa   : > { %19072 = vmatmul.mubr.msk.f32.gmra.mrb[104].mxu1 %vm8360_vm5, %v8340_v11 }
 0xffb   : > { %v19036_v35 = vpop.f32.mrb[94].mxu0 }
 0xffc   : > { %v8316_v4 = vadd.f32 %v19036_v35, %v17401_v38  ;;  %v8310_v22 = vpop.f32.mrb[95].mxu0 }
 0xffd   : > { %v8311_v52 = vadd.f32 %v17401_v38, %v8310_v22 }
 0xffe   : > { %v8342_v30 = vmax.f32 %v8316_v4, 0.0 }
 0xfff   : > { %v8341_v12 = vmax.f32 %v8311_v52, 0.0 }
0x1001   : > { %19074 = vmatprep.mubr.msk.f32.mxu1 %vm8360_vm5, %v8341_v12 }
0x1002   : > { %19075 = vmatmul.mubr.msk.f32.gmra.mrb[106].mxu1 %vm8360_vm5, %v8342_v30 }
0x101f   : > { %v19039_v36 = vpop.f32.mrb[96].mxu0 }
0x1020   : > { %v8326_v13 = vadd.f32 %v19039_v36, %v17401_v38  ;;  %v8320_v27 = vpop.f32.mrb[97].mxu0 }
0x1021   : > { %v8321_v53 = vadd.f32 %v17401_v38, %v8320_v27 }
0x1022   : > { %v8344_v17 = vmax.f32 %v8326_v13, 0.0 }
0x1023   : > { %v8343_v34 = vmax.f32 %v8321_v53, 0.0 }
0x1025   : > { %19077 = vmatprep.mubr.msk.f32.mxu1 %vm8360_vm5, %v8343_v34 }
0x1026   : > { %19078 = vmatmul.mubr.msk.f32.gmra.mrb[108].mxu1 %vm8360_vm5, %v8344_v17 }
0x10a0   : > { %v19058_v14 = vpop.f32.mrb[94].mxu1 }
0x10a1   : > { %v8481_v23 = vadd.f32 %v19058_v14, %v24025_v5  ;;  %v8475_v49 = vpop.f32.mrb[95].mxu1 }
0x10a2   : > { %v8476_v47 = vadd.f32 %v24025_v5, %v8475_v49 }
0x10a3   : > { %v24030_v24 = vadd.f32 %v8481_v23, %v23893_v32 }
0x10a4   : > { %v24033_v38 = vadd.f32 %v8476_v47, %v23890_v8 }
0x10a5   : > { %v8575_v33 = vsel %vm798_vm1, %v24030_v24, 0.0 }
0x10a6   : > { %8576 = vadd.xlane.f32.xlu0 %v8575_v33  ;;  %v8572_v56 = vsel %vm798_vm1, %v24033_v38, 0.0 }
0x10a7   : > { %8573 = vadd.xlane.f32.xlu1 %v8572_v56 }
0x10ae   : > { %v19061_v59 = vpop.f32.mrb[96].mxu1 }
0x10af   : > { %v8491_v50 = vadd.f32 %v19061_v59, %v24025_v5  ;;  %v8485_v21 = vpop.f32.mrb[97].mxu1 }
0x10b0   : > { %v8486_v31 = vadd.f32 %v24025_v5, %v8485_v21 }
0x10b1   : > { %v24042_v32 = vadd.f32 %v8491_v50, %v23911_v57 }
0x10b2   : > { %v24045_v8 = vadd.f32 %v8486_v31, %v23902_v41  ;;  %v19064_v29 = vpop.f32.mrb[98].mxu1 }
0x10b3   : > { %v8501_v58 = vadd.f32 %v19064_v29, %v24025_v5  ;;  %v8495_v44 = vpop.f32.mrb[99].mxu1  ;;  %v8581_v25 = vsel %vm798_vm1, %v24042_v32, 0.0 }
0x10b4   : > { %v8496_v60 = vadd.f32 %v24025_v5, %v8495_v44  ;;  %8582 = vadd.xlane.f32.xlu0 %v8581_v25  ;;  %v8578_v10 = vsel %vm798_vm1, %v24045_v8, 0.0 }
0x10b5   : > { %v24054_v16 = vadd.f32 %v8501_v58, %v23923_v43  ;;  %8579 = vadd.xlane.f32.xlu1 %v8578_v10 }
0x10b6   : > { %v24057_v41 = vadd.f32 %v8496_v60, %v23915_v6 }
0x10b7   : > { %v8587_v57 = vsel %vm798_vm1, %v24054_v16, 0.0 }
0x10b8   : > { %8588 = vadd.xlane.f32.xlu0 %v8587_v57  ;;  %v8584_v7 = vsel %vm798_vm1, %v24057_v41, 0.0 }
0x10b9   : > { %8585 = vadd.xlane.f32.xlu1 %v8584_v7 }
0x10c5   : > { %v19067_v9 = vpop.f32.mrb[100].mxu1 }
0x10c6   : > { %v8511_v61 = vadd.f32 %v19067_v9, %v24025_v5  ;;  %v8505_v39 = vpop.f32.mrb[101].mxu1 }
0x10c7   : > { %v8506_v28 = vadd.f32 %v24025_v5, %v8505_v39 }
0x10c8   : > { %v24066_v43 = vadd.f32 %v8511_v61, %v23937_v40 }
0x10c9   : > { %v24069_v6 = vadd.f32 %v8506_v28, %v23933_v3  ;;  %v19070_v0 = vpop.f32.mrb[102].mxu1 }
0x10ca   : > { %v8521_v51 = vadd.f32 %v19070_v0, %v24025_v5  ;;  %v8515_v26 = vpop.f32.mrb[103].mxu1  ;;  %v8593_v48 = vsel %vm798_vm1, %v24066_v43, 0.0 }
0x10cb   : > { %v8516_v15 = vadd.f32 %v24025_v5, %v8515_v26  ;;  %8594 = vadd.xlane.f32.xlu0 %v8593_v48  ;;  %v8590_v45 = vsel %vm798_vm1, %v24069_v6, 0.0 }
0x10cc   : > { %v24078_v62 = vadd.f32 %v8521_v51, %v23951_v2  ;;  %8591 = vadd.xlane.f32.xlu1 %v8590_v45 }
0x10cd   : > { %v24081_v3 = vadd.f32 %v8516_v15, %v23947_v37  ;;  %v19073_v40 = vpop.f32.mrb[104].mxu1  ;;  %v17438_v15 = vld [vmem:[%s26745_s3 + $0x28] sm:$0xff] }
0x10ce   : > { %v8531_v20 = vadd.f32 %v19073_v40, %v24025_v5  ;;  %v8525_v46 = vpop.f32.mrb[105].mxu1  ;;  %v8599_v11 = vsel %vm798_vm1, %v24078_v62, 0.0 }
0x10cf   : > { %v8526_v35 = vadd.f32 %v24025_v5, %v8525_v46  ;;  %8600 = vadd.xlane.f32.xlu0 %v8599_v11  ;;  %v8596_v4 = vsel %vm798_vm1, %v24081_v3, 0.0 }
0x10d0   : > { %v24090_v2 = vadd.f32 %v8531_v20, %v23963_v18  ;;  %8597 = vadd.xlane.f32.xlu1 %v8596_v4  ;;  %v17439_v4 = vld [vmem:[%s26745_s3 + $0x30] sm:$0xff] }
0x10d1   : > { %v24093_v37 = vadd.f32 %v8526_v35, %v23960_v54 }
0x10d2   : > { %v8605_v22 = vsel %vm798_vm1, %v24090_v2, 0.0 }
0x10d3   : > { %8606 = vadd.xlane.f32.xlu0 %v8605_v22  ;;  %v8602_v52 = vsel %vm798_vm1, %v24093_v37, 0.0  ;;  %v17440_v22 = vld [vmem:[%s26745_s3 + $0x38] sm:$0xff] }
0x10d4   : > { %8603 = vadd.xlane.f32.xlu1 %v8602_v52 }
0x10d5   : > { %v19076_v12 = vpop.f32.mrb[106].mxu1 }
0x10d6   : > { %v8541_v30 = vadd.f32 %v19076_v12, %v24025_v5  ;;  %v8535_v36 = vpop.f32.mrb[107].mxu1 }
0x10d7   : > { %v8536_v13 = vadd.f32 %v24025_v5, %v8535_v36 }
0x10d8   : > { %v24102_v18 = vadd.f32 %v8541_v30, %v23977_v42  ;;  %v20064_v30 = vpack.c.bf16 %v17440_v22, %v17439_v4  ;;  %v24234_v4 = vld [vmem:[%s26755_s13] ss:$0 sm:$0xff] }
0x10d9   : > { %v24105_v54 = vadd.f32 %v8536_v13, %v23974_v63 }
0x10da   : > { %v8611_v27 = vsel %vm798_vm1, %v24102_v18, 0.0 }
0x10db   : > { %8612 = vadd.xlane.f32.xlu0 %v8611_v27  ;;  %v8608_v53 = vsel %vm798_vm1, %v24105_v54, 0.0 }
0x10dc   : > { %8609 = vadd.xlane.f32.xlu1 %v8608_v53 }
0x10f9   : > { %v19079_v34 = vpop.f32.mrb[108].mxu1 }
0x10fa   : > { %v8551_v17 = vadd.f32 %v19079_v34, %v24025_v5  ;;  %v8545_v14 = vpop.f32.mrb[109].mxu1 }
0x10fb   : > { %v8546_v23 = vadd.f32 %v24025_v5, %v8545_v14 }
0x10fc   : > { %v24114_v42 = vadd.f32 %v8551_v17, %v23997_v1 }
0x10fd   : > { %v24117_v63 = vadd.f32 %v8546_v23, %v23994_v19 }
0x10fe   : > { %v8617_v49 = vsel %vm798_vm1, %v24114_v42, 0.0 }
0x10ff   : > { %8618 = vadd.xlane.f32.xlu0 %v8617_v49  ;;  %v8614_v47 = vsel %vm798_vm1, %v24117_v63, 0.0 }
0x1100   : > { %8615 = vadd.xlane.f32.xlu1 %v8614_v47 }
0x1133   : > { %v8577_v33 = vpop.xlane.xlu0 %8576 }
0x1134   : > { %v8621_v56 = vmul.f32 0.03125, %v8577_v33  ;;  %v8574_v59 = vpop.xlane.xlu1 %8573 }
0x1135   : > { %v8620_v50 = vmul.f32 0.03125, %v8574_v59 }
0x1136   : > { %v24124_v5 = vsub.f32 %v24030_v24, %v8621_v56 }
0x1137   : > { %v24127_v1 = vsub.f32 %v24033_v38, %v8620_v50 }
0x1138   : > { %v8653_v19 = vmul.f32 %v24124_v5, %v24124_v5 }
0x1139   : > { %v8652_v21 = vmul.f32 %v24127_v1, %v24127_v1 }
0x113a   : > { %v8671_v31 = vsel %vm798_vm1, %v8653_v19, 0.0 }
0x113b   : > { %8672 = vadd.xlane.f32.xlu0 %v8671_v31  ;;  %v8668_v29 = vsel %vm798_vm1, %v8652_v21, 0.0 }
0x113c   : > { %8669 = vadd.xlane.f32.xlu1 %v8668_v29 }
0x1141   : > { %v8583_v58 = vpop.xlane.xlu0 %8582 }
0x1142   : > { %v8623_v44 = vmul.f32 0.03125, %v8583_v58  ;;  %v8580_v25 = vpop.xlane.xlu1 %8579 }
0x1143   : > { %v8622_v24 = vmul.f32 0.03125, %v8580_v25 }
0x1144   : > { %v24136_v60 = vsub.f32 %v24042_v32, %v8623_v44 }
0x1145   : > { %v24139_v38 = vsub.f32 %v24045_v8, %v8622_v24  ;;  %v8589_v10 = vpop.xlane.xlu0 %8588 }
0x1146   : > { %v8625_v57 = vmul.f32 0.03125, %v8589_v10  ;;  %v8586_v7 = vpop.xlane.xlu1 %8585  ;;  %v8655_v9 = vmul.f32 %v24136_v60, %v24136_v60 }
0x1147   : > { %v8624_v61 = vmul.f32 0.03125, %v8586_v7  ;;  %v8654_v39 = vmul.f32 %v24139_v38, %v24139_v38 }
0x1148   : > { %v24146_v28 = vsub.f32 %v24054_v16, %v8625_v57  ;;  %v8677_v0 = vsel %vm798_vm1, %v8655_v9, 0.0 }
0x1149   : > { %v24150_v32 = vsub.f32 %v24057_v41, %v8624_v61  ;;  %8678 = vadd.xlane.f32.xlu0 %v8677_v0  ;;  %v8674_v8 = vsel %vm798_vm1, %v8654_v39, 0.0  ;;  %v17437_v41 = vld [vmem:[%s26745_s3 + $0x20] sm:$0xff] }
0x114a   : > { %8675 = vadd.xlane.f32.xlu1 %v8674_v8  ;;  %v8657_v51 = vmul.f32 %v24146_v28, %v24146_v28  ;;  %v20060_v40 = vpack.c.bf16 %v17438_v15, %v17437_v41 }
0x114b   : > { %v8656_v26 = vmul.f32 %v24150_v32, %v24150_v32 }
0x114c   : > { %v8683_v48 = vsel %vm798_vm1, %v8657_v51, 0.0  ;;  %20061 = vmatprep.subr.bf16.mxu0 %v20060_v40 }
0x114d   : > { %8684 = vadd.xlane.f32.xlu0 %v8683_v48  ;;  %v8680_v16 = vsel %vm798_vm1, %v8656_v26, 0.0  ;;  %20063 = vmatpush3.bf16.msra.mxu0 %v20060_v40 }
0x114e   : > { %8681 = vadd.xlane.f32.xlu1 %v8680_v16  ;;  %20065 = vmatprep.subr.bf16.mxu0 %v20064_v30 }
0x1151   : > { %20067 = vmatpush3.bf16.msra.mxu0 %v20064_v30 }
0x1158   : > { %v8595_v45 = vpop.xlane.xlu0 %8594 }
0x1159   : > { %v8627_v20 = vmul.f32 0.03125, %v8595_v45  ;;  %v8592_v46 = vpop.xlane.xlu1 %8591 }
0x115a   : > { %v8626_v11 = vmul.f32 0.03125, %v8592_v46 }
0x115b   : > { %v24166_v35 = vsub.f32 %v24066_v43, %v8627_v20 }
0x115c   : > { %v24175_v52 = vsub.f32 %v24069_v6, %v8626_v11  ;;  %v8601_v12 = vpop.xlane.xlu0 %8600 }
0x115d   : > { %v8629_v36 = vmul.f32 0.03125, %v8601_v12  ;;  %v8598_v13 = vpop.xlane.xlu1 %8597  ;;  %v8659_v43 = vmul.f32 %v24166_v35, %v24166_v35 }
0x115e   : > { %v8628_v27 = vmul.f32 0.03125, %v8598_v13  ;;  %v8658_v53 = vmul.f32 %v24175_v52, %v24175_v52 }
0x115f   : > { %v24182_v34 = vsub.f32 %v24078_v62, %v8629_v36  ;;  %v8689_v17 = vsel %vm798_vm1, %v8659_v43, 0.0 }
0x1160   : > { %v24186_v6 = vsub.f32 %v24081_v3, %v8628_v27  ;;  %8690 = vadd.xlane.f32.xlu0 %v8689_v17  ;;  %v8607_v14 = vpop.xlane.xlu0 %8606  ;;  %v8686_v23 = vsel %vm798_vm1, %v8658_v53, 0.0 }
0x1161   : > { %v8631_v49 = vmul.f32 0.03125, %v8607_v14  ;;  %v8604_v47 = vpop.xlane.xlu1 %8603  ;;  %8687 = vadd.xlane.f32.xlu1 %v8686_v23  ;;  %v8661_v33 = vmul.f32 %v24182_v34, %v24182_v34  ;;  %v24242_v23 = vld [vmem:[%s26756_s14] ss:$0 sm:$0xff] }
0x1162   : > { %v8630_v56 = vmul.f32 0.03125, %v8604_v47  ;;  %v8660_v62 = vmul.f32 %v24186_v6, %v24186_v6 }
0x1163   : > { %v24194_v59 = vsub.f32 %v24090_v2, %v8631_v49  ;;  %v8695_v3 = vsel %vm798_vm1, %v8661_v33, 0.0 }
0x1164   : > { %v24198_v50 = vsub.f32 %v24093_v37, %v8630_v56  ;;  %8696 = vadd.xlane.f32.xlu0 %v8695_v3  ;;  %v8692_v19 = vsel %vm798_vm1, %v8660_v62, 0.0 }
0x1165   : > { %8693 = vadd.xlane.f32.xlu1 %v8692_v19  ;;  %v8663_v21 = vmul.f32 %v24194_v59, %v24194_v59 }
0x1166   : > { %v8662_v31 = vmul.f32 %v24198_v50, %v24198_v50 }
0x1167   : > { %v8701_v29 = vsel %vm798_vm1, %v8663_v21, 0.0 }
0x1168   : > { %8702 = vadd.xlane.f32.xlu0 %v8701_v29  ;;  %v8613_v2 = vpop.xlane.xlu0 %8612  ;;  %v8698_v58 = vsel %vm798_vm1, %v8662_v31, 0.0 }
0x1169   : > { %v8633_v44 = vmul.f32 0.03125, %v8613_v2  ;;  %v8610_v25 = vpop.xlane.xlu1 %8609  ;;  %8699 = vadd.xlane.f32.xlu1 %v8698_v58 }
0x116a   : > { %v8632_v37 = vmul.f32 0.03125, %v8610_v25 }
0x116b   : > { %v24208_v24 = vsub.f32 %v24102_v18, %v8633_v44 }
0x116c   : > { %v24211_v10 = vsub.f32 %v24105_v54, %v8632_v37 }
0x116d   : > { %v8665_v57 = vmul.f32 %v24208_v24, %v24208_v24 }
0x116e   : > { %v8664_v7 = vmul.f32 %v24211_v10, %v24211_v10 }
0x116f   : > { %v8707_v9 = vsel %vm798_vm1, %v8665_v57, 0.0 }
0x1170   : > { %8708 = vadd.xlane.f32.xlu0 %v8707_v9  ;;  %v8704_v61 = vsel %vm798_vm1, %v8664_v7, 0.0 }
0x1171   : > { %8705 = vadd.xlane.f32.xlu1 %v8704_v61 }
0x118c   : > { %v8619_v39 = vpop.xlane.xlu0 %8618 }
0x118d   : > { %v8635_v0 = vmul.f32 0.03125, %v8619_v39  ;;  %v8616_v8 = vpop.xlane.xlu1 %8615 }
0x118e   : > { %v8634_v18 = vmul.f32 0.03125, %v8616_v8 }
0x118f   : > { %v24220_v51 = vsub.f32 %v24114_v42, %v8635_v0 }
0x1190   : > { %v24223_v54 = vsub.f32 %v24117_v63, %v8634_v18 }
0x1191   : > { %v8667_v26 = vmul.f32 %v24220_v51, %v24220_v51 }
0x1192   : > { %v8666_v48 = vmul.f32 %v24223_v54, %v24223_v54 }
0x1193   : > { %v8713_v16 = vsel %vm798_vm1, %v8667_v26, 0.0 }
0x1194   : > { %8714 = vadd.xlane.f32.xlu0 %v8713_v16  ;;  %v8710_v41 = vsel %vm798_vm1, %v8666_v48, 0.0 }
0x1195   : > { %8711 = vadd.xlane.f32.xlu1 %v8710_v41 }
0x11c8   : > { %v8673_v15 = vpop.xlane.xlu0 %8672 }
0x11c9   : > { %v8717_v45 = vmul.f32 0.03125, %v8673_v15  ;;  %v8670_v40 = vpop.xlane.xlu1 %8669 }
0x11ca   : > { %v8716_v42 = vmul.f32 0.03125, %v8670_v40 }
0x11cb   : > { %v8733_v20 = vadd.f32 1e-05, %v8717_v45 }
0x11cc   : > { %v8732_v46 = vadd.f32 1e-05, %v8716_v42 }
0x11cd   : > { %21378 = vrsqrt.f32 %v8733_v20 }
0x11ce   : > { %21380 = vrsqrt.f32 %v8732_v46 }
0x11d6   : > { %v8679_v63 = vpop.xlane.xlu0 %8678 }
0x11d7   : > { %v21379_v11 = vpop.eup %21378  ;;  %v8719_v22 = vmul.f32 0.03125, %v8679_v63  ;;  %v8676_v12 = vpop.xlane.xlu1 %8675 }
0x11d8   : > { %v21381_v30 = vpop.eup %21380  ;;  %v8765_v36 = vmul.f32 %v21379_v11, %v24124_v5  ;;  %v8718_v13 = vmul.f32 0.03125, %v8676_v12 }
0x11d9   : > { %v8735_v43 = vadd.f32 1e-05, %v8719_v22  ;;  %v8764_v27 = vmul.f32 %v21381_v30, %v24127_v1 }
0x11da   : > { %v8787_v53 = vmul.f32 %v24234_v4, %v8765_v36  ;;  %v8734_v17 = vadd.f32 1e-05, %v8718_v13  ;;  %v8685_v14 = vpop.xlane.xlu0 %8684 }
0x11db   : > { %21382 = vrsqrt.f32 %v8735_v43  ;;  %v8721_v49 = vmul.f32 0.03125, %v8685_v14  ;;  %v8682_v47 = vpop.xlane.xlu1 %8681  ;;  %v8786_v33 = vmul.f32 %v24234_v4, %v8764_v27 }
0x11dc   : > { %21384 = vrsqrt.f32 %v8734_v17  ;;  %v8720_v5 = vmul.f32 0.03125, %v8682_v47  ;;  %v24249_v3 = vadd.f32 %v24242_v23, %v8787_v53 }
0x11dd   : > { %v8737_v56 = vadd.f32 1e-05, %v8721_v49  ;;  %v24246_v62 = vadd.f32 %v24242_v23, %v8786_v33 }
0x11de   : > { %v8736_v1 = vadd.f32 1e-05, %v8720_v5  ;;  %26918 = vst [vmem:[#allocation18_spill] sm:$0xff] %v24249_v3 }
0x11df   : > { %26917 = vst [vmem:[#allocation19_spill] sm:$0xff] %v24246_v62  ;;  %21386 = vrsqrt.f32 %v8737_v56  ;;  %19088 = vmatprep.mubr.msk.f32.mxu0 %vm798_vm1, %v24246_v62 }
0x11e0   : > { %21388 = vrsqrt.f32 %v8736_v1  ;;  %19089 = vmatmul.mubr.msk.f32.vlgmr.msra.gmra.mrb[98].mxu0 %vm798_vm1, %v24249_v3 }
0x11e5   : > { %v21383_v19 = vpop.eup %21382 }
0x11e6   : > { %v21385_v21 = vpop.eup %21384  ;;  %v8767_v31 = vmul.f32 %v21383_v19, %v24136_v60 }
0x11e7   : > { %v8766_v29 = vmul.f32 %v21385_v21, %v24139_v38 }
0x11e8   : > { %v8789_v2 = vmul.f32 %v24234_v4, %v8767_v31 }
0x11e9   : > { %v21387_v58 = vpop.eup %21386  ;;  %v8788_v44 = vmul.f32 %v24234_v4, %v8766_v29 }
0x11ea   : > { %v21389_v25 = vpop.eup %21388  ;;  %v8769_v37 = vmul.f32 %v21387_v58, %v24146_v28  ;;  %v24265_v9 = vadd.f32 %v24242_v23, %v8789_v2 }
0x11eb   : > { %v24261_v57 = vadd.f32 %v24242_v23, %v8788_v44  ;;  %v8768_v7 = vmul.f32 %v21389_v25, %v24150_v32 }
0x11ec   : > { %26920 = vst [vmem:[#allocation36_spill] sm:$0xff] %v24265_v9  ;;  %v8791_v60 = vmul.f32 %v24234_v4, %v8769_v37 }
0x11ed   : > { %26919 = vst [vmem:[#allocation42_spill] sm:$0xff] %v24261_v57  ;;  %19091 = vmatprep.mubr.msk.f32.mxu0 %vm798_vm1, %v24261_v57  ;;  %v8691_v38 = vpop.xlane.xlu0 %8690  ;;  %v8790_v61 = vmul.f32 %v24234_v4, %v8768_v7 }
0x11ee   : > { %v8723_v39 = vmul.f32 0.03125, %v8691_v38  ;;  %v8688_v0 = vpop.xlane.xlu1 %8687  ;;  %19092 = vmatmul.mubr.msk.f32.gmra.mrb[100].mxu0 %vm798_vm1, %v24265_v9  ;;  %v24277_v18 = vadd.f32 %v24242_v23, %v8791_v60 }
0x11ef   : > { %v8722_v28 = vmul.f32 0.03125, %v8688_v0  ;;  %v24274_v8 = vadd.f32 %v24242_v23, %v8790_v61 }
0x11f0   : > { %v8739_v32 = vadd.f32 1e-05, %v8723_v39  ;;  %26922 = vst [vmem:[#allocation37_spill] sm:$0xff] %v24277_v18 }
0x11f1   : > { %26921 = vst [vmem:[#allocation44_spill] sm:$0xff] %v24274_v8  ;;  %v8738_v26 = vadd.f32 1e-05, %v8722_v28  ;;  %19094 = vmatprep.mubr.msk.f32.mxu0 %vm798_vm1, %v24274_v8  ;;  %v8697_v48 = vpop.xlane.xlu0 %8696 }
0x11f2   : > { %21390 = vrsqrt.f32 %v8739_v32  ;;  %v8725_v16 = vmul.f32 0.03125, %v8697_v48  ;;  %v8694_v41 = vpop.xlane.xlu1 %8693  ;;  %19095 = vmatmul.mubr.msk.f32.gmra.mrb[102].mxu0 %vm798_vm1, %v24277_v18 }
0x11f3   : > { %21392 = vrsqrt.f32 %v8738_v26  ;;  %v8724_v15 = vmul.f32 0.03125, %v8694_v41 }
0x11f4   : > { %v8741_v45 = vadd.f32 1e-05, %v8725_v16 }
0x11f5   : > { %v8740_v40 = vadd.f32 1e-05, %v8724_v15  ;;  %v8703_v42 = vpop.xlane.xlu0 %8702 }
0x11f6   : > { %21394 = vrsqrt.f32 %v8741_v45  ;;  %v8727_v20 = vmul.f32 0.03125, %v8703_v42  ;;  %v8700_v46 = vpop.xlane.xlu1 %8699 }
0x11f7   : > { %21396 = vrsqrt.f32 %v8740_v40  ;;  %v8726_v63 = vmul.f32 0.03125, %v8700_v46 }
0x11f8   : > { %v8743_v11 = vadd.f32 1e-05, %v8727_v20 }
0x11f9   : > { %v8742_v22 = vadd.f32 1e-05, %v8726_v63 }
0x11fa   : > { %21398 = vrsqrt.f32 %v8743_v11 }
0x11fb   : > { %21400 = vrsqrt.f32 %v8742_v22 }
0x11fc   : > { %v21391_v12 = vpop.eup %21390 }
0x11fd   : > { %v21393_v30 = vpop.eup %21392  ;;  %v8709_v36 = vpop.xlane.xlu0 %8708  ;;  %v8771_v13 = vmul.f32 %v21391_v12, %v24166_v35 }
0x11fe   : > { %v8729_v43 = vmul.f32 0.03125, %v8709_v36  ;;  %v8706_v27 = vpop.xlane.xlu1 %8705  ;;  %v8770_v53 = vmul.f32 %v21393_v30, %v24175_v52 }
0x11ff   : > { %v8728_v17 = vmul.f32 0.03125, %v8706_v27  ;;  %v8793_v14 = vmul.f32 %v24234_v4, %v8771_v13 }
0x1200   : > { %v21395_v49 = vpop.eup %21394  ;;  %v8745_v47 = vadd.f32 1e-05, %v8729_v43  ;;  %v8792_v33 = vmul.f32 %v24234_v4, %v8770_v53 }
0x1201   : > { %v21397_v5 = vpop.eup %21396  ;;  %v8744_v56 = vadd.f32 1e-05, %v8728_v17  ;;  %v8773_v1 = vmul.f32 %v21395_v49, %v24182_v34  ;;  %v24293_v52 = vadd.f32 %v24242_v23, %v8793_v14 }
0x1202   : > { %21402 = vrsqrt.f32 %v8745_v47  ;;  %v24289_v19 = vadd.f32 %v24242_v23, %v8792_v33  ;;  %v8772_v35 = vmul.f32 %v21397_v5, %v24186_v6 }
0x1203   : > { %21404 = vrsqrt.f32 %v8744_v56  ;;  %26924 = vst [vmem:[#allocation39_spill] sm:$0xff] %v24293_v52  ;;  %v8795_v21 = vmul.f32 %v24234_v4, %v8773_v1 }
0x1204   : > { %26923 = vst [vmem:[#allocation38_spill] sm:$0xff] %v24289_v19  ;;  %v21399_v31 = vpop.eup %21398  ;;  %19097 = vmatprep.mubr.msk.f32.mxu0 %vm798_vm1, %v24289_v19  ;;  %v8794_v29 = vmul.f32 %v24234_v4, %v8772_v35 }
0x1205   : > { %v21401_v2 = vpop.eup %21400  ;;  %19098 = vmatmul.mubr.msk.f32.gmra.mrb[104].mxu0 %vm798_vm1, %v24293_v52  ;;  %v8775_v34 = vmul.f32 %v21399_v31, %v24194_v59  ;;  %v24307_v44 = vadd.f32 %v24242_v23, %v8795_v21 }
0x1206   : > { %v24303_v6 = vadd.f32 %v24242_v23, %v8794_v29  ;;  %v8774_v58 = vmul.f32 %v21401_v2, %v24198_v50 }
0x1207   : > { %26926 = vst [vmem:[#allocation41_spill] sm:$0xff] %v24307_v44  ;;  %v8797_v25 = vmul.f32 %v24234_v4, %v8775_v34 }
0x1208   : > { %26925 = vst [vmem:[#allocation40_spill] sm:$0xff] %v24303_v6  ;;  %19100 = vmatprep.mubr.msk.f32.mxu0 %vm798_vm1, %v24303_v6  ;;  %v8796_v37 = vmul.f32 %v24234_v4, %v8774_v58 }
0x1209   : > { %19101 = vmatmul.mubr.msk.f32.gmra.mrb[106].mxu0 %vm798_vm1, %v24307_v44  ;;  %v24319_v7 = vadd.f32 %v24242_v23, %v8797_v25 }
0x120a   : > { %v24316_v59 = vadd.f32 %v24242_v23, %v8796_v37 }
0x120b   : > { %26928 = vst [vmem:[#allocation21_spill] sm:$0xff] %v24319_v7 }
0x120c   : > { %26927 = vst [vmem:[#allocation43_spill] sm:$0xff] %v24316_v59  ;;  %v21403_v50 = vpop.eup %21402  ;;  %19103 = vmatprep.mubr.msk.f32.mxu0 %vm798_vm1, %v24316_v59 }
0x120d   : > { %v21405_v60 = vpop.eup %21404  ;;  %19104 = vmatmul.mubr.msk.f32.gmra.mrb[108].mxu0 %vm798_vm1, %v24319_v7  ;;  %v8777_v38 = vmul.f32 %v21403_v50, %v24208_v24 }
0x120e   : > { %v8776_v61 = vmul.f32 %v21405_v60, %v24211_v10 }
0x120f   : > { %v8799_v39 = vmul.f32 %v24234_v4, %v8777_v38 }
0x1210   : > { %v8798_v0 = vmul.f32 %v24234_v4, %v8776_v61 }
0x1211   : > { %v24333_v32 = vadd.f32 %v24242_v23, %v8799_v39 }
0x1212   : > { %v24330_v28 = vadd.f32 %v24242_v23, %v8798_v0 }
0x1213   : > { %26930 = vst [vmem:[#allocation23_spill] sm:$0xff] %v24333_v32 }
0x1214   : > { %26929 = vst [vmem:[#allocation20_spill] sm:$0xff] %v24330_v28  ;;  %19106 = vmatprep.mubr.msk.f32.mxu0 %vm798_vm1, %v24330_v28 }
0x1215   : > { %19107 = vmatmul.mubr.msk.f32.gmra.mrb[110].mxu0 %vm798_vm1, %v24333_v32 }
0x1221   : > { %v8715_v26 = vpop.xlane.xlu0 %8714 }
0x1222   : > { %v8731_v24 = vmul.f32 0.03125, %v8715_v26  ;;  %v8712_v48 = vpop.xlane.xlu1 %8711 }
0x1223   : > { %v8730_v10 = vmul.f32 0.03125, %v8712_v48 }
0x1224   : > { %v8747_v16 = vadd.f32 1e-05, %v8731_v24 }
0x1225   : > { %v8746_v41 = vadd.f32 1e-05, %v8730_v10 }
0x1226   : > { %21406 = vrsqrt.f32 %v8747_v16 }
0x1227   : > { %21408 = vrsqrt.f32 %v8746_v41 }
0x1230   : > { %v21407_v15 = vpop.eup %21406 }
0x1231   : > { %v21409_v45 = vpop.eup %21408  ;;  %v8779_v40 = vmul.f32 %v21407_v15, %v24220_v51  ;;  %v17442_v51 = vld [vmem:[%s26746_s4 + $0x1] ss:$0 sm:$0xff] }
0x1232   : > { %v8778_v42 = vmul.f32 %v21409_v45, %v24223_v54 }
0x1233   : > { %v8801_v20 = vmul.f32 %v24234_v4, %v8779_v40 }
0x1234   : > { %v8800_v46 = vmul.f32 %v24234_v4, %v8778_v42 }
0x1235   : > { %v24347_v11 = vadd.f32 %v24242_v23, %v8801_v20 }
0x1236   : > { %v24344_v63 = vadd.f32 %v24242_v23, %v8800_v46 }
0x1237   : > { %26932 = vst [vmem:[#allocation25_spill] sm:$0xff] %v24347_v11 }
0x1238   : > { %26931 = vst [vmem:[#allocation22_spill] sm:$0xff] %v24344_v63  ;;  %19109 = vmatprep.mubr.msk.f32.mxu0 %vm798_vm1, %v24344_v63 }
0x1239   : > { %19110 = vmatmul.mubr.msk.f32.gmra.mrb[112].mxu0 %vm798_vm1, %v24347_v11 }
0x12b3   : > { %v19090_v54 = vpop.f32.mrb[98].mxu0 }
0x12b4   : > { %v24356_v22 = vadd.f32 %v19090_v54, %v17442_v51  ;;  %v8951_v4 = vpop.f32.mrb[99].mxu0 }
0x12b5   : > { %v8952_v12 = vadd.f32 %v17442_v51, %v8951_v4 }
0x12b7   : > { %v24359_v30 = vpack.i.bf16 %v24356_v22, %v8952_v12  ;;  %v24361_v23 = vmul.f32 0.35355338, %v8952_v12 }
0x12b9   : > { %20771 = vrot.lane.b32.xlu1 %v24359_v30, %s21738_s26  ;;  %19116 = vmatprep.mubr.msk.f32.mxu1 %vm1014_vm2, %v24361_v23 }
0x12c1   : > { %v19093_v36 = vpop.f32.mrb[100].mxu0 }
0x12c2   : > { %v24367_v13 = vadd.f32 %v19093_v36, %v17442_v51  ;;  %v8961_v43 = vpop.f32.mrb[101].mxu0 }
0x12c3   : > { %v8962_v27 = vadd.f32 %v17442_v51, %v8961_v43 }
0x12c5   : > { %v19096_v53 = vpop.f32.mrb[102].mxu0  ;;  %v24370_v17 = vpack.i.bf16 %v24367_v13, %v8962_v27  ;;  %v24372_v14 = vmul.f32 0.35355338, %v8962_v27 }
0x12c6   : > { %v24374_v49 = vadd.f32 %v19096_v53, %v17442_v51  ;;  %v8971_v47 = vpop.f32.mrb[103].mxu0 }
0x12c7   : > { %v8972_v33 = vadd.f32 %v17442_v51, %v8971_v47  ;;  %20776 = vrot.lane.b32.xlu0 %v24370_v17, %s21738_s26  ;;  %19123 = vmatprep.mubr.msk.f32.mxu0 %vm1014_vm2, %v24372_v14 }
0x12c9   : > { %v24381_v5 = vpack.i.bf16 %v24374_v49, %v8972_v33  ;;  %v24452_v54 = vmul.f32 0.35355338, %v8972_v33  ;;  %v24467_v33 = vmul.f32 0.35355338, %v24367_v13 }
0x12cb   : > { %20781 = vrot.lane.b32.xlu1 %v24381_v5, %s21738_s26 }
0x12d8   : > { %v19099_v56 = vpop.f32.mrb[104].mxu0 }
0x12d9   : > { %v24385_v1 = vadd.f32 %v19099_v56, %v17442_v51  ;;  %v8981_v35 = vpop.f32.mrb[105].mxu0 }
0x12da   : > { %v8982_v21 = vadd.f32 %v17442_v51, %v8981_v35  ;;  %v24476_v35 = vmul.f32 0.35355338, %v24374_v49 }
0x12dc   : > { %v19102_v31 = vpop.f32.mrb[106].mxu0  ;;  %v24388_v29 = vpack.i.bf16 %v24385_v1, %v8982_v21  ;;  %v24469_v56 = vmul.f32 0.35355338, %v8982_v21 }
0x12dd   : > { %v24390_v2 = vadd.f32 %v19102_v31, %v17442_v51  ;;  %v8991_v34 = vpop.f32.mrb[107].mxu0 }
0x12de   : > { %v8992_v58 = vadd.f32 %v17442_v51, %v8991_v34  ;;  %20786 = vrot.lane.b32.xlu1 %v24388_v29, %s21738_s26 }
0x12e0   : > { %v19105_v25 = vpop.f32.mrb[108].mxu0  ;;  %v24395_v37 = vpack.i.bf16 %v24390_v2, %v8992_v58  ;;  %v24478_v31 = vmul.f32 0.35355338, %v8992_v58 }
0x12e1   : > { %v24397_v50 = vadd.f32 %v19105_v25, %v17442_v51  ;;  %v9001_v60 = vpop.f32.mrb[109].mxu0 }
0x12e2   : > { %v24399_v38 = vadd.f32 %v17442_v51, %v9001_v60  ;;  %20791 = vrot.lane.b32.xlu0 %v24395_v37, %s21738_s26 }
0x12e4   : > { %v24405_v61 = vpack.i.bf16 %v24397_v50, %v24399_v38 }
0x12e6   : > { %20796 = vrot.lane.b32.xlu1 %v24405_v61, %s21738_s26 }
0x12e8   : > { %v19108_v39 = vpop.f32.mrb[110].mxu0 }
0x12e9   : > { %v24409_v0 = vadd.f32 %v19108_v39, %v17442_v51  ;;  %v9011_v26 = vpop.f32.mrb[111].mxu0 }
0x12ea   : > { %v24411_v24 = vadd.f32 %v17442_v51, %v9011_v26 }
0x12ec   : > { %v24415_v48 = vpack.i.bf16 %v24409_v0, %v24411_v24 }
0x12ee   : > { %20801 = vrot.lane.b32.xlu0 %v24415_v48, %s21738_s26 }
0x12f2   : > { %20811 = vrot.lane.b32.xlu0 %v24359_v30, %s21739_s27 }
0x12f6   : > { %20821 = vrot.lane.b32.xlu0 %v24381_v5, %s21739_s27 }
0x12fa   : > { %20831 = vrot.lane.b32.xlu0 %v24395_v37, %s21739_s27 }
0x12fe   : > { %20841 = vrot.lane.b32.xlu0 %v24415_v48, %s21739_s27 }
0x130c   : > { %v19111_v10 = vpop.f32.mrb[112].mxu0 }
0x130d   : > { %v24427_v16 = vadd.f32 %v19111_v10, %v17442_v51  ;;  %v9021_v41 = vpop.f32.mrb[113].mxu0 }
0x130e   : > { %v24429_v15 = vadd.f32 %v17442_v51, %v9021_v41  ;;  %v24450_v51 = vmul.f32 0.35355338, %v24356_v22 }
0x1310   : > { %v24433_v45 = vpack.i.bf16 %v24427_v16, %v24429_v15 }
0x1312   : > { %20806 = vrot.lane.b32.xlu1 %v24433_v45, %s21738_s26  ;;  %s26933_s26 = smov 88  }
0x1316   : > { %20816 = vrot.lane.b32.xlu1 %v24370_v17, %s21739_s27 }
0x131a   : > { %20826 = vrot.lane.b32.xlu1 %v24388_v29, %s21739_s27 }
0x131e   : > { %20836 = vrot.lane.b32.xlu1 %v24405_v61, %s21739_s27 }
0x1322   : > { %20846 = vrot.lane.b32.xlu1 %v24433_v45, %s21739_s27  ;;  %s26934_s27 = smov 120  }
0x132b   : > { %v20772_v40 = vpop.permute.xlu1 %20771 }
0x132c   : > { %v20774_v42 = vunpack.i.h.bf16 %v20772_v40  ;;  %v20773_v20 = vunpack.i.l.bf16 %v20772_v40 }
0x132e   : > { %v20068_v46 = vpack.c.bf16 %v20774_v42, %v20773_v20  ;;  %v24493_v42 = vmul.f32 0.35355338, %v24385_v1  ;;  %v24496_v20 = vmul.f32 0.35355338, %v24399_v38 }
0x1330   : > { %20070 = vmatprep.subr.msk.bf16.mxu1 %vm22080_vm3, %v20068_v46 }
0x1331   : > { %20073 = vmatpush3.bf16.xpose.msk.msra.mxu1 %vm22080_vm3, %v20068_v46  ;;  %v24507_v46 = vmul.f32 0.35355338, %v24390_v2  ;;  %v24520_v2 = vmul.f32 0.35355338, %v24429_v15  ;;  %v24531_v15 = vmul.f32 0.35355338, %v24409_v0 }
0x1338   : > { %19117 = vmatmul.mubr.msk.f32.vlgmr.msra.gmra.mrb[110].mxu1 %vm1014_vm2, %v24450_v51 }
0x1339   : > { %19130 = vmatprep.mubr.msk.f32.mxu1 %vm1014_vm2, %v24452_v54  ;;  %v20777_v4 = vpop.permute.xlu0 %20776 }
0x133a   : > { %v20779_v12 = vunpack.i.h.bf16 %v20777_v4  ;;  %v20778_v36 = vunpack.i.l.bf16 %v20777_v4  ;;  %v24510_v4 = vmul.f32 0.35355338, %v24411_v24 }
0x133c   : > { %v20074_v43 = vpack.c.bf16 %v20779_v12, %v20778_v36 }
0x133d   : > { %v20782_v27 = vpop.permute.xlu1 %20781 }
0x133e   : > { %v20784_v53 = vunpack.i.h.bf16 %v20782_v27  ;;  %v20783_v47 = vunpack.i.l.bf16 %v20782_v27  ;;  %20076 = vmatprep.subr.msk.bf16.mxu0 %vm22080_vm3, %v20074_v43 }
0x133f   : > { %20079 = vmatpush3.bf16.xpose.msk.msra.mxu0 %vm22080_vm3, %v20074_v43  ;;  %v24517_v43 = vmul.f32 0.35355338, %v24397_v50 }
0x1340   : > { %v20080_v22 = vpack.c.bf16 %v20784_v53, %v20783_v47 }
0x1342   : > { %20082 = vmatprep.subr.msk.bf16.mxu1 %vm22080_vm3, %v20080_v22 }
0x1343   : > { %20085 = vmatpush3.bf16.xpose.msk.msra.mxu1 %vm22080_vm3, %v20080_v22 }
0x1346   : > { %19124 = vmatmul.mubr.msk.f32.vlgmr.msra.gmra.mrb[114].mxu0 %vm1014_vm2, %v24467_v33 }
0x1347   : > { %19137 = vmatprep.mubr.msk.f32.mxu0 %vm1014_vm2, %v24469_v56 }
0x134a   : > { %19131 = vmatmul.mubr.msk.f32.vlgmr.msra.gmra.mrb[112].mxu1 %vm1014_vm2, %v24476_v35 }
0x134b   : > { %19144 = vmatprep.mubr.msk.f32.mxu1 %vm1014_vm2, %v24478_v31 }
0x1350   : > { %v20787_v13 = vpop.permute.xlu1 %20786 }
0x1351   : > { %v20789_v21 = vunpack.i.h.bf16 %v20787_v13  ;;  %v20788_v34 = vunpack.i.l.bf16 %v20787_v13 }
0x1353   : > { %v20086_v25 = vpack.c.bf16 %v20789_v21, %v20788_v34 }
0x1354   : > { %v20792_v60 = vpop.permute.xlu0 %20791 }
0x1355   : > { %v20794_v39 = vunpack.i.h.bf16 %v20792_v60  ;;  %v20793_v26 = vunpack.i.l.bf16 %v20792_v60  ;;  %20088 = vmatprep.subr.msk.bf16.mxu0 %vm22080_vm3, %v20086_v25 }
0x1356   : > { %20091 = vmatpush3.bf16.xpose.msk.msra.mxu0 %vm22080_vm3, %v20086_v25 }
0x1357   : > { %v20092_v49 = vpack.c.bf16 %v20794_v39, %v20793_v26 }
0x1358   : > { %v20797_v58 = vpop.permute.xlu1 %20796 }
0x1359   : > { %v20799_v10 = vunpack.i.h.bf16 %v20797_v58  ;;  %v20798_v41 = vunpack.i.l.bf16 %v20797_v58  ;;  %20094 = vmatprep.subr.msk.bf16.mxu1 %vm22080_vm3, %v20092_v49 }
0x135a   : > { %20097 = vmatpush3.bf16.xpose.msk.msra.mxu1 %vm22080_vm3, %v20092_v49 }
0x135b   : > { %v20098_v40 = vpack.c.bf16 %v20799_v10, %v20798_v41 }
0x135d   : > { %19138 = vmatmul.mubr.msk.f32.vlgmr.msra.gmra.mrb[116].mxu0 %vm1014_vm2, %v24493_v42  ;;  %20100 = vmatprep.subr.msk.bf16.mxu0 %vm22080_vm3, %v20098_v40 }
0x135e   : > { %20103 = vmatpush3.bf16.xpose.msk.msra.mxu0 %vm22080_vm3, %v20098_v40  ;;  %19151 = vmatprep.mubr.msk.f32.mxu0 %vm1014_vm2, %v24496_v20 }
0x1360   : > { %v20802_v1 = vpop.permute.xlu0 %20801 }
0x1361   : > { %v20804_v38 = vunpack.i.h.bf16 %v20802_v1  ;;  %v20803_v12 = vunpack.i.l.bf16 %v20802_v1  ;;  %19145 = vmatmul.mubr.msk.f32.vlgmr.msra.gmra.mrb[114].mxu1 %vm1014_vm2, %v24507_v46  ;;  %v24543_v1 = vmul.f32 0.35355338, %v24427_v16 }
0x1362   : > { %19158 = vmatprep.mubr.msk.f32.mxu1 %vm1014_vm2, %v24510_v4 }
0x1363   : > { %v20104_v36 = vpack.c.bf16 %v20804_v38, %v20803_v12 }
0x1364   : > { %v20812_v27 = vpop.permute.xlu0 %20811 }
0x1365   : > { %v20814_v53 = vunpack.i.h.bf16 %v20812_v27  ;;  %v20813_v47 = vunpack.i.l.bf16 %v20812_v27  ;;  %19152 = vmatmul.mubr.msk.f32.vlgmr.msra.gmra.mrb[118].mxu0 %vm1014_vm2, %v24517_v43  ;;  %20106 = vmatprep.subr.msk.bf16.mxu1 %vm22080_vm3, %v20104_v36 }
0x1366   : > { %20109 = vmatpush3.bf16.xpose.msk.msra.mxu1 %vm22080_vm3, %v20104_v36  ;;  %19165 = vmatprep.mubr.msk.f32.mxu0 %vm1014_vm2, %v24520_v2 }
0x1367   : > { %v20116_v50 = vpack.c.bf16 %v20814_v53, %v20813_v47 }
0x1368   : > { %v20822_v24 = vpop.permute.xlu0 %20821 }
0x1369   : > { %v20824_v22 = vunpack.i.h.bf16 %v20822_v24  ;;  %v20823_v13 = vunpack.i.l.bf16 %v20822_v24  ;;  %20117 = vmatprep.subr.bf16.mxu1 %v20116_v50 }
0x136b   : > { %v24535_v21 = vpack.c.bf16 %v20824_v22, %v20823_v13 }
0x136d   : > { %19159 = vmatmul.mubr.msk.f32.vlgmr.msra.gmra.mrb[116].mxu1 %vm1014_vm2, %v24531_v15 }
0x136e   : > { %20119 = vmatpush3.bf16.msra.mxu1 %v20116_v50 }
0x136f   : > { %20125 = vmatprep.subr.bf16.mxu1 %v24535_v21 }
0x1384   : > { %v20807_v34 = vpop.permute.xlu1 %20806 }
0x1385   : > { %v20809_v25 = vunpack.i.h.bf16 %v20807_v34  ;;  %v20808_v60 = vunpack.i.l.bf16 %v20807_v34 }
0x1387   : > { %v20110_v39 = vpack.c.bf16 %v20809_v25, %v20808_v60 }
0x1388   : > { %v20817_v26 = vpop.permute.xlu1 %20816 }
0x1389   : > { %v20819_v49 = vunpack.i.h.bf16 %v20817_v26  ;;  %v20818_v58 = vunpack.i.l.bf16 %v20817_v26  ;;  %20112 = vmatprep.subr.msk.bf16.mxu0 %vm22080_vm3, %v20110_v39 }
0x138a   : > { %20115 = vmatpush3.bf16.xpose.msk.msra.mxu0 %vm22080_vm3, %v20110_v39 }
0x138b   : > { %v20120_v0 = vpack.c.bf16 %v20819_v49, %v20818_v58 }
0x138c   : > { %v20827_v10 = vpop.permute.xlu1 %20826 }
0x138d   : > { %v20829_v41 = vunpack.i.h.bf16 %v20827_v10  ;;  %v20828_v40 = vunpack.i.l.bf16 %v20827_v10  ;;  %20121 = vmatprep.subr.bf16.mxu0 %v20120_v0 }
0x138f   : > { %v24547_v38 = vpack.c.bf16 %v20829_v41, %v20828_v40 }
0x1391   : > { %19166 = vmatmul.mubr.msk.f32.vlgmr.msra.gmra.mrb[120].mxu0 %vm1014_vm2, %v24543_v1 }
0x1392   : > { %20123 = vmatpush3.bf16.msra.mxu0 %v20120_v0 }
0x1393   : > { %20129 = vmatprep.subr.bf16.mxu0 %v24547_v38 }
0x140b   : > { %v19118_v12 = vpop.f32.mrb[110].mxu1 }
0x140c   : > { %v9128_v36 = vpop.f32.mrb[111].mxu1  ;;  %v9777_v27 = vsel %vm575_vm0, %v19118_v12, -inf }
0x140d   : > { %9778 = vmax.xlane.f32.xlu1 %v9777_v27  ;;  %v9774_v53 = vsel %vm575_vm0, %v9128_v36, -inf }
0x140e   : > { %9775 = vmax.xlane.f32.xlu0 %v9774_v53 }
0x1419   : > { %v24552_v47 = vpop.f32.mrb[114].mxu0 }
0x141a   : > { %v24554_v16 = vpop.f32.mrb[115].mxu0  ;;  %v9783_v50 = vsel %vm575_vm0, %v24552_v47, -inf }
0x141b   : > { %9784 = vmax.xlane.f32.xlu1 %v9783_v50  ;;  %v9780_v24 = vsel %vm575_vm0, %v24554_v16, -inf }
0x141c   : > { %9781 = vmax.xlane.f32.xlu0 %v9780_v24 }
0x141d   : > { %v24560_v22 = vpop.f32.mrb[112].mxu1 }
0x141e   : > { %v24562_v13 = vpop.f32.mrb[113].mxu1  ;;  %v9789_v34 = vsel %vm575_vm0, %v24560_v22, -inf }
0x141f   : > { %v9786_v25 = vsel %vm575_vm0, %v24562_v13, -inf }
0x1420   : > { %9790 = vmax.xlane.f32.xlu0 %v9789_v34 }
0x1424   : > { %9787 = vmax.xlane.f32.xlu0 %v9786_v25 }
0x1430   : > { %v24568_v60 = vpop.f32.mrb[116].mxu0 }
0x1431   : > { %v24570_v39 = vpop.f32.mrb[117].mxu0  ;;  %v9795_v26 = vsel %vm575_vm0, %v24568_v60, -inf }
0x1432   : > { %9796 = vmax.xlane.f32.xlu1 %v9795_v26  ;;  %v9792_v10 = vsel %vm575_vm0, %v24570_v39, -inf }
0x1434   : > { %v24574_v49 = vpop.f32.mrb[114].mxu1 }
0x1435   : > { %v24576_v58 = vpop.f32.mrb[115].mxu1  ;;  %v9801_v0 = vsel %vm575_vm0, %v24574_v49, -inf }
0x1436   : > { %9802 = vmax.xlane.f32.xlu0 %v9801_v0  ;;  %9793 = vmax.xlane.f32.xlu1 %v9792_v10  ;;  %v9798_v27 = vsel %vm575_vm0, %v24576_v58, -inf }
0x1438   : > { %v24582_v41 = vpop.f32.mrb[118].mxu0 }
0x1439   : > { %v24584_v40 = vpop.f32.mrb[119].mxu0  ;;  %v9807_v50 = vsel %vm575_vm0, %v24582_v41, -inf }
0x143a   : > { %9799 = vmax.xlane.f32.xlu0 %v9798_v27  ;;  %v9804_v53 = vsel %vm575_vm0, %v24584_v40, -inf }
0x143b   : > { %9805 = vmax.xlane.f32.xlu1 %v9804_v53 }
0x143e   : > { %9808 = vmax.xlane.f32.xlu0 %v9807_v50  ;;  %v24620_v50 = vpop.permute.xlu1 %20836 }
0x1440   : > { %v24592_v24 = vpop.f32.mrb[116].mxu1 }
0x1441   : > { %v24594_v34 = vpop.f32.mrb[117].mxu1  ;;  %v9813_v25 = vsel %vm575_vm0, %v24592_v24, -inf }
0x1442   : > { %9814 = vmax.xlane.f32.xlu0 %v9813_v25  ;;  %v9810_v26 = vsel %vm575_vm0, %v24594_v34, -inf  ;;  %v24622_v25 = vpop.permute.xlu0 %20831 }
0x1443   : > { %9811 = vmax.xlane.f32.xlu1 %v9810_v26  ;;  %v24624_v26 = vpop.permute.xlu1 %20846 }
0x1454   : > { %20856 = vrot.lane.b32.xlu1 %v24370_v17, %s26933_s26 }
0x1458   : > { %10646 = vrot.lane.b32.xlu1 %v24361_v23, %s26934_s27 }
0x145c   : > { %20866 = vrot.lane.b32.xlu1 %v24388_v29, %s26933_s26 }
0x1464   : > { %v24606_v0 = vpop.f32.mrb[120].mxu0 }
0x1465   : > { %v24608_v10 = vpop.f32.mrb[121].mxu0  ;;  %v9819_v27 = vsel %vm575_vm0, %v24606_v0, -inf }
0x1466   : > { %9820 = vmax.xlane.f32.xlu0 %v9819_v27  ;;  %v9816_v53 = vsel %vm575_vm0, %v24608_v10, -inf  ;;  %v24626_v27 = vpop.permute.xlu0 %20841 }
0x147c   : > { %20851 = vrot.lane.b32.xlu0 %v24359_v30, %s26933_s26 }
0x1480   : > { %20861 = vrot.lane.b32.xlu0 %v24381_v5, %s26933_s26  ;;  %9817 = vmax.xlane.f32.xlu1 %v9816_v53 }
0x1484   : > { %10648 = vrot.lane.b32.xlu0 %v24450_v51, %s26934_s27 }
0x149a   : > { %v9779_v63 = vpop.xlane.xlu1 %9778 }
0x149b   : > { %v9823_v11 = vsub.f32 %v19118_v12, %v9779_v63  ;;  %v9776_v28 = vpop.xlane.xlu0 %9775 }
0x149c   : > { %v9822_v32 = vsub.f32 %v9128_v36, %v9776_v28 }
0x149d   : > { %v9840_v59 = vmul.f32 1.442695, %v9823_v11 }
0x149e   : > { %v9838_v7 = vmul.f32 1.442695, %v9822_v32 }
0x149f   : > { %21410 = vpow2.f32 %v9840_v59 }
0x14a0   : > { %21412 = vpow2.f32 %v9838_v7 }
0x14a8   : > { %v9785_v53 = vpop.xlane.xlu1 %9784 }
0x14a9   : > { %v24628_v6 = vpop.eup %21410  ;;  %v9825_v44 = vsub.f32 %v24552_v47, %v9785_v53  ;;  %v9782_v19 = vpop.xlane.xlu0 %9781 }
0x14aa   : > { %v24631_v52 = vpop.eup %21412  ;;  %v9824_v18 = vsub.f32 %v24554_v16, %v9782_v19  ;;  %v9873_v8 = vsel %vm575_vm0, %v24628_v6, 0.0 }
0x14ab   : > { %v9844_v63 = vmul.f32 1.442695, %v9825_v44  ;;  %9874 = vadd.xlane.f32.xlu0 %v9873_v8  ;;  %v9870_v28 = vsel %vm575_vm0, %v24631_v52, 0.0 }
0x14ac   : > { %v9842_v59 = vmul.f32 1.442695, %v9824_v18  ;;  %9871 = vadd.xlane.f32.xlu1 %v9870_v28 }
0x14ad   : > { %21414 = vpow2.f32 %v9844_v63  ;;  %v9791_v7 = vpop.xlane.xlu0 %9790 }
0x14ae   : > { %v9827_v32 = vsub.f32 %v24560_v22, %v9791_v7  ;;  %21416 = vpow2.f32 %v9842_v59 }
0x14b0   : > { %v9848_v11 = vmul.f32 1.442695, %v9827_v32 }
0x14b1   : > { %v9788_v12 = vpop.xlane.xlu0 %9787 }
0x14b2   : > { %21418 = vpow2.f32 %v9848_v11  ;;  %v9826_v19 = vsub.f32 %v24562_v13, %v9788_v12 }
0x14b4   : > { %v9846_v36 = vmul.f32 1.442695, %v9826_v19 }
0x14b6   : > { %21420 = vpow2.f32 %v9846_v36 }
0x14b7   : > { %v24640_v47 = vpop.eup %21414 }
0x14b8   : > { %v9879_v8 = vsel %vm575_vm0, %v24640_v47, 0.0  ;;  %v24644_v44 = vpop.eup %21416 }
0x14b9   : > { %9880 = vadd.xlane.f32.xlu1 %v9879_v8  ;;  %v9876_v16 = vsel %vm575_vm0, %v24644_v44, 0.0 }
0x14bc   : > { %v24646_v18 = vpop.eup %21418 }
0x14bd   : > { %9877 = vadd.xlane.f32.xlu1 %v9876_v16  ;;  %v9885_v22 = vsel %vm575_vm0, %v24646_v18, 0.0 }
0x14be   : > { %9886 = vadd.xlane.f32.xlu0 %v9885_v22 }
0x14bf   : > { %v9797_v13 = vpop.xlane.xlu1 %9796 }
0x14c0   : > { %v24652_v53 = vpop.eup %21420  ;;  %v9829_v63 = vsub.f32 %v24568_v60, %v9797_v13 }
0x14c1   : > { %v9882_v28 = vsel %vm575_vm0, %v24652_v53, 0.0 }
0x14c2   : > { %v9852_v59 = vmul.f32 1.442695, %v9829_v63  ;;  %9883 = vadd.xlane.f32.xlu0 %v9882_v28 }
0x14c3   : > { %v9803_v7 = vpop.xlane.xlu0 %9802  ;;  %v9794_v32 = vpop.xlane.xlu1 %9793 }
0x14c4   : > { %21422 = vpow2.f32 %v9852_v59  ;;  %v9831_v11 = vsub.f32 %v24574_v49, %v9803_v7  ;;  %v9828_v12 = vsub.f32 %v24570_v39, %v9794_v32 }
0x14c6   : > { %v9856_v19 = vmul.f32 1.442695, %v9831_v11  ;;  %v9850_v36 = vmul.f32 1.442695, %v9828_v12 }
0x14c7   : > { %v9800_v8 = vpop.xlane.xlu0 %9799 }
0x14c8   : > { %21424 = vpow2.f32 %v9856_v19  ;;  %v9830_v16 = vsub.f32 %v24576_v58, %v9800_v8  ;;  %v9806_v22 = vpop.xlane.xlu1 %9805 }
0x14c9   : > { %21426 = vpow2.f32 %v9850_v36  ;;  %v9832_v60 = vsub.f32 %v24584_v40, %v9806_v22 }
0x14ca   : > { %v9854_v13 = vmul.f32 1.442695, %v9830_v16 }
0x14cb   : > { %v9858_v63 = vmul.f32 1.442695, %v9832_v60  ;;  %v9809_v28 = vpop.xlane.xlu0 %9808 }
0x14cc   : > { %21428 = vpow2.f32 %v9854_v13  ;;  %v9833_v59 = vsub.f32 %v24582_v41, %v9809_v28 }
0x14cd   : > { %21430 = vpow2.f32 %v9858_v63 }
0x14ce   : > { %v24662_v49 = vpop.eup %21422  ;;  %v9860_v39 = vmul.f32 1.442695, %v9833_v59 }
0x14cf   : > { %v9815_v7 = vpop.xlane.xlu0 %9814  ;;  %v9891_v32 = vsel %vm575_vm0, %v24662_v49, 0.0 }
0x14d0   : > { %21432 = vpow2.f32 %v9860_v39  ;;  %v9835_v58 = vsub.f32 %v24592_v24, %v9815_v7  ;;  %9892 = vadd.xlane.f32.xlu1 %v9891_v32  ;;  %v9812_v28 = vpop.xlane.xlu1 %9811 }
0x14d1   : > { %v9834_v59 = vsub.f32 %v24594_v34, %v9812_v28 }
0x14d2   : > { %v24667_v11 = vpop.eup %21424  ;;  %v9864_v40 = vmul.f32 1.442695, %v9835_v58 }
0x14d3   : > { %v24669_v12 = vpop.eup %21426  ;;  %v9897_v41 = vsel %vm575_vm0, %v24667_v11, 0.0  ;;  %v9862_v32 = vmul.f32 1.442695, %v9834_v59 }
0x14d4   : > { %21434 = vpow2.f32 %v9864_v40  ;;  %9898 = vadd.xlane.f32.xlu0 %v9897_v41  ;;  %v9888_v19 = vsel %vm575_vm0, %v24669_v12, 0.0  ;;  %v24700_v39 = vpop.permute.xlu1 %20856 }
0x14d5   : > { %9889 = vadd.xlane.f32.xlu1 %v9888_v19  ;;  %21436 = vpow2.f32 %v9862_v32 }
0x14d6   : > { %v24675_v36 = vpop.eup %21428 }
0x14d7   : > { %v24677_v8 = vpop.eup %21430  ;;  %v9894_v24 = vsel %vm575_vm0, %v24675_v36, 0.0 }
0x14d8   : > { %9895 = vadd.xlane.f32.xlu0 %v9894_v24  ;;  %v9900_v16 = vsel %vm575_vm0, %v24677_v8, 0.0  ;;  %v24707_v40 = vpop.permute.xlu1 %10646 }
0x14d9   : > { %9901 = vadd.xlane.f32.xlu1 %v9900_v16 }
0x14da   : > { %v24683_v22 = vpop.eup %21432 }
0x14db   : > { %v9903_v60 = vsel %vm575_vm0, %v24683_v22, 0.0 }
0x14dc   : > { %9904 = vadd.xlane.f32.xlu0 %v9903_v60  ;;  %v24711_v34 = vpop.permute.xlu1 %20866 }
0x14de   : > { %v24687_v13 = vpop.eup %21434 }
0x14df   : > { %v9909_v63 = vsel %vm575_vm0, %v24687_v13, 0.0  ;;  %v24715_v24 = vpop.eup %21436 }
0x14e0   : > { %9910 = vadd.xlane.f32.xlu0 %v9909_v63  ;;  %v9906_v60 = vsel %vm575_vm0, %v24715_v24, 0.0 }
0x14ea   : > { %10739 = vrot.lane.b32.xlu1 %v24467_v33, %s26934_s27 }
0x14ee   : > { %10828 = vrot.lane.b32.xlu1 %v24452_v54, %s26934_s27 }
0x14f3   : > { %v9821_v7 = vpop.xlane.xlu0 %9820 }
0x14f4   : > { %v9837_v58 = vsub.f32 %v24606_v0, %v9821_v7 }
0x14f6   : > { %10737 = vrot.lane.b32.xlu0 %v24372_v14, %s26934_s27  ;;  %v9868_v41 = vmul.f32 1.442695, %v9837_v58 }
0x14f7   : > { %v24742_v7 = vpop.permute.xlu0 %20851 }
0x14f8   : > { %21438 = vpow2.f32 %v9868_v41 }
0x14fa   : > { %20871 = vrot.lane.b32.xlu0 %v24395_v37, %s26933_s26 }
0x14fb   : > { %v24744_v32 = vpop.permute.xlu0 %20861 }
0x14fe   : > { %10830 = vrot.lane.b32.xlu0 %v24476_v35, %s26934_s27 }
0x14ff   : > { %v24750_v58 = vpop.permute.xlu0 %10648 }
0x1502   : > { %10919 = vrot.lane.b32.xlu0 %v24469_v56, %s26934_s27  ;;  %v24722_v63 = vpop.eup %21438 }
0x1503   : > { %v9915_v28 = vsel %vm575_vm0, %v24722_v63, 0.0 }
0x1506   : > { %11010 = vrot.lane.b32.xlu0 %v24478_v31, %s26934_s27 }
0x150a   : > { %11012 = vrot.lane.b32.xlu0 %v24507_v46, %s26934_s27 }
0x150d   : > { %v9818_v19 = vpop.xlane.xlu1 %9817 }
0x150e   : > { %v9836_v0 = vsub.f32 %v24608_v10, %v9818_v19  ;;  %20886 = vrot.lane.b32.xlu0 %v24433_v45, %s26933_s26 }
0x1510   : > { %v9866_v16 = vmul.f32 1.442695, %v9836_v0 }
0x1512   : > { %21440 = vpow2.f32 %v9866_v16  ;;  %11192 = vrot.lane.b32.xlu0 %v24510_v4, %s26934_s27  ;;  %9907 = vadd.xlane.f32.xlu1 %v9906_v60  ;;  %v20834_v60 = vunpack.i.h.bf16 %v24622_v25 }
0x1516   : > { %11283 = vrot.lane.b32.xlu0 %v24520_v2, %s26934_s27  ;;  %9916 = vadd.xlane.f32.xlu1 %v9915_v28  ;;  %v20833_v28 = vunpack.i.l.bf16 %v24622_v25 }
0x1518   : > { %v20132_v9 = vpack.c.bf16 %v20834_v60, %v20833_v28 }
0x151a   : > { %20891 = vrot.lane.b32.xlu0 %v24359_v30, %s26935_s18 }
0x151c   : > { %v24732_v10 = vpop.eup %21440 }
0x151d   : > { %v9912_v59 = vsel %vm575_vm0, %v24732_v10, 0.0 }
0x151e   : > { %20901 = vrot.lane.b32.xlu0 %v24381_v5, %s26935_s18  ;;  %9913 = vadd.xlane.f32.xlu1 %v9912_v59 }
0x1522   : > { %20911 = vrot.lane.b32.xlu0 %v24395_v37, %s26935_s18 }
0x1526   : > { %20921 = vrot.lane.b32.xlu0 %v24415_v48, %s26935_s18 }
0x152f   : > { %20876 = vrot.lane.b32.xlu1 %v24405_v61, %s26933_s26 }
0x1533   : > { %10921 = vrot.lane.b32.xlu1 %v24493_v42, %s26934_s27 }
0x1537   : > { %20881 = vrot.lane.b32.xlu1 %v24415_v48, %s26933_s26 }
0x1538   : > { %v9875_v41 = vpop.xlane.xlu0 %9874 }
0x1539   : > { %21442 = vrcp.f32 %v9875_v41  ;;  %v9872_v19 = vpop.xlane.xlu1 %9871 }
0x153a   : > { %21444 = vrcp.f32 %v9872_v19 }
0x153b   : > { %11101 = vrot.lane.b32.xlu1 %v24496_v20, %s26934_s27 }
0x153f   : > { %11103 = vrot.lane.b32.xlu1 %v24517_v43, %s26934_s27 }
0x1543   : > { %v21443_v0 = vpop.eup %21442  ;;  %11194 = vrot.lane.b32.xlu1 %v24531_v15, %s26934_s27 }
0x1544   : > { %v21445_v16 = vpop.eup %21444  ;;  %v9935_v19 = vmul.f32 %v21443_v0, %v24628_v6 }
0x1545   : > { %v9934_v59 = vmul.f32 %v21445_v16, %v24631_v52  ;;  %v20838_v16 = vunpack.i.l.bf16 %v24620_v50 }
0x1546   : > { %v9881_v41 = vpop.xlane.xlu1 %9880 }
0x1547   : > { %11285 = vrot.lane.b32.xlu1 %v24543_v1, %s26934_s27  ;;  %19172 = vmatprep.mubr.msk.f32.mxu1 %vm575_vm0, %v9934_v59  ;;  %21446 = vrcp.f32 %v9881_v41 }
0x1548   : > { %19173 = vmatmul.mubr.msk.f32.vlgmr.msra.gmra.mrb[118].mxu1 %vm575_vm0, %v9935_v19  ;;  %v20844_v19 = vunpack.i.h.bf16 %v24626_v27 }
0x1549   : > { %20127 = vmatpush3.bf16.msra.mxu1 %v24535_v21  ;;  %v20839_v21 = vunpack.i.h.bf16 %v24620_v50 }
0x154a   : > { %20133 = vmatprep.subr.bf16.mxu1 %v20132_v9  ;;  %v9878_v57 = vpop.xlane.xlu1 %9877 }
0x154b   : > { %21448 = vrcp.f32 %v9878_v57  ;;  %v9887_v25 = vpop.xlane.xlu0 %9886  ;;  %20896 = vrot.lane.b32.xlu1 %v24370_v17, %s26935_s18  ;;  %v20136_v59 = vpack.c.bf16 %v20839_v21, %v20838_v16  ;;  %v20849_v16 = vunpack.i.h.bf16 %v24624_v26 }
0x154c   : > { %21450 = vrcp.f32 %v9887_v25  ;;  %v20843_v25 = vunpack.i.l.bf16 %v24626_v27 }
0x154f   : > { %v9884_v52 = vpop.xlane.xlu0 %9883  ;;  %20906 = vrot.lane.b32.xlu1 %v24388_v29, %s26935_s18 }
0x1550   : > { %21452 = vrcp.f32 %v9884_v52  ;;  %v20140_v52 = vpack.c.bf16 %v20844_v19, %v20843_v25  ;;  %v20854_v19 = vunpack.i.h.bf16 %v24742_v7  ;;  %v20853_v25 = vunpack.i.l.bf16 %v24742_v7 }
0x1551   : > { %v21447_v6 = vpop.eup %21446 }
0x1552   : > { %v9937_v60 = vmul.f32 %v21447_v6, %v24640_v47 }
0x1553   : > { %20916 = vrot.lane.b32.xlu1 %v24405_v61, %s26935_s18 }
0x1555   : > { %v21449_v0 = vpop.eup %21448 }
0x1556   : > { %v9936_v57 = vmul.f32 %v21449_v0, %v24644_v44  ;;  %v21451_v28 = vpop.eup %21450 }
0x1557   : > { %20926 = vrot.lane.b32.xlu1 %v24433_v45, %s26935_s18  ;;  %v9939_v44 = vmul.f32 %v21451_v28, %v24646_v18 }
0x1558   : > { %19179 = vmatprep.mubr.msk.f32.mxu0 %vm575_vm0, %v9936_v57  ;;  %v20848_v57 = vunpack.i.l.bf16 %v24624_v26 }
0x1559   : > { %19180 = vmatmul.mubr.msk.f32.vlgmr.msra.gmra.mrb[122].mxu0 %vm575_vm0, %v9937_v60 }
0x155a   : > { %v21453_v41 = vpop.eup %21452  ;;  %20131 = vmatpush3.bf16.msra.mxu0 %v24547_v38 }
0x155b   : > { %20137 = vmatprep.subr.bf16.mxu0 %v20136_v59  ;;  %v9938_v50 = vmul.f32 %v21453_v41, %v24652_v53 }
0x155d   : > { %19186 = vmatprep.mubr.msk.f32.mxu1 %vm575_vm0, %v9938_v50  ;;  %v9893_v47 = vpop.xlane.xlu1 %9892 }
0x155e   : > { %19187 = vmatmul.mubr.msk.f32.vlgmr.msra.gmra.mrb[120].mxu1 %vm575_vm0, %v9939_v44  ;;  %21454 = vrcp.f32 %v9893_v47  ;;  %v20144_v44 = vpack.c.bf16 %v20849_v16, %v20848_v57 }
0x155f   : > { %20135 = vmatpush3.bf16.msra.mxu1 %v20132_v9 }
0x1560   : > { %20141 = vmatprep.subr.bf16.mxu1 %v20140_v52 }
0x1561   : > { %v9899_v6 = vpop.xlane.xlu0 %9898 }
0x1562   : > { %v9890_v0 = vpop.xlane.xlu1 %9889 }
0x1563   : > { %21456 = vrcp.f32 %v9890_v0  ;;  %v20148_v0 = vpack.c.bf16 %v20854_v19, %v20853_v25 }
0x1564   : > { %21458 = vrcp.f32 %v9899_v6  ;;  %v20858_v6 = vunpack.i.l.bf16 %v24700_v39 }
0x1565   : > { %v9896_v27 = vpop.xlane.xlu0 %9895 }
0x1566   : > { %21460 = vrcp.f32 %v9896_v27  ;;  %v9902_v38 = vpop.xlane.xlu1 %9901 }
0x1567   : > { %21462 = vrcp.f32 %v9902_v38 }
0x1568   : > { %v21455_v18 = vpop.eup %21454 }
0x1569   : > { %v9905_v53 = vpop.xlane.xlu0 %9904  ;;  %v9941_v28 = vmul.f32 %v21455_v18, %v24662_v49  ;;  %v20859_v49 = vunpack.i.h.bf16 %v24700_v39 }
0x156a   : > { %21464 = vrcp.f32 %v9905_v53  ;;  %v24812_v27 = vpop.permute.xlu1 %10739 }
0x156d   : > { %v21457_v21 = vpop.eup %21456 }
0x156e   : > { %v9940_v9 = vmul.f32 %v21457_v21, %v24669_v12  ;;  %v21459_v60 = vpop.eup %21458  ;;  %v10829_v53 = vpop.permute.xlu1 %10828 }
0x156f   : > { %v9943_v26 = vmul.f32 %v21459_v60, %v24667_v11  ;;  %v20154_v11 = vpack.c.bf16 %v20859_v49, %v20858_v6  ;;  %v20864_v60 = vunpack.i.h.bf16 %v24744_v32  ;;  %v20869_v6 = vunpack.i.h.bf16 %v24711_v34 }
0x1570   : > { %v21461_v41 = vpop.eup %21460  ;;  %19193 = vmatprep.mubr.msk.f32.mxu0 %vm575_vm0, %v9940_v9 }
0x1571   : > { %v21463_v50 = vpop.eup %21462  ;;  %19194 = vmatmul.mubr.msk.f32.vlgmr.msra.gmra.mrb[124].mxu0 %vm575_vm0, %v9941_v28  ;;  %v9942_v47 = vmul.f32 %v21461_v41, %v24675_v36  ;;  %v20863_v28 = vunpack.i.l.bf16 %v24744_v32 }
0x1572   : > { %20139 = vmatpush3.bf16.msra.mxu0 %v20136_v59  ;;  %v9944_v12 = vmul.f32 %v21463_v50, %v24677_v8  ;;  %v9911_v8 = vpop.xlane.xlu0 %9910 }
0x1573   : > { %20145 = vmatprep.subr.bf16.mxu0 %v20144_v44  ;;  %19200 = vmatprep.mubr.msk.f32.mxu1 %vm575_vm0, %v9942_v47  ;;  %21466 = vrcp.f32 %v9911_v8 }
0x1574   : > { %v21465_v7 = vpop.eup %21464  ;;  %19201 = vmatmul.mubr.msk.f32.vlgmr.msra.gmra.mrb[122].mxu1 %vm575_vm0, %v9943_v26  ;;  %19207 = vmatprep.mubr.msk.f32.mxu0 %vm575_vm0, %v9944_v12 }
0x1575   : > { %20143 = vmatpush3.bf16.msra.mxu1 %v20140_v52  ;;  %v9945_v36 = vmul.f32 %v21465_v7, %v24683_v22  ;;  %v20868_v7 = vunpack.i.l.bf16 %v24711_v34 }
0x1576   : > { %20150 = vmatprep.subr.msk.bf16.mxu1 %vm22080_vm3, %v20148_v0  ;;  %v10738_v39 = vpop.permute.xlu0 %10737 }
0x1577   : > { %19208 = vmatmul.mubr.msk.f32.vlgmr.msra.gmra.mrb[126].mxu0 %vm575_vm0, %v9945_v36  ;;  %v20166_v34 = vpack.c.bf16 %v20869_v6, %v20868_v7 }
0x1578   : > { %20147 = vmatpush3.bf16.msra.mxu0 %v20144_v44  ;;  %v20160_v44 = vpack.c.bf16 %v20864_v60, %v20863_v28 }
0x1579   : > { %20156 = vmatprep.subr.msk.bf16.mxu0 %vm22080_vm3, %v20154_v11 }
0x157a   : > { %v20872_v59 = vpop.permute.xlu0 %20871 }
0x157b   : > { %v20873_v47 = vunpack.i.l.bf16 %v20872_v59 }
0x157d   : > { %v21467_v57 = vpop.eup %21466 }
0x157e   : > { %v10831_v38 = vpop.permute.xlu0 %10830  ;;  %v9947_v25 = vmul.f32 %v21467_v57, %v24687_v13 }
0x1582   : > { %v24814_v52 = vpop.permute.xlu0 %10919 }
0x1586   : > { %v11011_v18 = vpop.permute.xlu0 %11010 }
0x158a   : > { %v24816_v21 = vpop.permute.xlu0 %11012 }
0x158e   : > { %v20887_v50 = vpop.permute.xlu0 %20886 }
0x158f   : > { %v20888_v28 = vunpack.i.l.bf16 %v20887_v50 }
0x1592   : > { %v11193_v26 = vpop.permute.xlu0 %11192 }
0x159f   : > { %v9908_v22 = vpop.xlane.xlu1 %9907 }
0x15a0   : > { %21468 = vrcp.f32 %v9908_v22 }
0x15a3   : > { %v9917_v16 = vpop.xlane.xlu1 %9916 }
0x15a4   : > { %21470 = vrcp.f32 %v9917_v16 }
0x15aa   : > { %v21469_v9 = vpop.eup %21468 }
0x15ab   : > { %v9914_v41 = vpop.xlane.xlu1 %9913  ;;  %v9946_v19 = vmul.f32 %v21469_v9, %v24715_v24  ;;  %v20874_v24 = vunpack.i.h.bf16 %v20872_v59  ;;  %v11284_v59 = vpop.permute.xlu0 %11283 }
0x15ac   : > { %21472 = vrcp.f32 %v9914_v41 }
0x15ad   : > { %19214 = vmatprep.mubr.msk.f32.mxu1 %vm575_vm0, %v9946_v19  ;;  %v20172_v36 = vpack.c.bf16 %v20874_v24, %v20873_v47 }
0x15ae   : > { %19215 = vmatmul.mubr.msk.f32.vlgmr.msra.gmra.mrb[124].mxu1 %vm575_vm0, %v9947_v25  ;;  %v21471_v12 = vpop.eup %21470 }
0x15af   : > { %20153 = vmatpush3.bf16.xpose.msk.msra.mxu1 %vm22080_vm3, %v20148_v0  ;;  %19228 = vmatprep.mubr.msk.f32.mxu1 %vm1014_vm2, %v24707_v40  ;;  %v20877_v32 = vpop.permute.xlu1 %20876  ;;  %v9949_v8 = vmul.f32 %v21471_v12, %v24722_v63  ;;  %v20892_v57 = vpop.permute.xlu0 %20891 }
0x15b0   : > { %20162 = vmatprep.subr.msk.bf16.mxu1 %vm22080_vm3, %v20160_v44 }
0x15b3   : > { %v10922_v13 = vpop.permute.xlu1 %10921  ;;  %v20902_v19 = vpop.permute.xlu0 %20901 }
0x15b6   : > { %v21473_v49 = vpop.eup %21472  ;;  %19229 = vmatmul.mubr.msk.f32.vlgmr.msra.gmra.mrb[126].mxu1 %vm1014_vm2, %v24750_v58 }
0x15b7   : > { %20165 = vmatpush3.bf16.xpose.msk.msra.mxu1 %vm22080_vm3, %v20160_v44  ;;  %19242 = vmatprep.mubr.msk.f32.mxu1 %vm1014_vm2, %v10829_v53  ;;  %v20882_v40 = vpop.permute.xlu1 %20881  ;;  %v9948_v0 = vmul.f32 %v21473_v49, %v24732_v10  ;;  %v20879_v10 = vunpack.i.h.bf16 %v20877_v32  ;;  %v20878_v53 = vunpack.i.l.bf16 %v20877_v32  ;;  %v20903_v44 = vunpack.i.l.bf16 %v20902_v19 }
0x15b8   : > { %20174 = vmatprep.subr.msk.bf16.mxu1 %vm22080_vm3, %v20172_v36  ;;  %v20884_v22 = vunpack.i.h.bf16 %v20882_v40  ;;  %v20883_v16 = vunpack.i.l.bf16 %v20882_v40 }
0x15b9   : > { %19221 = vmatprep.mubr.msk.f32.mxu0 %vm575_vm0, %v9948_v0  ;;  %v20178_v60 = vpack.c.bf16 %v20879_v10, %v20878_v53 }
0x15ba   : > { %19222 = vmatmul.mubr.msk.f32.vlgmr.msra.gmra.mrb[128].mxu0 %vm575_vm0, %v9949_v8  ;;  %v20184_v63 = vpack.c.bf16 %v20884_v22, %v20883_v16 }
0x15bb   : > { %20159 = vmatpush3.bf16.xpose.msk.msra.mxu0 %vm22080_vm3, %v20154_v11  ;;  %19235 = vmatprep.mubr.msk.f32.mxu0 %vm1014_vm2, %v10738_v39  ;;  %v11102_v58 = vpop.permute.xlu1 %11101  ;;  %v20894_v11 = vunpack.i.h.bf16 %v20892_v57  ;;  %v20893_v39 = vunpack.i.l.bf16 %v20892_v57 }
0x15bc   : > { %20168 = vmatprep.subr.msk.bf16.mxu0 %vm22080_vm3, %v20166_v34 }
0x15bd   : > { %v20196_v41 = vpack.c.bf16 %v20894_v11, %v20893_v39 }
0x15be   : > { %19243 = vmatmul.mubr.msk.f32.vlgmr.msra.gmra.mrb[128].mxu1 %vm1014_vm2, %v10831_v38 }
0x15bf   : > { %20177 = vmatpush3.bf16.xpose.msk.msra.mxu1 %vm22080_vm3, %v20172_v36  ;;  %19256 = vmatprep.mubr.msk.f32.mxu1 %vm1014_vm2, %v11011_v18  ;;  %v11104_v9 = vpop.permute.xlu1 %11103  ;;  %v20889_v18 = vunpack.i.h.bf16 %v20887_v50 }
0x15c0   : > { %20186 = vmatprep.subr.msk.bf16.mxu1 %vm22080_vm3, %v20184_v63 }
0x15c1   : > { %v20190_v25 = vpack.c.bf16 %v20889_v18, %v20888_v28 }
0x15c2   : > { %19236 = vmatmul.mubr.msk.f32.vlgmr.msra.gmra.mrb[130].mxu0 %vm1014_vm2, %v24812_v27 }
0x15c3   : > { %20171 = vmatpush3.bf16.xpose.msk.msra.mxu0 %vm22080_vm3, %v20166_v34  ;;  %19249 = vmatprep.mubr.msk.f32.mxu0 %vm1014_vm2, %v24814_v52  ;;  %v11195_v38 = vpop.permute.xlu1 %11194  ;;  %v20904_v52 = vunpack.i.h.bf16 %v20902_v19 }
0x15c4   : > { %20180 = vmatprep.subr.msk.bf16.mxu0 %vm22080_vm3, %v20178_v60 }
0x15c5   : > { %v24874_v24 = vpack.c.bf16 %v20904_v52, %v20903_v44 }
0x15c6   : > { %19257 = vmatmul.mubr.msk.f32.vlgmr.msra.gmra.mrb[130].mxu1 %vm1014_vm2, %v24816_v21 }
0x15c7   : > { %20189 = vmatpush3.bf16.xpose.msk.msra.mxu1 %vm22080_vm3, %v20184_v63  ;;  %19270 = vmatprep.mubr.msk.f32.mxu1 %vm1014_vm2, %v11193_v26  ;;  %v11286_v27 = vpop.permute.xlu1 %11285 }
0x15c8   : > { %20197 = vmatprep.subr.bf16.mxu1 %v20196_v41 }
0x15ca   : > { %19250 = vmatmul.mubr.msk.f32.vlgmr.msra.gmra.mrb[132].mxu0 %vm1014_vm2, %v10922_v13 }
0x15cb   : > { %20183 = vmatpush3.bf16.xpose.msk.msra.mxu0 %vm22080_vm3, %v20178_v60  ;;  %19263 = vmatprep.mubr.msk.f32.mxu0 %vm1014_vm2, %v11102_v58  ;;  %v20897_v21 = vpop.permute.xlu1 %20896 }
0x15cc   : > { %20192 = vmatprep.subr.msk.bf16.mxu0 %vm22080_vm3, %v20190_v25  ;;  %v20899_v50 = vunpack.i.h.bf16 %v20897_v21  ;;  %v20898_v32 = vunpack.i.l.bf16 %v20897_v21 }
0x15ce   : > { %19271 = vmatmul.mubr.msk.f32.vlgmr.msra.gmra.mrb[132].mxu1 %vm1014_vm2, %v11195_v38  ;;  %v20200_v47 = vpack.c.bf16 %v20899_v50, %v20898_v32 }
0x15cf   : > { %20199 = vmatpush3.bf16.msra.mxu1 %v20196_v41  ;;  %v20907_v26 = vpop.permute.xlu1 %20906 }
0x15d0   : > { %20205 = vmatprep.subr.bf16.mxu1 %v24874_v24  ;;  %v20909_v13 = vunpack.i.h.bf16 %v20907_v26  ;;  %v20908_v12 = vunpack.i.l.bf16 %v20907_v26 }
0x15d2   : > { %19264 = vmatmul.mubr.msk.f32.vlgmr.msra.gmra.mrb[134].mxu0 %vm1014_vm2, %v11104_v9  ;;  %v24882_v49 = vpack.c.bf16 %v20909_v13, %v20908_v12 }
0x15d3   : > { %20195 = vmatpush3.bf16.xpose.msk.msra.mxu0 %vm22080_vm3, %v20190_v25  ;;  %19277 = vmatprep.mubr.msk.f32.mxu0 %vm1014_vm2, %v11284_v59 }
0x15d4   : > { %20201 = vmatprep.subr.bf16.mxu0 %v20200_v47 }
0x15da   : > { %19278 = vmatmul.mubr.msk.f32.vlgmr.msra.gmra.mrb[136].mxu0 %vm1014_vm2, %v11286_v27 }
0x15db   : > { %20203 = vmatpush3.bf16.msra.mxu0 %v20200_v47 }
0x15dc   : > { %20209 = vmatprep.subr.bf16.mxu0 %v24882_v49 }
0x161b   : > { %v24885_v6 = vpop.f32.mrb[118].mxu1 }
0x161c   : > { %26936 = vst [vmem:[#allocation24_spill] sm:$0xff] %v24885_v6  ;;  %v24887_v7 = vpop.f32.mrb[119].mxu1 }
0x161d   : > { %26937 = vst [vmem:[#allocation27_spill] sm:$0xff] %v24887_v7 }
0x162c   : > { %v24889_v36 = vpop.f32.mrb[122].mxu0 }
0x162d   : > { %26938 = vst [vmem:[#allocation26_spill] sm:$0xff] %v24889_v36  ;;  %v24891_v40 = vpop.f32.mrb[123].mxu0 }
0x162e   : > { %26939 = vst [vmem:[#allocation29_spill] sm:$0xff] %v24891_v40 }
0x1631   : > { %v24893_v0 = vpop.f32.mrb[120].mxu1 }
0x1632   : > { %26940 = vst [vmem:[#allocation28_spill] sm:$0xff] %v24893_v0  ;;  %v24895_v8 = vpop.f32.mrb[121].mxu1 }
0x1633   : > { %26941 = vst [vmem:[#allocation31_spill] sm:$0xff] %v24895_v8 }
0x1644   : > { %v24897_v59 = vpop.f32.mrb[124].mxu0 }
0x1645   : > { %26942 = vst [vmem:[#allocation30_spill] sm:$0xff] %v24897_v59  ;;  %v24899_v34 = vpop.f32.mrb[125].mxu0 }
0x1646   : > { %26943 = vst [vmem:[#allocation33_spill] sm:$0xff] %v24899_v34 }
0x1647   : > { %v24901_v22 = vpop.f32.mrb[122].mxu1 }
0x1648   : > { %26944 = vst [vmem:[#allocation32_spill] sm:$0xff] %v24901_v22  ;;  %v24903_v16 = vpop.f32.mrb[123].mxu1 }
0x1649   : > { %26945 = vst [vmem:[#allocation35_spill] sm:$0xff] %v24903_v16 }
0x164a   : > { %v24905_v58 = vpop.f32.mrb[126].mxu0 }
0x164b   : > { %26946 = vst [vmem:[#allocation34_spill] sm:$0xff] %v24905_v58  ;;  %v24907_v10 = vpop.f32.mrb[127].mxu0 }
0x164c   : > { %26947 = vst [vmem:[#allocation3_spill] sm:$0xff] %v24907_v10 }
0x1681   : > { %v24909_v53 = vpop.f32.mrb[124].mxu1 }
0x1682   : > { %26948 = vst [vmem:[#allocation2_spill] sm:$0xff] %v24909_v53  ;;  %v24911_v63 = vpop.f32.mrb[125].mxu1 }
0x1683   : > { %26949 = vst [vmem:[#allocation4_spill] sm:$0xff] %v24911_v63 }
0x1689   : > { %v24913_v57 = vpop.f32.mrb[126].mxu1 }
0x168a   : > { %v24915_v9 = vpop.f32.mrb[127].mxu1  ;;  %v11377_v11 = vsel %vm575_vm0, %v24913_v57, -inf }
0x168b   : > { %11378 = vmax.xlane.f32.xlu1 %v11377_v11  ;;  %v11374_v39 = vsel %vm575_vm0, %v24915_v9, -inf }
0x168c   : > { %11375 = vmax.xlane.f32.xlu0 %v11374_v39 }
0x168d   : > { %v24921_v60 = vpop.f32.mrb[128].mxu0 }
0x168e   : > { %26950 = vst [vmem:[#allocation5_spill] sm:$0xff] %v24921_v60  ;;  %v24923_v38 = vpop.f32.mrb[129].mxu0 }
0x168f   : > { %26951 = vst [vmem:[#allocation6_spill] sm:$0xff] %v24923_v38 }
0x1691   : > { %v24925_v18 = vpop.f32.mrb[128].mxu1 }
0x1692   : > { %v24927_v28 = vpop.f32.mrb[129].mxu1  ;;  %v11389_v21 = vsel %vm575_vm0, %v24925_v18, -inf }
0x1693   : > { %v11386_v26 = vsel %vm575_vm0, %v24927_v28, -inf }
0x1695   : > { %v24929_v41 = vpop.f32.mrb[130].mxu0 }
0x1696   : > { %v24931_v19 = vpop.f32.mrb[131].mxu0  ;;  %v11383_v27 = vsel %vm575_vm0, %v24929_v41, -inf }
0x1697   : > { %11384 = vmax.xlane.f32.xlu1 %v11383_v27  ;;  %v11380_v25 = vsel %vm575_vm0, %v24931_v19, -inf }
0x1698   : > { %11381 = vmax.xlane.f32.xlu0 %v11380_v25 }
0x1699   : > { %v24937_v52 = vpop.f32.mrb[130].mxu1 }
0x169a   : > { %v24939_v44 = vpop.f32.mrb[131].mxu1  ;;  %v11401_v39 = vsel %vm575_vm0, %v24937_v52, -inf }
0x169c   : > { %11390 = vmax.xlane.f32.xlu0 %v11389_v21  ;;  %v11398_v21 = vsel %vm575_vm0, %v24939_v44, -inf }
0x169d   : > { %v24943_v50 = vpop.f32.mrb[132].mxu0 }
0x169e   : > { %v24945_v32 = vpop.f32.mrb[133].mxu0  ;;  %v11395_v47 = vsel %vm575_vm0, %v24943_v50, -inf }
0x169f   : > { %11396 = vmax.xlane.f32.xlu1 %v11395_v47  ;;  %v11392_v11 = vsel %vm575_vm0, %v24945_v32, -inf }
0x16a0   : > { %11387 = vmax.xlane.f32.xlu0 %v11386_v26 }
0x16a1   : > { %v24951_v13 = vpop.f32.mrb[132].mxu1 }
0x16a2   : > { %v24953_v12 = vpop.f32.mrb[133].mxu1  ;;  %v11413_v3 = vsel %vm575_vm0, %v24951_v13, -inf }
0x16a3   : > { %11393 = vmax.xlane.f32.xlu1 %v11392_v11  ;;  %v11410_v11 = vsel %vm575_vm0, %v24953_v12, -inf }
0x16a4   : > { %11402 = vmax.xlane.f32.xlu0 %v11401_v39 }
0x16a5   : > { %v24959_v27 = vpop.f32.mrb[134].mxu0 }
0x16a6   : > { %v24961_v25 = vpop.f32.mrb[135].mxu0  ;;  %v11407_v26 = vsel %vm575_vm0, %v24959_v27, -inf }
0x16a7   : > { %v11404_v47 = vsel %vm575_vm0, %v24961_v25, -inf }
0x16a8   : > { %11399 = vmax.xlane.f32.xlu0 %v11398_v21  ;;  %11405 = vmax.xlane.f32.xlu1 %v11404_v47  ;;  %v24993_v47 = vpop.permute.xlu1 %20916 }
0x16ac   : > { %11408 = vmax.xlane.f32.xlu0 %v11407_v26  ;;  %11411 = vmax.xlane.f32.xlu1 %v11410_v11  ;;  %v24995_v26 = vpop.permute.xlu0 %20911  ;;  %v24997_v11 = vpop.permute.xlu1 %20926 }
0x16ad   : > { %v24971_v39 = vpop.f32.mrb[136].mxu0 }
0x16ae   : > { %v24973_v62 = vpop.f32.mrb[137].mxu0  ;;  %v11419_v21 = vsel %vm575_vm0, %v24971_v39, -inf }
0x16b0   : > { %11414 = vmax.xlane.f32.xlu0 %v11413_v3  ;;  %v11416_v3 = vsel %vm575_vm0, %v24973_v62, -inf }
0x16b4   : > { %11420 = vmax.xlane.f32.xlu0 %v11419_v21  ;;  %v24999_v21 = vpop.permute.xlu0 %20921 }
0x16bd   : > { %20936 = vrot.lane.b32.xlu1 %v24370_v17, %s26952_s19 }
0x16c1   : > { %12246 = vrot.lane.b32.xlu1 %v24361_v23, %s26953_s1 }
0x16c5   : > { %20946 = vrot.lane.b32.xlu1 %v24388_v29, %s26952_s19 }
0x16ca   : > { %20931 = vrot.lane.b32.xlu0 %v24359_v30, %s26952_s19 }
0x16ce   : > { %20941 = vrot.lane.b32.xlu0 %v24381_v5, %s26952_s19 }
0x16d2   : > { %12248 = vrot.lane.b32.xlu0 %v24450_v51, %s26953_s1 }
0x16e9   : > { %11417 = vmax.xlane.f32.xlu1 %v11416_v3 }
0x1718   : > { %v11379_v53 = vpop.xlane.xlu1 %11378 }
0x1719   : > { %v11423_v63 = vsub.f32 %v24913_v57, %v11379_v53  ;;  %v11376_v34 = vpop.xlane.xlu0 %11375 }
0x171a   : > { %v11422_v0 = vsub.f32 %v24915_v9, %v11376_v34 }
0x171b   : > { %v11440_v8 = vmul.f32 1.442695, %v11423_v63 }
0x171c   : > { %v11438_v36 = vmul.f32 1.442695, %v11422_v0 }
0x171d   : > { %21474 = vpow2.f32 %v11440_v8 }
0x171e   : > { %21476 = vpow2.f32 %v11438_v36 }
0x1724   : > { %v11385_v40 = vpop.xlane.xlu1 %11384 }
0x1725   : > { %v11425_v3 = vsub.f32 %v24929_v41, %v11385_v40  ;;  %v11382_v6 = vpop.xlane.xlu0 %11381 }
0x1726   : > { %v11424_v7 = vsub.f32 %v24931_v19, %v11382_v6 }
0x1727   : > { %v25005_v60 = vpop.eup %21474  ;;  %v11444_v58 = vmul.f32 1.442695, %v11425_v3 }
0x1728   : > { %v25007_v22 = vpop.eup %21476  ;;  %v11442_v59 = vmul.f32 1.442695, %v11424_v7  ;;  %v11473_v53 = vsel %vm575_vm0, %v25005_v60, 0.0 }
0x1729   : > { %21478 = vpow2.f32 %v11444_v58  ;;  %v11391_v34 = vpop.xlane.xlu0 %11390  ;;  %11474 = vadd.xlane.f32.xlu0 %v11473_v53  ;;  %v11470_v36 = vsel %vm575_vm0, %v25007_v22, 0.0 }
0x172a   : > { %v11427_v40 = vsub.f32 %v24925_v18, %v11391_v34  ;;  %11471 = vadd.xlane.f32.xlu1 %v11470_v36  ;;  %21480 = vpow2.f32 %v11442_v59 }
0x172c   : > { %v11448_v6 = vmul.f32 1.442695, %v11427_v40  ;;  %v11397_v0 = vpop.xlane.xlu1 %11396 }
0x172d   : > { %v11429_v8 = vsub.f32 %v24943_v50, %v11397_v0  ;;  %v11388_v63 = vpop.xlane.xlu0 %11387 }
0x172e   : > { %21482 = vpow2.f32 %v11448_v6  ;;  %v11426_v7 = vsub.f32 %v24927_v28, %v11388_v63 }
0x172f   : > { %v11452_v57 = vmul.f32 1.442695, %v11429_v8 }
0x1730   : > { %v11446_v9 = vmul.f32 1.442695, %v11426_v7  ;;  %v11394_v58 = vpop.xlane.xlu1 %11393 }
0x1731   : > { %21484 = vpow2.f32 %v11452_v57  ;;  %v11428_v41 = vsub.f32 %v24945_v32, %v11394_v58  ;;  %v11403_v19 = vpop.xlane.xlu0 %11402 }
0x1732   : > { %21486 = vpow2.f32 %v11446_v9  ;;  %v11431_v18 = vsub.f32 %v24937_v52, %v11403_v19 }
0x1733   : > { %v25018_v3 = vpop.eup %21478  ;;  %v11450_v59 = vmul.f32 1.442695, %v11428_v41 }
0x1734   : > { %v11456_v53 = vmul.f32 1.442695, %v11431_v18  ;;  %v11479_v50 = vsel %vm575_vm0, %v25018_v3, 0.0  ;;  %v25022_v34 = vpop.eup %21480 }
0x1735   : > { %21488 = vpow2.f32 %v11450_v59  ;;  %v11400_v28 = vpop.xlane.xlu0 %11399  ;;  %v11406_v36 = vpop.xlane.xlu1 %11405  ;;  %11480 = vadd.xlane.f32.xlu1 %v11479_v50  ;;  %v11476_v8 = vsel %vm575_vm0, %v25022_v34, 0.0 }
0x1736   : > { %21490 = vpow2.f32 %v11456_v53  ;;  %v11430_v32 = vsub.f32 %v24939_v44, %v11400_v28  ;;  %v11432_v40 = vsub.f32 %v24961_v25, %v11406_v36 }
0x1738   : > { %v25026_v6 = vpop.eup %21482  ;;  %v11454_v52 = vmul.f32 1.442695, %v11430_v32  ;;  %v11458_v0 = vmul.f32 1.442695, %v11432_v40 }
0x1739   : > { %v11409_v63 = vpop.xlane.xlu0 %11408  ;;  %11477 = vadd.xlane.f32.xlu1 %v11476_v8  ;;  %v11485_v7 = vsel %vm575_vm0, %v25026_v6, 0.0 }
0x173a   : > { %21492 = vpow2.f32 %v11454_v52  ;;  %v11433_v57 = vsub.f32 %v24959_v27, %v11409_v63  ;;  %11486 = vadd.xlane.f32.xlu0 %v11485_v7  ;;  %v11412_v7 = vpop.xlane.xlu1 %11411 }
0x173b   : > { %v25033_v9 = vpop.eup %21484  ;;  %21494 = vpow2.f32 %v11458_v0 }
0x173c   : > { %v25035_v44 = vpop.eup %21486  ;;  %v11460_v25 = vmul.f32 1.442695, %v11433_v57  ;;  %v11491_v58 = vsel %vm575_vm0, %v25033_v9, 0.0 }
0x173d   : > { %v11415_v41 = vpop.xlane.xlu0 %11414  ;;  %11492 = vadd.xlane.f32.xlu1 %v11491_v58  ;;  %v11482_v19 = vsel %vm575_vm0, %v25035_v44, 0.0 }
0x173e   : > { %21496 = vpow2.f32 %v11460_v25  ;;  %v11435_v18 = vsub.f32 %v24951_v13, %v11415_v41  ;;  %11483 = vadd.xlane.f32.xlu0 %v11482_v19  ;;  %v25072_v57 = vpop.permute.xlu1 %20936  ;;  %v11434_v25 = vsub.f32 %v24953_v12, %v11412_v7 }
0x173f   : > { %v25042_v27 = vpop.eup %21488 }
0x1740   : > { %v25044_v59 = vpop.eup %21490  ;;  %v11464_v53 = vmul.f32 1.442695, %v11435_v18  ;;  %v11488_v50 = vsel %vm575_vm0, %v25042_v27, 0.0  ;;  %v11462_v19 = vmul.f32 1.442695, %v11434_v25 }
0x1741   : > { %11489 = vadd.xlane.f32.xlu1 %v11488_v50  ;;  %v11497_v28 = vsel %vm575_vm0, %v25044_v59, 0.0  ;;  %v11421_v41 = vpop.xlane.xlu0 %11420 }
0x1742   : > { %21498 = vpow2.f32 %v11464_v53  ;;  %11498 = vadd.xlane.f32.xlu0 %v11497_v28  ;;  %v25077_v58 = vpop.permute.xlu1 %12246  ;;  %v11437_v18 = vsub.f32 %v24971_v39, %v11421_v41 }
0x1743   : > { %21500 = vpow2.f32 %v11462_v19 }
0x1744   : > { %v25050_v36 = vpop.eup %21492  ;;  %v11468_v50 = vmul.f32 1.442695, %v11437_v18 }
0x1745   : > { %v25052_v32 = vpop.eup %21494  ;;  %v11494_v13 = vsel %vm575_vm0, %v25050_v36, 0.0  ;;  %v25123_v25 = vpop.permute.xlu0 %20931 }
0x1746   : > { %11495 = vadd.xlane.f32.xlu0 %v11494_v13  ;;  %v11500_v40 = vsel %vm575_vm0, %v25052_v32, 0.0  ;;  %v25084_v53 = vpop.permute.xlu1 %20946  ;;  %21502 = vpow2.f32 %v11468_v50 }
0x1747   : > { %11501 = vadd.xlane.f32.xlu1 %v11500_v40 }
0x1748   : > { %v25058_v52 = vpop.eup %21496 }
0x1749   : > { %v11503_v0 = vsel %vm575_vm0, %v25058_v52, 0.0  ;;  %v25129_v41 = vpop.permute.xlu0 %20941 }
0x174a   : > { %11504 = vadd.xlane.f32.xlu0 %v11503_v0 }
0x174c   : > { %v25062_v8 = vpop.eup %21498 }
0x174d   : > { %v11509_v63 = vsel %vm575_vm0, %v25062_v8, 0.0  ;;  %v25093_v39 = vpop.eup %21500  ;;  %v25133_v19 = vpop.permute.xlu0 %12248 }
0x174e   : > { %11510 = vadd.xlane.f32.xlu0 %v11509_v63  ;;  %v11506_v40 = vsel %vm575_vm0, %v25093_v39, 0.0 }
0x1750   : > { %v25099_v0 = vpop.eup %21502 }
0x1758   : > { %12339 = vrot.lane.b32.xlu1 %v24467_v33, %s26953_s1 }
0x175c   : > { %12428 = vrot.lane.b32.xlu1 %v24452_v54, %s26953_s1 }
0x1764   : > { %12337 = vrot.lane.b32.xlu0 %v24372_v14, %s26953_s1 }
0x1768   : > { %20951 = vrot.lane.b32.xlu0 %v24395_v37, %s26952_s19 }
0x176c   : > { %12430 = vrot.lane.b32.xlu0 %v24476_v35, %s26953_s1 }
0x1770   : > { %12519 = vrot.lane.b32.xlu0 %v24469_v56, %s26953_s1 }
0x1774   : > { %12610 = vrot.lane.b32.xlu0 %v24478_v31, %s26953_s1 }
0x1776   : > { %v11418_v12 = vpop.xlane.xlu1 %11417 }
0x1777   : > { %v11436_v28 = vsub.f32 %v24973_v62, %v11418_v12  ;;  %v11515_v62 = vsel %vm575_vm0, %v25099_v0, 0.0 }
0x1778   : > { %12612 = vrot.lane.b32.xlu0 %v24507_v46, %s26953_s1 }
0x1779   : > { %v11466_v13 = vmul.f32 1.442695, %v11436_v28 }
0x177b   : > { %21504 = vpow2.f32 %v11466_v13  ;;  %v20914_v13 = vunpack.i.h.bf16 %v24995_v26 }
0x177c   : > { %20966 = vrot.lane.b32.xlu0 %v24433_v45, %s26952_s19 }
0x1780   : > { %12792 = vrot.lane.b32.xlu0 %v24510_v4, %s26953_s1  ;;  %11507 = vadd.xlane.f32.xlu1 %v11506_v40  ;;  %v20913_v40 = vunpack.i.l.bf16 %v24995_v26 }
0x1782   : > { %v20212_v38 = vpack.c.bf16 %v20914_v13, %v20913_v40 }
0x1784   : > { %12883 = vrot.lane.b32.xlu0 %v24520_v2, %s26953_s1  ;;  %11516 = vadd.xlane.f32.xlu1 %v11515_v62 }
0x1785   : > { %v25105_v63 = vpop.eup %21504 }
0x1786   : > { %v11512_v7 = vsel %vm575_vm0, %v25105_v63, 0.0 }
0x1788   : > { %20971 = vrot.lane.b32.xlu0 %v24359_v30, %s26954_s20  ;;  %11513 = vadd.xlane.f32.xlu1 %v11512_v7 }
0x178c   : > { %20981 = vrot.lane.b32.xlu0 %v24381_v5, %s26954_s20 }
0x1790   : > { %20991 = vrot.lane.b32.xlu0 %v24395_v37, %s26954_s20 }
0x1794   : > { %21001 = vrot.lane.b32.xlu0 %v24415_v48, %s26954_s20 }
0x1799   : > { %20956 = vrot.lane.b32.xlu1 %v24405_v61, %s26952_s19 }
0x179d   : > { %12521 = vrot.lane.b32.xlu1 %v24493_v42, %s26953_s1 }
0x17a1   : > { %20961 = vrot.lane.b32.xlu1 %v24415_v48, %s26952_s19 }
0x17a5   : > { %12701 = vrot.lane.b32.xlu1 %v24496_v20, %s26953_s1 }
0x17a9   : > { %12703 = vrot.lane.b32.xlu1 %v24517_v43, %s26953_s1 }
0x17ad   : > { %12794 = vrot.lane.b32.xlu1 %v24531_v15, %s26953_s1 }
0x17b1   : > { %12885 = vrot.lane.b32.xlu1 %v24543_v1, %s26953_s1 }
0x17b5   : > { %20976 = vrot.lane.b32.xlu1 %v24370_v17, %s26954_s20 }
0x17b6   : > { %v11475_v18 = vpop.xlane.xlu0 %11474 }
0x17b7   : > { %21506 = vrcp.f32 %v11475_v18  ;;  %v11472_v50 = vpop.xlane.xlu1 %11471 }
0x17b8   : > { %21508 = vrcp.f32 %v11472_v50 }
0x17b9   : > { %20986 = vrot.lane.b32.xlu1 %v24388_v29, %s26954_s20 }
0x17bd   : > { %20996 = vrot.lane.b32.xlu1 %v24405_v61, %s26954_s20 }
0x17c1   : > { %v21507_v12 = vpop.eup %21506  ;;  %21006 = vrot.lane.b32.xlu1 %v24433_v45, %s26954_s20 }
0x17c2   : > { %v21509_v28 = vpop.eup %21508  ;;  %v11481_v62 = vpop.xlane.xlu1 %11480  ;;  %v11535_v18 = vmul.f32 %v21507_v12, %v25005_v60 }
0x17c3   : > { %v11534_v7 = vmul.f32 %v21509_v28, %v25007_v22  ;;  %21510 = vrcp.f32 %v11481_v62  ;;  %v20919_v62 = vunpack.i.h.bf16 %v24993_v47 }
0x17c5   : > { %19284 = vmatprep.mubr.msk.f32.mxu1 %vm575_vm0, %v11534_v7  ;;  %v20918_v7 = vunpack.i.l.bf16 %v24993_v47 }
0x17c6   : > { %19285 = vmatmul.mubr.msk.f32.vlgmr.msra.gmra.mrb[134].mxu1 %vm575_vm0, %v11535_v18  ;;  %v11478_v50 = vpop.xlane.xlu1 %11477 }
0x17c7   : > { %20207 = vmatpush3.bf16.msra.mxu1 %v24874_v24  ;;  %21512 = vrcp.f32 %v11478_v50  ;;  %v11487_v10 = vpop.xlane.xlu0 %11486  ;;  %v20216_v18 = vpack.c.bf16 %v20919_v62, %v20918_v7  ;;  %v20928_v62 = vunpack.i.l.bf16 %v24997_v11 }
0x17c8   : > { %20213 = vmatprep.subr.bf16.mxu1 %v20212_v38  ;;  %21514 = vrcp.f32 %v11487_v10 }
0x17ca   : > { %v11493_v26 = vpop.xlane.xlu1 %11492 }
0x17cb   : > { %v11484_v16 = vpop.xlane.xlu0 %11483 }
0x17cc   : > { %21516 = vrcp.f32 %v11484_v16 }
0x17cd   : > { %21518 = vrcp.f32 %v11493_v26  ;;  %v21511_v12 = vpop.eup %21510  ;;  %v20924_v26 = vunpack.i.h.bf16 %v24999_v21 }
0x17ce   : > { %v11490_v22 = vpop.xlane.xlu1 %11489  ;;  %v11537_v40 = vmul.f32 %v21511_v12, %v25018_v3 }
0x17cf   : > { %21520 = vrcp.f32 %v11490_v22  ;;  %v11499_v60 = vpop.xlane.xlu0 %11498  ;;  %v20923_v22 = vunpack.i.l.bf16 %v24999_v21 }
0x17d0   : > { %21522 = vrcp.f32 %v11499_v60 }
0x17d1   : > { %v21513_v28 = vpop.eup %21512  ;;  %v20220_v21 = vpack.c.bf16 %v20924_v26, %v20923_v22 }
0x17d2   : > { %v11536_v13 = vmul.f32 %v21513_v28, %v25022_v34  ;;  %v21515_v16 = vpop.eup %21514  ;;  %v20929_v28 = vunpack.i.h.bf16 %v24997_v11  ;;  %v20934_v11 = vunpack.i.h.bf16 %v25123_v25 }
0x17d3   : > { %v11496_v24 = vpop.xlane.xlu0 %11495  ;;  %v11539_v60 = vmul.f32 %v21515_v16, %v25026_v6  ;;  %v20938_v16 = vunpack.i.l.bf16 %v25072_v57 }
0x17d4   : > { %21524 = vrcp.f32 %v11496_v24  ;;  %19291 = vmatprep.mubr.msk.f32.mxu0 %vm575_vm0, %v11536_v13  ;;  %v11502_v10 = vpop.xlane.xlu1 %11501  ;;  %v20224_v6 = vpack.c.bf16 %v20929_v28, %v20928_v62  ;;  %v20933_v24 = vunpack.i.l.bf16 %v25123_v25 }
0x17d5   : > { %19292 = vmatmul.mubr.msk.f32.vlgmr.msra.gmra.mrb[138].mxu0 %vm575_vm0, %v11537_v40  ;;  %21526 = vrcp.f32 %v11502_v10 }
0x17d6   : > { %v21517_v50 = vpop.eup %21516  ;;  %20211 = vmatpush3.bf16.msra.mxu0 %v24882_v49  ;;  %v20228_v26 = vpack.c.bf16 %v20934_v11, %v20933_v24 }
0x17d7   : > { %20217 = vmatprep.subr.bf16.mxu0 %v20216_v18  ;;  %v11505_v47 = vpop.xlane.xlu0 %11504  ;;  %v11538_v3 = vmul.f32 %v21517_v50, %v25035_v44  ;;  %v21519_v34 = vpop.eup %21518 }
0x17d8   : > { %21528 = vrcp.f32 %v11505_v47  ;;  %v11541_v7 = vmul.f32 %v21519_v34, %v25033_v9  ;;  %v20939_v9 = vunpack.i.h.bf16 %v25072_v57 }
0x17d9   : > { %v21521_v12 = vpop.eup %21520  ;;  %19298 = vmatprep.mubr.msk.f32.mxu1 %vm575_vm0, %v11538_v3 }
0x17da   : > { %19299 = vmatmul.mubr.msk.f32.vlgmr.msra.gmra.mrb[136].mxu1 %vm575_vm0, %v11539_v60  ;;  %v11540_v49 = vmul.f32 %v21521_v12, %v25042_v27  ;;  %v21523_v44 = vpop.eup %21522 }
0x17db   : > { %20215 = vmatpush3.bf16.msra.mxu1 %v20212_v38  ;;  %v11543_v38 = vmul.f32 %v21523_v44, %v25044_v59  ;;  %v20234_v59 = vpack.c.bf16 %v20939_v9, %v20938_v16 }
0x17dc   : > { %20221 = vmatprep.subr.bf16.mxu1 %v20220_v21  ;;  %19305 = vmatprep.mubr.msk.f32.mxu0 %vm575_vm0, %v11540_v49  ;;  %v20944_v49 = vunpack.i.h.bf16 %v25129_v41 }
0x17dd   : > { %19306 = vmatmul.mubr.msk.f32.vlgmr.msra.gmra.mrb[140].mxu0 %vm575_vm0, %v11541_v7  ;;  %v20943_v7 = vunpack.i.l.bf16 %v25129_v41 }
0x17de   : > { %v21525_v13 = vpop.eup %21524  ;;  %20219 = vmatpush3.bf16.msra.mxu0 %v20216_v18  ;;  %v12340_v18 = vpop.permute.xlu1 %12339 }
0x17df   : > { %20225 = vmatprep.subr.bf16.mxu0 %v20224_v6  ;;  %v11542_v40 = vmul.f32 %v21525_v13, %v25050_v36  ;;  %v21527_v27 = vpop.eup %21526  ;;  %v20240_v11 = vpack.c.bf16 %v20944_v49, %v20943_v7 }
0x17e0   : > { %v11544_v10 = vmul.f32 %v21527_v27, %v25052_v32  ;;  %v11511_v32 = vpop.xlane.xlu0 %11510  ;;  %v20948_v27 = vunpack.i.l.bf16 %v25084_v53 }
0x17e1   : > { %19312 = vmatprep.mubr.msk.f32.mxu1 %vm575_vm0, %v11542_v40  ;;  %21530 = vrcp.f32 %v11511_v32 }
0x17e2   : > { %v21529_v50 = vpop.eup %21528  ;;  %19313 = vmatmul.mubr.msk.f32.vlgmr.msra.gmra.mrb[138].mxu1 %vm575_vm0, %v11543_v38  ;;  %19319 = vmatprep.mubr.msk.f32.mxu0 %vm575_vm0, %v11544_v10  ;;  %v12429_v47 = vpop.permute.xlu1 %12428 }
0x17e3   : > { %20223 = vmatpush3.bf16.msra.mxu1 %v20220_v21  ;;  %v11545_v36 = vmul.f32 %v21529_v50, %v25058_v52 }
0x17e4   : > { %20230 = vmatprep.subr.msk.bf16.mxu1 %vm22080_vm3, %v20228_v26  ;;  %v12338_v57 = vpop.permute.xlu0 %12337 }
0x17e5   : > { %19320 = vmatmul.mubr.msk.f32.vlgmr.msra.gmra.mrb[142].mxu0 %vm575_vm0, %v11545_v36 }
0x17e6   : > { %20227 = vmatpush3.bf16.msra.mxu0 %v20224_v6 }
0x17e7   : > { %20236 = vmatprep.subr.msk.bf16.mxu0 %vm22080_vm3, %v20234_v59 }
0x17e8   : > { %v20952_v25 = vpop.permute.xlu0 %20951 }
0x17e9   : > { %v20954_v38 = vunpack.i.h.bf16 %v20952_v25  ;;  %v20953_v9 = vunpack.i.l.bf16 %v20952_v25 }
0x17eb   : > { %v21531_v28 = vpop.eup %21530  ;;  %v20252_v36 = vpack.c.bf16 %v20954_v38, %v20953_v9 }
0x17ec   : > { %v12431_v22 = vpop.permute.xlu0 %12430  ;;  %v11547_v13 = vmul.f32 %v21531_v28, %v25062_v8  ;;  %v20949_v8 = vunpack.i.h.bf16 %v25084_v53 }
0x17f0   : > { %v12520_v3 = vpop.permute.xlu0 %12519 }
0x17f4   : > { %v12611_v52 = vpop.permute.xlu0 %12610 }
0x17f8   : > { %v12613_v62 = vpop.permute.xlu0 %12612 }
0x17fc   : > { %v20967_v24 = vpop.permute.xlu0 %20966 }
0x180d   : > { %v11508_v34 = vpop.xlane.xlu1 %11507 }
0x180e   : > { %21532 = vrcp.f32 %v11508_v34 }
0x1811   : > { %v11517_v60 = vpop.xlane.xlu1 %11516 }
0x1812   : > { %21534 = vrcp.f32 %v11517_v60 }
0x1815   : > { %v11514_v12 = vpop.xlane.xlu1 %11513 }
0x1816   : > { %21536 = vrcp.f32 %v11514_v12 }
0x1818   : > { %v21533_v21 = vpop.eup %21532 }
0x1819   : > { %v20957_v44 = vpop.permute.xlu1 %20956  ;;  %v11546_v6 = vmul.f32 %v21533_v21, %v25093_v39 }
0x181b   : > { %19326 = vmatprep.mubr.msk.f32.mxu1 %vm575_vm0, %v11546_v6 }
0x181c   : > { %19327 = vmatmul.mubr.msk.f32.vlgmr.msra.gmra.mrb[140].mxu1 %vm575_vm0, %v11547_v13  ;;  %v21535_v41 = vpop.eup %21534 }
0x181d   : > { %20233 = vmatpush3.bf16.xpose.msk.msra.mxu1 %vm22080_vm3, %v20228_v26  ;;  %19340 = vmatprep.mubr.msk.f32.mxu1 %vm1014_vm2, %v25077_v58  ;;  %v12522_v40 = vpop.permute.xlu1 %12521  ;;  %v11549_v50 = vmul.f32 %v21535_v41, %v25099_v0  ;;  %v12793_v26 = vpop.permute.xlu0 %12792  ;;  %v20246_v58 = vpack.c.bf16 %v20949_v8, %v20948_v27 }
0x181e   : > { %20242 = vmatprep.subr.msk.bf16.mxu1 %vm22080_vm3, %v20240_v11 }
0x1820   : > { %v21537_v39 = vpop.eup %21536 }
0x1821   : > { %v20962_v16 = vpop.permute.xlu1 %20961  ;;  %v11548_v10 = vmul.f32 %v21537_v39, %v25105_v63  ;;  %v12884_v0 = vpop.permute.xlu0 %12883  ;;  %v20959_v63 = vunpack.i.h.bf16 %v20957_v44 }
0x1822   : > { %v20964_v32 = vunpack.i.h.bf16 %v20962_v16  ;;  %v20963_v25 = vunpack.i.l.bf16 %v20962_v16 }
0x1823   : > { %19333 = vmatprep.mubr.msk.f32.mxu0 %vm575_vm0, %v11548_v10 }
0x1824   : > { %19341 = vmatmul.mubr.msk.f32.vlgmr.msra.gmra.mrb[142].mxu1 %vm1014_vm2, %v25133_v19  ;;  %19334 = vmatmul.mubr.msk.f32.vlgmr.msra.gmra.mrb[144].mxu0 %vm575_vm0, %v11549_v50  ;;  %v20958_v19 = vunpack.i.l.bf16 %v20957_v44 }
0x1825   : > { %20239 = vmatpush3.bf16.xpose.msk.msra.mxu0 %vm22080_vm3, %v20234_v59  ;;  %20245 = vmatpush3.bf16.xpose.msk.msra.mxu1 %vm22080_vm3, %v20240_v11  ;;  %v12702_v53 = vpop.permute.xlu1 %12701  ;;  %v20972_v60 = vpop.permute.xlu0 %20971 }
0x1826   : > { %19354 = vmatprep.mubr.msk.f32.mxu1 %vm1014_vm2, %v12429_v47  ;;  %19347 = vmatprep.mubr.msk.f32.mxu0 %vm1014_vm2, %v12338_v57  ;;  %v20258_v34 = vpack.c.bf16 %v20959_v63, %v20958_v19  ;;  %v20264_v47 = vpack.c.bf16 %v20964_v32, %v20963_v25  ;;  %v20974_v28 = vunpack.i.h.bf16 %v20972_v60  ;;  %v20973_v21 = vunpack.i.l.bf16 %v20972_v60 }
0x1827   : > { %20248 = vmatprep.subr.msk.bf16.mxu0 %vm22080_vm3, %v20246_v58  ;;  %20254 = vmatprep.subr.msk.bf16.mxu1 %vm22080_vm3, %v20252_v36 }
0x1828   : > { %v20276_v7 = vpack.c.bf16 %v20974_v28, %v20973_v21 }
0x1829   : > { %v12704_v59 = vpop.permute.xlu1 %12703 }
0x182c   : > { %19348 = vmatmul.mubr.msk.f32.vlgmr.msra.gmra.mrb[146].mxu0 %vm1014_vm2, %v12340_v18  ;;  %19355 = vmatmul.mubr.msk.f32.vlgmr.msra.gmra.mrb[144].mxu1 %vm1014_vm2, %v12431_v22  ;;  %v20969_v18 = vunpack.i.h.bf16 %v20967_v24  ;;  %v20968_v22 = vunpack.i.l.bf16 %v20967_v24 }
0x182d   : > { %20251 = vmatpush3.bf16.xpose.msk.msra.mxu0 %vm22080_vm3, %v20246_v58  ;;  %19361 = vmatprep.mubr.msk.f32.mxu0 %vm1014_vm2, %v12520_v3  ;;  %v12795_v57 = vpop.permute.xlu1 %12794 }
0x182e   : > { %20257 = vmatpush3.bf16.xpose.msk.msra.mxu1 %vm22080_vm3, %v20252_v36  ;;  %19368 = vmatprep.mubr.msk.f32.mxu1 %vm1014_vm2, %v12611_v52  ;;  %v20270_v3 = vpack.c.bf16 %v20969_v18, %v20968_v22  ;;  %v20982_v52 = vpop.permute.xlu0 %20981 }
0x182f   : > { %20260 = vmatprep.subr.msk.bf16.mxu0 %vm22080_vm3, %v20258_v34  ;;  %20266 = vmatprep.subr.msk.bf16.mxu1 %vm22080_vm3, %v20264_v47  ;;  %v20984_v44 = vunpack.i.h.bf16 %v20982_v52  ;;  %v20983_v6 = vunpack.i.l.bf16 %v20982_v52 }
0x1831   : > { %v12886_v12 = vpop.permute.xlu1 %12885 }
0x1834   : > { %19362 = vmatmul.mubr.msk.f32.vlgmr.msra.gmra.mrb[148].mxu0 %vm1014_vm2, %v12522_v40  ;;  %v25243_v40 = vpack.c.bf16 %v20984_v44, %v20983_v6 }
0x1835   : > { %19369 = vmatmul.mubr.msk.f32.vlgmr.msra.gmra.mrb[146].mxu1 %vm1014_vm2, %v12613_v62  ;;  %20263 = vmatpush3.bf16.xpose.msk.msra.mxu0 %vm22080_vm3, %v20258_v34  ;;  %v20977_v49 = vpop.permute.xlu1 %20976 }
0x1836   : > { %19375 = vmatprep.mubr.msk.f32.mxu0 %vm1014_vm2, %v12702_v53  ;;  %20269 = vmatpush3.bf16.xpose.msk.msra.mxu1 %vm22080_vm3, %v20264_v47  ;;  %v20979_v62 = vunpack.i.h.bf16 %v20977_v49  ;;  %v20978_v13 = vunpack.i.l.bf16 %v20977_v49 }
0x1837   : > { %19382 = vmatprep.mubr.msk.f32.mxu1 %vm1014_vm2, %v12793_v26  ;;  %20272 = vmatprep.subr.msk.bf16.mxu0 %vm22080_vm3, %v20270_v3 }
0x1838   : > { %20277 = vmatprep.subr.bf16.mxu1 %v20276_v7  ;;  %v20280_v24 = vpack.c.bf16 %v20979_v62, %v20978_v13 }
0x1839   : > { %v20987_v11 = vpop.permute.xlu1 %20986 }
0x183a   : > { %v20989_v41 = vunpack.i.h.bf16 %v20987_v11  ;;  %v20988_v39 = vunpack.i.l.bf16 %v20987_v11 }
0x183c   : > { %19376 = vmatmul.mubr.msk.f32.vlgmr.msra.gmra.mrb[150].mxu0 %vm1014_vm2, %v12704_v59  ;;  %v25248_v8 = vpack.c.bf16 %v20989_v41, %v20988_v39 }
0x183d   : > { %19383 = vmatmul.mubr.msk.f32.vlgmr.msra.gmra.mrb[148].mxu1 %vm1014_vm2, %v12795_v57  ;;  %20275 = vmatpush3.bf16.xpose.msk.msra.mxu0 %vm22080_vm3, %v20270_v3 }
0x183e   : > { %19389 = vmatprep.mubr.msk.f32.mxu0 %vm1014_vm2, %v12884_v0  ;;  %20279 = vmatpush3.bf16.msra.mxu1 %v20276_v7 }
0x183f   : > { %20281 = vmatprep.subr.bf16.mxu0 %v20280_v24  ;;  %20285 = vmatprep.subr.bf16.mxu1 %v25243_v40 }
0x1844   : > { %19390 = vmatmul.mubr.msk.f32.vlgmr.msra.gmra.mrb[152].mxu0 %vm1014_vm2, %v12886_v12 }
0x1845   : > { %20283 = vmatpush3.bf16.msra.mxu0 %v20280_v24 }
0x1846   : > { %20289 = vmatprep.subr.bf16.mxu0 %v25248_v8 }
0x1899   : > { %v25251_v27 = vpop.f32.mrb[134].mxu1 }
0x189a   : > { %26955 = vst [vmem:[#allocation7_spill] sm:$0xff] %v25251_v27  ;;  %v25253_v38 = vpop.f32.mrb[135].mxu1 }
0x18a8   : > { %v25255_v9 = vpop.f32.mrb[138].mxu0 }
0x18a9   : > { %26956 = vst [vmem:[#allocation9_spill] sm:$0xff] %v25255_v9  ;;  %v25257_v16 = vpop.f32.mrb[139].mxu0 }
0x18ad   : > { %v25259_v10 = vpop.f32.mrb[136].mxu1 }
0x18ae   : > { %26957 = vst [vmem:[#allocation8_spill] sm:$0xff] %v25259_v10  ;;  %v25261_v50 = vpop.f32.mrb[137].mxu1 }
0x18b0   : > { %v25263_v26 = vpop.f32.mrb[140].mxu0 }
0x18b1   : > { %26958 = vst [vmem:[#allocation11_spill] sm:$0xff] %v25263_v26  ;;  %v25265_v58 = vpop.f32.mrb[141].mxu0 }
0x18b5   : > { %v25267_v36 = vpop.f32.mrb[138].mxu1 }
0x18b6   : > { %26959 = vst [vmem:[#allocation10_spill] sm:$0xff] %v25267_v36  ;;  %v25269_v53 = vpop.f32.mrb[139].mxu1 }
0x18b8   : > { %v25271_v0 = vpop.f32.mrb[142].mxu0 }
0x18b9   : > { %26960 = vst [vmem:[#allocation13_spill] sm:$0xff] %v25271_v0  ;;  %v25273_v63 = vpop.f32.mrb[143].mxu0 }
0x18ba   : > { %26961 = vst [vmem:[#allocation12_spill] sm:$0xff] %v25273_v63 }
0x18ef   : > { %v25275_v19 = vpop.f32.mrb[140].mxu1 }
0x18f0   : > { %26962 = vst [vmem:[#allocation15_spill] sm:$0xff] %v25275_v19  ;;  %v25277_v32 = vpop.f32.mrb[141].mxu1 }
0x18f1   : > { %26963 = vst [vmem:[#allocation14_spill] sm:$0xff] %v25277_v32 }
0x18f7   : > { %v25279_v25 = vpop.f32.mrb[142].mxu1  ;;  %v25281_v59 = vpop.f32.mrb[144].mxu0 }
0x18f8   : > { %26964 = vst [vmem:[#allocation16_spill] sm:$0xff] %v25281_v59  ;;  %v25283_v34 = vpop.f32.mrb[143].mxu1  ;;  %v12977_v47 = vsel %vm575_vm0, %v25279_v25, -inf  ;;  %v25287_v57 = vpop.f32.mrb[145].mxu0 }
0x18f9   : > { %26965 = vst [vmem:[#allocation17_spill] sm:$0xff] %v25287_v57  ;;  %12978 = vmax.xlane.f32.xlu1 %v12977_v47  ;;  %v12974_v60 = vsel %vm575_vm0, %v25283_v34, -inf }
0x18fa   : > { %12975 = vmax.xlane.f32.xlu0 %v12974_v60 }
0x18ff   : > { %v25291_v18 = vpop.f32.mrb[146].mxu0  ;;  %v25293_v22 = vpop.f32.mrb[144].mxu1 }
0x1900   : > { %v25295_v12 = vpop.f32.mrb[147].mxu0  ;;  %v25297_v28 = vpop.f32.mrb[145].mxu1  ;;  %v12983_v21 = vsel %vm575_vm0, %v25291_v18, -inf  ;;  %v12989_v52 = vsel %vm575_vm0, %v25293_v22, -inf }
0x1901   : > { %12984 = vmax.xlane.f32.xlu1 %v12983_v21  ;;  %v12980_v3 = vsel %vm575_vm0, %v25295_v12, -inf  ;;  %v12986_v13 = vsel %vm575_vm0, %v25297_v28, -inf }
0x1902   : > { %12981 = vmax.xlane.f32.xlu0 %v12980_v3 }
0x1906   : > { %12990 = vmax.xlane.f32.xlu0 %v12989_v52 }
0x1907   : > { %v25305_v49 = vpop.f32.mrb[148].mxu0 }
0x1908   : > { %v25307_v7 = vpop.f32.mrb[146].mxu1  ;;  %v25309_v44 = vpop.f32.mrb[149].mxu0  ;;  %v12995_v6 = vsel %vm575_vm0, %v25305_v49, -inf }
0x1909   : > { %v25313_v62 = vpop.f32.mrb[147].mxu1  ;;  %12996 = vmax.xlane.f32.xlu1 %v12995_v6  ;;  %v12992_v11 = vsel %vm575_vm0, %v25309_v44, -inf  ;;  %v13001_v24 = vsel %vm575_vm0, %v25307_v7, -inf }
0x190a   : > { %12987 = vmax.xlane.f32.xlu0 %v12986_v13  ;;  %v12998_v21 = vsel %vm575_vm0, %v25313_v62, -inf }
0x190d   : > { %12993 = vmax.xlane.f32.xlu1 %v12992_v11 }
0x190e   : > { %13002 = vmax.xlane.f32.xlu0 %v13001_v24 }
0x190f   : > { %v25321_v41 = vpop.f32.mrb[150].mxu0 }
0x1910   : > { %v25323_v39 = vpop.f32.mrb[148].mxu1  ;;  %v25325_v47 = vpop.f32.mrb[151].mxu0  ;;  %v13007_v52 = vsel %vm575_vm0, %v25321_v41, -inf }
0x1911   : > { %v25327_v60 = vpop.f32.mrb[149].mxu1  ;;  %v13004_v3 = vsel %vm575_vm0, %v25325_v47, -inf  ;;  %v13013_v24 = vsel %vm575_vm0, %v25323_v39, -inf }
0x1912   : > { %12999 = vmax.xlane.f32.xlu0 %v12998_v21  ;;  %13005 = vmax.xlane.f32.xlu1 %v13004_v3  ;;  %v13010_v6 = vsel %vm575_vm0, %v25327_v60, -inf }
0x1916   : > { %13008 = vmax.xlane.f32.xlu0 %v13007_v52  ;;  %13011 = vmax.xlane.f32.xlu1 %v13010_v6  ;;  %v25359_v52 = vpop.permute.xlu1 %20996  ;;  %v25361_v6 = vpop.permute.xlu0 %20991 }
0x1917   : > { %v25337_v13 = vpop.f32.mrb[152].mxu0 }
0x1918   : > { %v25339_v11 = vpop.f32.mrb[153].mxu0  ;;  %v13019_v21 = vsel %vm575_vm0, %v25337_v13, -inf }
0x1919   : > { %v13016_v3 = vsel %vm575_vm0, %v25339_v11, -inf }
0x191a   : > { %13014 = vmax.xlane.f32.xlu0 %v13013_v24  ;;  %v25365_v24 = vpop.permute.xlu0 %21001 }
0x191e   : > { %13020 = vmax.xlane.f32.xlu0 %v13019_v21 }
0x1927   : > { %21016 = vrot.lane.b32.xlu1 %v24370_v17, %s26966_s29 }
0x192b   : > { %13846 = vrot.lane.b32.xlu1 %v24361_v23, %s26967_s23  ;;  %v25363_v23 = vpop.permute.xlu1 %21006 }
0x192f   : > { %21026 = vrot.lane.b32.xlu1 %v24388_v29, %s26966_s29 }
0x1934   : > { %21011 = vrot.lane.b32.xlu0 %v24359_v30, %s26966_s29 }
0x1938   : > { %21021 = vrot.lane.b32.xlu0 %v24381_v5, %s26966_s29 }
0x193c   : > { %13848 = vrot.lane.b32.xlu0 %v24450_v51, %s26967_s23 }
0x1953   : > { %13017 = vmax.xlane.f32.xlu1 %v13016_v3 }
0x1986   : > { %v12979_v21 = vpop.xlane.xlu1 %12978 }
0x1987   : > { %v13023_v59 = vsub.f32 %v25279_v25, %v12979_v21  ;;  %v12976_v19 = vpop.xlane.xlu0 %12975 }
0x1988   : > { %v13022_v0 = vsub.f32 %v25283_v34, %v12976_v19 }
0x1989   : > { %v13040_v36 = vmul.f32 1.442695, %v13023_v59 }
0x198a   : > { %v13038_v51 = vmul.f32 1.442695, %v13022_v0 }
0x198b   : > { %21538 = vpow2.f32 %v13040_v36 }
0x198c   : > { %21540 = vpow2.f32 %v13038_v51 }
0x198e   : > { %v12985_v26 = vpop.xlane.xlu1 %12984 }
0x198f   : > { %v13025_v3 = vsub.f32 %v25291_v18, %v12985_v26  ;;  %v12982_v10 = vpop.xlane.xlu0 %12981 }
0x1990   : > { %v13024_v57 = vsub.f32 %v25295_v12, %v12982_v10 }
0x1991   : > { %v13044_v9 = vmul.f32 1.442695, %v13025_v3 }
0x1992   : > { %v13042_v32 = vmul.f32 1.442695, %v13024_v57 }
0x1993   : > { %21542 = vpow2.f32 %v13044_v9  ;;  %v12991_v27 = vpop.xlane.xlu0 %12990 }
0x1994   : > { %v13027_v63 = vsub.f32 %v25293_v22, %v12991_v27  ;;  %21544 = vpow2.f32 %v13042_v32 }
0x1995   : > { %v25372_v25 = vpop.eup %21538 }
0x1996   : > { %v25374_v19 = vpop.eup %21540  ;;  %v13048_v0 = vmul.f32 1.442695, %v13027_v63  ;;  %v12997_v36 = vpop.xlane.xlu1 %12996  ;;  %v13073_v59 = vsel %vm575_vm0, %v25372_v25, 0.0 }
0x1997   : > { %v13029_v26 = vsub.f32 %v25305_v49, %v12997_v36  ;;  %v12988_v34 = vpop.xlane.xlu0 %12987  ;;  %13074 = vadd.xlane.f32.xlu0 %v13073_v59  ;;  %v13070_v9 = vsel %vm575_vm0, %v25374_v19, 0.0 }
0x1998   : > { %21546 = vpow2.f32 %v13048_v0  ;;  %v13026_v27 = vsub.f32 %v25297_v28, %v12988_v34  ;;  %13071 = vadd.xlane.f32.xlu1 %v13070_v9 }
0x1999   : > { %v13052_v10 = vmul.f32 1.442695, %v13029_v26 }
0x199a   : > { %v13046_v32 = vmul.f32 1.442695, %v13026_v27  ;;  %v12994_v57 = vpop.xlane.xlu1 %12993 }
0x199b   : > { %21548 = vpow2.f32 %v13052_v10  ;;  %v13028_v63 = vsub.f32 %v25309_v44, %v12994_v57  ;;  %v13003_v18 = vpop.xlane.xlu0 %13002 }
0x199c   : > { %21550 = vpow2.f32 %v13046_v32  ;;  %v13031_v22 = vsub.f32 %v25307_v7, %v13003_v18 }
0x199d   : > { %v25384_v12 = vpop.eup %21542  ;;  %v13050_v49 = vmul.f32 1.442695, %v13028_v63 }
0x199e   : > { %v13056_v21 = vmul.f32 1.442695, %v13031_v22  ;;  %v13079_v51 = vsel %vm575_vm0, %v25384_v12, 0.0  ;;  %v25388_v3 = vpop.eup %21544 }
0x199f   : > { %21552 = vpow2.f32 %v13050_v49  ;;  %v13000_v28 = vpop.xlane.xlu0 %12999  ;;  %v13006_v0 = vpop.xlane.xlu1 %13005  ;;  %13080 = vadd.xlane.f32.xlu1 %v13079_v51  ;;  %v13076_v34 = vsel %vm575_vm0, %v25388_v3, 0.0 }
0x19a0   : > { %21554 = vpow2.f32 %v13056_v21  ;;  %v13030_v44 = vsub.f32 %v25313_v62, %v13000_v28  ;;  %v13032_v36 = vsub.f32 %v25325_v47, %v13006_v0 }
0x19a2   : > { %v25392_v59 = vpop.eup %21546  ;;  %v13054_v7 = vmul.f32 1.442695, %v13030_v44  ;;  %v13058_v26 = vmul.f32 1.442695, %v13032_v36 }
0x19a3   : > { %v13009_v9 = vpop.xlane.xlu0 %13008  ;;  %13077 = vadd.xlane.f32.xlu1 %v13076_v34  ;;  %v13085_v27 = vsel %vm575_vm0, %v25392_v59, 0.0 }
0x19a4   : > { %21556 = vpow2.f32 %v13054_v7  ;;  %v13033_v10 = vsub.f32 %v25321_v41, %v13009_v9  ;;  %13086 = vadd.xlane.f32.xlu0 %v13085_v27  ;;  %v13012_v27 = vpop.xlane.xlu1 %13011 }
0x19a5   : > { %v25399_v32 = vpop.eup %21548  ;;  %21558 = vpow2.f32 %v13058_v26 }
0x19a6   : > { %v25401_v62 = vpop.eup %21550  ;;  %v13060_v47 = vmul.f32 1.442695, %v13033_v10  ;;  %v13091_v57 = vsel %vm575_vm0, %v25399_v32, 0.0 }
0x19a7   : > { %v13015_v63 = vpop.xlane.xlu0 %13014  ;;  %13092 = vadd.xlane.f32.xlu1 %v13091_v57  ;;  %v13082_v18 = vsel %vm575_vm0, %v25401_v62, 0.0 }
0x19a8   : > { %21560 = vpow2.f32 %v13060_v47  ;;  %v13035_v22 = vsub.f32 %v25323_v39, %v13015_v63  ;;  %13083 = vadd.xlane.f32.xlu0 %v13082_v18  ;;  %v25438_v10 = vpop.permute.xlu1 %21016  ;;  %v13034_v47 = vsub.f32 %v25327_v60, %v13012_v27 }
0x19a9   : > { %v25408_v41 = vpop.eup %21552 }
0x19aa   : > { %v25410_v49 = vpop.eup %21554  ;;  %v13064_v21 = vmul.f32 1.442695, %v13035_v22  ;;  %v13088_v51 = vsel %vm575_vm0, %v25408_v41, 0.0 }
0x19ab   : > { %13089 = vadd.xlane.f32.xlu1 %v13088_v51  ;;  %v13097_v28 = vsel %vm575_vm0, %v25410_v49, 0.0  ;;  %v13021_v63 = vpop.xlane.xlu0 %13020 }
0x19ac   : > { %21562 = vpow2.f32 %v13064_v21  ;;  %13098 = vadd.xlane.f32.xlu0 %v13097_v28  ;;  %v25443_v57 = vpop.permute.xlu1 %13846 }
0x19ae   : > { %v25416_v0 = vpop.eup %21556 }
0x19af   : > { %v25418_v44 = vpop.eup %21558  ;;  %v13094_v39 = vsel %vm575_vm0, %v25416_v0, 0.0 }
0x19b0   : > { %13095 = vadd.xlane.f32.xlu0 %v13094_v39  ;;  %v13100_v36 = vsel %vm575_vm0, %v25418_v44, 0.0 }
0x19b1   : > { %13101 = vadd.xlane.f32.xlu1 %v13100_v36  ;;  %v20994_v36 = vunpack.i.h.bf16 %v25361_v6 }
0x19b2   : > { %v25424_v7 = vpop.eup %21560 }
0x19b3   : > { %v13103_v26 = vsel %vm575_vm0, %v25424_v7, 0.0 }
0x19b4   : > { %13104 = vadd.xlane.f32.xlu0 %v13103_v26 }
0x19b6   : > { %v25428_v34 = vpop.eup %21562 }
0x19b7   : > { %v13109_v9 = vsel %vm575_vm0, %v25428_v34, 0.0 }
0x19b8   : > { %13110 = vadd.xlane.f32.xlu0 %v13109_v9 }
0x19c2   : > { %13939 = vrot.lane.b32.xlu1 %v24467_v33, %s26967_s23  ;;  %v13062_v33 = vmul.f32 1.442695, %v13034_v47 }
0x19c4   : > { %21564 = vpow2.f32 %v13062_v33 }
0x19c6   : > { %14028 = vrot.lane.b32.xlu1 %v24452_v54, %s26967_s23  ;;  %v13037_v54 = vsub.f32 %v25337_v13, %v13021_v63 }
0x19c8   : > { %v13068_v18 = vmul.f32 1.442695, %v13037_v54 }
0x19ca   : > { %21566 = vpow2.f32 %v13068_v18  ;;  %v20998_v18 = vunpack.i.l.bf16 %v25359_v52 }
0x19ce   : > { %13937 = vrot.lane.b32.xlu0 %v24372_v14, %s26967_s23  ;;  %v25450_v14 = vpop.permute.xlu1 %21026 }
0x19d2   : > { %21031 = vrot.lane.b32.xlu0 %v24395_v37, %s26966_s29 }
0x19d6   : > { %14030 = vrot.lane.b32.xlu0 %v24476_v35, %s26967_s23 }
0x19da   : > { %14119 = vrot.lane.b32.xlu0 %v24469_v56, %s26967_s23  ;;  %v25459_v56 = vpop.eup %21564 }
0x19db   : > { %v13106_v13 = vsel %vm575_vm0, %v25459_v56, 0.0  ;;  %v25465_v21 = vpop.eup %21566 }
0x19de   : > { %21041 = vrot.lane.b32.xlu0 %v24415_v48, %s26966_s29 }
0x19e0   : > { %v13018_v60 = vpop.xlane.xlu1 %13017 }
0x19e1   : > { %v13036_v22 = vsub.f32 %v25339_v11, %v13018_v60  ;;  %v13115_v11 = vsel %vm575_vm0, %v25465_v21, 0.0 }
0x19e2   : > { %14212 = vrot.lane.b32.xlu0 %v24507_v46, %s26967_s23 }
0x19e3   : > { %v13066_v35 = vmul.f32 1.442695, %v13036_v22 }
0x19e5   : > { %21568 = vpow2.f32 %v13066_v35 }
0x19e6   : > { %14301 = vrot.lane.b32.xlu0 %v24496_v20, %s26967_s23 }
0x19ea   : > { %14392 = vrot.lane.b32.xlu0 %v24510_v4, %s26967_s23  ;;  %13107 = vadd.xlane.f32.xlu1 %v13106_v13  ;;  %v25483_v4 = vpop.permute.xlu0 %21011 }
0x19ee   : > { %14483 = vrot.lane.b32.xlu0 %v24520_v2, %s26967_s23  ;;  %13116 = vadd.xlane.f32.xlu1 %v13115_v11  ;;  %v25489_v2 = vpop.permute.xlu0 %21021 }
0x19ef   : > { %v25471_v46 = vpop.eup %21568 }
0x19f0   : > { %v13112_v20 = vsel %vm575_vm0, %v25471_v46, 0.0 }
0x19f2   : > { %13113 = vadd.xlane.f32.xlu1 %v13112_v20 }
0x1a03   : > { %21036 = vrot.lane.b32.xlu1 %v24405_v61, %s26966_s29 }
0x1a07   : > { %14121 = vrot.lane.b32.xlu1 %v24493_v42, %s26967_s23  ;;  %v25493_v42 = vpop.permute.xlu0 %13848 }
0x1a0b   : > { %14210 = vrot.lane.b32.xlu1 %v24478_v31, %s26967_s23 }
0x1a0f   : > { %21046 = vrot.lane.b32.xlu1 %v24433_v45, %s26966_s29 }
0x1a13   : > { %14303 = vrot.lane.b32.xlu1 %v24517_v43, %s26967_s23 }
0x1a17   : > { %14394 = vrot.lane.b32.xlu1 %v24531_v15, %s26967_s23  ;;  %v20993_v15 = vunpack.i.l.bf16 %v25361_v6 }
0x1a19   : > { %v20292_v47 = vpack.c.bf16 %v20994_v36, %v20993_v15  ;;  %v21008_v36 = vunpack.i.l.bf16 %v25363_v23 }
0x1a1b   : > { %14485 = vrot.lane.b32.xlu1 %v24543_v1, %s26967_s23  ;;  %s26989_s23 = smov 24  }
0x1a1f   : > { %21051 = vrot.lane.b32.xlu1 %v24359_v30, %s26968_s21 }
0x1a24   : > { %v13075_v31 = vpop.xlane.xlu0 %13074 }
0x1a25   : > { %21570 = vrcp.f32 %v13075_v31  ;;  %v13072_v51 = vpop.xlane.xlu1 %13071  ;;  %v21004_v31 = vunpack.i.h.bf16 %v25365_v24 }
0x1a26   : > { %21572 = vrcp.f32 %v13072_v51  ;;  %v21003_v51 = vunpack.i.l.bf16 %v25365_v24 }
0x1a28   : > { %v20300_v24 = vpack.c.bf16 %v21004_v31, %v21003_v51 }
0x1a2c   : > { %v13081_v28 = vpop.xlane.xlu1 %13080 }
0x1a2d   : > { %21574 = vrcp.f32 %v13081_v28 }
0x1a2f   : > { %v21571_v39 = vpop.eup %21570 }
0x1a30   : > { %v21573_v43 = vpop.eup %21572  ;;  %v13078_v26 = vpop.xlane.xlu1 %13077  ;;  %v13135_v27 = vmul.f32 %v21571_v39, %v25372_v25  ;;  %v20999_v25 = vunpack.i.h.bf16 %v25359_v52 }
0x1a31   : > { %21576 = vrcp.f32 %v13078_v26  ;;  %v13087_v1 = vpop.xlane.xlu0 %13086  ;;  %v13134_v9 = vmul.f32 %v21573_v43, %v25374_v19  ;;  %v21009_v43 = vunpack.i.h.bf16 %v25363_v23  ;;  %v21014_v23 = vunpack.i.h.bf16 %v25483_v4 }
0x1a32   : > { %21578 = vrcp.f32 %v13087_v1  ;;  %v20296_v11 = vpack.c.bf16 %v20999_v25, %v20998_v18  ;;  %v21013_v1 = vunpack.i.l.bf16 %v25483_v4 }
0x1a33   : > { %19396 = vmatprep.mubr.msk.f32.mxu1 %vm575_vm0, %v13134_v9 }
0x1a34   : > { %19397 = vmatmul.mubr.msk.f32.vlgmr.msra.gmra.mrb[150].mxu1 %vm575_vm0, %v13135_v27  ;;  %v13093_v30 = vpop.xlane.xlu1 %13092 }
0x1a35   : > { %20287 = vmatpush3.bf16.msra.mxu1 %v25243_v40  ;;  %v13084_v63 = vpop.xlane.xlu0 %13083 }
0x1a36   : > { %21580 = vrcp.f32 %v13084_v63  ;;  %20293 = vmatprep.subr.bf16.mxu1 %v20292_v47 }
0x1a37   : > { %21582 = vrcp.f32 %v13093_v30  ;;  %v21575_v54 = vpop.eup %21574  ;;  %v21018_v30 = vunpack.i.l.bf16 %v25438_v10 }
0x1a38   : > { %v13090_v6 = vpop.xlane.xlu1 %13089  ;;  %v13137_v35 = vmul.f32 %v21575_v54, %v25384_v12 }
0x1a39   : > { %21584 = vrcp.f32 %v13090_v6  ;;  %v13099_v33 = vpop.xlane.xlu0 %13098  ;;  %v20308_v6 = vpack.c.bf16 %v21014_v23, %v21013_v1 }
0x1a3a   : > { %21586 = vrcp.f32 %v13099_v33 }
0x1a3b   : > { %v21577_v19 = vpop.eup %21576 }
0x1a3c   : > { %v13136_v60 = vmul.f32 %v21577_v19, %v25388_v3  ;;  %v21579_v40 = vpop.eup %21578 }
0x1a3d   : > { %v13096_v22 = vpop.xlane.xlu0 %13095  ;;  %v13139_v28 = vmul.f32 %v21579_v40, %v25392_v59  ;;  %v20304_v59 = vpack.c.bf16 %v21009_v43, %v21008_v36 }
0x1a3e   : > { %21588 = vrcp.f32 %v13096_v22  ;;  %19403 = vmatprep.mubr.msk.f32.mxu0 %vm575_vm0, %v13136_v60  ;;  %v13102_v13 = vpop.xlane.xlu1 %13101  ;;  %v21024_v22 = vunpack.i.h.bf16 %v25489_v2 }
0x1a3f   : > { %19404 = vmatmul.mubr.msk.f32.vlgmr.msra.gmra.mrb[154].mxu0 %vm575_vm0, %v13137_v35  ;;  %21590 = vrcp.f32 %v13102_v13  ;;  %v21023_v35 = vunpack.i.l.bf16 %v25489_v2 }
0x1a40   : > { %v21581_v20 = vpop.eup %21580  ;;  %20291 = vmatpush3.bf16.msra.mxu0 %v25248_v8 }
0x1a41   : > { %20297 = vmatprep.subr.bf16.mxu0 %v20296_v11  ;;  %v13105_v52 = vpop.xlane.xlu0 %13104  ;;  %v13138_v12 = vmul.f32 %v21581_v20, %v25401_v62  ;;  %v21583_v3 = vpop.eup %21582  ;;  %v20320_v31 = vpack.c.bf16 %v21024_v22, %v21023_v35 }
0x1a42   : > { %21592 = vrcp.f32 %v13105_v52  ;;  %v13141_v15 = vmul.f32 %v21583_v3, %v25399_v32  ;;  %v21019_v32 = vunpack.i.h.bf16 %v25438_v10 }
0x1a43   : > { %v21585_v39 = vpop.eup %21584  ;;  %19410 = vmatprep.mubr.msk.f32.mxu1 %vm575_vm0, %v13138_v12  ;;  %v21028_v12 = vunpack.i.l.bf16 %v25450_v14 }
0x1a44   : > { %19411 = vmatmul.mubr.msk.f32.vlgmr.msra.gmra.mrb[152].mxu1 %vm575_vm0, %v13139_v28  ;;  %v13140_v8 = vmul.f32 %v21585_v39, %v25408_v41  ;;  %v21587_v62 = vpop.eup %21586 }
0x1a45   : > { %20295 = vmatpush3.bf16.msra.mxu1 %v20292_v47  ;;  %v13143_v27 = vmul.f32 %v21587_v62, %v25410_v49  ;;  %v20314_v49 = vpack.c.bf16 %v21019_v32, %v21018_v30  ;;  %v13111_v10 = vpop.xlane.xlu0 %13110 }
0x1a46   : > { %20301 = vmatprep.subr.bf16.mxu1 %v20300_v24  ;;  %19417 = vmatprep.mubr.msk.f32.mxu0 %vm575_vm0, %v13140_v8  ;;  %21594 = vrcp.f32 %v13111_v10 }
0x1a47   : > { %19418 = vmatmul.mubr.msk.f32.vlgmr.msra.gmra.mrb[156].mxu0 %vm575_vm0, %v13141_v15 }
0x1a48   : > { %v21589_v26 = vpop.eup %21588  ;;  %20299 = vmatpush3.bf16.msra.mxu0 %v20296_v11 }
0x1a49   : > { %20305 = vmatprep.subr.bf16.mxu0 %v20304_v59  ;;  %v13142_v9 = vmul.f32 %v21589_v26, %v25416_v0  ;;  %v21591_v41 = vpop.eup %21590  ;;  %v13938_v33 = vpop.permute.xlu0 %13937 }
0x1a4a   : > { %v13144_v47 = vmul.f32 %v21591_v41, %v25418_v44  ;;  %v13940_v44 = vpop.permute.xlu1 %13939 }
0x1a4b   : > { %19424 = vmatprep.mubr.msk.f32.mxu1 %vm575_vm0, %v13142_v9 }
0x1a4c   : > { %v21593_v63 = vpop.eup %21592  ;;  %19425 = vmatmul.mubr.msk.f32.vlgmr.msra.gmra.mrb[154].mxu1 %vm575_vm0, %v13143_v27  ;;  %19431 = vmatprep.mubr.msk.f32.mxu0 %vm575_vm0, %v13144_v47 }
0x1a4d   : > { %20303 = vmatpush3.bf16.msra.mxu1 %v20300_v24  ;;  %v13145_v0 = vmul.f32 %v21593_v63, %v25424_v7  ;;  %v21032_v25 = vpop.permute.xlu0 %21031 }
0x1a4e   : > { %20310 = vmatprep.subr.msk.bf16.mxu1 %vm22080_vm3, %v20308_v6  ;;  %v14029_v4 = vpop.permute.xlu1 %14028  ;;  %v21034_v3 = vunpack.i.h.bf16 %v21032_v25  ;;  %v21033_v28 = vunpack.i.l.bf16 %v21032_v25 }
0x1a4f   : > { %19432 = vmatmul.mubr.msk.f32.vlgmr.msra.gmra.mrb[158].mxu0 %vm575_vm0, %v13145_v0 }
0x1a50   : > { %20307 = vmatpush3.bf16.msra.mxu0 %v20304_v59  ;;  %v21595_v18 = vpop.eup %21594  ;;  %v20332_v8 = vpack.c.bf16 %v21034_v3, %v21033_v28 }
0x1a51   : > { %20316 = vmatprep.subr.msk.bf16.mxu0 %vm22080_vm3, %v20314_v49  ;;  %v14031_v40 = vpop.permute.xlu0 %14030  ;;  %v13147_v20 = vmul.f32 %v21595_v18, %v25428_v34  ;;  %v21029_v34 = vunpack.i.h.bf16 %v25450_v14 }
0x1a53   : > { %v20326_v24 = vpack.c.bf16 %v21029_v34, %v21028_v12 }
0x1a55   : > { %v14120_v52 = vpop.permute.xlu0 %14119 }
0x1a77   : > { %v13108_v54 = vpop.xlane.xlu1 %13107 }
0x1a78   : > { %21596 = vrcp.f32 %v13108_v54 }
0x1a7b   : > { %v13117_v19 = vpop.xlane.xlu1 %13116 }
0x1a7c   : > { %21598 = vrcp.f32 %v13117_v19 }
0x1a7f   : > { %v13114_v7 = vpop.xlane.xlu1 %13113 }
0x1a80   : > { %21600 = vrcp.f32 %v13114_v7 }
0x1a82   : > { %v21597_v60 = vpop.eup %21596 }
0x1a83   : > { %v21037_v13 = vpop.permute.xlu1 %21036  ;;  %v13146_v11 = vmul.f32 %v21597_v60, %v25459_v56 }
0x1a84   : > { %v21038_v15 = vunpack.i.l.bf16 %v21037_v13 }
0x1a85   : > { %19438 = vmatprep.mubr.msk.f32.mxu1 %vm575_vm0, %v13146_v11 }
0x1a86   : > { %19439 = vmatmul.mubr.msk.f32.vlgmr.msra.gmra.mrb[156].mxu1 %vm575_vm0, %v13147_v20  ;;  %v21599_v2 = vpop.eup %21598 }
0x1a87   : > { %20313 = vmatpush3.bf16.xpose.msk.msra.mxu1 %vm22080_vm3, %v20308_v6  ;;  %19452 = vmatprep.mubr.msk.f32.mxu1 %vm1014_vm2, %v25443_v57  ;;  %v14122_v51 = vpop.permute.xlu1 %14121  ;;  %v13149_v36 = vmul.f32 %v21599_v2, %v25465_v21  ;;  %v21042_v57 = vpop.permute.xlu0 %21041 }
0x1a88   : > { %20322 = vmatprep.subr.msk.bf16.mxu1 %vm22080_vm3, %v20320_v31  ;;  %v21044_v21 = vunpack.i.h.bf16 %v21042_v57 }
0x1a8a   : > { %v21601_v56 = vpop.eup %21600 }
0x1a8b   : > { %v14211_v39 = vpop.permute.xlu1 %14210  ;;  %v13148_v43 = vmul.f32 %v21601_v56, %v25471_v46  ;;  %v21043_v46 = vunpack.i.l.bf16 %v21042_v57  ;;  %v14213_v59 = vpop.permute.xlu0 %14212 }
0x1a8d   : > { %19445 = vmatprep.mubr.msk.f32.mxu0 %vm575_vm0, %v13148_v43  ;;  %v20344_v26 = vpack.c.bf16 %v21044_v21, %v21043_v46 }
0x1a8e   : > { %19453 = vmatmul.mubr.msk.f32.vlgmr.msra.gmra.mrb[158].mxu1 %vm1014_vm2, %v25493_v42  ;;  %19446 = vmatmul.mubr.msk.f32.vlgmr.msra.gmra.mrb[160].mxu0 %vm575_vm0, %v13149_v36  ;;  %v21039_v42 = vunpack.i.h.bf16 %v21037_v13 }
0x1a8f   : > { %20319 = vmatpush3.bf16.xpose.msk.msra.mxu0 %vm22080_vm3, %v20314_v49  ;;  %20325 = vmatpush3.bf16.xpose.msk.msra.mxu1 %vm22080_vm3, %v20320_v31  ;;  %v21047_v14 = vpop.permute.xlu1 %21046  ;;  %v14302_v9 = vpop.permute.xlu0 %14301 }
0x1a90   : > { %19466 = vmatprep.mubr.msk.f32.mxu1 %vm1014_vm2, %v14029_v4  ;;  %19459 = vmatprep.mubr.msk.f32.mxu0 %vm1014_vm2, %v13938_v33  ;;  %v20338_v23 = vpack.c.bf16 %v21039_v42, %v21038_v15  ;;  %v21049_v41 = vunpack.i.h.bf16 %v21047_v14  ;;  %v21048_v27 = vunpack.i.l.bf16 %v21047_v14 }
0x1a91   : > { %20328 = vmatprep.subr.msk.bf16.mxu0 %vm22080_vm3, %v20326_v24  ;;  %20334 = vmatprep.subr.msk.bf16.mxu1 %vm22080_vm3, %v20332_v8 }
0x1a92   : > { %v20350_v30 = vpack.c.bf16 %v21049_v41, %v21048_v27 }
0x1a93   : > { %v14304_v62 = vpop.permute.xlu1 %14303  ;;  %v14393_v63 = vpop.permute.xlu0 %14392 }
0x1a96   : > { %19460 = vmatmul.mubr.msk.f32.vlgmr.msra.gmra.mrb[162].mxu0 %vm1014_vm2, %v13940_v44  ;;  %19467 = vmatmul.mubr.msk.f32.vlgmr.msra.gmra.mrb[160].mxu1 %vm1014_vm2, %v14031_v40 }
0x1a97   : > { %20331 = vmatpush3.bf16.xpose.msk.msra.mxu0 %vm22080_vm3, %v20326_v24  ;;  %19473 = vmatprep.mubr.msk.f32.mxu0 %vm1014_vm2, %v14120_v52  ;;  %v14395_v1 = vpop.permute.xlu1 %14394  ;;  %v14484_v44 = vpop.permute.xlu0 %14483 }
0x1a98   : > { %20337 = vmatpush3.bf16.xpose.msk.msra.mxu1 %vm22080_vm3, %v20332_v8  ;;  %19480 = vmatprep.mubr.msk.f32.mxu1 %vm1014_vm2, %v14211_v39 }
0x1a99   : > { %20346 = vmatprep.subr.msk.bf16.mxu1 %vm22080_vm3, %v20344_v26  ;;  %20340 = vmatprep.subr.msk.bf16.mxu0 %vm22080_vm3, %v20338_v23 }
0x1a9b   : > { %v14486_v32 = vpop.permute.xlu1 %14485 }
0x1a9e   : > { %19474 = vmatmul.mubr.msk.f32.vlgmr.msra.gmra.mrb[164].mxu0 %vm1014_vm2, %v14122_v51 }
0x1a9f   : > { %19481 = vmatmul.mubr.msk.f32.vlgmr.msra.gmra.mrb[162].mxu1 %vm1014_vm2, %v14213_v59  ;;  %20343 = vmatpush3.bf16.xpose.msk.msra.mxu0 %vm22080_vm3, %v20338_v23  ;;  %v21052_v47 = vpop.permute.xlu1 %21051 }
0x1aa0   : > { %19487 = vmatprep.mubr.msk.f32.mxu0 %vm1014_vm2, %v14302_v9  ;;  %20349 = vmatpush3.bf16.xpose.msk.msra.mxu1 %vm22080_vm3, %v20344_v26  ;;  %v21054_v6 = vunpack.i.h.bf16 %v21052_v47  ;;  %v21053_v0 = vunpack.i.l.bf16 %v21052_v47 }
0x1aa1   : > { %19494 = vmatprep.mubr.msk.f32.mxu1 %vm1014_vm2, %v14393_v63  ;;  %20352 = vmatprep.subr.msk.bf16.mxu0 %vm22080_vm3, %v20350_v30 }
0x1aa2   : > { %v20356_v49 = vpack.c.bf16 %v21054_v6, %v21053_v0 }
0x1aa4   : > { %20357 = vmatprep.subr.bf16.mxu1 %v20356_v49 }
0x1aa6   : > { %19488 = vmatmul.mubr.msk.f32.vlgmr.msra.gmra.mrb[166].mxu0 %vm1014_vm2, %v14304_v62 }
0x1aa7   : > { %19495 = vmatmul.mubr.msk.f32.vlgmr.msra.gmra.mrb[164].mxu1 %vm1014_vm2, %v14395_v1  ;;  %20355 = vmatpush3.bf16.xpose.msk.msra.mxu0 %vm22080_vm3, %v20350_v30 }
0x1aa8   : > { %19501 = vmatprep.mubr.msk.f32.mxu0 %vm1014_vm2, %v14484_v44  ;;  %20359 = vmatpush3.bf16.msra.mxu1 %v20356_v49 }
0x1aae   : > { %19502 = vmatmul.mubr.msk.f32.vlgmr.msra.gmra.mrb[168].mxu0 %vm1014_vm2, %v14486_v32 }
0x1b07   : > { %v25597_v10 = vpop.f32.mrb[150].mxu1 }
0x1b08   : > { %v25599_v4 = vpop.f32.mrb[151].mxu1 }
0x1b12   : > { %v25601_v33 = vpop.f32.mrb[154].mxu0 }
0x1b13   : > { %v25603_v54 = vpop.f32.mrb[155].mxu0 }
0x1b17   : > { %v25605_v19 = vpop.f32.mrb[152].mxu1 }
0x1b18   : > { %v25607_v25 = vpop.f32.mrb[153].mxu1 }
0x1b1a   : > { %v25609_v7 = vpop.f32.mrb[156].mxu0 }
0x1b1b   : > { %v25611_v55 = vpop.f32.mrb[157].mxu0 }
0x1b1f   : > { %v25613_v18 = vpop.f32.mrb[154].mxu1 }
0x1b20   : > { %v25615_v60 = vpop.f32.mrb[155].mxu1 }
0x1b22   : > { %v25617_v22 = vpop.f32.mrb[158].mxu0 }
0x1b23   : > { %v25619_v35 = vpop.f32.mrb[159].mxu0 }
0x1b59   : > { %v25621_v40 = vpop.f32.mrb[156].mxu1 }
0x1b5a   : > { %v25623_v13 = vpop.f32.mrb[157].mxu1 }
0x1b61   : > { %v19454_v11 = vpop.f32.mrb[158].mxu1  ;;  %v25625_v20 = vpop.f32.mrb[160].mxu0 }
0x1b62   : > { %v13928_v31 = vpop.f32.mrb[159].mxu1  ;;  %v14577_v51 = vsel %vm575_vm0, %v19454_v11, -inf  ;;  %v25628_v52 = vpop.f32.mrb[161].mxu0 }
0x1b63   : > { %14578 = vmax.xlane.f32.xlu1 %v14577_v51  ;;  %v14574_v2 = vsel %vm575_vm0, %v13928_v31, -inf }
0x1b64   : > { %14575 = vmax.xlane.f32.xlu0 %v14574_v2 }
0x1b69   : > { %v19461_v56 = vpop.f32.mrb[162].mxu0  ;;  %v25631_v34 = vpop.f32.mrb[160].mxu1 }
0x1b6a   : > { %v14019_v12 = vpop.f32.mrb[163].mxu0  ;;  %v14110_v3 = vpop.f32.mrb[161].mxu1  ;;  %v14583_v28 = vsel %vm575_vm0, %v19461_v56, -inf  ;;  %v14589_v8 = vsel %vm575_vm0, %v25631_v34, -inf }
0x1b6b   : > { %14584 = vmax.xlane.f32.xlu0 %v14583_v28  ;;  %v14586_v39 = vsel %vm575_vm0, %v14110_v3, -inf  ;;  %v14580_v43 = vsel %vm575_vm0, %v14019_v12, -inf }
0x1b6c   : > { %14587 = vmax.xlane.f32.xlu1 %v14586_v39 }
0x1b6f   : > { %14581 = vmax.xlane.f32.xlu0 %v14580_v43 }
0x1b71   : > { %v25636_v36 = vpop.f32.mrb[164].mxu0 }
0x1b72   : > { %v25638_v57 = vpop.f32.mrb[162].mxu1  ;;  %v25640_v24 = vpop.f32.mrb[165].mxu0  ;;  %v14595_v46 = vsel %vm575_vm0, %v25636_v36, -inf }
0x1b73   : > { %v25644_v14 = vpop.f32.mrb[163].mxu1  ;;  %14590 = vmax.xlane.f32.xlu0 %v14589_v8  ;;  %v14592_v21 = vsel %vm575_vm0, %v25640_v24, -inf  ;;  %v14601_v26 = vsel %vm575_vm0, %v25638_v57, -inf }
0x1b74   : > { %14593 = vmax.xlane.f32.xlu1 %v14592_v21  ;;  %v14598_v42 = vsel %vm575_vm0, %v25644_v14, -inf }
0x1b77   : > { %14596 = vmax.xlane.f32.xlu0 %v14595_v46 }
0x1b78   : > { %14599 = vmax.xlane.f32.xlu1 %v14598_v42 }
0x1b79   : > { %v25652_v15 = vpop.f32.mrb[166].mxu0 }
0x1b7a   : > { %v25654_v62 = vpop.f32.mrb[164].mxu1  ;;  %v25656_v59 = vpop.f32.mrb[167].mxu0  ;;  %v14607_v9 = vsel %vm575_vm0, %v25652_v15, -inf }
0x1b7b   : > { %v25660_v23 = vpop.f32.mrb[165].mxu1  ;;  %14602 = vmax.xlane.f32.xlu0 %v14601_v26  ;;  %v14604_v1 = vsel %vm575_vm0, %v25656_v59, -inf  ;;  %v14613_v30 = vsel %vm575_vm0, %v25654_v62, -inf }
0x1b7c   : > { %14605 = vmax.xlane.f32.xlu1 %v14604_v1  ;;  %v14610_v41 = vsel %vm575_vm0, %v25660_v23, -inf }
0x1b7f   : > { %14608 = vmax.xlane.f32.xlu0 %v14607_v9 }
0x1b80   : > { %14611 = vmax.xlane.f32.xlu1 %v14610_v41 }
0x1b81   : > { %v25668_v27 = vpop.f32.mrb[168].mxu0 }
0x1b82   : > { %v25670_v32 = vpop.f32.mrb[169].mxu0  ;;  %v14619_v47 = vsel %vm575_vm0, %v25668_v27, -inf }
0x1b83   : > { %14614 = vmax.xlane.f32.xlu0 %v14613_v30  ;;  %v14616_v63 = vsel %vm575_vm0, %v25670_v32, -inf }
0x1b87   : > { %14620 = vmax.xlane.f32.xlu0 %v14619_v47 }
0x1b91   : > { %21061 = vrot.lane.b32.xlu1 %v24381_v5, %s26968_s21 }
0x1b9d   : > { %21056 = vrot.lane.b32.xlu0 %v24370_v17, %s26968_s21 }
0x1bb5   : > { %14617 = vmax.xlane.f32.xlu1 %v14616_v63 }
0x1bf0   : > { %v14579_v6 = vpop.xlane.xlu1 %14578 }
0x1bf1   : > { %v14623_v0 = vsub.f32 %v19454_v11, %v14579_v6  ;;  %v14576_v49 = vpop.xlane.xlu0 %14575 }
0x1bf2   : > { %v14622_v44 = vsub.f32 %v13928_v31, %v14576_v49 }
0x1bf3   : > { %v14640_v51 = vmul.f32 1.442695, %v14623_v0 }
0x1bf4   : > { %v14638_v2 = vmul.f32 1.442695, %v14622_v44 }
0x1bf5   : > { %21602 = vpow2.f32 %v14640_v51 }
0x1bf6   : > { %21604 = vpow2.f32 %v14638_v2 }
0x1bf8   : > { %v14585_v28 = vpop.xlane.xlu0 %14584 }
0x1bf9   : > { %v14625_v39 = vsub.f32 %v19461_v56, %v14585_v28  ;;  %v14588_v43 = vpop.xlane.xlu1 %14587 }
0x1bfa   : > { %v14626_v5 = vsub.f32 %v14110_v3, %v14588_v43 }
0x1bfb   : > { %v14644_v8 = vmul.f32 1.442695, %v14625_v39 }
0x1bfc   : > { %v14582_v21 = vpop.xlane.xlu0 %14581  ;;  %v14646_v42 = vmul.f32 1.442695, %v14626_v5 }
0x1bfd   : > { %21606 = vpow2.f32 %v14644_v8  ;;  %v14624_v17 = vsub.f32 %v14019_v12, %v14582_v21 }
0x1bff   : > { %v25682_v46 = vpop.eup %21602  ;;  %v14642_v26 = vmul.f32 1.442695, %v14624_v17 }
0x1c00   : > { %v25684_v1 = vpop.eup %21604  ;;  %v14591_v11 = vpop.xlane.xlu0 %14590  ;;  %v14673_v31 = vsel %vm575_vm0, %v25682_v46, 0.0 }
0x1c01   : > { %21608 = vpow2.f32 %v14642_v26  ;;  %v14627_v9 = vsub.f32 %v25631_v34, %v14591_v11  ;;  %v14594_v56 = vpop.xlane.xlu1 %14593  ;;  %14674 = vadd.xlane.f32.xlu0 %v14673_v31  ;;  %v14670_v3 = vsel %vm575_vm0, %v25684_v1, 0.0 }
0x1c02   : > { %v14628_v12 = vsub.f32 %v25640_v24, %v14594_v56  ;;  %14671 = vadd.xlane.f32.xlu1 %v14670_v3  ;;  %21610 = vpow2.f32 %v14646_v42 }
0x1c03   : > { %v14648_v41 = vmul.f32 1.442695, %v14627_v9 }
0x1c04   : > { %v14650_v30 = vmul.f32 1.442695, %v14628_v12  ;;  %v14597_v47 = vpop.xlane.xlu0 %14596 }
0x1c05   : > { %21612 = vpow2.f32 %v14648_v41  ;;  %v14629_v63 = vsub.f32 %v25636_v36, %v14597_v47  ;;  %v14600_v6 = vpop.xlane.xlu1 %14599 }
0x1c06   : > { %v14630_v0 = vsub.f32 %v25644_v14, %v14600_v6  ;;  %21614 = vpow2.f32 %v14650_v30 }
0x1c07   : > { %v25694_v49 = vpop.eup %21606  ;;  %v14652_v34 = vmul.f32 1.442695, %v14629_v63 }
0x1c08   : > { %v14654_v44 = vmul.f32 1.442695, %v14630_v0  ;;  %v14603_v51 = vpop.xlane.xlu0 %14602  ;;  %v14679_v24 = vsel %vm575_vm0, %v25694_v49, 0.0 }
0x1c09   : > { %21616 = vpow2.f32 %v14652_v34  ;;  %v14631_v2 = vsub.f32 %v25638_v57, %v14603_v51  ;;  %v14606_v28 = vpop.xlane.xlu1 %14605  ;;  %14680 = vadd.xlane.f32.xlu0 %v14679_v24 }
0x1c0a   : > { %v14632_v39 = vsub.f32 %v25656_v59, %v14606_v28  ;;  %21618 = vpow2.f32 %v14654_v44 }
0x1c0b   : > { %v25700_v36 = vpop.eup %21608  ;;  %v14656_v14 = vmul.f32 1.442695, %v14631_v2 }
0x1c0c   : > { %v14658_v43 = vmul.f32 1.442695, %v14632_v39  ;;  %v14609_v8 = vpop.xlane.xlu0 %14608  ;;  %v14676_v5 = vsel %vm575_vm0, %v25700_v36, 0.0  ;;  %v25704_v21 = vpop.eup %21610 }
0x1c0d   : > { %21620 = vpow2.f32 %v14656_v14  ;;  %v14633_v17 = vsub.f32 %v25652_v15, %v14609_v8  ;;  %v14612_v42 = vpop.xlane.xlu1 %14611  ;;  %14677 = vadd.xlane.f32.xlu1 %v14676_v5  ;;  %v14682_v9 = vsel %vm575_vm0, %v25704_v21, 0.0 }
0x1c0e   : > { %v14634_v59 = vsub.f32 %v25660_v23, %v14612_v42  ;;  %21622 = vpow2.f32 %v14658_v43 }
0x1c0f   : > { %v25707_v57 = vpop.eup %21612  ;;  %v14660_v26 = vmul.f32 1.442695, %v14633_v17 }
0x1c10   : > { %v14615_v11 = vpop.xlane.xlu0 %14614  ;;  %v14685_v31 = vsel %vm575_vm0, %v25707_v57, 0.0  ;;  %v25714_v56 = vpop.eup %21614  ;;  %v14662_v23 = vmul.f32 1.442695, %v14634_v59 }
0x1c11   : > { %21624 = vpow2.f32 %v14660_v26  ;;  %v14635_v15 = vsub.f32 %v25654_v62, %v14615_v11  ;;  %v21062_v3 = vpop.permute.xlu1 %21061  ;;  %14686 = vadd.xlane.f32.xlu0 %v14685_v31  ;;  %14683 = vadd.xlane.f32.xlu1 %v14682_v9  ;;  %v14688_v0 = vsel %vm575_vm0, %v25714_v56, 0.0 }
0x1c12   : > { %v21064_v12 = vunpack.i.h.bf16 %v21062_v3  ;;  %v21063_v41 = vunpack.i.l.bf16 %v21062_v3 }
0x1c13   : > { %v25717_v30 = vpop.eup %21616  ;;  %v14664_v47 = vmul.f32 1.442695, %v14635_v15 }
0x1c14   : > { %v14621_v63 = vpop.xlane.xlu0 %14620  ;;  %v14691_v6 = vsel %vm575_vm0, %v25717_v30, 0.0  ;;  %v25723_v34 = vpack.c.bf16 %v21064_v12, %v21063_v41  ;;  %v25725_v44 = vpop.eup %21618 }
0x1c15   : > { %21626 = vpow2.f32 %v14664_v47  ;;  %v14637_v62 = vsub.f32 %v25668_v27, %v14621_v63  ;;  %14692 = vadd.xlane.f32.xlu0 %v14691_v6  ;;  %14689 = vadd.xlane.f32.xlu1 %v14688_v0  ;;  %v14694_v39 = vsel %vm575_vm0, %v25725_v44, 0.0  ;;  %v26981_v6 = vld [vmem:[#allocation16_spill] sm:$0xff] }
0x1c16   : > { %20365 = vmatprep.subr.bf16.mxu1 %v25723_v34  ;;  %21628 = vpow2.f32 %v14662_v23 }
0x1c17   : > { %v25729_v51 = vpop.eup %21620  ;;  %v14668_v24 = vmul.f32 1.442695, %v14637_v62 }
0x1c18   : > { %v21057_v2 = vpop.permute.xlu0 %21056  ;;  %v14697_v28 = vsel %vm575_vm0, %v25729_v51, 0.0  ;;  %v25735_v27 = vpop.eup %21622 }
0x1c19   : > { %v21059_v14 = vunpack.i.h.bf16 %v21057_v2  ;;  %v21058_v43 = vunpack.i.l.bf16 %v21057_v2  ;;  %14698 = vadd.xlane.f32.xlu0 %v14697_v28  ;;  %14695 = vadd.xlane.f32.xlu1 %v14694_v39  ;;  %21630 = vpow2.f32 %v14668_v24  ;;  %v14700_v42 = vsel %vm575_vm0, %v25735_v27, 0.0 }
0x1c1b   : > { %v25737_v8 = vpop.eup %21624  ;;  %v20360_v5 = vpack.c.bf16 %v21059_v14, %v21058_v43 }
0x1c1c   : > { %v14703_v17 = vsel %vm575_vm0, %v25737_v8, 0.0 }
0x1c1d   : > { %14704 = vadd.xlane.f32.xlu0 %v14703_v17  ;;  %20361 = vmatprep.subr.bf16.mxu0 %v20360_v5 }
0x1c1e   : > { %14701 = vadd.xlane.f32.xlu1 %v14700_v42  ;;  %20363 = vmatpush3.bf16.msra.mxu0 %v20360_v5 }
0x1c1f   : > { %v25743_v26 = vpop.eup %21626 }
0x1c20   : > { %v14709_v59 = vsel %vm575_vm0, %v25743_v26, 0.0  ;;  %v25747_v11 = vpop.eup %21628 }
0x1c21   : > { %14710 = vadd.xlane.f32.xlu0 %v14709_v59  ;;  %v14706_v31 = vsel %vm575_vm0, %v25747_v11, 0.0 }
0x1c23   : > { %v25751_v9 = vpop.eup %21630 }
0x1c24   : > { %v14715_v15 = vsel %vm575_vm0, %v25751_v9, 0.0 }
0x1c25   : > { %14707 = vadd.xlane.f32.xlu0 %v14706_v31 }
0x1c29   : > { %14716 = vadd.xlane.f32.xlu0 %v14715_v15 }
0x1c2f   : > { %21071 = vrot.lane.b32.xlu1 %v24395_v37, %s26968_s21 }
0x1c33   : > { %21076 = vrot.lane.b32.xlu1 %v24405_v61, %s26968_s21  ;;  %v26971_v61 = vld [vmem:[#allocation12_spill] sm:$0xff] }
0x1c37   : > { %21081 = vrot.lane.b32.xlu1 %v24415_v48, %s26968_s21  ;;  %v26972_v48 = vld [vmem:[#allocation7_spill] sm:$0xff] }
0x1c3f   : > { %21066 = vrot.lane.b32.xlu0 %v24388_v29, %s26968_s21 }
0x1c42   : > { %v14618_v3 = vpop.xlane.xlu1 %14617 }
0x1c43   : > { %15462 = vrot.lane.b32.xlu0 %v25253_v38, %s26969_s22  ;;  %v14636_v12 = vsub.f32 %v25670_v32, %v14618_v3  ;;  %v26973_v38 = vld [vmem:[#allocation14_spill] sm:$0xff] }
0x1c45   : > { %v14666_v41 = vmul.f32 1.442695, %v14636_v12 }
0x1c47   : > { %15526 = vrot.lane.b32.xlu0 %v25599_v4, %s26970_s25  ;;  %21632 = vpow2.f32 %v14666_v41  ;;  %v26978_v4 = vld [vmem:[#allocation10_spill] sm:$0xff] }
0x1c4b   : > { %15466 = vrot.lane.b32.xlu0 %v25257_v16, %s26969_s22  ;;  %v26974_v16 = vld [vmem:[#allocation9_spill] sm:$0xff] }
0x1c4f   : > { %15530 = vrot.lane.b32.xlu0 %v25603_v54, %s26970_s25  ;;  %v26979_v54 = vld [vmem:[#allocation13_spill] sm:$0xff] }
0x1c51   : > { %v25774_v29 = vpop.eup %21632 }
0x1c52   : > { %v14712_v37 = vsel %vm575_vm0, %v25774_v29, 0.0 }
0x1c53   : > { %15470 = vrot.lane.b32.xlu0 %v25261_v50, %s26969_s22  ;;  %v26976_v50 = vld [vmem:[#allocation8_spill] sm:$0xff] }
0x1c57   : > { %15534 = vrot.lane.b32.xlu0 %v25607_v25, %s26970_s25 }
0x1c5b   : > { %14713 = vadd.xlane.f32.xlu1 %v14712_v37  ;;  %15474 = vrot.lane.b32.xlu0 %v25265_v58, %s26969_s22  ;;  %v26977_v58 = vld [vmem:[#allocation11_spill] sm:$0xff] }
0x1c5f   : > { %15538 = vrot.lane.b32.xlu0 %v25611_v55, %s26970_s25 }
0x1c63   : > { %15478 = vrot.lane.b32.xlu0 %v25269_v53, %s26969_s22 }
0x1c67   : > { %15542 = vrot.lane.b32.xlu0 %v25615_v60, %s26970_s25 }
0x1c6b   : > { %15482 = vrot.lane.b32.xlu0 %v26971_v61, %s26969_s22 }
0x1c6c   : > { %21086 = vrot.lane.b32.xlu1 %v24433_v45, %s26968_s21  ;;  %v26975_v45 = vld [vmem:[#allocation17_spill] sm:$0xff]  ;;  %s27015_s21 = sshll.u32 %s27017_s30, 4 }
0x1c6d   : > { %s26721_s0 = scalar_lea.vmem %s26759_s17, %s27015_s21 }
0x1c6f   : > { %15546 = vrot.lane.b32.xlu0 %v25619_v35, %s26970_s25 }
0x1c70   : > { %15464 = vrot.lane.b32.xlu1 %v26972_v48, %s26969_s22 }
0x1c73   : > { %15486 = vrot.lane.b32.xlu0 %v26973_v38, %s26969_s22 }
0x1c74   : > { %15528 = vrot.lane.b32.xlu1 %v25597_v10, %s26970_s25 }
0x1c77   : > { %15550 = vrot.lane.b32.xlu0 %v25623_v13, %s26970_s25  ;;  %v26980_v13 = vld [vmem:[#allocation15_spill] sm:$0xff] }
0x1c78   : > { %15468 = vrot.lane.b32.xlu1 %v26974_v16, %s26969_s22 }
0x1c7b   : > { %15490 = vrot.lane.b32.xlu0 %v26975_v45, %s26969_s22 }
0x1c7c   : > { %15532 = vrot.lane.b32.xlu1 %v25601_v33, %s26970_s25 }
0x1c7f   : > { %15554 = vrot.lane.b32.xlu0 %v25628_v52, %s26970_s25 }
0x1c80   : > { %15472 = vrot.lane.b32.xlu1 %v26976_v50, %s26969_s22 }
0x1c84   : > { %15536 = vrot.lane.b32.xlu1 %v25605_v19, %s26970_s25 }
0x1c88   : > { %15476 = vrot.lane.b32.xlu1 %v26977_v58, %s26969_s22 }
0x1c8c   : > { %15540 = vrot.lane.b32.xlu1 %v25609_v7, %s26970_s25 }
0x1c8e   : > { %v14675_v53 = vpop.xlane.xlu0 %14674 }
0x1c8f   : > { %21634 = vrcp.f32 %v14675_v53  ;;  %v14672_v10 = vpop.xlane.xlu1 %14671 }
0x1c90   : > { %15480 = vrot.lane.b32.xlu1 %v26978_v4, %s26969_s22  ;;  %21636 = vrcp.f32 %v14672_v10 }
0x1c94   : > { %15544 = vrot.lane.b32.xlu1 %v25613_v18, %s26970_s25 }
0x1c96   : > { %v14681_v33 = vpop.xlane.xlu0 %14680 }
0x1c97   : > { %21638 = vrcp.f32 %v14681_v33 }
0x1c98   : > { %15484 = vrot.lane.b32.xlu1 %v26979_v54, %s26969_s22 }
0x1c99   : > { %v21635_v19 = vpop.eup %21634 }
0x1c9a   : > { %v21637_v25 = vpop.eup %21636  ;;  %v14678_v55 = vpop.xlane.xlu1 %14677  ;;  %v14735_v60 = vmul.f32 %v21635_v19, %v25682_v46 }
0x1c9b   : > { %21640 = vrcp.f32 %v14678_v55  ;;  %v14734_v7 = vmul.f32 %v21637_v25, %v25684_v1 }
0x1c9c   : > { %15548 = vrot.lane.b32.xlu1 %v25617_v22, %s26970_s25 }
0x1c9d   : > { %19508 = vmatprep.mubr.msk.f32.mxu1 %vm575_vm0, %v14734_v7 }
0x1c9e   : > { %v14687_v35 = vpop.xlane.xlu0 %14686  ;;  %19509 = vmatmul.mubr.msk.f32.vlgmr.msra.gmra.mrb[166].mxu1 %vm575_vm0, %v14735_v60  ;;  %v14684_v18 = vpop.xlane.xlu1 %14683 }
0x1c9f   : > { %21642 = vrcp.f32 %v14687_v35  ;;  %20367 = vmatpush3.bf16.msra.mxu1 %v25723_v34 }
0x1ca0   : > { %21644 = vrcp.f32 %v14684_v18  ;;  %15488 = vrot.lane.b32.xlu1 %v26980_v13, %s26969_s22  ;;  %v26982_v18 = vld [vmem:[#allocation35_spill] sm:$0xff] }
0x1ca1   : > { %v21639_v1 = vpop.eup %21638 }
0x1ca2   : > { %v14693_v52 = vpop.xlane.xlu0 %14692  ;;  %v14690_v32 = vpop.xlane.xlu1 %14689  ;;  %v14737_v63 = vmul.f32 %v21639_v1, %v25694_v49  ;;  %v26983_v1 = vld [vmem:[#allocation3_spill] sm:$0xff] }
0x1ca3   : > { %21646 = vrcp.f32 %v14690_v32 }
0x1ca4   : > { %15552 = vrot.lane.b32.xlu1 %v25621_v40, %s26970_s25 }
0x1ca5   : > { %v21641_v22 = vpop.eup %21640 }
0x1ca6   : > { %v14699_v46 = vpop.xlane.xlu0 %14698  ;;  %v14696_v23 = vpop.xlane.xlu1 %14695  ;;  %v14736_v47 = vmul.f32 %v21641_v22, %v25700_v36 }
0x1ca7   : > { %21648 = vrcp.f32 %v14696_v23 }
0x1ca8   : > { %15492 = vrot.lane.b32.xlu1 %v26981_v6, %s26969_s22  ;;  %19515 = vmatprep.mubr.msk.f32.mxu0 %vm575_vm0, %v14736_v47  ;;  %21650 = vrcp.f32 %v14699_v46 }
0x1ca9   : > { %v21643_v0 = vpop.eup %21642  ;;  %19516 = vmatmul.mubr.msk.f32.vlgmr.msra.gmra.mrb[170].mxu0 %vm575_vm0, %v14737_v63 }
0x1caa   : > { %v21645_v34 = vpop.eup %21644  ;;  %v14705_v62 = vpop.xlane.xlu0 %14704  ;;  %v14739_v40 = vmul.f32 %v21643_v0, %v25707_v57 }
0x1cab   : > { %v14702_v24 = vpop.xlane.xlu1 %14701  ;;  %v14738_v2 = vmul.f32 %v21645_v34, %v25704_v21 }
0x1cac   : > { %15556 = vrot.lane.b32.xlu1 %v25625_v20, %s26970_s25 }
0x1cad   : > { %19522 = vmatprep.mubr.msk.f32.mxu1 %vm575_vm0, %v14738_v2  ;;  %v21647_v49 = vpop.eup %21646 }
0x1cae   : > { %19523 = vmatmul.mubr.msk.f32.vlgmr.msra.gmra.mrb[168].mxu1 %vm575_vm0, %v14739_v40  ;;  %v14711_v36 = vpop.xlane.xlu0 %14710  ;;  %v14740_v39 = vmul.f32 %v21647_v49, %v25714_v56 }
0x1caf   : > { %v21072_v28 = vpop.permute.xlu1 %21071  ;;  %21652 = vrcp.f32 %v14711_v36 }
0x1cb0   : > { %v21074_v14 = vunpack.i.h.bf16 %v21072_v28  ;;  %v21073_v43 = vunpack.i.l.bf16 %v21072_v28  ;;  %19529 = vmatprep.mubr.msk.f32.mxu0 %vm575_vm0, %v14740_v39 }
0x1cb1   : > { %v21649_v57 = vpop.eup %21648 }
0x1cb2   : > { %v14708_v5 = vpop.xlane.xlu0 %14707  ;;  %v20372_v21 = vpack.c.bf16 %v21074_v14, %v21073_v43  ;;  %v21651_v17 = vpop.eup %21650  ;;  %v14742_v42 = vmul.f32 %v21649_v57, %v25725_v44  ;;  %v26984_v43 = vld [vmem:[#allocation6_spill] sm:$0xff] }
0x1cb3   : > { %21654 = vrcp.f32 %v14708_v5  ;;  %v21077_v20 = vpop.permute.xlu1 %21076  ;;  %v14743_v59 = vmul.f32 %v21651_v17, %v25729_v51 }
0x1cb4   : > { %21656 = vrcp.f32 %v14693_v52  ;;  %20373 = vmatprep.subr.bf16.mxu1 %v20372_v21  ;;  %19536 = vmatprep.mubr.msk.f32.mxu1 %vm575_vm0, %v14742_v42  ;;  %v21079_v37 = vunpack.i.h.bf16 %v21077_v20  ;;  %v21078_v61 = vunpack.i.l.bf16 %v21077_v20  ;;  %v26985_v42 = vld [vmem:[#allocation30_spill] sm:$0xff] }
0x1cb5   : > { %21658 = vrcp.f32 %v14702_v24  ;;  %20375 = vmatpush3.bf16.msra.mxu1 %v20372_v21 }
0x1cb6   : > { %v14717_v56 = vpop.xlane.xlu0 %14716  ;;  %21660 = vrcp.f32 %v14705_v62  ;;  %v20376_v10 = vpack.c.bf16 %v21079_v37, %v21078_v61  ;;  %v26987_v61 = vld [vmem:[#allocation34_spill] sm:$0xff] }
0x1cb7   : > { %v21082_v31 = vpop.permute.xlu1 %21081  ;;  %21662 = vrcp.f32 %v14717_v56 }
0x1cb8   : > { %v21084_v15 = vunpack.i.h.bf16 %v21082_v31  ;;  %v21083_v3 = vunpack.i.l.bf16 %v21082_v31  ;;  %19537 = vmatmul.mubr.msk.f32.vlgmr.msra.gmra.mrb[170].mxu1 %vm575_vm0, %v14743_v59 }
0x1cb9   : > { %v21653_v38 = vpop.eup %21652 }
0x1cba   : > { %v21067_v12 = vpop.permute.xlu0 %21066  ;;  %v20380_v41 = vpack.c.bf16 %v21084_v15, %v21083_v3  ;;  %v14747_v4 = vmul.f32 %v21653_v38, %v25743_v26  ;;  %v26986_v15 = vld [vmem:[#allocation32_spill] sm:$0xff] }
0x1cbb   : > { %v21069_v44 = vunpack.i.h.bf16 %v21067_v12  ;;  %v21068_v48 = vunpack.i.l.bf16 %v21067_v12 }
0x1cbc   : > { %20381 = vmatprep.subr.bf16.mxu1 %v20380_v41 }
0x1cbd   : > { %v21655_v16 = vpop.eup %21654  ;;  %20383 = vmatpush3.bf16.msra.mxu1 %v20380_v41  ;;  %v20368_v45 = vpack.c.bf16 %v21069_v44, %v21068_v48 }
0x1cbe   : > { %v21657_v50 = vpop.eup %21656  ;;  %v25853_v58 = vpop.permute.xlu0 %15462  ;;  %v14746_v51 = vmul.f32 %v21655_v16, %v25747_v11 }
0x1cbf   : > { %v21659_v53 = vpop.eup %21658  ;;  %20369 = vmatprep.subr.bf16.mxu0 %v20368_v45  ;;  %v14741_v33 = vmul.f32 %v21657_v50, %v25717_v30 }
0x1cc0   : > { %20371 = vmatpush3.bf16.msra.mxu0 %v20368_v45  ;;  %19550 = vmatprep.mubr.msk.f32.mxu1 %vm575_vm0, %v14746_v51  ;;  %v21661_v54 = vpop.eup %21660  ;;  %v14744_v25 = vmul.f32 %v21659_v53, %v25735_v27  ;;  %v26988_v51 = vld [vmem:[#allocation5_spill] sm:$0xff] }
0x1cc1   : > { %20377 = vmatprep.subr.bf16.mxu0 %v20376_v10  ;;  %19551 = vmatmul.mubr.msk.f32.vlgmr.msra.gmra.mrb[172].mxu1 %vm575_vm0, %v14747_v4  ;;  %v14745_v26 = vmul.f32 %v21661_v54, %v25737_v8  ;;  %v21663_v24 = vpop.eup %21662  ;;  %v17652_v4 = vld [vmem:[%s26747_s5 + $0x28] sm:$0xff]  ;;  %v17653_v54 = vld [vmem:[%s26747_s5 + $0x30] sm:$0xff] }
0x1cc2   : > { %v25860_v19 = vpop.permute.xlu0 %15526  ;;  %v14749_v39 = vmul.f32 %v21663_v24, %v25751_v9 }
0x1cc3   : > { %19530 = vmatmul.mubr.msk.f32.vlgmr.msra.gmra.mrb[172].mxu0 %vm575_vm0, %v14741_v33 }
0x1cc4   : > { %20379 = vmatpush3.bf16.msra.mxu0 %v20376_v10  ;;  %19543 = vmatprep.mubr.msk.f32.mxu0 %vm575_vm0, %v14744_v25  ;;  %v17651_v10 = vld [vmem:[%s26747_s5 + $0x20] sm:$0xff]  ;;  %v17654_v25 = vld [vmem:[%s26747_s5 + $0x38] sm:$0xff] }
0x1cc5   : > { %v20388_v33 = vpack.c.bf16 %v17652_v4, %v17651_v10 }
0x1cc6   : > { %v25866_v11 = vpop.permute.xlu0 %15466 }
0x1cc7   : > { %19544 = vmatmul.mubr.msk.f32.vlgmr.msra.gmra.mrb[174].mxu0 %vm575_vm0, %v14745_v26  ;;  %20389 = vmatprep.subr.bf16.mxu1 %v20388_v33  ;;  %v20392_v26 = vpack.c.bf16 %v17654_v25, %v17653_v54 }
0x1cc8   : > { %20391 = vmatpush3.bf16.msra.mxu1 %v20388_v33  ;;  %v26995_v33 = vld [vmem:[#allocation28_spill] sm:$0xff] }
0x1cc9   : > { %20393 = vmatprep.subr.bf16.mxu1 %v20392_v26 }
0x1cca   : > { %v25869_v55 = vpop.permute.xlu0 %15530 }
0x1ccc   : > { %20395 = vmatpush3.bf16.msra.mxu1 %v20392_v26 }
0x1cce   : > { %v25871_v7 = vpop.permute.xlu0 %15470 }
0x1cd2   : > { %v25873_v30 = vpop.permute.xlu0 %15534 }
0x1cd6   : > { %v25875_v60 = vpop.permute.xlu0 %15474 }
0x1cda   : > { %v25877_v27 = vpop.permute.xlu0 %15538 }
0x1cde   : > { %v15479_v35 = vpop.permute.xlu0 %15478 }
0x1cdf   : > { %v15646_v13 = vsel %vm1014_vm2, %v26982_v18, %v15479_v35 }
0x1ce2   : > { %v15543_v52 = vpop.permute.xlu0 %15542 }
0x1ce3   : > { %v25882_v8 = vsel %vm575_vm0, %v15646_v13, %v15543_v52 }
0x1ce6   : > { %v15483_v32 = vpop.permute.xlu0 %15482 }
0x1ce7   : > { %v15648_v22 = vsel %vm1014_vm2, %v26983_v1, %v15483_v32 }
0x1ce8   : > { %v14714_v46 = vpop.xlane.xlu1 %14713 }
0x1ce9   : > { %21664 = vrcp.f32 %v14714_v46 }
0x1cea   : > { %v15547_v23 = vpop.permute.xlu0 %15546 }
0x1ceb   : > { %v25887_v47 = vsel %vm575_vm0, %v15648_v22, %v15547_v23 }
0x1cec   : > { %v21087_v63 = vpop.permute.xlu1 %21086 }
0x1ced   : > { %v21089_v6 = vunpack.i.h.bf16 %v21087_v63  ;;  %v21088_v0 = vunpack.i.l.bf16 %v21087_v63 }
0x1cee   : > { %v25889_v34 = vpop.permute.xlu0 %15486 }
0x1cef   : > { %v20384_v62 = vpack.c.bf16 %v21089_v6, %v21088_v0 }
0x1cf0   : > { %v25891_v40 = vpop.permute.xlu1 %15464 }
0x1cf1   : > { %20385 = vmatprep.subr.bf16.mxu0 %v20384_v62 }
0x1cf2   : > { %20387 = vmatpush3.bf16.msra.mxu0 %v20384_v62  ;;  %v25893_v2 = vpop.permute.xlu0 %15550 }
0x1cf3   : > { %v21665_v49 = vpop.eup %21664 }
0x1cf4   : > { %v25895_v36 = vpop.permute.xlu1 %15528  ;;  %v14748_v28 = vmul.f32 %v21665_v49, %v25774_v29 }
0x1cf6   : > { %19557 = vmatprep.mubr.msk.f32.mxu0 %vm575_vm0, %v14748_v28  ;;  %v15491_v14 = vpop.permute.xlu0 %15490 }
0x1cf7   : > { %v25902_v57 = vsel %vm1014_vm2, %v26984_v43, %v15491_v14  ;;  %19558 = vmatmul.mubr.msk.f32.vlgmr.msra.gmra.mrb[176].mxu0 %vm575_vm0, %v14749_v39  ;;  %v26990_v43 = vld [vmem:[#allocation27_spill] sm:$0xff] }
0x1cf8   : > { %v25905_v5 = vpop.permute.xlu1 %15468 }
0x1cfa   : > { %v25966_v14 = vpop.permute.xlu0 %15554 }
0x1cfc   : > { %v25907_v21 = vpop.permute.xlu1 %15532 }
0x1d00   : > { %v25909_v17 = vpop.permute.xlu1 %15472 }
0x1d04   : > { %v25911_v20 = vpop.permute.xlu1 %15536 }
0x1d08   : > { %v15477_v29 = vpop.permute.xlu1 %15476 }
0x1d09   : > { %v15645_v9 = vsel %vm1014_vm2, %v26985_v42, %v15477_v29  ;;  %v15638_v29 = vsel %vm1014_vm2, %v26990_v43, %v25853_v58  ;;  %v26992_v58 = vld [vmem:[#allocation29_spill] sm:$0xff] }
0x1d0c   : > { %v15541_v56 = vpop.permute.xlu1 %15540 }
0x1d0d   : > { %v25916_v59 = vsel %vm575_vm0, %v15645_v9, %v15541_v56  ;;  %v15654_v9 = vsel %vm575_vm0, %v15638_v29, %v25860_v19  ;;  %v26991_v56 = vld [vmem:[#allocation24_spill] sm:$0xff]  ;;  %v15640_v19 = vsel %vm1014_vm2, %v26992_v58, %v25866_v11  ;;  %v26994_v11 = vld [vmem:[#allocation31_spill] sm:$0xff]  ;;  %v26059_v29 = vld [vmem:[%s26748_s6 + $0x1] ss:$0 sm:$0xff] }
0x1d10   : > { %v15481_v31 = vpop.permute.xlu1 %15480 }
0x1d11   : > { %v15647_v3 = vsel %vm1014_vm2, %v26986_v15, %v15481_v31  ;;  %v15639_v31 = vsel %vm1014_vm2, %v26991_v56, %v25891_v40  ;;  %v15656_v40 = vsel %vm575_vm0, %v15640_v19, %v25869_v55  ;;  %v15642_v55 = vsel %vm1014_vm2, %v26994_v11, %v25871_v7  ;;  %v26996_v7 = vld [vmem:[#allocation33_spill] sm:$0xff]  ;;  %v27000_v56 = vld [vmem:[#allocation19_spill] sm:$0xff] }
0x1d14   : > { %v15545_v12 = vpop.permute.xlu1 %15544 }
0x1d15   : > { %v25921_v41 = vsel %vm575_vm0, %v15647_v3, %v15545_v12  ;;  %v15655_v3 = vsel %vm575_vm0, %v15639_v31, %v25895_v36 }
0x1d18   : > { %v15485_v37 = vpop.permute.xlu1 %15484 }
0x1d19   : > { %v15649_v44 = vsel %vm1014_vm2, %v26987_v61, %v15485_v37 }
0x1d1c   : > { %v15549_v48 = vpop.permute.xlu1 %15548 }
0x1d1d   : > { %v25926_v38 = vsel %vm575_vm0, %v15649_v44, %v15549_v48  ;;  %v26993_v44 = vld [vmem:[#allocation26_spill] sm:$0xff] }
0x1d1e   : > { %v15641_v36 = vsel %vm1014_vm2, %v26993_v44, %v25905_v5  ;;  %v15658_v5 = vsel %vm575_vm0, %v15642_v55, %v25873_v30  ;;  %v15644_v30 = vsel %vm1014_vm2, %v26996_v7, %v25875_v60  ;;  %v27003_v55 = vld [vmem:[#allocation44_spill] sm:$0xff] }
0x1d20   : > { %v25928_v16 = vpop.permute.xlu1 %15488 }
0x1d24   : > { %v25930_v45 = vpop.permute.xlu1 %15552 }
0x1d28   : > { %v15493_v50 = vpop.permute.xlu1 %15492 }
0x1d29   : > { %v25934_v53 = vsel %vm1014_vm2, %v26988_v51, %v15493_v50  ;;  %v15657_v50 = vsel %vm575_vm0, %v15641_v36, %v25907_v21  ;;  %v15643_v21 = vsel %vm1014_vm2, %v26995_v33, %v25909_v17  ;;  %v15660_v17 = vsel %vm575_vm0, %v15644_v30, %v25877_v27  ;;  %v27002_v36 = vld [vmem:[#allocation36_spill] sm:$0xff] }
0x1d2a   : > { %v15659_v25 = vsel %vm575_vm0, %v15643_v21, %v25911_v20 }
0x1d2c   : > { %v25964_v39 = vpop.permute.xlu1 %15556 }
0x1d71   : > { %v19510_v35 = vpop.f32.mrb[166].mxu1 }
0x1d72   : > { %15592 = vrot.lane.b32.xlu1 %v19510_v35, %s26989_s23  ;;  %v14828_v18 = vpop.f32.mrb[167].mxu1 }
0x1d73   : > { %15590 = vrot.lane.b32.xlu0 %v14828_v18, %s26989_s23 }
0x1d7c   : > { %v19517_v13 = vpop.f32.mrb[170].mxu0 }
0x1d7d   : > { %15596 = vrot.lane.b32.xlu1 %v19517_v13, %s26989_s23  ;;  %v14915_v52 = vpop.f32.mrb[171].mxu0 }
0x1d7e   : > { %15594 = vrot.lane.b32.xlu0 %v14915_v52, %s26989_s23 }
0x1d81   : > { %v19524_v32 = vpop.f32.mrb[168].mxu1 }
0x1d82   : > { %15600 = vrot.lane.b32.xlu1 %v19524_v32, %s26989_s23  ;;  %v15002_v1 = vpop.f32.mrb[169].mxu1 }
0x1d83   : > { %15598 = vrot.lane.b32.xlu0 %v15002_v1, %s26989_s23 }
0x1d8b   : > { %v19538_v22 = vpop.f32.mrb[170].mxu1 }
0x1d8c   : > { %v15176_v46 = vpop.f32.mrb[171].mxu1 }
0x1d94   : > { %v19552_v23 = vpop.f32.mrb[172].mxu1 }
0x1d95   : > { %v15350_v63 = vpop.f32.mrb[173].mxu1 }
0x1d96   : > { %v19531_v6 = vpop.f32.mrb[172].mxu0 }
0x1d97   : > { %15604 = vrot.lane.b32.xlu1 %v19531_v6, %s26989_s23  ;;  %v15089_v0 = vpop.f32.mrb[173].mxu0 }
0x1d98   : > { %15602 = vrot.lane.b32.xlu0 %v15089_v0, %s26989_s23  ;;  %v26998_v0 = vld [vmem:[#allocation2_spill] sm:$0xff] }
0x1d9a   : > { %v19545_v62 = vpop.f32.mrb[174].mxu0 }
0x1d9b   : > { %v15263_v24 = vpop.f32.mrb[175].mxu0  ;;  %15608 = vrot.lane.b32.xlu1 %v19538_v22, %s26989_s23 }
0x1d9c   : > { %15606 = vrot.lane.b32.xlu0 %v15176_v46, %s26989_s23 }
0x1d9f   : > { %15612 = vrot.lane.b32.xlu1 %v19545_v62, %s26989_s23  ;;  %v15651_v62 = vsel %vm1014_vm2, %v26998_v0, %v25928_v16  ;;  %v15669_v16 = vsel %vm575_vm0, %v25934_v53, %v25964_v39  ;;  %v26999_v53 = vld [vmem:[#allocation18_spill] sm:$0xff] }
0x1da0   : > { %15610 = vrot.lane.b32.xlu0 %v15263_v24, %s26989_s23 }
0x1da3   : > { %15616 = vrot.lane.b32.xlu1 %v19552_v23, %s26989_s23 }
0x1da4   : > { %15614 = vrot.lane.b32.xlu0 %v15350_v63, %s26989_s23  ;;  %v26997_v63 = vld [vmem:[#allocation4_spill] sm:$0xff] }
0x1dca   : > { %v19559_v49 = vpop.f32.mrb[176].mxu0 }
0x1dcb   : > { %v15437_v28 = vpop.f32.mrb[177].mxu0  ;;  %15620 = vrot.lane.b32.xlu1 %v19559_v49, %s26989_s23 }
0x1dcc   : > { %15618 = vrot.lane.b32.xlu0 %v15437_v28, %s26989_s23 }
0x1de4   : > { %v15593_v42 = vpop.permute.xlu1 %15592 }
0x1de5   : > { %v15591_v15 = vpop.permute.xlu0 %15590  ;;  %v15671_v37 = vsel %vm7633_vm4, %v15655_v3, %v15593_v42 }
0x1de6   : > { %v15670_v12 = vsel %vm7633_vm4, %v15654_v9, %v15591_v15 }
0x1de7   : > { %19568 = vmatprep.mubr.msk.f32.mxu1 %vm798_vm1, %v15670_v12 }
0x1de8   : > { %19569 = vmatmul.mubr.msk.f32.vlgmr.msra.gmra.mrb[174].mxu1 %vm798_vm1, %v15671_v37 }
0x1def   : > { %v15597_v61 = vpop.permute.xlu1 %15596 }
0x1df0   : > { %v15595_v48 = vpop.permute.xlu0 %15594  ;;  %v15673_v10 = vsel %vm7633_vm4, %v15657_v50, %v15597_v61  ;;  %v27001_v61 = vld [vmem:[#allocation42_spill] sm:$0xff] }
0x1df1   : > { %v15672_v51 = vsel %vm7633_vm4, %v15656_v40, %v15595_v48 }
0x1df2   : > { %19571 = vmatprep.mubr.msk.f32.mxu1 %vm798_vm1, %v15672_v51 }
0x1df3   : > { %19572 = vmatmul.mubr.msk.f32.gmra.mrb[176].mxu1 %vm798_vm1, %v15673_v10 }
0x1df4   : > { %v15601_v4 = vpop.permute.xlu1 %15600 }
0x1df5   : > { %v15599_v54 = vpop.permute.xlu0 %15598  ;;  %v15675_v35 = vsel %vm7633_vm4, %v15659_v25, %v15601_v4 }
0x1df6   : > { %v15674_v26 = vsel %vm7633_vm4, %v15658_v5, %v15599_v54  ;;  %v27004_v5 = vld [vmem:[#allocation37_spill] sm:$0xff] }
0x1df7   : > { %19574 = vmatprep.mubr.msk.f32.mxu1 %vm798_vm1, %v15674_v26 }
0x1df8   : > { %19575 = vmatmul.mubr.msk.f32.gmra.mrb[178].mxu1 %vm798_vm1, %v15675_v35 }
0x1e09   : > { %v15605_v18 = vpop.permute.xlu1 %15604 }
0x1e0a   : > { %v15603_v13 = vpop.permute.xlu0 %15602  ;;  %v15677_v20 = vsel %vm7633_vm4, %v25916_v59, %v15605_v18  ;;  %v27005_v18 = vld [vmem:[#allocation39_spill] sm:$0xff] }
0x1e0b   : > { %v15676_v52 = vsel %vm7633_vm4, %v15660_v17, %v15603_v13  ;;  %v27006_v13 = vld [vmem:[#allocation38_spill] sm:$0xff] }
0x1e0c   : > { %19577 = vmatprep.mubr.msk.f32.mxu1 %vm798_vm1, %v15676_v52 }
0x1e0d   : > { %19578 = vmatmul.mubr.msk.f32.gmra.mrb[180].mxu1 %vm798_vm1, %v15677_v20  ;;  %v15609_v32 = vpop.permute.xlu1 %15608 }
0x1e0e   : > { %v15607_v1 = vpop.permute.xlu0 %15606  ;;  %v15679_v60 = vsel %vm7633_vm4, %v25921_v41, %v15609_v32 }
0x1e0f   : > { %v15678_v22 = vsel %vm7633_vm4, %v25882_v8, %v15607_v1  ;;  %v15650_v8 = vsel %vm1014_vm2, %v26997_v63, %v25889_v34 }
0x1e10   : > { %19580 = vmatprep.mubr.msk.f32.mxu1 %vm798_vm1, %v15678_v22  ;;  %v15666_v6 = vsel %vm575_vm0, %v15650_v8, %v25893_v2  ;;  %v15668_v2 = vsel %vm575_vm0, %v25902_v57, %v25966_v14 }
0x1e11   : > { %v15613_v27 = vpop.permute.xlu1 %15612  ;;  %19581 = vmatmul.mubr.msk.f32.gmra.mrb[182].mxu1 %vm798_vm1, %v15679_v60 }
0x1e12   : > { %v15611_v46 = vpop.permute.xlu0 %15610  ;;  %v15681_v23 = vsel %vm7633_vm4, %v25926_v38, %v15613_v27  ;;  %v15667_v38 = vsel %vm575_vm0, %v15651_v62, %v25930_v45 }
0x1e13   : > { %v15680_v59 = vsel %vm7633_vm4, %v25887_v47, %v15611_v46  ;;  %v27007_v46 = vld [vmem:[#allocation41_spill] sm:$0xff] }
0x1e14   : > { %19583 = vmatprep.mubr.msk.f32.mxu1 %vm798_vm1, %v15680_v59 }
0x1e15   : > { %19584 = vmatmul.mubr.msk.f32.gmra.mrb[184].mxu1 %vm798_vm1, %v15681_v23  ;;  %v15617_v41 = vpop.permute.xlu1 %15616  ;;  %v27008_v23 = vld [vmem:[#allocation40_spill] sm:$0xff] }
0x1e16   : > { %v15615_v47 = vpop.permute.xlu0 %15614  ;;  %v15683_v49 = vsel %vm7633_vm4, %v15667_v38, %v15617_v41  ;;  %v27009_v38 = vld [vmem:[#allocation21_spill] sm:$0xff] }
0x1e17   : > { %v15682_v24 = vsel %vm7633_vm4, %v15666_v6, %v15615_v47 }
0x1e18   : > { %19586 = vmatprep.mubr.msk.f32.mxu1 %vm798_vm1, %v15682_v24 }
0x1e19   : > { %19587 = vmatmul.mubr.msk.f32.gmra.mrb[186].mxu1 %vm798_vm1, %v15683_v49  ;;  %v27010_v49 = vld [vmem:[#allocation43_spill] sm:$0xff] }
0x1e3d   : > { %v15621_v34 = vpop.permute.xlu1 %15620 }
0x1e3e   : > { %v15619_v28 = vpop.permute.xlu0 %15618  ;;  %v15685_v43 = vsel %vm7633_vm4, %v15669_v16, %v15621_v34 }
0x1e3f   : > { %v15684_v45 = vsel %vm7633_vm4, %v15668_v2, %v15619_v28 }
0x1e40   : > { %19589 = vmatprep.mubr.msk.f32.mxu1 %vm798_vm1, %v15684_v45 }
0x1e41   : > { %19590 = vmatmul.mubr.msk.f32.gmra.mrb[188].mxu1 %vm798_vm1, %v15685_v43 }
0x1ebb   : > { %v19570_v42 = vpop.f32.mrb[174].mxu1 }
0x1ebc   : > { %v15819_v57 = vadd.f32 %v19570_v42, %v26059_v29  ;;  %v15813_v14 = vpop.f32.mrb[175].mxu1 }
0x1ebd   : > { %v15814_v9 = vadd.f32 %v26059_v29, %v15813_v14 }
0x1ebe   : > { %v26064_v39 = vadd.f32 %v15819_v57, %v26999_v53  ;;  %v27011_v57 = vld [vmem:[#allocation23_spill] sm:$0xff] }
0x1ebf   : > { %v26067_v31 = vadd.f32 %v15814_v9, %v27000_v56  ;;  %v27012_v9 = vld [vmem:[#allocation20_spill] sm:$0xff] }
0x1ec0   : > { %v15915_v15 = vsel %vm798_vm1, %v26064_v39, 0.0 }
0x1ec1   : > { %15916 = vadd.xlane.f32.xlu1 %v15915_v15  ;;  %v15912_v3 = vsel %vm798_vm1, %v26067_v31, 0.0 }
0x1ec2   : > { %15913 = vadd.xlane.f32.xlu0 %v15912_v3 }
0x1ec6   : > { %v19573_v12 = vpop.f32.mrb[176].mxu1 }
0x1ec7   : > { %v15823_v37 = vpop.f32.mrb[177].mxu1  ;;  %v15829_v58 = vadd.f32 %v19573_v12, %v26059_v29 }
0x1ec8   : > { %v15824_v19 = vadd.f32 %v26059_v29, %v15823_v37 }
0x1ec9   : > { %v26079_v48 = vadd.f32 %v15829_v58, %v27002_v36 }
0x1eca   : > { %v26076_v40 = vadd.f32 %v15824_v19, %v27001_v61  ;;  %v27013_v19 = vld [vmem:[#allocation25_spill] sm:$0xff] }
0x1ecb   : > { %v19576_v44 = vpop.f32.mrb[178].mxu1  ;;  %v15921_v21 = vsel %vm798_vm1, %v26079_v48, 0.0 }
0x1ecc   : > { %v15839_v50 = vadd.f32 %v19576_v44, %v26059_v29  ;;  %v15833_v51 = vpop.f32.mrb[179].mxu1  ;;  %v15918_v10 = vsel %vm798_vm1, %v26076_v40, 0.0  ;;  %v27014_v44 = vld [vmem:[#allocation22_spill] sm:$0xff] }
0x1ecd   : > { %v15834_v11 = vadd.f32 %v26059_v29, %v15833_v51  ;;  %15919 = vadd.xlane.f32.xlu0 %v15918_v10 }
0x1ece   : > { %v26089_v33 = vadd.f32 %v15839_v50, %v27004_v5 }
0x1ecf   : > { %v26086_v4 = vadd.f32 %v15834_v11, %v27003_v55 }
0x1ed0   : > { %v15927_v25 = vsel %vm798_vm1, %v26089_v33, 0.0 }
0x1ed1   : > { %v15924_v54 = vsel %vm798_vm1, %v26086_v4, 0.0  ;;  %15922 = vadd.xlane.f32.xlu0 %v15921_v21 }
0x1ed2   : > { %15925 = vadd.xlane.f32.xlu1 %v15924_v54 }
0x1ed5   : > { %15928 = vadd.xlane.f32.xlu0 %v15927_v25 }
0x1ee0   : > { %v19579_v26 = vpop.f32.mrb[180].mxu1 }
0x1ee1   : > { %v15849_v35 = vadd.f32 %v19579_v26, %v26059_v29  ;;  %v15843_v7 = vpop.f32.mrb[181].mxu1 }
0x1ee2   : > { %v15844_v30 = vadd.f32 %v26059_v29, %v15843_v7 }
0x1ee3   : > { %v26100_v17 = vadd.f32 %v15849_v35, %v27005_v18 }
0x1ee4   : > { %v26103_v52 = vadd.f32 %v15844_v30, %v27006_v13  ;;  %v19582_v20 = vpop.f32.mrb[182].mxu1 }
0x1ee5   : > { %v15859_v32 = vadd.f32 %v19582_v20, %v26059_v29  ;;  %v15853_v1 = vpop.f32.mrb[183].mxu1  ;;  %v15933_v22 = vsel %vm798_vm1, %v26100_v17, 0.0 }
0x1ee6   : > { %v15854_v60 = vadd.f32 %v26059_v29, %v15853_v1  ;;  %15934 = vadd.xlane.f32.xlu0 %v15933_v22  ;;  %v15930_v27 = vsel %vm798_vm1, %v26103_v52, 0.0 }
0x1ee7   : > { %v26112_v59 = vadd.f32 %v15859_v32, %v27007_v46  ;;  %15931 = vadd.xlane.f32.xlu1 %v15930_v27 }
0x1ee8   : > { %v26115_v63 = vadd.f32 %v15854_v60, %v27008_v23  ;;  %v19585_v8 = vpop.f32.mrb[184].mxu1 }
0x1ee9   : > { %v15869_v41 = vadd.f32 %v19585_v8, %v26059_v29  ;;  %v15863_v6 = vpop.f32.mrb[185].mxu1  ;;  %v15939_v0 = vsel %vm798_vm1, %v26112_v59, 0.0 }
0x1eea   : > { %v15864_v62 = vadd.f32 %v26059_v29, %v15863_v6  ;;  %15940 = vadd.xlane.f32.xlu0 %v15939_v0  ;;  %v15936_v47 = vsel %vm798_vm1, %v26115_v63, 0.0  ;;  %v17677_v0 = vld [vmem:[%s26751_s9 + $0x20] sm:$0xff] }
0x1eeb   : > { %v26124_v24 = vadd.f32 %v15869_v41, %v27009_v38  ;;  %15937 = vadd.xlane.f32.xlu1 %v15936_v47 }
0x1eec   : > { %v26127_v34 = vadd.f32 %v15864_v62, %v27010_v49  ;;  %v19588_v2 = vpop.f32.mrb[186].mxu1 }
0x1eed   : > { %v15879_v28 = vadd.f32 %v19588_v2, %v26059_v29  ;;  %v15873_v16 = vpop.f32.mrb[187].mxu1  ;;  %v15945_v45 = vsel %vm798_vm1, %v26124_v24, 0.0 }
0x1eee   : > { %v15874_v43 = vadd.f32 %v26059_v29, %v15873_v16  ;;  %15946 = vadd.xlane.f32.xlu0 %v15945_v45  ;;  %v15942_v42 = vsel %vm798_vm1, %v26127_v34, 0.0  ;;  %v17679_v16 = vld [vmem:[%s26751_s9 + $0x30] sm:$0xff]  ;;  %v17680_v45 = vld [vmem:[%s26751_s9 + $0x38] sm:$0xff] }
0x1eef   : > { %v26136_v14 = vadd.f32 %v15879_v28, %v27011_v57  ;;  %15943 = vadd.xlane.f32.xlu1 %v15942_v42  ;;  %v20400_v57 = vpack.c.bf16 %v17680_v45, %v17679_v16 }
0x1ef0   : > { %v26139_v53 = vadd.f32 %v15874_v43, %v27012_v9 }
0x1ef1   : > { %v15951_v56 = vsel %vm798_vm1, %v26136_v14, 0.0 }
0x1ef2   : > { %15952 = vadd.xlane.f32.xlu0 %v15951_v56  ;;  %v15948_v15 = vsel %vm798_vm1, %v26139_v53, 0.0 }
0x1ef3   : > { %15949 = vadd.xlane.f32.xlu1 %v15948_v15 }
0x1f14   : > { %v19591_v3 = vpop.f32.mrb[188].mxu1 }
0x1f15   : > { %v15889_v12 = vadd.f32 %v19591_v3, %v26059_v29  ;;  %v15883_v37 = vpop.f32.mrb[189].mxu1 }
0x1f16   : > { %v15884_v58 = vadd.f32 %v26059_v29, %v15883_v37 }
0x1f17   : > { %v26148_v61 = vadd.f32 %v15889_v12, %v27013_v19 }
0x1f18   : > { %v26151_v36 = vadd.f32 %v15884_v58, %v27014_v44 }
0x1f19   : > { %v15957_v50 = vsel %vm798_vm1, %v26148_v61, 0.0 }
0x1f1a   : > { %15958 = vadd.xlane.f32.xlu0 %v15957_v50  ;;  %v15954_v51 = vsel %vm798_vm1, %v26151_v36, 0.0 }
0x1f1b   : > { %15955 = vadd.xlane.f32.xlu1 %v15954_v51 }
0x1f4e   : > { %v15917_v10 = vpop.xlane.xlu1 %15916 }
0x1f4f   : > { %v15961_v11 = vmul.f32 0.03125, %v15917_v10  ;;  %v15914_v55 = vpop.xlane.xlu0 %15913 }
0x1f50   : > { %v15960_v5 = vmul.f32 0.03125, %v15914_v55 }
0x1f51   : > { %v26158_v29 = vsub.f32 %v26064_v39, %v15961_v11 }
0x1f52   : > { %v26161_v21 = vsub.f32 %v26067_v31, %v15960_v5 }
0x1f53   : > { %v15993_v54 = vmul.f32 %v26158_v29, %v26158_v29 }
0x1f54   : > { %v15992_v25 = vmul.f32 %v26161_v21, %v26161_v21 }
0x1f55   : > { %v16011_v26 = vsel %vm798_vm1, %v15993_v54, 0.0 }
0x1f56   : > { %16012 = vadd.xlane.f32.xlu0 %v16011_v26  ;;  %v16008_v35 = vsel %vm798_vm1, %v15992_v25, 0.0 }
0x1f57   : > { %16009 = vadd.xlane.f32.xlu1 %v16008_v35 }
0x1f5a   : > { %v15920_v7 = vpop.xlane.xlu0 %15919 }
0x1f5b   : > { %v15962_v30 = vmul.f32 0.03125, %v15920_v7 }
0x1f5d   : > { %v26170_v39 = vsub.f32 %v26076_v40, %v15962_v30 }
0x1f5e   : > { %v15923_v18 = vpop.xlane.xlu0 %15922 }
0x1f5f   : > { %v15926_v31 = vpop.xlane.xlu1 %15925  ;;  %v15963_v13 = vmul.f32 0.03125, %v15923_v18  ;;  %v15994_v20 = vmul.f32 %v26170_v39, %v26170_v39 }
0x1f60   : > { %v15964_v32 = vmul.f32 0.03125, %v15926_v31 }
0x1f61   : > { %v26175_v1 = vsub.f32 %v26079_v48, %v15963_v13  ;;  %v16014_v22 = vsel %vm798_vm1, %v15994_v20, 0.0 }
0x1f62   : > { %v26179_v60 = vsub.f32 %v26086_v4, %v15964_v32  ;;  %16015 = vadd.xlane.f32.xlu1 %v16014_v22  ;;  %v15929_v27 = vpop.xlane.xlu0 %15928 }
0x1f63   : > { %v15965_v46 = vmul.f32 0.03125, %v15929_v27  ;;  %v15995_v40 = vmul.f32 %v26175_v1, %v26175_v1 }
0x1f64   : > { %v15996_v23 = vmul.f32 %v26179_v60, %v26179_v60 }
0x1f65   : > { %v26186_v8 = vsub.f32 %v26089_v33, %v15965_v46  ;;  %v16017_v48 = vsel %vm798_vm1, %v15995_v40, 0.0  ;;  %v17678_v33 = vld [vmem:[%s26751_s9 + $0x28] sm:$0xff] }
0x1f66   : > { %v16020_v41 = vsel %vm798_vm1, %v15996_v23, 0.0  ;;  %16018 = vadd.xlane.f32.xlu0 %v16017_v48  ;;  %v20396_v47 = vpack.c.bf16 %v17678_v33, %v17677_v0  ;;  %v17701_v0 = vld [vmem:[%s26753_s11 + $0x50] sm:$0xff] }
0x1f67   : > { %16021 = vadd.xlane.f32.xlu1 %v16020_v41  ;;  %v15997_v4 = vmul.f32 %v26186_v8, %v26186_v8 }
0x1f68   : > { %20397 = vmatprep.subr.bf16.mxu0 %v20396_v47 }
0x1f69   : > { %v16023_v6 = vsel %vm798_vm1, %v15997_v4, 0.0  ;;  %20399 = vmatpush3.bf16.msra.mxu0 %v20396_v47 }
0x1f6a   : > { %16024 = vadd.xlane.f32.xlu0 %v16023_v6  ;;  %20401 = vmatprep.subr.bf16.mxu0 %v20400_v57 }
0x1f6d   : > { %20403 = vmatpush3.bf16.msra.mxu0 %v20400_v57 }
0x1f73   : > { %v15935_v62 = vpop.xlane.xlu0 %15934 }
0x1f74   : > { %v15967_v38 = vmul.f32 0.03125, %v15935_v62  ;;  %v15932_v49 = vpop.xlane.xlu1 %15931  ;;  %v17702_v62 = vld [vmem:[%s26753_s11 + $0x58] sm:$0xff] }
0x1f75   : > { %v15966_v2 = vmul.f32 0.03125, %v15932_v49  ;;  %v20408_v47 = vpack.c.bf16 %v17702_v62, %v17701_v0  ;;  %v17704_v49 = vld [vmem:[%s26753_s11 + $0x68] sm:$0xff] }
0x1f76   : > { %v26200_v28 = vsub.f32 %v26100_v17, %v15967_v38  ;;  %v17703_v38 = vld [vmem:[%s26753_s11 + $0x60] sm:$0xff] }
0x1f77   : > { %v26209_v43 = vsub.f32 %v26103_v52, %v15966_v2  ;;  %v15941_v42 = vpop.xlane.xlu0 %15940  ;;  %v20412_v2 = vpack.c.bf16 %v17704_v49, %v17703_v38 }
0x1f78   : > { %v15969_v9 = vmul.f32 0.03125, %v15941_v42  ;;  %v15938_v56 = vpop.xlane.xlu1 %15937  ;;  %v15999_v17 = vmul.f32 %v26200_v28, %v26200_v28 }
0x1f79   : > { %v15968_v15 = vmul.f32 0.03125, %v15938_v56  ;;  %v15998_v3 = vmul.f32 %v26209_v43, %v26209_v43 }
0x1f7a   : > { %v26216_v12 = vsub.f32 %v26112_v59, %v15969_v9  ;;  %v16029_v37 = vsel %vm798_vm1, %v15999_v17, 0.0 }
0x1f7b   : > { %v26220_v52 = vsub.f32 %v26115_v63, %v15968_v15  ;;  %16030 = vadd.xlane.f32.xlu0 %v16029_v37  ;;  %v15947_v58 = vpop.xlane.xlu0 %15946  ;;  %v16026_v19 = vsel %vm798_vm1, %v15998_v3, 0.0 }
0x1f7c   : > { %v15971_v44 = vmul.f32 0.03125, %v15947_v58  ;;  %v15944_v50 = vpop.xlane.xlu1 %15943  ;;  %16027 = vadd.xlane.f32.xlu1 %v16026_v19  ;;  %v16001_v51 = vmul.f32 %v26216_v12, %v26216_v12  ;;  %v26286_v58 = vld [vmem:[%s26749_s7 + $0x1] ss:$0 sm:$0xff] }
0x1f7d   : > { %v15970_v10 = vmul.f32 0.03125, %v15944_v50  ;;  %v16000_v59 = vmul.f32 %v26220_v52, %v26220_v52 }
0x1f7e   : > { %v26228_v11 = vsub.f32 %v26124_v24, %v15971_v44  ;;  %v16035_v63 = vsel %vm798_vm1, %v16001_v51, 0.0 }
0x1f7f   : > { %v26232_v55 = vsub.f32 %v26127_v34, %v15970_v10  ;;  %16036 = vadd.xlane.f32.xlu0 %v16035_v63  ;;  %v15953_v5 = vpop.xlane.xlu0 %15952  ;;  %v16032_v54 = vsel %vm798_vm1, %v16000_v59, 0.0 }
0x1f80   : > { %v15973_v25 = vmul.f32 0.03125, %v15953_v5  ;;  %v15950_v26 = vpop.xlane.xlu1 %15949  ;;  %16033 = vadd.xlane.f32.xlu1 %v16032_v54  ;;  %v16003_v35 = vmul.f32 %v26228_v11, %v26228_v11  ;;  %v26293_v5 = vld [vmem:[%s26750_s8 + $0x1] ss:$0 sm:$0xff] }
0x1f81   : > { %v15972_v7 = vmul.f32 0.03125, %v15950_v26  ;;  %v16002_v24 = vmul.f32 %v26232_v55, %v26232_v55 }
0x1f82   : > { %v26240_v30 = vsub.f32 %v26136_v14, %v15973_v25  ;;  %v16041_v34 = vsel %vm798_vm1, %v16003_v35, 0.0 }
0x1f83   : > { %v26244_v18 = vsub.f32 %v26139_v53, %v15972_v7  ;;  %16042 = vadd.xlane.f32.xlu0 %v16041_v34  ;;  %v16038_v31 = vsel %vm798_vm1, %v16002_v24, 0.0 }
0x1f84   : > { %16039 = vadd.xlane.f32.xlu1 %v16038_v31  ;;  %v16005_v13 = vmul.f32 %v26240_v30, %v26240_v30 }
0x1f85   : > { %v16004_v20 = vmul.f32 %v26244_v18, %v26244_v18 }
0x1f86   : > { %v16047_v32 = vsel %vm798_vm1, %v16005_v13, 0.0 }
0x1f87   : > { %16048 = vadd.xlane.f32.xlu0 %v16047_v32  ;;  %v16044_v14 = vsel %vm798_vm1, %v16004_v20, 0.0 }
0x1f88   : > { %16045 = vadd.xlane.f32.xlu1 %v16044_v14 }
0x1fa7   : > { %v15959_v22 = vpop.xlane.xlu0 %15958 }
0x1fa8   : > { %v15975_v27 = vmul.f32 0.03125, %v15959_v22  ;;  %v15956_v53 = vpop.xlane.xlu1 %15955 }
0x1fa9   : > { %v15974_v46 = vmul.f32 0.03125, %v15956_v53 }
0x1faa   : > { %v26254_v40 = vsub.f32 %v26148_v61, %v15975_v27  ;;  %v17699_v61 = vld [vmem:[%s26753_s11 + $0x40] sm:$0xff] }
0x1fab   : > { %v26257_v23 = vsub.f32 %v26151_v36, %v15974_v46  ;;  %v17700_v36 = vld [vmem:[%s26753_s11 + $0x48] sm:$0xff] }
0x1fac   : > { %v16007_v48 = vmul.f32 %v26254_v40, %v26254_v40  ;;  %v20404_v33 = vpack.c.bf16 %v17700_v36, %v17699_v61 }
0x1fad   : > { %v16006_v41 = vmul.f32 %v26257_v23, %v26257_v23 }
0x1fae   : > { %v16053_v4 = vsel %vm798_vm1, %v16007_v48, 0.0  ;;  %20405 = vmatprep.subr.bf16.mxu1 %v20404_v33 }
0x1faf   : > { %16054 = vadd.xlane.f32.xlu0 %v16053_v4  ;;  %v16050_v6 = vsel %vm798_vm1, %v16006_v41, 0.0  ;;  %20407 = vmatpush3.bf16.msra.mxu1 %v20404_v33 }
0x1fb0   : > { %16051 = vadd.xlane.f32.xlu1 %v16050_v6  ;;  %20409 = vmatprep.subr.bf16.mxu1 %v20408_v47 }
0x1fb3   : > { %20411 = vmatpush3.bf16.msra.mxu1 %v20408_v47 }
0x1fb4   : > { %20413 = vmatprep.subr.bf16.mxu1 %v20412_v2 }
0x1fb7   : > { %20415 = vmatpush3.bf16.msra.mxu1 %v20412_v2 }
0x1fe3   : > { %v16013_v16 = vpop.xlane.xlu0 %16012 }
0x1fe4   : > { %v16057_v45 = vmul.f32 0.03125, %v16013_v16  ;;  %v16010_v42 = vpop.xlane.xlu1 %16009 }
0x1fe5   : > { %v16056_v57 = vmul.f32 0.03125, %v16010_v42 }
0x1fe6   : > { %v16073_v9 = vadd.f32 1e-05, %v16057_v45 }
0x1fe7   : > { %v16072_v56 = vadd.f32 1e-05, %v16056_v57 }
0x1fe8   : > { %21666 = vrsqrt.f32 %v16073_v9 }
0x1fe9   : > { %21668 = vrsqrt.f32 %v16072_v56 }
0x1fef   : > { %v16016_v17 = vpop.xlane.xlu1 %16015 }
0x1ff0   : > { %v16058_v15 = vmul.f32 0.03125, %v16016_v17 }
0x1ff2   : > { %v21667_v3 = vpop.eup %21666  ;;  %v16074_v37 = vadd.f32 1e-05, %v16058_v15 }
0x1ff3   : > { %v21669_v19 = vpop.eup %21668  ;;  %v16105_v44 = vmul.f32 %v21667_v3, %v26158_v29  ;;  %v16019_v50 = vpop.xlane.xlu0 %16018 }
0x1ff4   : > { %21670 = vrsqrt.f32 %v16074_v37  ;;  %v16022_v51 = vpop.xlane.xlu1 %16021  ;;  %v16059_v10 = vmul.f32 0.03125, %v16019_v50  ;;  %v16104_v59 = vmul.f32 %v21669_v19, %v26161_v21 }
0x1ff5   : > { %v16060_v63 = vmul.f32 0.03125, %v16022_v51  ;;  %v16127_v54 = vmul.f32 %v26286_v58, %v16105_v44 }
0x1ff6   : > { %v16075_v25 = vadd.f32 1e-05, %v16059_v10  ;;  %v16126_v26 = vmul.f32 %v26286_v58, %v16104_v59 }
0x1ff7   : > { %v16076_v35 = vadd.f32 1e-05, %v16060_v63  ;;  %v16025_v7 = vpop.xlane.xlu0 %16024  ;;  %v26301_v21 = vadd.f32 %v26293_v5, %v16127_v54 }
0x1ff8   : > { %21672 = vrsqrt.f32 %v16075_v25  ;;  %v16061_v29 = vmul.f32 0.03125, %v16025_v7  ;;  %v26298_v24 = vadd.f32 %v26293_v5, %v16126_v26 }
0x1ff9   : > { %21674 = vrsqrt.f32 %v16076_v35 }
0x1ffa   : > { %v16077_v34 = vadd.f32 1e-05, %v16061_v29  ;;  %19600 = vmatprep.mubr.msk.f32.mxu0 %vm798_vm1, %v26298_v24 }
0x1ffb   : > { %19601 = vmatmul.mubr.msk.f32.vlgmr.msra.gmra.mrb[178].mxu0 %vm798_vm1, %v26301_v21 }
0x1ffc   : > { %21676 = vrsqrt.f32 %v16077_v34 }
0x1ffe   : > { %v21671_v31 = vpop.eup %21670 }
0x1fff   : > { %v16106_v13 = vmul.f32 %v21671_v31, %v26170_v39 }
0x2001   : > { %v16128_v20 = vmul.f32 %v26286_v58, %v16106_v13 }
0x2002   : > { %v21673_v32 = vpop.eup %21672 }
0x2003   : > { %v21675_v14 = vpop.eup %21674  ;;  %v26310_v22 = vadd.f32 %v26293_v5, %v16128_v20  ;;  %v16107_v27 = vmul.f32 %v21673_v32, %v26175_v1 }
0x2004   : > { %v16108_v53 = vmul.f32 %v21675_v14, %v26179_v60 }
0x2005   : > { %19603 = vmatprep.mubr.msk.f32.mxu0 %vm798_vm1, %v26310_v22  ;;  %v16129_v46 = vmul.f32 %v26286_v58, %v16107_v27 }
0x2006   : > { %v21677_v48 = vpop.eup %21676  ;;  %v16130_v41 = vmul.f32 %v26286_v58, %v16108_v53 }
0x2007   : > { %v26319_v39 = vadd.f32 %v26293_v5, %v16129_v46  ;;  %v16109_v4 = vmul.f32 %v21677_v48, %v26186_v8 }
0x2008   : > { %v16031_v6 = vpop.xlane.xlu0 %16030  ;;  %v26323_v61 = vadd.f32 %v26293_v5, %v16130_v41 }
0x2009   : > { %v16063_v1 = vmul.f32 0.03125, %v16031_v6  ;;  %v16028_v36 = vpop.xlane.xlu1 %16027  ;;  %19604 = vmatmul.mubr.msk.f32.gmra.mrb[180].mxu0 %vm798_vm1, %v26319_v39  ;;  %v16131_v60 = vmul.f32 %v26286_v58, %v16109_v4 }
0x200a   : > { %v16062_v0 = vmul.f32 0.03125, %v16028_v36  ;;  %19606 = vmatprep.mubr.msk.f32.mxu0 %vm798_vm1, %v26323_v61 }
0x200b   : > { %v16079_v33 = vadd.f32 1e-05, %v16063_v1  ;;  %v26331_v62 = vadd.f32 %v26293_v5, %v16131_v60 }
0x200c   : > { %v16078_v8 = vadd.f32 1e-05, %v16062_v0  ;;  %v16037_v47 = vpop.xlane.xlu0 %16036 }
0x200d   : > { %21678 = vrsqrt.f32 %v16079_v33  ;;  %v16065_v38 = vmul.f32 0.03125, %v16037_v47  ;;  %v16034_v49 = vpop.xlane.xlu1 %16033  ;;  %19607 = vmatmul.mubr.msk.f32.gmra.mrb[182].mxu0 %vm798_vm1, %v26331_v62 }
0x200e   : > { %21680 = vrsqrt.f32 %v16078_v8  ;;  %v16064_v2 = vmul.f32 0.03125, %v16034_v49 }
0x200f   : > { %v16081_v16 = vadd.f32 1e-05, %v16065_v38 }
0x2010   : > { %v16080_v45 = vadd.f32 1e-05, %v16064_v2  ;;  %v16043_v42 = vpop.xlane.xlu0 %16042 }
0x2011   : > { %21682 = vrsqrt.f32 %v16081_v16  ;;  %v16067_v57 = vmul.f32 0.03125, %v16043_v42  ;;  %v16040_v9 = vpop.xlane.xlu1 %16039 }
0x2012   : > { %21684 = vrsqrt.f32 %v16080_v45  ;;  %v16066_v56 = vmul.f32 0.03125, %v16040_v9  ;;  %v17705_v9 = vld [vmem:[%s26753_s11 + $0x70] sm:$0xff] }
0x2013   : > { %v16083_v17 = vadd.f32 1e-05, %v16067_v57 }
0x2014   : > { %v16082_v15 = vadd.f32 1e-05, %v16066_v56  ;;  %v16049_v3 = vpop.xlane.xlu0 %16048  ;;  %v17706_v56 = vld [vmem:[%s26753_s11 + $0x78] sm:$0xff] }
0x2015   : > { %21686 = vrsqrt.f32 %v16083_v17  ;;  %v16069_v37 = vmul.f32 0.03125, %v16049_v3  ;;  %v16046_v19 = vpop.xlane.xlu1 %16045 }
0x2016   : > { %21688 = vrsqrt.f32 %v16082_v15  ;;  %v16068_v44 = vmul.f32 0.03125, %v16046_v19  ;;  %v20416_v15 = vpack.c.bf16 %v17706_v56, %v17705_v9 }
0x2017   : > { %v21679_v50 = vpop.eup %21678  ;;  %v16085_v51 = vadd.f32 1e-05, %v16069_v37 }
0x2018   : > { %v21681_v10 = vpop.eup %21680  ;;  %v16084_v59 = vadd.f32 1e-05, %v16068_v44  ;;  %v16111_v63 = vmul.f32 %v21679_v50, %v26200_v28  ;;  %20417 = vmatprep.subr.bf16.mxu1 %v20416_v15 }
0x2019   : > { %21690 = vrsqrt.f32 %v16085_v51  ;;  %v16110_v54 = vmul.f32 %v21681_v10, %v26209_v43  ;;  %20419 = vmatpush3.bf16.msra.mxu1 %v20416_v15 }
0x201a   : > { %21692 = vrsqrt.f32 %v16084_v59  ;;  %v16133_v25 = vmul.f32 %v26286_v58, %v16111_v63 }
0x201b   : > { %v21683_v26 = vpop.eup %21682  ;;  %v16132_v35 = vmul.f32 %v26286_v58, %v16110_v54 }
0x201c   : > { %v21685_v7 = vpop.eup %21684  ;;  %v16113_v29 = vmul.f32 %v21683_v26, %v26216_v12  ;;  %v26345_v13 = vadd.f32 %v26293_v5, %v16133_v25 }
0x201d   : > { %v26341_v34 = vadd.f32 %v26293_v5, %v16132_v35  ;;  %v16112_v31 = vmul.f32 %v21685_v7, %v26220_v52 }
0x201e   : > { %v16135_v28 = vmul.f32 %v26286_v58, %v16113_v29 }
0x201f   : > { %v21687_v43 = vpop.eup %21686  ;;  %19609 = vmatprep.mubr.msk.f32.mxu0 %vm798_vm1, %v26341_v34  ;;  %v16134_v20 = vmul.f32 %v26286_v58, %v16112_v31 }
0x2020   : > { %v21689_v32 = vpop.eup %21688  ;;  %19610 = vmatmul.mubr.msk.f32.gmra.mrb[184].mxu0 %vm798_vm1, %v26345_v13  ;;  %v16115_v12 = vmul.f32 %v21687_v43, %v26228_v11  ;;  %v26359_v27 = vadd.f32 %v26293_v5, %v16135_v28 }
0x2021   : > { %v26355_v14 = vadd.f32 %v26293_v5, %v16134_v20  ;;  %v16114_v52 = vmul.f32 %v21689_v32, %v26232_v55 }
0x2022   : > { %v16137_v53 = vmul.f32 %v26286_v58, %v16115_v12 }
0x2023   : > { %v21691_v46 = vpop.eup %21690  ;;  %19612 = vmatprep.mubr.msk.f32.mxu0 %vm798_vm1, %v26355_v14  ;;  %v16136_v48 = vmul.f32 %v26286_v58, %v16114_v52 }
0x2024   : > { %v21693_v41 = vpop.eup %21692  ;;  %19613 = vmatmul.mubr.msk.f32.gmra.mrb[186].mxu0 %vm798_vm1, %v26359_v27  ;;  %v16117_v11 = vmul.f32 %v21691_v46, %v26240_v30  ;;  %v26373_v6 = vadd.f32 %v26293_v5, %v16137_v53 }
0x2025   : > { %v26369_v4 = vadd.f32 %v26293_v5, %v16136_v48  ;;  %v16116_v55 = vmul.f32 %v21693_v41, %v26244_v18 }
0x2026   : > { %v16139_v1 = vmul.f32 %v26286_v58, %v16117_v11 }
0x2027   : > { %19615 = vmatprep.mubr.msk.f32.mxu0 %vm798_vm1, %v26369_v4  ;;  %v16138_v36 = vmul.f32 %v26286_v58, %v16116_v55 }
0x2028   : > { %19616 = vmatmul.mubr.msk.f32.gmra.mrb[188].mxu0 %vm798_vm1, %v26373_v6  ;;  %v26385_v60 = vadd.f32 %v26293_v5, %v16139_v1 }
0x2029   : > { %v26382_v30 = vadd.f32 %v26293_v5, %v16138_v36 }
0x202b   : > { %19618 = vmatprep.mubr.msk.f32.mxu0 %vm798_vm1, %v26382_v30 }
0x202c   : > { %19619 = vmatmul.mubr.msk.f32.gmra.mrb[190].mxu0 %vm798_vm1, %v26385_v60 }
0x203c   : > { %v16055_v18 = vpop.xlane.xlu0 %16054 }
0x203d   : > { %v16071_v0 = vmul.f32 0.03125, %v16055_v18  ;;  %v16052_v33 = vpop.xlane.xlu1 %16051 }
0x203e   : > { %v16070_v8 = vmul.f32 0.03125, %v16052_v33 }
0x203f   : > { %v16087_v47 = vadd.f32 1e-05, %v16071_v0 }
0x2040   : > { %v16086_v38 = vadd.f32 1e-05, %v16070_v8 }
0x2041   : > { %21694 = vrsqrt.f32 %v16087_v47 }
0x2042   : > { %21696 = vrsqrt.f32 %v16086_v38 }
0x204b   : > { %v21695_v49 = vpop.eup %21694 }
0x204c   : > { %v21697_v2 = vpop.eup %21696  ;;  %v16119_v16 = vmul.f32 %v21695_v49, %v26254_v40 }
0x204d   : > { %v16118_v45 = vmul.f32 %v21697_v2, %v26257_v23  ;;  %v17682_v23 = vld [vmem:[%s26752_s10 + $0x1] ss:$0 sm:$0xff] }
0x204e   : > { %v16141_v42 = vmul.f32 %v26286_v58, %v16119_v16 }
0x204f   : > { %v16140_v57 = vmul.f32 %v26286_v58, %v16118_v45 }
0x2050   : > { %v26405_v40 = vadd.f32 %v26293_v5, %v16141_v42 }
0x2051   : > { %v26402_v17 = vadd.f32 %v26293_v5, %v16140_v57 }
0x2053   : > { %19621 = vmatprep.mubr.msk.f32.mxu0 %vm798_vm1, %v26402_v17 }
0x2054   : > { %19622 = vmatmul.mubr.msk.f32.gmra.mrb[192].mxu0 %vm798_vm1, %v26405_v40 }
0x20ce   : > { %v19602_v58 = vpop.f32.mrb[178].mxu0 }
0x20cf   : > { %v16297_v3 = vadd.f32 %v19602_v58, %v17682_v23  ;;  %v16291_v37 = vpop.f32.mrb[179].mxu0 }
0x20d0   : > { %v16292_v19 = vadd.f32 %v17682_v23, %v16291_v37 }
0x20d1   : > { %v16371_v50 = vmax.f32 %v16297_v3, 0.0  ;;  %v26433_v3 = vld [vmem:[%s26754_s12 + $0x1] ss:$0 sm:$0xff] }
0x20d2   : > { %v16370_v44 = vmax.f32 %v16292_v19, 0.0 }
0x20d4   : > { %19640 = vmatprep.mubr.msk.f32.mxu1 %vm8360_vm5, %v16370_v44 }
0x20d5   : > { %19641 = vmatmul.mubr.msk.f32.vlgmr.msra.gmra.mrb[190].mxu1 %vm8360_vm5, %v16371_v50 }
0x20dc   : > { %v19605_v5 = vpop.f32.mrb[180].mxu0 }
0x20dd   : > { %v16307_v51 = vadd.f32 %v19605_v5, %v17682_v23  ;;  %v16301_v10 = vpop.f32.mrb[181].mxu0 }
0x20de   : > { %v16302_v59 = vadd.f32 %v17682_v23, %v16301_v10 }
0x20df   : > { %v16373_v25 = vmax.f32 %v16307_v51, 0.0 }
0x20e0   : > { %v16372_v63 = vmax.f32 %v16302_v59, 0.0  ;;  %v19608_v54 = vpop.f32.mrb[182].mxu0 }
0x20e1   : > { %v16317_v26 = vadd.f32 %v19608_v54, %v17682_v23  ;;  %v16311_v35 = vpop.f32.mrb[183].mxu0 }
0x20e2   : > { %v16312_v7 = vadd.f32 %v17682_v23, %v16311_v35  ;;  %19643 = vmatprep.mubr.msk.f32.mxu1 %vm8360_vm5, %v16372_v63 }
0x20e3   : > { %19644 = vmatmul.mubr.msk.f32.gmra.mrb[192].mxu1 %vm8360_vm5, %v16373_v25  ;;  %v16375_v31 = vmax.f32 %v16317_v26, 0.0 }
0x20e4   : > { %v16374_v29 = vmax.f32 %v16312_v7, 0.0 }
0x20e6   : > { %19646 = vmatprep.mubr.msk.f32.mxu1 %vm8360_vm5, %v16374_v29 }
0x20e7   : > { %19647 = vmatmul.mubr.msk.f32.gmra.mrb[194].mxu1 %vm8360_vm5, %v16375_v31 }
0x20f3   : > { %v19611_v28 = vpop.f32.mrb[184].mxu0 }
0x20f4   : > { %v16327_v43 = vadd.f32 %v19611_v28, %v17682_v23  ;;  %v16321_v20 = vpop.f32.mrb[185].mxu0 }
0x20f5   : > { %v16322_v32 = vadd.f32 %v17682_v23, %v16321_v20 }
0x20f6   : > { %v16377_v53 = vmax.f32 %v16327_v43, 0.0 }
0x20f7   : > { %v16376_v12 = vmax.f32 %v16322_v32, 0.0  ;;  %v19614_v52 = vpop.f32.mrb[186].mxu0 }
0x20f8   : > { %v16337_v46 = vadd.f32 %v19614_v52, %v17682_v23  ;;  %v16331_v48 = vpop.f32.mrb[187].mxu0 }
0x20f9   : > { %v16332_v41 = vadd.f32 %v17682_v23, %v16331_v48  ;;  %19649 = vmatprep.mubr.msk.f32.mxu1 %vm8360_vm5, %v16376_v12 }
0x20fa   : > { %19650 = vmatmul.mubr.msk.f32.gmra.mrb[196].mxu1 %vm8360_vm5, %v16377_v53  ;;  %v16379_v1 = vmax.f32 %v16337_v46, 0.0 }
0x20fb   : > { %v16378_v11 = vmax.f32 %v16332_v41, 0.0  ;;  %v19617_v55 = vpop.f32.mrb[188].mxu0 }
0x20fc   : > { %v16347_v36 = vadd.f32 %v19617_v55, %v17682_v23  ;;  %v16341_v18 = vpop.f32.mrb[189].mxu0 }
0x20fd   : > { %v16342_v0 = vadd.f32 %v17682_v23, %v16341_v18  ;;  %19652 = vmatprep.mubr.msk.f32.mxu1 %vm8360_vm5, %v16378_v11 }
0x20fe   : > { %19653 = vmatmul.mubr.msk.f32.gmra.mrb[198].mxu1 %vm8360_vm5, %v16379_v1  ;;  %v16381_v47 = vmax.f32 %v16347_v36, 0.0 }
0x20ff   : > { %v16380_v33 = vmax.f32 %v16342_v0, 0.0  ;;  %v19620_v8 = vpop.f32.mrb[190].mxu0 }
0x2100   : > { %v16357_v38 = vadd.f32 %v19620_v8, %v17682_v23  ;;  %v16351_v49 = vpop.f32.mrb[191].mxu0 }
0x2101   : > { %v16352_v2 = vadd.f32 %v17682_v23, %v16351_v49  ;;  %19655 = vmatprep.mubr.msk.f32.mxu1 %vm8360_vm5, %v16380_v33 }
0x2102   : > { %19656 = vmatmul.mubr.msk.f32.gmra.mrb[200].mxu1 %vm8360_vm5, %v16381_v47  ;;  %v16383_v45 = vmax.f32 %v16357_v38, 0.0 }
0x2103   : > { %v16382_v16 = vmax.f32 %v16352_v2, 0.0 }
0x2105   : > { %19658 = vmatprep.mubr.msk.f32.mxu1 %vm8360_vm5, %v16382_v16 }
0x2106   : > { %19659 = vmatmul.mubr.msk.f32.gmra.mrb[202].mxu1 %vm8360_vm5, %v16383_v45 }
0x2127   : > { %v19623_v42 = vpop.f32.mrb[192].mxu0 }
0x2128   : > { %v16367_v57 = vadd.f32 %v19623_v42, %v17682_v23  ;;  %v16361_v9 = vpop.f32.mrb[193].mxu0 }
0x2129   : > { %v16362_v56 = vadd.f32 %v17682_v23, %v16361_v9 }
0x212a   : > { %v16385_v58 = vmax.f32 %v16367_v57, 0.0 }
0x212b   : > { %v16384_v15 = vmax.f32 %v16362_v56, 0.0 }
0x212d   : > { %19661 = vmatprep.mubr.msk.f32.mxu1 %vm8360_vm5, %v16384_v15 }
0x212e   : > { %19662 = vmatmul.mubr.msk.f32.gmra.mrb[204].mxu1 %vm8360_vm5, %v16385_v58 }
0x21a8   : > { %v19642_v37 = vpop.f32.mrb[190].mxu1 }
0x21a9   : > { %v16523_v19 = vadd.f32 %v19642_v37, %v26433_v3  ;;  %v16517_v44 = vpop.f32.mrb[191].mxu1 }
0x21aa   : > { %v16518_v50 = vadd.f32 %v26433_v3, %v16517_v44 }
0x21ab   : > { %v26438_v5 = vadd.f32 %v16523_v19, %v26301_v21 }
0x21ac   : > { %v26441_v23 = vadd.f32 %v16518_v50, %v26298_v24 }
0x21ad   : > { %v16619_v51 = vsel %vm798_vm1, %v26438_v5, 0.0 }
0x21ae   : > { %16620 = vadd.xlane.f32.xlu0 %v16619_v51  ;;  %v16616_v10 = vsel %vm798_vm1, %v26441_v23, 0.0 }
0x21af   : > { %16617 = vadd.xlane.f32.xlu1 %v16616_v10 }
0x21b6   : > { %v19645_v59 = vpop.f32.mrb[192].mxu1 }
0x21b7   : > { %v16533_v63 = vadd.f32 %v19645_v59, %v26433_v3  ;;  %v16527_v54 = vpop.f32.mrb[193].mxu1 }
0x21b8   : > { %v16528_v25 = vadd.f32 %v26433_v3, %v16527_v54 }
0x21b9   : > { %v26450_v21 = vadd.f32 %v16533_v63, %v26319_v39 }
0x21ba   : > { %v26453_v24 = vadd.f32 %v16528_v25, %v26310_v22  ;;  %v19648_v26 = vpop.f32.mrb[194].mxu1 }
0x21bb   : > { %v16543_v35 = vadd.f32 %v19648_v26, %v26433_v3  ;;  %v16537_v7 = vpop.f32.mrb[195].mxu1  ;;  %v16625_v29 = vsel %vm798_vm1, %v26450_v21, 0.0 }
0x21bc   : > { %v16538_v31 = vadd.f32 %v26433_v3, %v16537_v7  ;;  %16626 = vadd.xlane.f32.xlu0 %v16625_v29  ;;  %v16622_v28 = vsel %vm798_vm1, %v26453_v24, 0.0 }
0x21bd   : > { %v26462_v43 = vadd.f32 %v16543_v35, %v26331_v62  ;;  %16623 = vadd.xlane.f32.xlu1 %v16622_v28 }
0x21be   : > { %v26465_v22 = vadd.f32 %v16538_v31, %v26323_v61 }
0x21bf   : > { %v16631_v39 = vsel %vm798_vm1, %v26462_v43, 0.0 }
0x21c0   : > { %16632 = vadd.xlane.f32.xlu0 %v16631_v39  ;;  %v16628_v20 = vsel %vm798_vm1, %v26465_v22, 0.0 }
0x21c1   : > { %16629 = vadd.xlane.f32.xlu1 %v16628_v20 }
0x21cd   : > { %v19651_v32 = vpop.f32.mrb[196].mxu1 }
0x21ce   : > { %v16553_v12 = vadd.f32 %v19651_v32, %v26433_v3  ;;  %v16547_v52 = vpop.f32.mrb[197].mxu1 }
0x21cf   : > { %v16548_v53 = vadd.f32 %v26433_v3, %v16547_v52 }
0x21d0   : > { %v26474_v62 = vadd.f32 %v16553_v12, %v26345_v13 }
0x21d1   : > { %v26477_v61 = vadd.f32 %v16548_v53, %v26341_v34  ;;  %v19654_v46 = vpop.f32.mrb[198].mxu1 }
0x21d2   : > { %v16563_v48 = vadd.f32 %v19654_v46, %v26433_v3  ;;  %v16557_v41 = vpop.f32.mrb[199].mxu1  ;;  %v16637_v11 = vsel %vm798_vm1, %v26474_v62, 0.0 }
0x21d3   : > { %v16558_v55 = vadd.f32 %v26433_v3, %v16557_v41  ;;  %16638 = vadd.xlane.f32.xlu0 %v16637_v11  ;;  %v16634_v1 = vsel %vm798_vm1, %v26477_v61, 0.0  ;;  %v16869_v11 = vld [vmem:[%s26757_s15 + $0x8] sm:$0xff] }
0x21d4   : > { %v26486_v36 = vadd.f32 %v16563_v48, %v26359_v27  ;;  %16635 = vadd.xlane.f32.xlu1 %v16634_v1 }
0x21d5   : > { %v26489_v34 = vadd.f32 %v16558_v55, %v26355_v14  ;;  %v19657_v13 = vpop.f32.mrb[200].mxu1 }
0x21d6   : > { %v16573_v18 = vadd.f32 %v19657_v13, %v26433_v3  ;;  %v16567_v0 = vpop.f32.mrb[201].mxu1  ;;  %v16643_v33 = vsel %vm798_vm1, %v26486_v36, 0.0 }
0x21d7   : > { %v16568_v8 = vadd.f32 %v26433_v3, %v16567_v0  ;;  %16644 = vadd.xlane.f32.xlu0 %v16643_v33  ;;  %v16640_v47 = vsel %vm798_vm1, %v26489_v34, 0.0 }
0x21d8   : > { %v26498_v27 = vadd.f32 %v16573_v18, %v26373_v6  ;;  %16641 = vadd.xlane.f32.xlu1 %v16640_v47  ;;  %v16871_v47 = vld [vmem:[%s26757_s15 + $0x18] sm:$0xff] }
0x21d9   : > { %v26501_v14 = vadd.f32 %v16568_v8, %v26369_v4  ;;  %v19660_v38 = vpop.f32.mrb[202].mxu1  ;;  %v16870_v8 = vld [vmem:[%s26757_s15 + $0x10] sm:$0xff] }
0x21da   : > { %v16583_v49 = vadd.f32 %v19660_v38, %v26433_v3  ;;  %v16577_v2 = vpop.f32.mrb[203].mxu1  ;;  %v16649_v16 = vsel %vm798_vm1, %v26498_v27, 0.0 }
0x21db   : > { %v16578_v45 = vadd.f32 %v26433_v3, %v16577_v2  ;;  %16650 = vadd.xlane.f32.xlu0 %v16649_v16  ;;  %v16646_v42 = vsel %vm798_vm1, %v26501_v14, 0.0  ;;  %v20424_v2 = vpack.c.bf16 %v16871_v47, %v16870_v8 }
0x21dc   : > { %v26510_v6 = vadd.f32 %v16583_v49, %v26385_v60  ;;  %16647 = vadd.xlane.f32.xlu1 %v16646_v42 }
0x21dd   : > { %v26513_v4 = vadd.f32 %v16578_v45, %v26382_v30 }
0x21de   : > { %v16655_v57 = vsel %vm798_vm1, %v26510_v6, 0.0 }
0x21df   : > { %16656 = vadd.xlane.f32.xlu0 %v16655_v57  ;;  %v16652_v9 = vsel %vm798_vm1, %v26513_v4, 0.0 }
0x21e0   : > { %16653 = vadd.xlane.f32.xlu1 %v16652_v9 }
0x2201   : > { %v19663_v56 = vpop.f32.mrb[204].mxu1 }
0x2202   : > { %v16593_v15 = vadd.f32 %v19663_v56, %v26433_v3  ;;  %v16587_v58 = vpop.f32.mrb[205].mxu1 }
0x2203   : > { %v16588_v37 = vadd.f32 %v26433_v3, %v16587_v58 }
0x2204   : > { %v26522_v60 = vadd.f32 %v16593_v15, %v26405_v40 }
0x2205   : > { %v26525_v30 = vadd.f32 %v16588_v37, %v26402_v17 }
0x2206   : > { %v16661_v19 = vsel %vm798_vm1, %v26522_v60, 0.0 }
0x2207   : > { %16662 = vadd.xlane.f32.xlu0 %v16661_v19  ;;  %v16658_v44 = vsel %vm798_vm1, %v26525_v30, 0.0 }
0x2208   : > { %16659 = vadd.xlane.f32.xlu1 %v16658_v44 }
0x223b   : > { %v16621_v50 = vpop.xlane.xlu0 %16620 }
0x223c   : > { %v16665_v51 = vmul.f32 0.03125, %v16621_v50  ;;  %v16618_v10 = vpop.xlane.xlu1 %16617 }
0x223d   : > { %v16664_v59 = vmul.f32 0.03125, %v16618_v10 }
0x223e   : > { %v26532_v3 = vsub.f32 %v26438_v5, %v16665_v51 }
0x223f   : > { %v26535_v40 = vsub.f32 %v26441_v23, %v16664_v59 }
0x2240   : > { %v16697_v17 = vmul.f32 %v26532_v3, %v26532_v3 }
0x2241   : > { %v16696_v63 = vmul.f32 %v26535_v40, %v26535_v40 }
0x2242   : > { %v16715_v54 = vsel %vm798_vm1, %v16697_v17, 0.0 }
0x2243   : > { %16716 = vadd.xlane.f32.xlu0 %v16715_v54  ;;  %v16712_v25 = vsel %vm798_vm1, %v16696_v63, 0.0 }
0x2244   : > { %16713 = vadd.xlane.f32.xlu1 %v16712_v25 }
0x2249   : > { %v16627_v26 = vpop.xlane.xlu0 %16626 }
0x224a   : > { %v16667_v35 = vmul.f32 0.03125, %v16627_v26  ;;  %v16624_v7 = vpop.xlane.xlu1 %16623 }
0x224b   : > { %v16666_v5 = vmul.f32 0.03125, %v16624_v7 }
0x224c   : > { %v26544_v29 = vsub.f32 %v26450_v21, %v16667_v35 }
0x224d   : > { %v26547_v23 = vsub.f32 %v26453_v24, %v16666_v5  ;;  %v16633_v31 = vpop.xlane.xlu0 %16632 }
0x224e   : > { %v16669_v28 = vmul.f32 0.03125, %v16633_v31  ;;  %v16630_v39 = vpop.xlane.xlu1 %16629  ;;  %v16699_v20 = vmul.f32 %v26544_v29, %v26544_v29 }
0x224f   : > { %v16668_v32 = vmul.f32 0.03125, %v16630_v39  ;;  %v16698_v12 = vmul.f32 %v26547_v23, %v26547_v23 }
0x2250   : > { %v26554_v52 = vsub.f32 %v26462_v43, %v16669_v28  ;;  %v16721_v53 = vsel %vm798_vm1, %v16699_v20, 0.0 }
0x2251   : > { %v26558_v21 = vsub.f32 %v26465_v22, %v16668_v32  ;;  %16722 = vadd.xlane.f32.xlu0 %v16721_v53  ;;  %v16718_v24 = vsel %vm798_vm1, %v16698_v12, 0.0  ;;  %v16868_v22 = vld [vmem:[%s26757_s15] sm:$0xff] }
0x2252   : > { %16719 = vadd.xlane.f32.xlu1 %v16718_v24  ;;  %v16701_v46 = vmul.f32 %v26554_v52, %v26554_v52  ;;  %v20420_v1 = vpack.c.bf16 %v16869_v11, %v16868_v22 }
0x2253   : > { %v16700_v48 = vmul.f32 %v26558_v21, %v26558_v21 }
0x2254   : > { %v16727_v41 = vsel %vm798_vm1, %v16701_v46, 0.0  ;;  %20421 = vmatprep.subr.bf16.mxu0 %v20420_v1 }
0x2255   : > { %16728 = vadd.xlane.f32.xlu0 %v16727_v41  ;;  %v16724_v43 = vsel %vm798_vm1, %v16700_v48, 0.0  ;;  %20423 = vmatpush3.bf16.msra.mxu0 %v20420_v1 }
0x2256   : > { %16725 = vadd.xlane.f32.xlu1 %v16724_v43  ;;  %20425 = vmatprep.subr.bf16.mxu0 %v20424_v2 }
0x2259   : > { %20427 = vmatpush3.bf16.msra.mxu0 %v20424_v2 }
0x2260   : > { %v16639_v55 = vpop.xlane.xlu0 %16638 }
0x2261   : > { %v16671_v13 = vmul.f32 0.03125, %v16639_v55  ;;  %v16636_v18 = vpop.xlane.xlu1 %16635 }
0x2262   : > { %v16670_v0 = vmul.f32 0.03125, %v16636_v18 }
0x2263   : > { %v26574_v33 = vsub.f32 %v26474_v62, %v16671_v13 }
0x2264   : > { %v26583_v38 = vsub.f32 %v26477_v61, %v16670_v0  ;;  %v16645_v49 = vpop.xlane.xlu0 %16644  ;;  %v26642_v0 = vld [vmem:[%s26755_s13 + $0x1] ss:$0 sm:$0xff] }
0x2265   : > { %v16673_v16 = vmul.f32 0.03125, %v16645_v49  ;;  %v16642_v45 = vpop.xlane.xlu1 %16641  ;;  %v16703_v62 = vmul.f32 %v26574_v33, %v26574_v33 }
0x2266   : > { %v16672_v42 = vmul.f32 0.03125, %v16642_v45  ;;  %v16702_v57 = vmul.f32 %v26583_v38, %v26583_v38 }
0x2267   : > { %v26590_v9 = vsub.f32 %v26486_v36, %v16673_v16  ;;  %v16733_v56 = vsel %vm798_vm1, %v16703_v62, 0.0 }
0x2268   : > { %v26594_v61 = vsub.f32 %v26489_v34, %v16672_v42  ;;  %16734 = vadd.xlane.f32.xlu0 %v16733_v56  ;;  %v16651_v15 = vpop.xlane.xlu0 %16650  ;;  %v16730_v58 = vsel %vm798_vm1, %v16702_v57, 0.0  ;;  %v26649_v42 = vld [vmem:[%s26756_s14 + $0x1] ss:$0 sm:$0xff] }
0x2269   : > { %v16675_v37 = vmul.f32 0.03125, %v16651_v15  ;;  %v16648_v19 = vpop.xlane.xlu1 %16647  ;;  %16731 = vadd.xlane.f32.xlu1 %v16730_v58  ;;  %v16705_v44 = vmul.f32 %v26590_v9, %v26590_v9 }
0x226a   : > { %v16674_v50 = vmul.f32 0.03125, %v16648_v19  ;;  %v16704_v36 = vmul.f32 %v26594_v61, %v26594_v61 }
0x226b   : > { %v26602_v51 = vsub.f32 %v26498_v27, %v16675_v37  ;;  %v16739_v34 = vsel %vm798_vm1, %v16705_v44, 0.0 }
0x226c   : > { %v26606_v10 = vsub.f32 %v26501_v14, %v16674_v50  ;;  %16740 = vadd.xlane.f32.xlu0 %v16739_v34  ;;  %v16657_v59 = vpop.xlane.xlu0 %16656  ;;  %v16736_v17 = vsel %vm798_vm1, %v16704_v36, 0.0 }
0x226d   : > { %v16677_v63 = vmul.f32 0.03125, %v16657_v59  ;;  %v16654_v54 = vpop.xlane.xlu1 %16653  ;;  %16737 = vadd.xlane.f32.xlu1 %v16736_v17  ;;  %v16707_v25 = vmul.f32 %v26602_v51, %v26602_v51 }
0x226e   : > { %v16676_v26 = vmul.f32 0.03125, %v16654_v54  ;;  %v16706_v27 = vmul.f32 %v26606_v10, %v26606_v10 }
0x226f   : > { %v26614_v35 = vsub.f32 %v26510_v6, %v16677_v63  ;;  %v16745_v14 = vsel %vm798_vm1, %v16707_v25, 0.0 }
0x2270   : > { %v26618_v7 = vsub.f32 %v26513_v4, %v16676_v26  ;;  %16746 = vadd.xlane.f32.xlu0 %v16745_v14  ;;  %v16742_v5 = vsel %vm798_vm1, %v16706_v27, 0.0 }
0x2271   : > { %16743 = vadd.xlane.f32.xlu1 %v16742_v5  ;;  %v16709_v31 = vmul.f32 %v26614_v35, %v26614_v35 }
0x2272   : > { %v16708_v28 = vmul.f32 %v26618_v7, %v26618_v7 }
0x2273   : > { %v16751_v39 = vsel %vm798_vm1, %v16709_v31, 0.0 }
0x2274   : > { %16752 = vadd.xlane.f32.xlu0 %v16751_v39  ;;  %v16748_v6 = vsel %vm798_vm1, %v16708_v28, 0.0 }
0x2275   : > { %16749 = vadd.xlane.f32.xlu1 %v16748_v6 }
0x2294   : > { %v16663_v20 = vpop.xlane.xlu0 %16662 }
0x2295   : > { %v16679_v32 = vmul.f32 0.03125, %v16663_v20  ;;  %v16660_v4 = vpop.xlane.xlu1 %16659 }
0x2296   : > { %v16678_v12 = vmul.f32 0.03125, %v16660_v4 }
0x2297   : > { %v26628_v53 = vsub.f32 %v26522_v60, %v16679_v32 }
0x2298   : > { %v26631_v24 = vsub.f32 %v26525_v30, %v16678_v12 }
0x2299   : > { %v16711_v46 = vmul.f32 %v26628_v53, %v26628_v53 }
0x229a   : > { %v16710_v48 = vmul.f32 %v26631_v24, %v26631_v24 }
0x229b   : > { %v16757_v41 = vsel %vm798_vm1, %v16711_v46, 0.0 }
0x229c   : > { %16758 = vadd.xlane.f32.xlu0 %v16757_v41  ;;  %v16754_v43 = vsel %vm798_vm1, %v16710_v48, 0.0 }
0x229d   : > { %16755 = vadd.xlane.f32.xlu1 %v16754_v43 }
0x22d0   : > { %v16717_v22 = vpop.xlane.xlu0 %16716 }
0x22d1   : > { %v16761_v11 = vmul.f32 0.03125, %v16717_v22  ;;  %v16714_v55 = vpop.xlane.xlu1 %16713 }
0x22d2   : > { %v16760_v60 = vmul.f32 0.03125, %v16714_v55 }
0x22d3   : > { %v16777_v1 = vadd.f32 1e-05, %v16761_v11 }
0x22d4   : > { %v16776_v13 = vadd.f32 1e-05, %v16760_v60 }
0x22d5   : > { %21698 = vrsqrt.f32 %v16777_v1 }
0x22d6   : > { %21700 = vrsqrt.f32 %v16776_v13 }
0x22de   : > { %v16723_v30 = vpop.xlane.xlu0 %16722 }
0x22df   : > { %v21699_v18 = vpop.eup %21698  ;;  %v16763_v8 = vmul.f32 0.03125, %v16723_v30  ;;  %v16720_v47 = vpop.xlane.xlu1 %16719 }
0x22e0   : > { %v21701_v49 = vpop.eup %21700  ;;  %v16809_v2 = vmul.f32 %v21699_v18, %v26532_v3  ;;  %v16762_v16 = vmul.f32 0.03125, %v16720_v47 }
0x22e1   : > { %v16779_v45 = vadd.f32 1e-05, %v16763_v8  ;;  %v16808_v62 = vmul.f32 %v21701_v49, %v26535_v40 }
0x22e2   : > { %v16831_v57 = vmul.f32 %v26642_v0, %v16809_v2  ;;  %v16778_v56 = vadd.f32 1e-05, %v16762_v16  ;;  %v16729_v15 = vpop.xlane.xlu0 %16728 }
0x22e3   : > { %21702 = vrsqrt.f32 %v16779_v45  ;;  %v16765_v58 = vmul.f32 0.03125, %v16729_v15  ;;  %v16726_v37 = vpop.xlane.xlu1 %16725  ;;  %v16830_v19 = vmul.f32 %v26642_v0, %v16808_v62 }
0x22e4   : > { %21704 = vrsqrt.f32 %v16778_v56  ;;  %v16764_v3 = vmul.f32 0.03125, %v16726_v37  ;;  %v16853_v40 = vadd.f32 %v26649_v42, %v16831_v57 }
0x22e5   : > { %v16781_v44 = vadd.f32 1e-05, %v16765_v58  ;;  %v16852_v50 = vadd.f32 %v26649_v42, %v16830_v19 }
0x22e6   : > { %v16780_v36 = vadd.f32 1e-05, %v16764_v3 }
0x22e7   : > { %21706 = vrsqrt.f32 %v16781_v44  ;;  %19672 = vmatprep.mubr.msk.f32.mxu0 %vm798_vm1, %v16852_v50 }
0x22e8   : > { %21708 = vrsqrt.f32 %v16780_v36  ;;  %19673 = vmatmul.mubr.msk.f32.vlgmr.msra.gmra.mrb[194].mxu0 %vm798_vm1, %v16853_v40 }
0x22ed   : > { %v21703_v34 = vpop.eup %21702 }
0x22ee   : > { %v21705_v59 = vpop.eup %21704  ;;  %v16811_v17 = vmul.f32 %v21703_v34, %v26544_v29 }
0x22ef   : > { %v16810_v63 = vmul.f32 %v21705_v59, %v26547_v23 }
0x22f0   : > { %v16833_v54 = vmul.f32 %v26642_v0, %v16811_v17 }
0x22f1   : > { %v21707_v25 = vpop.eup %21706  ;;  %v16832_v26 = vmul.f32 %v26642_v0, %v16810_v63 }
0x22f2   : > { %v21709_v27 = vpop.eup %21708  ;;  %v16813_v14 = vmul.f32 %v21707_v25, %v26554_v52  ;;  %v16855_v28 = vadd.f32 %v26649_v42, %v16833_v54 }
0x22f3   : > { %v16854_v5 = vadd.f32 %v26649_v42, %v16832_v26  ;;  %v16812_v31 = vmul.f32 %v21709_v27, %v26558_v21 }
0x22f4   : > { %v16835_v39 = vmul.f32 %v26642_v0, %v16813_v14 }
0x22f5   : > { %19675 = vmatprep.mubr.msk.f32.mxu0 %vm798_vm1, %v16854_v5  ;;  %v16735_v29 = vpop.xlane.xlu0 %16734  ;;  %v16834_v23 = vmul.f32 %v26642_v0, %v16812_v31 }
0x22f6   : > { %v16767_v6 = vmul.f32 0.03125, %v16735_v29  ;;  %v16732_v20 = vpop.xlane.xlu1 %16731  ;;  %19676 = vmatmul.mubr.msk.f32.gmra.mrb[196].mxu0 %vm798_vm1, %v16855_v28  ;;  %v16857_v12 = vadd.f32 %v26649_v42, %v16835_v39 }
0x22f7   : > { %v16766_v32 = vmul.f32 0.03125, %v16732_v20  ;;  %v16856_v52 = vadd.f32 %v26649_v42, %v16834_v23 }
0x22f8   : > { %v16783_v4 = vadd.f32 1e-05, %v16767_v6 }
0x22f9   : > { %v16782_v21 = vadd.f32 1e-05, %v16766_v32  ;;  %19678 = vmatprep.mubr.msk.f32.mxu0 %vm798_vm1, %v16856_v52  ;;  %v16741_v46 = vpop.xlane.xlu0 %16740 }
0x22fa   : > { %21710 = vrsqrt.f32 %v16783_v4  ;;  %v16769_v48 = vmul.f32 0.03125, %v16741_v46  ;;  %v16738_v41 = vpop.xlane.xlu1 %16737  ;;  %19679 = vmatmul.mubr.msk.f32.gmra.mrb[198].mxu0 %vm798_vm1, %v16857_v12 }
0x22fb   : > { %21712 = vrsqrt.f32 %v16782_v21  ;;  %v16768_v43 = vmul.f32 0.03125, %v16738_v41 }
0x22fc   : > { %v16785_v22 = vadd.f32 1e-05, %v16769_v48 }
0x22fd   : > { %v16784_v11 = vadd.f32 1e-05, %v16768_v43  ;;  %v16747_v55 = vpop.xlane.xlu0 %16746 }
0x22fe   : > { %21714 = vrsqrt.f32 %v16785_v22  ;;  %v16771_v60 = vmul.f32 0.03125, %v16747_v55  ;;  %v16744_v1 = vpop.xlane.xlu1 %16743  ;;  %v17729_v22 = vld [vmem:[%s26758_s16] ss:$0 sm:$0xff] }
0x22ff   : > { %21716 = vrsqrt.f32 %v16784_v11  ;;  %v16770_v13 = vmul.f32 0.03125, %v16744_v1 }
0x2300   : > { %v16787_v30 = vadd.f32 1e-05, %v16771_v60 }
0x2301   : > { %v16786_v18 = vadd.f32 1e-05, %v16770_v13  ;;  %v16753_v8 = vpop.xlane.xlu0 %16752 }
0x2302   : > { %21718 = vrsqrt.f32 %v16787_v30  ;;  %v16773_v47 = vmul.f32 0.03125, %v16753_v8  ;;  %v16750_v49 = vpop.xlane.xlu1 %16749 }
0x2303   : > { %21720 = vrsqrt.f32 %v16786_v18  ;;  %v16772_v2 = vmul.f32 0.03125, %v16750_v49 }
0x2304   : > { %v21711_v16 = vpop.eup %21710  ;;  %v16789_v45 = vadd.f32 1e-05, %v16773_v47 }
0x2305   : > { %v21713_v62 = vpop.eup %21712  ;;  %v16788_v57 = vadd.f32 1e-05, %v16772_v2  ;;  %v16815_v56 = vmul.f32 %v21711_v16, %v26574_v33 }
0x2306   : > { %21722 = vrsqrt.f32 %v16789_v45  ;;  %v16814_v15 = vmul.f32 %v21713_v62, %v26583_v38 }
0x2307   : > { %21724 = vrsqrt.f32 %v16788_v57  ;;  %v16837_v58 = vmul.f32 %v26642_v0, %v16815_v56 }
0x2308   : > { %v21715_v37 = vpop.eup %21714  ;;  %v16836_v19 = vmul.f32 %v26642_v0, %v16814_v15 }
0x2309   : > { %v21717_v3 = vpop.eup %21716  ;;  %v16817_v44 = vmul.f32 %v21715_v37, %v26590_v9  ;;  %v16859_v36 = vadd.f32 %v26649_v42, %v16837_v58 }
0x230a   : > { %v16858_v50 = vadd.f32 %v26649_v42, %v16836_v19  ;;  %v16816_v40 = vmul.f32 %v21717_v3, %v26594_v61 }
0x230b   : > { %v16839_v33 = vmul.f32 %v26642_v0, %v16817_v44 }
0x230c   : > { %v21719_v34 = vpop.eup %21718  ;;  %19681 = vmatprep.mubr.msk.f32.mxu0 %vm798_vm1, %v16858_v50  ;;  %v16838_v38 = vmul.f32 %v26642_v0, %v16816_v40 }
0x230d   : > { %v21721_v59 = vpop.eup %21720  ;;  %19682 = vmatmul.mubr.msk.f32.gmra.mrb[200].mxu0 %vm798_vm1, %v16859_v36  ;;  %v16819_v17 = vmul.f32 %v21719_v34, %v26602_v51  ;;  %v16861_v61 = vadd.f32 %v26649_v42, %v16839_v33 }
0x230e   : > { %v16860_v9 = vadd.f32 %v26649_v42, %v16838_v38  ;;  %v16818_v63 = vmul.f32 %v21721_v59, %v26606_v10 }
0x230f   : > { %v16841_v54 = vmul.f32 %v26642_v0, %v16819_v17 }
0x2310   : > { %v21723_v25 = vpop.eup %21722  ;;  %19684 = vmatprep.mubr.msk.f32.mxu0 %vm798_vm1, %v16860_v9  ;;  %v16840_v26 = vmul.f32 %v26642_v0, %v16818_v63 }
0x2311   : > { %v21725_v27 = vpop.eup %21724  ;;  %19685 = vmatmul.mubr.msk.f32.gmra.mrb[202].mxu0 %vm798_vm1, %v16861_v61  ;;  %v16821_v14 = vmul.f32 %v21723_v25, %v26614_v35  ;;  %v16863_v10 = vadd.f32 %v26649_v42, %v16841_v54 }
0x2312   : > { %v16862_v51 = vadd.f32 %v26649_v42, %v16840_v26  ;;  %v16820_v5 = vmul.f32 %v21725_v27, %v26618_v7 }
0x2313   : > { %v16843_v31 = vmul.f32 %v26642_v0, %v16821_v14 }
0x2314   : > { %19687 = vmatprep.mubr.msk.f32.mxu0 %vm798_vm1, %v16862_v51  ;;  %v16842_v28 = vmul.f32 %v26642_v0, %v16820_v5 }
0x2315   : > { %19688 = vmatmul.mubr.msk.f32.gmra.mrb[204].mxu0 %vm798_vm1, %v16863_v10  ;;  %v16865_v29 = vadd.f32 %v26649_v42, %v16843_v31 }
0x2316   : > { %v16864_v39 = vadd.f32 %v26649_v42, %v16842_v28 }
0x2318   : > { %19690 = vmatprep.mubr.msk.f32.mxu0 %vm798_vm1, %v16864_v39 }
0x2319   : > { %19691 = vmatmul.mubr.msk.f32.gmra.mrb[206].mxu0 %vm798_vm1, %v16865_v29 }
0x2329   : > { %v16759_v35 = vpop.xlane.xlu0 %16758 }
0x232a   : > { %v16775_v7 = vmul.f32 0.03125, %v16759_v35  ;;  %v16756_v23 = vpop.xlane.xlu1 %16755 }
0x232b   : > { %v16774_v6 = vmul.f32 0.03125, %v16756_v23 }
0x232c   : > { %v16791_v20 = vadd.f32 1e-05, %v16775_v7 }
0x232d   : > { %v16790_v32 = vadd.f32 1e-05, %v16774_v6 }
0x232e   : > { %21726 = vrsqrt.f32 %v16791_v20 }
0x232f   : > { %21728 = vrsqrt.f32 %v16790_v32 }
0x2338   : > { %v21727_v52 = vpop.eup %21726 }
0x2339   : > { %v21729_v4 = vpop.eup %21728  ;;  %v16823_v12 = vmul.f32 %v21727_v52, %v26628_v53 }
0x233a   : > { %v16822_v21 = vmul.f32 %v21729_v4, %v26631_v24 }
0x233b   : > { %v16845_v46 = vmul.f32 %v26642_v0, %v16823_v12 }
0x233c   : > { %v16844_v48 = vmul.f32 %v26642_v0, %v16822_v21 }
0x233d   : > { %v16867_v43 = vadd.f32 %v26649_v42, %v16845_v46 }
0x233e   : > { %v16866_v41 = vadd.f32 %v26649_v42, %v16844_v48 }
0x2340   : > { %19693 = vmatprep.mubr.msk.f32.mxu0 %vm798_vm1, %v16866_v41 }
0x2341   : > { %19694 = vmatmul.mubr.msk.f32.gmra.mrb[208].mxu0 %vm798_vm1, %v16867_v43 }
0x23bb   : > { %v19674_v53 = vpop.f32.mrb[194].mxu0 }
0x23bc   : > { %v16999_v24 = vadd.f32 %v19674_v53, %v17729_v22  ;;  %v16993_v0 = vpop.f32.mrb[195].mxu0 }
0x23bd   : > { %v16994_v42 = vadd.f32 %v17729_v22, %v16993_v0 }
0x23be   : > { %17073 = vst [vmem:[%s26721_s0 + $0x8] sm:$0xff] %v16999_v24 }
0x23bf   : > { %17072 = vst [vmem:[%s26721_s0] sm:$0xff] %v16994_v42 }
0x23c9   : > { %v19677_v11 = vpop.f32.mrb[196].mxu0 }
0x23ca   : > { %v17009_v55 = vadd.f32 %v19677_v11, %v17729_v22  ;;  %v17003_v60 = vpop.f32.mrb[197].mxu0 }
0x23cb   : > { %v17004_v1 = vadd.f32 %v17729_v22, %v17003_v60 }
0x23cc   : > { %17075 = vst [vmem:[%s26721_s0 + $0x18] sm:$0xff] %v17009_v55 }
0x23cd   : > { %17074 = vst [vmem:[%s26721_s0 + $0x10] sm:$0xff] %v17004_v1  ;;  %v19680_v13 = vpop.f32.mrb[198].mxu0 }
0x23ce   : > { %v17019_v30 = vadd.f32 %v19680_v13, %v17729_v22  ;;  %v17013_v18 = vpop.f32.mrb[199].mxu0 }
0x23cf   : > { %v17014_v8 = vadd.f32 %v17729_v22, %v17013_v18 }
0x23d0   : > { %17077 = vst [vmem:[%s26721_s0 + $0x28] sm:$0xff] %v17019_v30 }
0x23d1   : > { %17076 = vst [vmem:[%s26721_s0 + $0x20] sm:$0xff] %v17014_v8 }
0x23e0   : > { %v19683_v47 = vpop.f32.mrb[200].mxu0 }
0x23e1   : > { %v17029_v49 = vadd.f32 %v19683_v47, %v17729_v22  ;;  %v17023_v2 = vpop.f32.mrb[201].mxu0 }
0x23e2   : > { %v17024_v16 = vadd.f32 %v17729_v22, %v17023_v2 }
0x23e3   : > { %17079 = vst [vmem:[%s26721_s0 + $0x38] sm:$0xff] %v17029_v49 }
0x23e4   : > { %17078 = vst [vmem:[%s26721_s0 + $0x30] sm:$0xff] %v17024_v16  ;;  %v19686_v45 = vpop.f32.mrb[202].mxu0 }
0x23e5   : > { %v17039_v62 = vadd.f32 %v19686_v45, %v17729_v22  ;;  %v17033_v57 = vpop.f32.mrb[203].mxu0 }
0x23e6   : > { %v17034_v56 = vadd.f32 %v17729_v22, %v17033_v57 }
0x23e7   : > { %17081 = vst [vmem:[%s26721_s0 + $0x48] sm:$0xff] %v17039_v62 }
0x23e8   : > { %17080 = vst [vmem:[%s26721_s0 + $0x40] sm:$0xff] %v17034_v56  ;;  %v19689_v15 = vpop.f32.mrb[204].mxu0 }
0x23e9   : > { %v17049_v58 = vadd.f32 %v19689_v15, %v17729_v22  ;;  %v17043_v37 = vpop.f32.mrb[205].mxu0 }
0x23ea   : > { %v17044_v19 = vadd.f32 %v17729_v22, %v17043_v37 }
0x23eb   : > { %17083 = vst [vmem:[%s26721_s0 + $0x58] sm:$0xff] %v17049_v58 }
0x23ec   : > { %17082 = vst [vmem:[%s26721_s0 + $0x50] sm:$0xff] %v17044_v19  ;;  %v19692_v3 = vpop.f32.mrb[206].mxu0 }
0x23ed   : > { %v17059_v44 = vadd.f32 %v19692_v3, %v17729_v22  ;;  %v17053_v50 = vpop.f32.mrb[207].mxu0 }
0x23ee   : > { %v17054_v40 = vadd.f32 %v17729_v22, %v17053_v50 }
0x23ef   : > { %17085 = vst [vmem:[%s26721_s0 + $0x68] sm:$0xff] %v17059_v44 }
0x23f0   : > { %17084 = vst [vmem:[%s26721_s0 + $0x60] sm:$0xff] %v17054_v40 }
0x2414   : > { %v19695_v36 = vpop.f32.mrb[208].mxu0 }
0x2415   : > { %v17069_v33 = vadd.f32 %v19695_v36, %v17729_v22  ;;  %v17063_v34 = vpop.f32.mrb[209].mxu0 }
0x2416   : > { %v17064_v38 = vadd.f32 %v17729_v22, %v17063_v34 }
0x2417   : > { %17087 = vst [vmem:[%s26721_s0 + $0x78] sm:$0xff] %v17069_v33 }
0x2418   : > { %17086 = vst [vmem:[%s26721_s0 + $0x70] sm:$0xff] %v17064_v38 }
0x2419 PF: > { %s27_s24 = sadd.s32 1, %s21736_s24  }
0x241a   : > { %p24_p4 = scmp.ge.s32.totalorder %s27_s24, 4  }
0x241c   :  { %26 = sbr.rel (!%p24_p4) target bundleno = 3 (0x3), region = 130 }

</bundles_post_ra>
